<compile_context>
chip_gen: v5e
topology: v5e:2x2
jax: 0.10.0
libtpu: 0.0.40
codegen_flags: <defaults>
</compile_context>

<pallas_src>
import jax
import jax.numpy as jnp
from jax.experimental import pallas as pl
from jax.experimental.pallas import tpu as pltpu

# ------------------------- synthetic cfg (stand-in) --------------------------
NUM_VIEWS = 2
IMG_H, IMG_W = 16, 16
IN_CH = 3
FEAT_DIM = 128         # feature-encoder output channels (lane-dense hidden)
NERF_HIDDEN = 128      # NeRF MLP hidden width (lane-dense hidden)
N_SAMPLES = 16         # samples per ray
CHUNK = 128            # cfg.chunk (rays per rendering chunk; 128 -> lane-dense)
N_PIXELS = 256         # rays per batch element
TP = 256               # pixels per encoder tile (P=512 -> 2 parallel halves)
OBJ_SEG_IDX = 2
BCE_LOSS_WEIGHT = 0.1
OBJ_SEG_BCE_LOSS_WEIGHT = 3.0


# ------------------ kernel 1: feature encoder + object seg -------------------
# pix_ref: (16, TP) f32; rows 0..2 = rgb (rows 3..7 zero pad = matmul K-pad),
#          row 8 = binary gt object-seg label.
# w1_ref: (FEAT_DIM, 8) bf16, b1_ref: (FEAT_DIM, 1) f32
# segw_ref: (FEAT_DIM, 1) f32, segb_ref: (1, 1) f32
# loss_ref: (1, 1, 128) f32 accumulator (lane 0 = obj-seg BCE sum), revisited
#           across the inner "arbitrary" grid axis.
def encoder_seg_kernel(pix_ref, w1_ref, b1_ref, segw_ref, segb_ref, loss_ref):
    step = pl.program_id(1)

    px = pix_ref[...]                          # (16, TP)
    x = px[0:8, :].astype(jnp.bfloat16)        # (8, TP)  rgb + zero pad
    gt = px[8:9, :]                            # (1, TP)  gt object-seg label

    h = jnp.maximum(
        jnp.dot(w1_ref[...], x, preferred_element_type=jnp.float32) + b1_ref[...],
        0.0)                                   # (FEAT_DIM, TP) f32

    # 1-channel seg head on VPU + sublane reduce (skip the 87.5%-padded MXU
    # pass and the bf16 recast of h).
    logit = jnp.sum(h * segw_ref[...], axis=0, keepdims=True) + segb_ref[...]  # (1, TP)

    # BCE in logits form: relu(z) - z*gt + log(1 + exp(-|z|))  (2 EUP ops/elem,
    # no clip, numerically safe for large |z|).
    bce = (jnp.maximum(logit, 0.0) - logit * gt
           + jnp.log(1.0 + jnp.exp(-jnp.abs(logit))))
    bce_sum = jnp.sum(bce)

    li = jax.lax.broadcasted_iota(jnp.int32, (1, 128), 1)

    @pl.when(step == 0)
    def _():
        loss_ref[...] = jnp.zeros_like(loss_ref)

    loss_ref[0] += jnp.where(li == 0, bce_sum, 0.0)


def encode_segment_loss(pix_t, w1t, b1c, segw, segb, tp=TP):
    P = pix_t.shape[1]
    assert P % tp == 0, "pixel count must be a multiple of the tile size"
    n_tiles = P // tp
    par = 2 if n_tiles % 2 == 0 else 1         # >=2 parallel steps for v7x
    inner = n_tiles // par
    return pl.pallas_call(
        encoder_seg_kernel,
        out_shape=jax.ShapeDtypeStruct((par, 1, 128), jnp.float32),
        grid=(par, inner),
        in_specs=[pl.BlockSpec((16, tp), lambda p, c, _i=inner: (0, p * _i + c)),
                  pl.BlockSpec((FEAT_DIM, 8), lambda p, c: (0, 0)),
                  pl.BlockSpec((FEAT_DIM, 1), lambda p, c: (0, 0)),
                  pl.BlockSpec((FEAT_DIM, 1), lambda p, c: (0, 0)),
                  pl.BlockSpec((1, 1), lambda p, c: (0, 0))],
        out_specs=pl.BlockSpec((1, 1, 128), lambda p, c: (p, 0, 0)),
        compiler_params=pltpu.CompilerParams(
            dimension_semantics=("parallel", "arbitrary")),
    )(pix_t, w1t, b1c, segw, segb)


# --------- kernel 2: NeRF MLP + volume rendering + fused render losses -------
# geom_ref: (16, C) f32 : rows 0..2 = ray_o xyz, rows 8..10 = ray_d xyz
# aux_ref : (8, C)  f32 : rows = [near, far, r_gt, g_gt, b_gt, fg_mask, 0, 0]
# Weights pre-transposed/padded (channels on sublanes, rays/points on lanes):
#   w1_ref (H, 8) bf16, b1_ref (H, 1) f32
#   w2_ref (H, H) bf16, b2_ref (H, 1) f32
#   w3_ref (8, H) bf16 (rows [r,g,b,sigma,0..]), b3_ref (8, 1) f32
# loss_ref (1, 1, 128) f32 accumulator: lane 0 = sum of squared rgb error,
#   lane 1 = sum of mask BCE; revisited across the inner "arbitrary" grid axis.
def nerf_render_kernel(geom_ref, aux_ref, w1_ref, b1_ref, w2_ref, b2_ref,
                       w3_ref, b3_ref, loss_ref):
    step = pl.program_id(1)
    C = geom_ref.shape[1]                  # rays in this chunk (lanes)
    M = N_SAMPLES * C                      # all sample points, sample-major

    g = geom_ref[...]                      # (16, C)
    aux = aux_ref[...]                     # (8, C)
    ro = g[0:8, :].astype(jnp.bfloat16)    # (8, C)  origin xyz + zero pad
    rd = g[8:16, :].astype(jnp.bfloat16)   # (8, C)  direction xyz + zero pad
    near = aux[0:1, :]                     # (1, C)
    far = aux[1:2, :]                      # (1, C)
    rgb_gt = aux[2:5, :]                   # (3, C)
    fg = aux[5:6, :]                       # (1, C)

    # Layer 1 is affine in depth z:  h1(s) = relu(A + Bv * z_s)
    #   A  = W1 @ ro + b1,  Bv = W1 @ rd       (two K=8, N=C matmuls only)
    A = jnp.dot(w1_ref[...], ro, preferred_element_type=jnp.float32) + b1_ref[...]
    Bv = jnp.dot(w1_ref[...], rd, preferred_element_type=jnp.float32)   # (H, C)

    span = far - near                      # (1, C)
    pieces = []
    for s in range(N_SAMPLES):
        t = (s + 0.5) * (1.0 / N_SAMPLES)
        z_s = near + span * t              # (1, C) depth of sample s
        pieces.append(jnp.maximum(A + Bv * z_s, 0.0).astype(jnp.bfloat16))
    h1 = jnp.concatenate(pieces, axis=1)   # (H, M) bf16 (stored bf16 -> v5e vst)

    # Layers 2..3: one batched pass over all M points (bf16 ops, f32 accum).
    h2 = jnp.maximum(
        jnp.dot(w2_ref[...], h1, preferred_element_type=jnp.float32) + b2_ref[...],
        0.0).astype(jnp.bfloat16)                                       # (H, M)
    o = (jnp.dot(w3_ref[...], h2, preferred_element_type=jnp.float32)
         + b3_ref[...])                                                 # (8, M)

    rgb = jax.nn.sigmoid(o[0:3, :])        # (3, M)
    sigma = jnp.maximum(o[3:4, :], 0.0)    # (1, M)

    # Segment lengths: uniform (far-near)/N for all but the last sample (1e10).
    dz = span * (1.0 / N_SAMPLES)          # (1, C)
    dist = jnp.concatenate([dz] * (N_SAMPLES - 1)
                           + [jnp.full((1, C), 1e10, jnp.float32)], axis=1)
    e = jnp.exp(-sigma * dist)             # (1, M) per-sample exp(-sigma*dist)
    alpha = 1.0 - e                        # (1, M)

    # Transmittance = EXCLUSIVE cumulative product of e over samples.  All
    # factors are in [0,1] so there is no large-magnitude cancellation (fixes
    # the exp(sd - cumsum(sd)) bug with the 1e10 final segment).  The serial
    # chain is 15 single-vreg multiplies - negligible next to the MXU work.
    t_pieces = []
    T = jnp.ones((1, C), jnp.float32)
    for s in range(N_SAMPLES):
        t_pieces.append(T)
        if s + 1 < N_SAMPLES:
            T = T * e[:, s * C:(s + 1) * C]
    trans = jnp.concatenate(t_pieces, axis=1)   # (1, M)
    w = trans * alpha                            # (1, M) per-sample weights

    # Weighted reduction over samples via a log2 lane-fold tree (4 halvings);
    # w*rgb and w reduced separately (no sublane concat).
    def fold_samples(x):
        width = x.shape[1]
        while width > C:
            half = width // 2
            x = x[:, :half] + x[:, half:width]
            width = half
        return x

    rgb_map = fold_samples(w * rgb)              # (3, C)
    mask_map = fold_samples(w)                   # (1, C)

    # Fused rendering losses (partial sums for this chunk).
    sq_sum = jnp.sum((rgb_map - rgb_gt) ** 2)
    pm = jnp.clip(mask_map, 1e-7, 1.0 - 1e-7)    # mask_map is a probability
    bce_sum = jnp.sum(-(fg * jnp.log(pm) + (1.0 - fg) * jnp.log(1.0 - pm)))

    li = jax.lax.broadcasted_iota(jnp.int32, (1, 128), 1)
    part = jnp.where(li == 0, sq_sum, jnp.where(li == 1, bce_sum, 0.0))

    @pl.when(step == 0)
    def _():
        loss_ref[...] = jnp.zeros_like(loss_ref)

    loss_ref[0] += part


def volume_render_losses(geom, aux, w, chunk=CHUNK):
    R = geom.shape[1]
    assert R % chunk == 0, "ray count must be a multiple of the chunk size"
    n_chunks = R // chunk
    par = 2 if n_chunks % 2 == 0 else 1          # >=2 parallel steps for v7x
    inner = n_chunks // par
    return pl.pallas_call(
        nerf_render_kernel,
        out_shape=jax.ShapeDtypeStruct((par, 1, 128), jnp.float32),
        grid=(par, inner),
        in_specs=[pl.BlockSpec((16, chunk), lambda p, c, _i=inner: (0, p * _i + c)),
                  pl.BlockSpec((8, chunk), lambda p, c, _i=inner: (0, p * _i + c)),
                  pl.BlockSpec((NERF_HIDDEN, 8), lambda p, c: (0, 0)),
                  pl.BlockSpec((NERF_HIDDEN, 1), lambda p, c: (0, 0)),
                  pl.BlockSpec((NERF_HIDDEN, NERF_HIDDEN), lambda p, c: (0, 0)),
                  pl.BlockSpec((NERF_HIDDEN, 1), lambda p, c: (0, 0)),
                  pl.BlockSpec((8, NERF_HIDDEN), lambda p, c: (0, 0)),
                  pl.BlockSpec((8, 1), lambda p, c: (0, 0))],
        out_specs=pl.BlockSpec((1, 1, 128), lambda p, c: (p, 0, 0)),
        compiler_params=pltpu.CompilerParams(
            dimension_semantics=("parallel", "arbitrary")),
    )(geom, aux, w['nerf_w1t'], w['nerf_b1c'], w['nerf_w2t'], w['nerf_b2c'],
      w['nerf_w3t'], w['nerf_b3c'])


# ----------------------- one-time packing / parameter prep -------------------
def pack_params(params):
    """One-time weight transposes / zero-padding (hoisted out of the step)."""
    f32, bf16 = jnp.float32, jnp.bfloat16

    def pad_cols(w_t, total):
        r, k = w_t.shape
        return jnp.concatenate([w_t, jnp.zeros((r, total - k), w_t.dtype)], axis=1)

    def pad_rows(w_t, total):
        r, k = w_t.shape
        return jnp.concatenate([w_t, jnp.zeros((total - r, k), w_t.dtype)], axis=0)

    return dict(
        enc_w1t=pad_cols(params['enc_w1'].T, 8).astype(bf16),          # (FEAT, 8)
        enc_b1c=params['enc_b1'].reshape(FEAT_DIM, 1).astype(f32),
        seg_w=params['seg_w'].reshape(FEAT_DIM, 1).astype(f32),
        seg_b=params['seg_b'].reshape(1, 1).astype(f32),
        nerf_w1t=pad_cols(params['nerf_w1'].T, 8).astype(bf16),        # (H, 8)
        nerf_b1c=params['nerf_b1'].reshape(NERF_HIDDEN, 1).astype(f32),
        nerf_w2t=params['nerf_w2'].T.astype(bf16),                     # (H, H)
        nerf_b2c=params['nerf_b2'].reshape(NERF_HIDDEN, 1).astype(f32),
        nerf_w3t=pad_rows(params['nerf_w3'].T, 8).astype(bf16),        # (8, H)
        nerf_b3c=pad_rows(params['nerf_b3'].reshape(4, 1), 8).astype(f32),
    )


def pack_pixels(input_img, input_view_mask):
    """One-time packing of the encoder input: (16, P) lane-dense slab.
    nearest-resize with ratio 1 is an identity; gt mask = (mask == OBJ_SEG_IDX)."""
    N, V, H, W, C = input_img.shape
    P = N * V * H * W
    rgb_t = input_img.reshape(P, C).T.astype(jnp.float32)              # (3, P)
    gt = (input_view_mask.reshape(1, P) == OBJ_SEG_IDX).astype(jnp.float32)
    return jnp.concatenate([rgb_t, jnp.zeros((5, P), jnp.float32),
                            gt, jnp.zeros((7, P), jnp.float32)], axis=0)  # (16, P)


def pack_rays(rays):
    """One-time packing of the rays into lane-dense slabs; the dead batch axis
    (B=1) is folded into the ray axis."""
    B, Np, _ = rays['ray_o'].shape
    R = B * Np

    def tr(x, k):
        return x.reshape(R, k).T.astype(jnp.float32)                   # (k, R)

    z5 = jnp.zeros((5, R), jnp.float32)
    geom = jnp.concatenate([tr(rays['ray_o'], 3), z5,
                            tr(rays['ray_d'], 3), z5], axis=0)          # (16, R)
    aux = jnp.concatenate([tr(rays['near'], 1), tr(rays['far'], 1),
                           tr(rays['rgb'], 3), tr(rays['fg_mask'], 1),
                           jnp.zeros((2, R), jnp.float32)], axis=0)     # (8, R)
    return geom, aux


# ------------------------------ model forward --------------------------------
def model_forward(w, pix_t, geom, aux):
    """Train-mode forward pass on pre-packed inputs: returns the loss dict."""
    P = pix_t.shape[1]
    R = geom.shape[1]

    # ' Encoding image features ' + object segmentation head (fused BCE).
    enc_parts = encode_segment_loss(pix_t, w['enc_w1t'], w['enc_b1c'],
                                    w['seg_w'], w['seg_b'])

    # TODO(synk): feature-conditioned NeRF / handpose / handmesh encoders are
    # external modules; the synthetic NeRF here conditions on xyz only.
    # TODO(synk): dynamic boolean ray filtering (mask_at_box) has no
    # static-shape Pallas equivalent; all rays are assumed valid here.

    # ' volume rendering for each pixel ' (chunking == inner grid axis) with the
    # rendering losses fused and accumulated inside the kernel.
    nerf_parts = volume_render_losses(geom, aux, w)

    obj_seg_bce = jnp.sum(enc_parts[:, 0, 0]) / P
    img_mse = jnp.sum(nerf_parts[:, 0, 0]) / (R * 3)
    mask_bce = jnp.sum(nerf_parts[:, 0, 1]) / R

    # TODO(synk): semantic CE and coarse-NeRF losses skipped ('semantic' not in
    # nerf_mode and N_importance == 0 in this synthetic config).
    return {
        'img_mse': img_mse,
        'mask_bce': BCE_LOSS_WEIGHT * mask_bce,
        'obj_seg_bce': OBJ_SEG_BCE_LOSS_WEIGHT * obj_seg_bce,
    }


# ----------------------------------- main -------------------------------------
if __name__ == "__main__":
    key = jax.random.PRNGKey(0)
    k = jax.random.split(key, 12)

    params = {
        'enc_w1': 0.1 * jax.random.normal(k[0], (IN_CH, FEAT_DIM), jnp.float32),
        'enc_b1': jnp.zeros((1, FEAT_DIM), jnp.float32),
        'seg_w': 0.1 * jax.random.normal(k[1], (FEAT_DIM, 1), jnp.float32),
        'seg_b': jnp.zeros((1, 1), jnp.float32),
        'nerf_w1': 0.3 * jax.random.normal(k[2], (3, NERF_HIDDEN), jnp.float32),
        'nerf_b1': jnp.zeros((1, NERF_HIDDEN), jnp.float32),
        'nerf_w2': 0.1 * jax.random.normal(k[3], (NERF_HIDDEN, NERF_HIDDEN), jnp.float32),
        'nerf_b2': jnp.zeros((1, NERF_HIDDEN), jnp.float32),
        'nerf_w3': 0.1 * jax.random.normal(k[4], (NERF_HIDDEN, 4), jnp.float32),
        'nerf_b3': jnp.zeros((1, 4), jnp.float32),
    }

    input_img = jax.random.uniform(k[5], (1, NUM_VIEWS, IMG_H, IMG_W, 3), jnp.float32)
    input_view_mask = jax.random.randint(k[6], (1, NUM_VIEWS, IMG_H, IMG_W), 0, 3)

    ray_d = jax.random.normal(k[7], (1, N_PIXELS, 3), jnp.float32)
    ray_d = ray_d / jnp.linalg.norm(ray_d, axis=-1, keepdims=True)
    rays = {
        'ray_o': 0.1 * jax.random.normal(k[8], (1, N_PIXELS, 3), jnp.float32),
        'ray_d': ray_d,
        'near': jnp.full((1, N_PIXELS, 1), 0.5, jnp.float32),
        'far': jnp.full((1, N_PIXELS, 1), 2.0, jnp.float32),
        'rgb': jax.random.uniform(k[9], (1, N_PIXELS, 3), jnp.float32),
        'fg_mask': jax.random.bernoulli(k[10], 0.5, (1, N_PIXELS, 1)).astype(jnp.float32),
    }

    # one-time prep (kept out of the hot jitted step per the perf review)
    packed_w = pack_params(params)
    pix_t = pack_pixels(input_img, input_view_mask)
    geom, aux = pack_rays(rays)

    loss = jax.jit(model_forward)(packed_w, pix_t, geom, aux)
    loss = jax.block_until_ready(loss)
    assert all(bool(jnp.isfinite(v)) for v in loss.values())
    print("KERNEL_OK")
</pallas_src>

<mosaic_0001>
module attributes {stable_mosaic.version = 11 : i64} {
  func.func @nerf_render_kernel(%arg0: i32, %arg1: i32, %arg2: memref<16x128xf32, #tpu.memory_space<vmem>>, %arg3: memref<8x128xf32, #tpu.memory_space<vmem>>, %arg4: memref<128x8xbf16, #tpu.memory_space<vmem>>, %arg5: memref<128x1xf32, #tpu.memory_space<vmem>>, %arg6: memref<128x128xbf16, #tpu.memory_space<vmem>>, %arg7: memref<128x1xf32, #tpu.memory_space<vmem>>, %arg8: memref<8x128xbf16, #tpu.memory_space<vmem>>, %arg9: memref<8x1xf32, #tpu.memory_space<vmem>>, %arg10: memref<1x1x128xf32, #tpu.memory_space<vmem>>) attributes {dimension_semantics = [#tpu.dimension_semantics<parallel>, #tpu.dimension_semantics<arbitrary>], iteration_bounds = array<i64: 2, 1>, scalar_prefetch = 0 : i64, scratch_operands = 0 : i64, tpu.core_type = #tpu.core_type<tc>, window_params = [{transform_indices = @transform_0, window_bounds = array<i64: 16, 128>}, {transform_indices = @transform_1, window_bounds = array<i64: 8, 128>}, {pipeline_mode = #tpu.pipeline_mode<synchronous>, transform_indices = @transform_2, window_bounds = array<i64: 128, 8>}, {pipeline_mode = #tpu.pipeline_mode<synchronous>, transform_indices = @transform_3, window_bounds = array<i64: 128, 1>}, {pipeline_mode = #tpu.pipeline_mode<synchronous>, transform_indices = @transform_4, window_bounds = array<i64: 128, 128>}, {pipeline_mode = #tpu.pipeline_mode<synchronous>, transform_indices = @transform_5, window_bounds = array<i64: 128, 1>}, {pipeline_mode = #tpu.pipeline_mode<synchronous>, transform_indices = @transform_6, window_bounds = array<i64: 8, 128>}, {pipeline_mode = #tpu.pipeline_mode<synchronous>, transform_indices = @transform_7, window_bounds = array<i64: 8, 1>}, {transform_indices = @transform_8, window_bounds = array<i64: 1, 1, 128>}]} {
    %c0 = arith.constant 0 : index
    %c0_0 = arith.constant 0 : index
    %0 = vector.load %arg2[%c0, %c0_0] : memref<16x128xf32, #tpu.memory_space<vmem>>, vector<16x128xf32>
    %c0_1 = arith.constant 0 : index
    %c0_2 = arith.constant 0 : index
    %1 = vector.load %arg3[%c0_1, %c0_2] : memref<8x128xf32, #tpu.memory_space<vmem>>, vector<8x128xf32>
    %2 = vector.extract_strided_slice %0 {offsets = [0, 0], sizes = [8, 128], strides = [1, 1]} : vector<16x128xf32> to vector<8x128xf32>
    %3 = arith.truncf %2 : vector<8x128xf32> to vector<8x128xbf16>
    %4 = vector.extract_strided_slice %0 {offsets = [8, 0], sizes = [8, 128], strides = [1, 1]} : vector<16x128xf32> to vector<8x128xf32>
    %5 = arith.truncf %4 : vector<8x128xf32> to vector<8x128xbf16>
    %6 = vector.extract_strided_slice %1 {offsets = [0, 0], sizes = [1, 128], strides = [1, 1]} : vector<8x128xf32> to vector<1x128xf32>
    %7 = vector.extract_strided_slice %1 {offsets = [1, 0], sizes = [1, 128], strides = [1, 1]} : vector<8x128xf32> to vector<1x128xf32>
    %8 = vector.extract_strided_slice %1 {offsets = [2, 0], sizes = [3, 128], strides = [1, 1]} : vector<8x128xf32> to vector<3x128xf32>
    %9 = vector.extract_strided_slice %1 {offsets = [5, 0], sizes = [1, 128], strides = [1, 1]} : vector<8x128xf32> to vector<1x128xf32>
    %c0_3 = arith.constant 0 : index
    %c0_4 = arith.constant 0 : index
    %10 = vector.load %arg4[%c0_3, %c0_4] : memref<128x8xbf16, #tpu.memory_space<vmem>>, vector<128x8xbf16>
    %cst = arith.constant dense<0.000000e+00> : vector<128x128xf32>
    %11 = tpu.matmul %10, %3, %cst {dimension_numbers = #tpu.dot_dimension_numbers<[1], [0], [0], [1], [0, 0, 1, 1], [], []>} : vector<128x8xbf16>, vector<8x128xbf16>, vector<128x128xf32> -> vector<128x128xf32>
    %c0_5 = arith.constant 0 : index
    %c0_6 = arith.constant 0 : index
    %12 = vector.load %arg5[%c0_5, %c0_6] : memref<128x1xf32, #tpu.memory_space<vmem>>, vector<128x1xf32>
    %13 = vector.broadcast %12 : vector<128x1xf32> to vector<128x128xf32>
    %14 = arith.addf %11, %13 : vector<128x128xf32>
    %c0_7 = arith.constant 0 : index
    %c0_8 = arith.constant 0 : index
    %15 = vector.load %arg4[%c0_7, %c0_8] : memref<128x8xbf16, #tpu.memory_space<vmem>>, vector<128x8xbf16>
    %cst_9 = arith.constant dense<0.000000e+00> : vector<128x128xf32>
    %16 = tpu.matmul %15, %5, %cst_9 {dimension_numbers = #tpu.dot_dimension_numbers<[1], [0], [0], [1], [0, 0, 1, 1], [], []>} : vector<128x8xbf16>, vector<8x128xbf16>, vector<128x128xf32> -> vector<128x128xf32>
    %17 = arith.subf %7, %6 : vector<1x128xf32>
    %cst_10 = arith.constant 3.125000e-02 : f32
    %18 = vector.broadcast %cst_10 : f32 to vector<1x128xf32>
    %19 = arith.mulf %17, %18 : vector<1x128xf32>
    %20 = arith.addf %6, %19 : vector<1x128xf32>
    %21 = vector.broadcast %20 : vector<1x128xf32> to vector<128x128xf32>
    %22 = arith.mulf %16, %21 : vector<128x128xf32>
    %23 = arith.addf %14, %22 : vector<128x128xf32>
    %cst_11 = arith.constant 0.000000e+00 : f32
    %24 = vector.broadcast %cst_11 : f32 to vector<128x128xf32>
    %25 = arith.maximumf %23, %24 : vector<128x128xf32>
    %26 = arith.truncf %25 : vector<128x128xf32> to vector<128x128xbf16>
    %cst_12 = arith.constant 9.375000e-02 : f32
    %27 = vector.broadcast %cst_12 : f32 to vector<1x128xf32>
    %28 = arith.mulf %17, %27 : vector<1x128xf32>
    %29 = arith.addf %6, %28 : vector<1x128xf32>
    %30 = vector.broadcast %29 : vector<1x128xf32> to vector<128x128xf32>
    %31 = arith.mulf %16, %30 : vector<128x128xf32>
    %32 = arith.addf %14, %31 : vector<128x128xf32>
    %cst_13 = arith.constant 0.000000e+00 : f32
    %33 = vector.broadcast %cst_13 : f32 to vector<128x128xf32>
    %34 = arith.maximumf %32, %33 : vector<128x128xf32>
    %35 = arith.truncf %34 : vector<128x128xf32> to vector<128x128xbf16>
    %cst_14 = arith.constant 1.562500e-01 : f32
    %36 = vector.broadcast %cst_14 : f32 to vector<1x128xf32>
    %37 = arith.mulf %17, %36 : vector<1x128xf32>
    %38 = arith.addf %6, %37 : vector<1x128xf32>
    %39 = vector.broadcast %38 : vector<1x128xf32> to vector<128x128xf32>
    %40 = arith.mulf %16, %39 : vector<128x128xf32>
    %41 = arith.addf %14, %40 : vector<128x128xf32>
    %cst_15 = arith.constant 0.000000e+00 : f32
    %42 = vector.broadcast %cst_15 : f32 to vector<128x128xf32>
    %43 = arith.maximumf %41, %42 : vector<128x128xf32>
    %44 = arith.truncf %43 : vector<128x128xf32> to vector<128x128xbf16>
    %cst_16 = arith.constant 2.187500e-01 : f32
    %45 = vector.broadcast %cst_16 : f32 to vector<1x128xf32>
    %46 = arith.mulf %17, %45 : vector<1x128xf32>
    %47 = arith.addf %6, %46 : vector<1x128xf32>
    %48 = vector.broadcast %47 : vector<1x128xf32> to vector<128x128xf32>
    %49 = arith.mulf %16, %48 : vector<128x128xf32>
    %50 = arith.addf %14, %49 : vector<128x128xf32>
    %cst_17 = arith.constant 0.000000e+00 : f32
    %51 = vector.broadcast %cst_17 : f32 to vector<128x128xf32>
    %52 = arith.maximumf %50, %51 : vector<128x128xf32>
    %53 = arith.truncf %52 : vector<128x128xf32> to vector<128x128xbf16>
    %cst_18 = arith.constant 2.812500e-01 : f32
    %54 = vector.broadcast %cst_18 : f32 to vector<1x128xf32>
    %55 = arith.mulf %17, %54 : vector<1x128xf32>
    %56 = arith.addf %6, %55 : vector<1x128xf32>
    %57 = vector.broadcast %56 : vector<1x128xf32> to vector<128x128xf32>
    %58 = arith.mulf %16, %57 : vector<128x128xf32>
    %59 = arith.addf %14, %58 : vector<128x128xf32>
    %cst_19 = arith.constant 0.000000e+00 : f32
    %60 = vector.broadcast %cst_19 : f32 to vector<128x128xf32>
    %61 = arith.maximumf %59, %60 : vector<128x128xf32>
    %62 = arith.truncf %61 : vector<128x128xf32> to vector<128x128xbf16>
    %cst_20 = arith.constant 3.437500e-01 : f32
    %63 = vector.broadcast %cst_20 : f32 to vector<1x128xf32>
    %64 = arith.mulf %17, %63 : vector<1x128xf32>
    %65 = arith.addf %6, %64 : vector<1x128xf32>
    %66 = vector.broadcast %65 : vector<1x128xf32> to vector<128x128xf32>
    %67 = arith.mulf %16, %66 : vector<128x128xf32>
    %68 = arith.addf %14, %67 : vector<128x128xf32>
    %cst_21 = arith.constant 0.000000e+00 : f32
    %69 = vector.broadcast %cst_21 : f32 to vector<128x128xf32>
    %70 = arith.maximumf %68, %69 : vector<128x128xf32>
    %71 = arith.truncf %70 : vector<128x128xf32> to vector<128x128xbf16>
    %cst_22 = arith.constant 4.062500e-01 : f32
    %72 = vector.broadcast %cst_22 : f32 to vector<1x128xf32>
    %73 = arith.mulf %17, %72 : vector<1x128xf32>
    %74 = arith.addf %6, %73 : vector<1x128xf32>
    %75 = vector.broadcast %74 : vector<1x128xf32> to vector<128x128xf32>
    %76 = arith.mulf %16, %75 : vector<128x128xf32>
    %77 = arith.addf %14, %76 : vector<128x128xf32>
    %cst_23 = arith.constant 0.000000e+00 : f32
    %78 = vector.broadcast %cst_23 : f32 to vector<128x128xf32>
    %79 = arith.maximumf %77, %78 : vector<128x128xf32>
    %80 = arith.truncf %79 : vector<128x128xf32> to vector<128x128xbf16>
    %cst_24 = arith.constant 4.687500e-01 : f32
    %81 = vector.broadcast %cst_24 : f32 to vector<1x128xf32>
    %82 = arith.mulf %17, %81 : vector<1x128xf32>
    %83 = arith.addf %6, %82 : vector<1x128xf32>
    %84 = vector.broadcast %83 : vector<1x128xf32> to vector<128x128xf32>
    %85 = arith.mulf %16, %84 : vector<128x128xf32>
    %86 = arith.addf %14, %85 : vector<128x128xf32>
    %cst_25 = arith.constant 0.000000e+00 : f32
    %87 = vector.broadcast %cst_25 : f32 to vector<128x128xf32>
    %88 = arith.maximumf %86, %87 : vector<128x128xf32>
    %89 = arith.truncf %88 : vector<128x128xf32> to vector<128x128xbf16>
    %cst_26 = arith.constant 5.312500e-01 : f32
    %90 = vector.broadcast %cst_26 : f32 to vector<1x128xf32>
    %91 = arith.mulf %17, %90 : vector<1x128xf32>
    %92 = arith.addf %6, %91 : vector<1x128xf32>
    %93 = vector.broadcast %92 : vector<1x128xf32> to vector<128x128xf32>
    %94 = arith.mulf %16, %93 : vector<128x128xf32>
    %95 = arith.addf %14, %94 : vector<128x128xf32>
    %cst_27 = arith.constant 0.000000e+00 : f32
    %96 = vector.broadcast %cst_27 : f32 to vector<128x128xf32>
    %97 = arith.maximumf %95, %96 : vector<128x128xf32>
    %98 = arith.truncf %97 : vector<128x128xf32> to vector<128x128xbf16>
    %cst_28 = arith.constant 5.937500e-01 : f32
    %99 = vector.broadcast %cst_28 : f32 to vector<1x128xf32>
    %100 = arith.mulf %17, %99 : vector<1x128xf32>
    %101 = arith.addf %6, %100 : vector<1x128xf32>
    %102 = vector.broadcast %101 : vector<1x128xf32> to vector<128x128xf32>
    %103 = arith.mulf %16, %102 : vector<128x128xf32>
    %104 = arith.addf %14, %103 : vector<128x128xf32>
    %cst_29 = arith.constant 0.000000e+00 : f32
    %105 = vector.broadcast %cst_29 : f32 to vector<128x128xf32>
    %106 = arith.maximumf %104, %105 : vector<128x128xf32>
    %107 = arith.truncf %106 : vector<128x128xf32> to vector<128x128xbf16>
    %cst_30 = arith.constant 6.562500e-01 : f32
    %108 = vector.broadcast %cst_30 : f32 to vector<1x128xf32>
    %109 = arith.mulf %17, %108 : vector<1x128xf32>
    %110 = arith.addf %6, %109 : vector<1x128xf32>
    %111 = vector.broadcast %110 : vector<1x128xf32> to vector<128x128xf32>
    %112 = arith.mulf %16, %111 : vector<128x128xf32>
    %113 = arith.addf %14, %112 : vector<128x128xf32>
    %cst_31 = arith.constant 0.000000e+00 : f32
    %114 = vector.broadcast %cst_31 : f32 to vector<128x128xf32>
    %115 = arith.maximumf %113, %114 : vector<128x128xf32>
    %116 = arith.truncf %115 : vector<128x128xf32> to vector<128x128xbf16>
    %cst_32 = arith.constant 7.187500e-01 : f32
    %117 = vector.broadcast %cst_32 : f32 to vector<1x128xf32>
    %118 = arith.mulf %17, %117 : vector<1x128xf32>
    %119 = arith.addf %6, %118 : vector<1x128xf32>
    %120 = vector.broadcast %119 : vector<1x128xf32> to vector<128x128xf32>
    %121 = arith.mulf %16, %120 : vector<128x128xf32>
    %122 = arith.addf %14, %121 : vector<128x128xf32>
    %cst_33 = arith.constant 0.000000e+00 : f32
    %123 = vector.broadcast %cst_33 : f32 to vector<128x128xf32>
    %124 = arith.maximumf %122, %123 : vector<128x128xf32>
    %125 = arith.truncf %124 : vector<128x128xf32> to vector<128x128xbf16>
    %cst_34 = arith.constant 7.812500e-01 : f32
    %126 = vector.broadcast %cst_34 : f32 to vector<1x128xf32>
    %127 = arith.mulf %17, %126 : vector<1x128xf32>
    %128 = arith.addf %6, %127 : vector<1x128xf32>
    %129 = vector.broadcast %128 : vector<1x128xf32> to vector<128x128xf32>
    %130 = arith.mulf %16, %129 : vector<128x128xf32>
    %131 = arith.addf %14, %130 : vector<128x128xf32>
    %cst_35 = arith.constant 0.000000e+00 : f32
    %132 = vector.broadcast %cst_35 : f32 to vector<128x128xf32>
    %133 = arith.maximumf %131, %132 : vector<128x128xf32>
    %134 = arith.truncf %133 : vector<128x128xf32> to vector<128x128xbf16>
    %cst_36 = arith.constant 8.437500e-01 : f32
    %135 = vector.broadcast %cst_36 : f32 to vector<1x128xf32>
    %136 = arith.mulf %17, %135 : vector<1x128xf32>
    %137 = arith.addf %6, %136 : vector<1x128xf32>
    %138 = vector.broadcast %137 : vector<1x128xf32> to vector<128x128xf32>
    %139 = arith.mulf %16, %138 : vector<128x128xf32>
    %140 = arith.addf %14, %139 : vector<128x128xf32>
    %cst_37 = arith.constant 0.000000e+00 : f32
    %141 = vector.broadcast %cst_37 : f32 to vector<128x128xf32>
    %142 = arith.maximumf %140, %141 : vector<128x128xf32>
    %143 = arith.truncf %142 : vector<128x128xf32> to vector<128x128xbf16>
    %cst_38 = arith.constant 9.062500e-01 : f32
    %144 = vector.broadcast %cst_38 : f32 to vector<1x128xf32>
    %145 = arith.mulf %17, %144 : vector<1x128xf32>
    %146 = arith.addf %6, %145 : vector<1x128xf32>
    %147 = vector.broadcast %146 : vector<1x128xf32> to vector<128x128xf32>
    %148 = arith.mulf %16, %147 : vector<128x128xf32>
    %149 = arith.addf %14, %148 : vector<128x128xf32>
    %cst_39 = arith.constant 0.000000e+00 : f32
    %150 = vector.broadcast %cst_39 : f32 to vector<128x128xf32>
    %151 = arith.maximumf %149, %150 : vector<128x128xf32>
    %152 = arith.truncf %151 : vector<128x128xf32> to vector<128x128xbf16>
    %cst_40 = arith.constant 9.687500e-01 : f32
    %153 = vector.broadcast %cst_40 : f32 to vector<1x128xf32>
    %154 = arith.mulf %17, %153 : vector<1x128xf32>
    %155 = arith.addf %6, %154 : vector<1x128xf32>
    %156 = vector.broadcast %155 : vector<1x128xf32> to vector<128x128xf32>
    %157 = arith.mulf %16, %156 : vector<128x128xf32>
    %158 = arith.addf %14, %157 : vector<128x128xf32>
    %cst_41 = arith.constant 0.000000e+00 : f32
    %159 = vector.broadcast %cst_41 : f32 to vector<128x128xf32>
    %160 = arith.maximumf %158, %159 : vector<128x128xf32>
    %161 = arith.truncf %160 : vector<128x128xf32> to vector<128x128xbf16>
    %162 = tpu.concatenate %26, %35, %44, %53, %62, %71, %80, %89, %98, %107, %116, %125, %134, %143, %152, %161 in 1 : vector<128x128xbf16>, vector<128x128xbf16>, vector<128x128xbf16>, vector<128x128xbf16>, vector<128x128xbf16>, vector<128x128xbf16>, vector<128x128xbf16>, vector<128x128xbf16>, vector<128x128xbf16>, vector<128x128xbf16>, vector<128x128xbf16>, vector<128x128xbf16>, vector<128x128xbf16>, vector<128x128xbf16>, vector<128x128xbf16>, vector<128x128xbf16> -> vector<128x2048xbf16>
    %c0_42 = arith.constant 0 : index
    %c0_43 = arith.constant 0 : index
    %163 = vector.load %arg6[%c0_42, %c0_43] : memref<128x128xbf16, #tpu.memory_space<vmem>>, vector<128x128xbf16>
    %cst_44 = arith.constant dense<0.000000e+00> : vector<128x2048xf32>
    %164 = tpu.matmul %163, %162, %cst_44 {dimension_numbers = #tpu.dot_dimension_numbers<[1], [0], [0], [1], [0, 0, 1, 1], [], []>} : vector<128x128xbf16>, vector<128x2048xbf16>, vector<128x2048xf32> -> vector<128x2048xf32>
    %c0_45 = arith.constant 0 : index
    %c0_46 = arith.constant 0 : index
    %165 = vector.load %arg7[%c0_45, %c0_46] : memref<128x1xf32, #tpu.memory_space<vmem>>, vector<128x1xf32>
    %166 = vector.broadcast %165 : vector<128x1xf32> to vector<128x2048xf32>
    %167 = arith.addf %164, %166 : vector<128x2048xf32>
    %cst_47 = arith.constant 0.000000e+00 : f32
    %168 = vector.broadcast %cst_47 : f32 to vector<128x2048xf32>
    %169 = arith.maximumf %167, %168 : vector<128x2048xf32>
    %170 = arith.truncf %169 : vector<128x2048xf32> to vector<128x2048xbf16>
    %c0_48 = arith.constant 0 : index
    %c0_49 = arith.constant 0 : index
    %171 = vector.load %arg8[%c0_48, %c0_49] : memref<8x128xbf16, #tpu.memory_space<vmem>>, vector<8x128xbf16>
    %cst_50 = arith.constant dense<0.000000e+00> : vector<8x2048xf32>
    %172 = tpu.matmul %171, %170, %cst_50 {dimension_numbers = #tpu.dot_dimension_numbers<[1], [0], [0], [1], [0, 0, 1, 1], [], []>} : vector<8x128xbf16>, vector<128x2048xbf16>, vector<8x2048xf32> -> vector<8x2048xf32>
    %c0_51 = arith.constant 0 : index
    %c0_52 = arith.constant 0 : index
    %173 = vector.load %arg9[%c0_51, %c0_52] : memref<8x1xf32, #tpu.memory_space<vmem>>, vector<8x1xf32>
    %174 = vector.broadcast %173 : vector<8x1xf32> to vector<8x2048xf32>
    %175 = arith.addf %172, %174 : vector<8x2048xf32>
    %176 = vector.extract_strided_slice %175 {offsets = [0, 0], sizes = [3, 2048], strides = [1, 1]} : vector<8x2048xf32> to vector<3x2048xf32>
    %177 = arith.negf %176 : vector<3x2048xf32>
    %178 = math.exp %177 : vector<3x2048xf32>
    %cst_53 = arith.constant 1.000000e+00 : f32
    %179 = vector.broadcast %cst_53 : f32 to vector<3x2048xf32>
    %180 = arith.addf %179, %178 : vector<3x2048xf32>
    %181 = arith.divf %179, %180 : vector<3x2048xf32>
    %182 = vector.extract_strided_slice %175 {offsets = [3, 0], sizes = [1, 2048], strides = [1, 1]} : vector<8x2048xf32> to vector<1x2048xf32>
    %cst_54 = arith.constant 0.000000e+00 : f32
    %183 = vector.broadcast %cst_54 : f32 to vector<1x2048xf32>
    %184 = arith.maximumf %182, %183 : vector<1x2048xf32>
    %cst_55 = arith.constant 6.250000e-02 : f32
    %185 = vector.broadcast %cst_55 : f32 to vector<1x128xf32>
    %186 = arith.mulf %17, %185 : vector<1x128xf32>
    %cst_56 = arith.constant 1.000000e+10 : f32
    %187 = vector.broadcast %cst_56 : f32 to vector<1x128xf32>
    %188 = tpu.concatenate %186, %186, %186, %186, %186, %186, %186, %186, %186, %186, %186, %186, %186, %186, %186, %187 in 1 : vector<1x128xf32>, vector<1x128xf32>, vector<1x128xf32>, vector<1x128xf32>, vector<1x128xf32>, vector<1x128xf32>, vector<1x128xf32>, vector<1x128xf32>, vector<1x128xf32>, vector<1x128xf32>, vector<1x128xf32>, vector<1x128xf32>, vector<1x128xf32>, vector<1x128xf32>, vector<1x128xf32>, vector<1x128xf32> -> vector<1x2048xf32>
    %cst_57 = arith.constant 0.000000e+00 : f32
    %189 = vector.broadcast %cst_57 : f32 to vector<1x2048xf32>
    %190 = arith.subf %189, %184 : vector<1x2048xf32>
    %191 = arith.mulf %190, %188 : vector<1x2048xf32>
    %192 = math.exp %191 : vector<1x2048xf32>
    %cst_58 = arith.constant 1.000000e+00 : f32
    %193 = vector.broadcast %cst_58 : f32 to vector<1x2048xf32>
    %194 = arith.subf %193, %192 : vector<1x2048xf32>
    %cst_59 = arith.constant 1.000000e+00 : f32
    %195 = vector.broadcast %cst_59 : f32 to vector<1x128xf32>
    %196 = vector.extract_strided_slice %192 {offsets = [0, 0], sizes = [1, 128], strides = [1, 1]} : vector<1x2048xf32> to vector<1x128xf32>
    %197 = arith.mulf %195, %196 : vector<1x128xf32>
    %198 = vector.extract_strided_slice %192 {offsets = [0, 128], sizes = [1, 128], strides = [1, 1]} : vector<1x2048xf32> to vector<1x128xf32>
    %199 = arith.mulf %197, %198 : vector<1x128xf32>
    %200 = vector.extract_strided_slice %192 {offsets = [0, 256], sizes = [1, 128], strides = [1, 1]} : vector<1x2048xf32> to vector<1x128xf32>
    %201 = arith.mulf %199, %200 : vector<1x128xf32>
    %202 = vector.extract_strided_slice %192 {offsets = [0, 384], sizes = [1, 128], strides = [1, 1]} : vector<1x2048xf32> to vector<1x128xf32>
    %203 = arith.mulf %201, %202 : vector<1x128xf32>
    %204 = vector.extract_strided_slice %192 {offsets = [0, 512], sizes = [1, 128], strides = [1, 1]} : vector<1x2048xf32> to vector<1x128xf32>
    %205 = arith.mulf %203, %204 : vector<1x128xf32>
    %206 = vector.extract_strided_slice %192 {offsets = [0, 640], sizes = [1, 128], strides = [1, 1]} : vector<1x2048xf32> to vector<1x128xf32>
    %207 = arith.mulf %205, %206 : vector<1x128xf32>
    %208 = vector.extract_strided_slice %192 {offsets = [0, 768], sizes = [1, 128], strides = [1, 1]} : vector<1x2048xf32> to vector<1x128xf32>
    %209 = arith.mulf %207, %208 : vector<1x128xf32>
    %210 = vector.extract_strided_slice %192 {offsets = [0, 896], sizes = [1, 128], strides = [1, 1]} : vector<1x2048xf32> to vector<1x128xf32>
    %211 = arith.mulf %209, %210 : vector<1x128xf32>
    %212 = vector.extract_strided_slice %192 {offsets = [0, 1024], sizes = [1, 128], strides = [1, 1]} : vector<1x2048xf32> to vector<1x128xf32>
    %213 = arith.mulf %211, %212 : vector<1x128xf32>
    %214 = vector.extract_strided_slice %192 {offsets = [0, 1152], sizes = [1, 128], strides = [1, 1]} : vector<1x2048xf32> to vector<1x128xf32>
    %215 = arith.mulf %213, %214 : vector<1x128xf32>
    %216 = vector.extract_strided_slice %192 {offsets = [0, 1280], sizes = [1, 128], strides = [1, 1]} : vector<1x2048xf32> to vector<1x128xf32>
    %217 = arith.mulf %215, %216 : vector<1x128xf32>
    %218 = vector.extract_strided_slice %192 {offsets = [0, 1408], sizes = [1, 128], strides = [1, 1]} : vector<1x2048xf32> to vector<1x128xf32>
    %219 = arith.mulf %217, %218 : vector<1x128xf32>
    %220 = vector.extract_strided_slice %192 {offsets = [0, 1536], sizes = [1, 128], strides = [1, 1]} : vector<1x2048xf32> to vector<1x128xf32>
    %221 = arith.mulf %219, %220 : vector<1x128xf32>
    %222 = vector.extract_strided_slice %192 {offsets = [0, 1664], sizes = [1, 128], strides = [1, 1]} : vector<1x2048xf32> to vector<1x128xf32>
    %223 = arith.mulf %221, %222 : vector<1x128xf32>
    %224 = vector.extract_strided_slice %192 {offsets = [0, 1792], sizes = [1, 128], strides = [1, 1]} : vector<1x2048xf32> to vector<1x128xf32>
    %225 = arith.mulf %223, %224 : vector<1x128xf32>
    %226 = tpu.concatenate %195, %197, %199, %201, %203, %205, %207, %209, %211, %213, %215, %217, %219, %221, %223, %225 in 1 : vector<1x128xf32>, vector<1x128xf32>, vector<1x128xf32>, vector<1x128xf32>, vector<1x128xf32>, vector<1x128xf32>, vector<1x128xf32>, vector<1x128xf32>, vector<1x128xf32>, vector<1x128xf32>, vector<1x128xf32>, vector<1x128xf32>, vector<1x128xf32>, vector<1x128xf32>, vector<1x128xf32>, vector<1x128xf32> -> vector<1x2048xf32>
    %227 = arith.mulf %226, %194 : vector<1x2048xf32>
    %228 = vector.broadcast %227 : vector<1x2048xf32> to vector<3x2048xf32>
    %229 = arith.mulf %228, %181 : vector<3x2048xf32>
    %230 = vector.extract_strided_slice %229 {offsets = [0, 0], sizes = [3, 1024], strides = [1, 1]} : vector<3x2048xf32> to vector<3x1024xf32>
    %231 = vector.extract_strided_slice %229 {offsets = [0, 1024], sizes = [3, 1024], strides = [1, 1]} : vector<3x2048xf32> to vector<3x1024xf32>
    %232 = arith.addf %230, %231 : vector<3x1024xf32>
    %233 = vector.extract_strided_slice %232 {offsets = [0, 0], sizes = [3, 512], strides = [1, 1]} : vector<3x1024xf32> to vector<3x512xf32>
    %234 = vector.extract_strided_slice %232 {offsets = [0, 512], sizes = [3, 512], strides = [1, 1]} : vector<3x1024xf32> to vector<3x512xf32>
    %235 = arith.addf %233, %234 : vector<3x512xf32>
    %236 = vector.extract_strided_slice %235 {offsets = [0, 0], sizes = [3, 256], strides = [1, 1]} : vector<3x512xf32> to vector<3x256xf32>
    %237 = vector.extract_strided_slice %235 {offsets = [0, 256], sizes = [3, 256], strides = [1, 1]} : vector<3x512xf32> to vector<3x256xf32>
    %238 = arith.addf %236, %237 : vector<3x256xf32>
    %239 = vector.extract_strided_slice %238 {offsets = [0, 0], sizes = [3, 128], strides = [1, 1]} : vector<3x256xf32> to vector<3x128xf32>
    %240 = vector.extract_strided_slice %238 {offsets = [0, 128], sizes = [3, 128], strides = [1, 1]} : vector<3x256xf32> to vector<3x128xf32>
    %241 = arith.addf %239, %240 : vector<3x128xf32>
    %242 = vector.extract_strided_slice %227 {offsets = [0, 0], sizes = [1, 1024], strides = [1, 1]} : vector<1x2048xf32> to vector<1x1024xf32>
    %243 = vector.extract_strided_slice %227 {offsets = [0, 1024], sizes = [1, 1024], strides = [1, 1]} : vector<1x2048xf32> to vector<1x1024xf32>
    %244 = arith.addf %242, %243 : vector<1x1024xf32>
    %245 = vector.extract_strided_slice %244 {offsets = [0, 0], sizes = [1, 512], strides = [1, 1]} : vector<1x1024xf32> to vector<1x512xf32>
    %246 = vector.extract_strided_slice %244 {offsets = [0, 512], sizes = [1, 512], strides = [1, 1]} : vector<1x1024xf32> to vector<1x512xf32>
    %247 = arith.addf %245, %246 : vector<1x512xf32>
    %248 = vector.extract_strided_slice %247 {offsets = [0, 0], sizes = [1, 256], strides = [1, 1]} : vector<1x512xf32> to vector<1x256xf32>
    %249 = vector.extract_strided_slice %247 {offsets = [0, 256], sizes = [1, 256], strides = [1, 1]} : vector<1x512xf32> to vector<1x256xf32>
    %250 = arith.addf %248, %249 : vector<1x256xf32>
    %251 = vector.extract_strided_slice %250 {offsets = [0, 0], sizes = [1, 128], strides = [1, 1]} : vector<1x256xf32> to vector<1x128xf32>
    %252 = vector.extract_strided_slice %250 {offsets = [0, 128], sizes = [1, 128], strides = [1, 1]} : vector<1x256xf32> to vector<1x128xf32>
    %253 = arith.addf %251, %252 : vector<1x128xf32>
    %254 = arith.subf %241, %8 : vector<3x128xf32>
    %255 = arith.mulf %254, %254 : vector<3x128xf32>
    %256 = vector.shape_cast %255 : vector<3x128xf32> to vector<1x3x128xf32>
    %cst_60 = arith.constant dense<0.000000e+00> : vector<1xf32>
    %257 = vector.multi_reduction <add>, %256, %cst_60 [1, 2] : vector<1x3x128xf32> to vector<1xf32>
    %258 = vector.shape_cast %257 : vector<1xf32> to vector<1x1x1xf32>
    %259 = vector.extract %258[0, 0, 0] : f32 from vector<1x1x1xf32>
    %cst_61 = arith.constant 1.000000e-07 : f32
    %cst_62 = arith.constant 0.99999988 : f32
    %260 = vector.broadcast %cst_61 : f32 to vector<1x128xf32>
    %261 = arith.maximumf %260, %253 : vector<1x128xf32>
    %262 = vector.broadcast %cst_62 : f32 to vector<1x128xf32>
    %263 = arith.minimumf %262, %261 : vector<1x128xf32>
    %264 = math.log %263 : vector<1x128xf32>
    %265 = arith.mulf %9, %264 : vector<1x128xf32>
    %cst_63 = arith.constant 1.000000e+00 : f32
    %266 = vector.broadcast %cst_63 : f32 to vector<1x128xf32>
    %267 = arith.subf %266, %9 : vector<1x128xf32>
    %cst_64 = arith.constant 1.000000e+00 : f32
    %268 = vector.broadcast %cst_64 : f32 to vector<1x128xf32>
    %269 = arith.subf %268, %263 : vector<1x128xf32>
    %270 = math.log %269 : vector<1x128xf32>
    %271 = arith.mulf %267, %270 : vector<1x128xf32>
    %272 = arith.addf %265, %271 : vector<1x128xf32>
    %cst_65 = arith.constant 0.000000e+00 : f32
    %273 = vector.broadcast %cst_65 : f32 to vector<1x128xf32>
    %274 = arith.subf %273, %272 : vector<1x128xf32>
    %275 = vector.shape_cast %274 : vector<1x128xf32> to vector<1x1x128xf32>
    %cst_66 = arith.constant dense<0.000000e+00> : vector<1xf32>
    %276 = vector.multi_reduction <add>, %275, %cst_66 [1, 2] : vector<1x1x128xf32> to vector<1xf32>
    %277 = vector.shape_cast %276 : vector<1xf32> to vector<1x1x1xf32>
    %278 = vector.extract %277[0, 0, 0] : f32 from vector<1x1x1xf32>
    %279 = tpu.iota {dimensions = array<i32: 1>} : vector<1x128xi32>
    %c0_i32 = arith.constant 0 : i32
    %280 = vector.broadcast %c0_i32 : i32 to vector<1x128xi32>
    %281 = arith.cmpi eq, %279, %280 : vector<1x128xi32>
    %c1_i32 = arith.constant 1 : i32
    %282 = vector.broadcast %c1_i32 : i32 to vector<1x128xi32>
    %283 = arith.cmpi eq, %279, %282 : vector<1x128xi32>
    %cst_67 = arith.constant 0.000000e+00 : f32
    %284 = vector.broadcast %278 : f32 to vector<1x128xf32>
    %285 = vector.broadcast %cst_67 : f32 to vector<1x128xf32>
    %286 = arith.select %283, %284, %285 : vector<1x128xi1>, vector<1x128xf32>
    %287 = vector.broadcast %259 : f32 to vector<1x128xf32>
    %288 = arith.select %281, %287, %286 : vector<1x128xi1>, vector<1x128xf32>
    %c0_i32_68 = arith.constant 0 : i32
    %289 = arith.cmpi eq, %arg1, %c0_i32_68 : i32
    %290 = arith.extui %289 : i1 to i32
    %c0_i32_69 = arith.constant 0 : i32
    %291 = arith.cmpi ne, %290, %c0_i32_69 : i32
    scf.if %291 {
      %cst_76 = arith.constant 0.000000e+00 : f32
      %298 = vector.broadcast %cst_76 : f32 to vector<1x1x128xf32>
      %c0_77 = arith.constant 0 : index
      %c0_78 = arith.constant 0 : index
      %c0_79 = arith.constant 0 : index
      %299 = vector.load %arg10[%c0_77, %c0_78, %c0_79] : memref<1x1x128xf32, #tpu.memory_space<vmem>>, vector<1x1x128xf32>
      tpu.vector_store %arg10[%c0_77, %c0_78, %c0_79], %298 {strides = array<i32>} : memref<1x1x128xf32, #tpu.memory_space<vmem>>, vector<1x1x128xf32>,
    } else {
    }
    %c0_70 = arith.constant 0 : index
    %c0_71 = arith.constant 0 : index
    %c0_72 = arith.constant 0 : index
    %292 = vector.load %arg10[%c0_70, %c0_71, %c0_72] : memref<1x1x128xf32, #tpu.memory_space<vmem>>, vector<1x1x128xf32>
    %293 = vector.shape_cast %292 : vector<1x1x128xf32> to vector<1x128xf32>
    %294 = arith.addf %293, %288 : vector<1x128xf32>
    %c0_73 = arith.constant 0 : index
    %c0_74 = arith.constant 0 : index
    %c0_75 = arith.constant 0 : index
    %295 = vector.load %arg10[%c0_73, %c0_74, %c0_75] : memref<1x1x128xf32, #tpu.memory_space<vmem>>, vector<1x1x128xf32>
    %296 = vector.shape_cast %295 : vector<1x1x128xf32> to vector<1x128xf32>
    %297 = vector.shape_cast %294 : vector<1x128xf32> to vector<1x1x128xf32>
    tpu.vector_store %arg10[%c0_73, %c0_74, %c0_75], %297 {strides = array<i32>} : memref<1x1x128xf32, #tpu.memory_space<vmem>>, vector<1x1x128xf32>,
    return
  }
  func.func @transform_0(%arg0: i32, %arg1: i32) -> (i32, i32) {
    %c1_i32 = arith.constant 1 : i32
    %0 = arith.muli %arg0, %c1_i32 : i32
    %1 = arith.addi %0, %arg1 : i32
    %c0_i32 = arith.constant 0 : i32
    %c0_i32_0 = arith.constant 0 : i32
    return %c0_i32, %1 : i32, i32
  }
  func.func @transform_1(%arg0: i32, %arg1: i32) -> (i32, i32) {
    %c1_i32 = arith.constant 1 : i32
    %0 = arith.muli %arg0, %c1_i32 : i32
    %1 = arith.addi %0, %arg1 : i32
    %c0_i32 = arith.constant 0 : i32
    %c0_i32_0 = arith.constant 0 : i32
    return %c0_i32, %1 : i32, i32
  }
  func.func @transform_2(%arg0: i32, %arg1: i32) -> (i32, i32) {
    %c0_i32 = arith.constant 0 : i32
    %c0_i32_0 = arith.constant 0 : i32
    %c0_i32_1 = arith.constant 0 : i32
    return %c0_i32, %c0_i32_0 : i32, i32
  }
  func.func @transform_3(%arg0: i32, %arg1: i32) -> (i32, i32) {
    %c0_i32 = arith.constant 0 : i32
    %c0_i32_0 = arith.constant 0 : i32
    %c0_i32_1 = arith.constant 0 : i32
    return %c0_i32, %c0_i32_0 : i32, i32
  }
  func.func @transform_4(%arg0: i32, %arg1: i32) -> (i32, i32) {
    %c0_i32 = arith.constant 0 : i32
    %c0_i32_0 = arith.constant 0 : i32
    %c0_i32_1 = arith.constant 0 : i32
    return %c0_i32, %c0_i32_0 : i32, i32
  }
  func.func @transform_5(%arg0: i32, %arg1: i32) -> (i32, i32) {
    %c0_i32 = arith.constant 0 : i32
    %c0_i32_0 = arith.constant 0 : i32
    %c0_i32_1 = arith.constant 0 : i32
    return %c0_i32, %c0_i32_0 : i32, i32
  }
  func.func @transform_6(%arg0: i32, %arg1: i32) -> (i32, i32) {
    %c0_i32 = arith.constant 0 : i32
    %c0_i32_0 = arith.constant 0 : i32
    %c0_i32_1 = arith.constant 0 : i32
    return %c0_i32, %c0_i32_0 : i32, i32
  }
  func.func @transform_7(%arg0: i32, %arg1: i32) -> (i32, i32) {
    %c0_i32 = arith.constant 0 : i32
    %c0_i32_0 = arith.constant 0 : i32
    %c0_i32_1 = arith.constant 0 : i32
    return %c0_i32, %c0_i32_0 : i32, i32
  }
  func.func @transform_8(%arg0: i32, %arg1: i32) -> (i32, i32, i32) {
    %c0_i32 = arith.constant 0 : i32
    %c0_i32_0 = arith.constant 0 : i32
    %c0_i32_1 = arith.constant 0 : i32
    return %arg0, %c0_i32, %c0_i32_0 : i32, i32, i32
  }
}

module attributes {stable_mosaic.version = 11 : i64} {
  func.func @encoder_seg_kernel(%arg0: i32, %arg1: i32, %arg2: memref<16x256xf32, #tpu.memory_space<vmem>>, %arg3: memref<128x8xbf16, #tpu.memory_space<vmem>>, %arg4: memref<128x1xf32, #tpu.memory_space<vmem>>, %arg5: memref<128x1xf32, #tpu.memory_space<vmem>>, %arg6: memref<1x1xf32, #tpu.memory_space<vmem>>, %arg7: memref<1x1x128xf32, #tpu.memory_space<vmem>>) attributes {dimension_semantics = [#tpu.dimension_semantics<parallel>, #tpu.dimension_semantics<arbitrary>], iteration_bounds = array<i64: 2, 1>, scalar_prefetch = 0 : i64, scratch_operands = 0 : i64, tpu.core_type = #tpu.core_type<tc>, window_params = [{transform_indices = @transform_0, window_bounds = array<i64: 16, 256>}, {pipeline_mode = #tpu.pipeline_mode<synchronous>, transform_indices = @transform_1, window_bounds = array<i64: 128, 8>}, {pipeline_mode = #tpu.pipeline_mode<synchronous>, transform_indices = @transform_2, window_bounds = array<i64: 128, 1>}, {pipeline_mode = #tpu.pipeline_mode<synchronous>, transform_indices = @transform_3, window_bounds = array<i64: 128, 1>}, {pipeline_mode = #tpu.pipeline_mode<synchronous>, transform_indices = @transform_4, window_bounds = array<i64: 1, 1>}, {transform_indices = @transform_5, window_bounds = array<i64: 1, 1, 128>}]} {
    %c0 = arith.constant 0 : index
    %c0_0 = arith.constant 0 : index
    %0 = vector.load %arg2[%c0, %c0_0] : memref<16x256xf32, #tpu.memory_space<vmem>>, vector<16x256xf32>
    %1 = vector.extract_strided_slice %0 {offsets = [0, 0], sizes = [8, 256], strides = [1, 1]} : vector<16x256xf32> to vector<8x256xf32>
    %2 = arith.truncf %1 : vector<8x256xf32> to vector<8x256xbf16>
    %3 = vector.extract_strided_slice %0 {offsets = [8, 0], sizes = [1, 256], strides = [1, 1]} : vector<16x256xf32> to vector<1x256xf32>
    %c0_1 = arith.constant 0 : index
    %c0_2 = arith.constant 0 : index
    %4 = vector.load %arg3[%c0_1, %c0_2] : memref<128x8xbf16, #tpu.memory_space<vmem>>, vector<128x8xbf16>
    %cst = arith.constant dense<0.000000e+00> : vector<128x256xf32>
    %5 = tpu.matmul %4, %2, %cst {dimension_numbers = #tpu.dot_dimension_numbers<[1], [0], [0], [1], [0, 0, 1, 1], [], []>} : vector<128x8xbf16>, vector<8x256xbf16>, vector<128x256xf32> -> vector<128x256xf32>
    %c0_3 = arith.constant 0 : index
    %c0_4 = arith.constant 0 : index
    %6 = vector.load %arg4[%c0_3, %c0_4] : memref<128x1xf32, #tpu.memory_space<vmem>>, vector<128x1xf32>
    %7 = vector.broadcast %6 : vector<128x1xf32> to vector<128x256xf32>
    %8 = arith.addf %5, %7 : vector<128x256xf32>
    %cst_5 = arith.constant 0.000000e+00 : f32
    %9 = vector.broadcast %cst_5 : f32 to vector<128x256xf32>
    %10 = arith.maximumf %8, %9 : vector<128x256xf32>
    %c0_6 = arith.constant 0 : index
    %c0_7 = arith.constant 0 : index
    %11 = vector.load %arg5[%c0_6, %c0_7] : memref<128x1xf32, #tpu.memory_space<vmem>>, vector<128x1xf32>
    %12 = vector.broadcast %11 : vector<128x1xf32> to vector<128x256xf32>
    %13 = arith.mulf %10, %12 : vector<128x256xf32>
    %cst_8 = arith.constant dense<0.000000e+00> : vector<256xf32>
    %14 = vector.multi_reduction <add>, %13, %cst_8 [0] : vector<128x256xf32> to vector<256xf32>
    %15 = vector.shape_cast %14 : vector<256xf32> to vector<1x256xf32>
    %c0_9 = arith.constant 0 : index
    %c0_10 = arith.constant 0 : index
    %16 = vector.load %arg6[%c0_9, %c0_10] : memref<1x1xf32, #tpu.memory_space<vmem>>, vector<1x1xf32>
    %17 = vector.broadcast %16 : vector<1x1xf32> to vector<1x256xf32>
    %18 = arith.addf %15, %17 : vector<1x256xf32>
    %cst_11 = arith.constant 0.000000e+00 : f32
    %19 = vector.broadcast %cst_11 : f32 to vector<1x256xf32>
    %20 = arith.maximumf %18, %19 : vector<1x256xf32>
    %21 = arith.mulf %18, %3 : vector<1x256xf32>
    %22 = arith.subf %20, %21 : vector<1x256xf32>
    %23 = math.absf %18 : vector<1x256xf32>
    %cst_12 = arith.constant 0.000000e+00 : f32
    %24 = vector.broadcast %cst_12 : f32 to vector<1x256xf32>
    %25 = arith.subf %24, %23 : vector<1x256xf32>
    %26 = math.exp %25 : vector<1x256xf32>
    %cst_13 = arith.constant 1.000000e+00 : f32
    %27 = vector.broadcast %cst_13 : f32 to vector<1x256xf32>
    %28 = arith.addf %27, %26 : vector<1x256xf32>
    %29 = math.log %28 : vector<1x256xf32>
    %30 = arith.addf %22, %29 : vector<1x256xf32>
    %31 = vector.shape_cast %30 : vector<1x256xf32> to vector<1x1x256xf32>
    %cst_14 = arith.constant dense<0.000000e+00> : vector<1xf32>
    %32 = vector.multi_reduction <add>, %31, %cst_14 [1, 2] : vector<1x1x256xf32> to vector<1xf32>
    %33 = vector.shape_cast %32 : vector<1xf32> to vector<1x1x1xf32>
    %34 = vector.extract %33[0, 0, 0] : f32 from vector<1x1x1xf32>
    %35 = tpu.iota {dimensions = array<i32: 1>} : vector<1x128xi32>
    %c0_i32 = arith.constant 0 : i32
    %36 = arith.cmpi eq, %arg1, %c0_i32 : i32
    %37 = arith.extui %36 : i1 to i32
    %c0_i32_15 = arith.constant 0 : i32
    %38 = arith.cmpi ne, %37, %c0_i32_15 : i32
    scf.if %38 {
      %cst_24 = arith.constant 0.000000e+00 : f32
      %50 = vector.broadcast %cst_24 : f32 to vector<1x1x128xf32>
      %c0_25 = arith.constant 0 : index
      %c0_26 = arith.constant 0 : index
      %c0_27 = arith.constant 0 : index
      %51 = vector.load %arg7[%c0_25, %c0_26, %c0_27] : memref<1x1x128xf32, #tpu.memory_space<vmem>>, vector<1x1x128xf32>
      tpu.vector_store %arg7[%c0_25, %c0_26, %c0_27], %50 {strides = array<i32>} : memref<1x1x128xf32, #tpu.memory_space<vmem>>, vector<1x1x128xf32>,
    } else {
    }
    %c0_16 = arith.constant 0 : index
    %c0_17 = arith.constant 0 : index
    %c0_18 = arith.constant 0 : index
    %39 = vector.load %arg7[%c0_16, %c0_17, %c0_18] : memref<1x1x128xf32, #tpu.memory_space<vmem>>, vector<1x1x128xf32>
    %40 = vector.shape_cast %39 : vector<1x1x128xf32> to vector<1x128xf32>
    %c0_i32_19 = arith.constant 0 : i32
    %41 = vector.broadcast %c0_i32_19 : i32 to vector<1x128xi32>
    %42 = arith.cmpi eq, %35, %41 : vector<1x128xi32>
    %cst_20 = arith.constant 0.000000e+00 : f32
    %43 = vector.broadcast %34 : f32 to vector<1x128xf32>
    %44 = vector.broadcast %cst_20 : f32 to vector<1x128xf32>
    %45 = arith.select %42, %43, %44 : vector<1x128xi1>, vector<1x128xf32>
    %46 = arith.addf %40, %45 : vector<1x128xf32>
    %c0_21 = arith.constant 0 : index
    %c0_22 = arith.constant 0 : index
    %c0_23 = arith.constant 0 : index
    %47 = vector.load %arg7[%c0_21, %c0_22, %c0_23] : memref<1x1x128xf32, #tpu.memory_space<vmem>>, vector<1x1x128xf32>
    %48 = vector.shape_cast %47 : vector<1x1x128xf32> to vector<1x128xf32>
    %49 = vector.shape_cast %46 : vector<1x128xf32> to vector<1x1x128xf32>
    tpu.vector_store %arg7[%c0_21, %c0_22, %c0_23], %49 {strides = array<i32>} : memref<1x1x128xf32, #tpu.memory_space<vmem>>, vector<1x1x128xf32>,
    return
  }
  func.func @transform_0(%arg0: i32, %arg1: i32) -> (i32, i32) {
    %c1_i32 = arith.constant 1 : i32
    %0 = arith.muli %arg0, %c1_i32 : i32
    %1 = arith.addi %0, %arg1 : i32
    %c0_i32 = arith.constant 0 : i32
    %c0_i32_0 = arith.constant 0 : i32
    return %c0_i32, %1 : i32, i32
  }
  func.func @transform_1(%arg0: i32, %arg1: i32) -> (i32, i32) {
    %c0_i32 = arith.constant 0 : i32
    %c0_i32_0 = arith.constant 0 : i32
    %c0_i32_1 = arith.constant 0 : i32
    return %c0_i32, %c0_i32_0 : i32, i32
  }
  func.func @transform_2(%arg0: i32, %arg1: i32) -> (i32, i32) {
    %c0_i32 = arith.constant 0 : i32
    %c0_i32_0 = arith.constant 0 : i32
    %c0_i32_1 = arith.constant 0 : i32
    return %c0_i32, %c0_i32_0 : i32, i32
  }
  func.func @transform_3(%arg0: i32, %arg1: i32) -> (i32, i32) {
    %c0_i32 = arith.constant 0 : i32
    %c0_i32_0 = arith.constant 0 : i32
    %c0_i32_1 = arith.constant 0 : i32
    return %c0_i32, %c0_i32_0 : i32, i32
  }
  func.func @transform_4(%arg0: i32, %arg1: i32) -> (i32, i32) {
    %c0_i32 = arith.constant 0 : i32
    %c0_i32_0 = arith.constant 0 : i32
    %c0_i32_1 = arith.constant 0 : i32
    return %c0_i32, %c0_i32_0 : i32, i32
  }
  func.func @transform_5(%arg0: i32, %arg1: i32) -> (i32, i32, i32) {
    %c0_i32 = arith.constant 0 : i32
    %c0_i32_0 = arith.constant 0 : i32
    %c0_i32_1 = arith.constant 0 : i32
    return %arg0, %c0_i32, %c0_i32_0 : i32, i32, i32
  }
}

</mosaic_0001>

<bundles_post_ra>
// kernel: model_forward.2
= control target key start
LH: loop header
LB: loop body
LE: loop exit
PB: predicated region body
PF: predicated region fallthrough
CT: control target
= control target key end

     0   :  { %s1392_s0 = inlined_call_operand.vmem [shape: f32[16,512], index: 0, kind: input, shape index: {}]   ;;  %s1393_s1 = inlined_call_operand.vmem [shape: bf16[128,8], index: 1, kind: input, shape index: {}]   ;;  %s1394_s2 = inlined_call_operand.vmem [shape: f32[128,1], index: 2, kind: input, shape index: {}]   ;;  %s1395_s3 = inlined_call_operand.vmem [shape: f32[128,1], index: 3, kind: input, shape index: {}]   ;;  %s1396_s4 = inlined_call_operand.<no memory space> [shape: f32[1,1], index: 4, kind: input, shape index: {}]   ;;  %s1397_s5 = inlined_call_operand.vmem [shape: f32[2,1,128], index: 5, kind: output, shape index: {}]  }
   0x1   :  { %v10_v0 = vstv %s1396_s4 }
   0x2   :  { %11 = vst [vmem:[#allocation2] sm:$0x1] %v10_v0 }
   0x3   :  { %s1076_s20 = smov 0   ;;  %s1078_s21 = smov 0  }
   0x4   :  { %s1080_s22 = smov 0   ;;  %s1082_s23 = smov 0  }
   0x5   :  { %s1084_s24 = smov 0  }
   0x6 LB: > { %s29_s4 = sadd.s32 1, %s1035_s23  ;;  %p45_p1 = scmp.ne.s32.totalorder %s1027_s21, %s1023_s20  ;;  %s1039_s24 = sphi %s1084_s24, %s17_s24   ;;  %s1035_s23 = sphi %s1082_s23, %s1401_s23   ;;  %s1031_s22 = sphi %s1080_s22, %s1400_s22   ;;  %s1027_s21 = sphi %s1078_s21, %s1399_s21   ;;  %s1023_s20 = sphi %s1076_s20, %s1398_s20  }
   0x7   : > { %p31_p0 = scmp.ge.s32.totalorder %s29_s4, 2  ;;  %p46_p2 = scmp.eq.s32.totalorder %s1039_s24, 0 }
   0x8   : > { %s38_s26 = sadd.s32 1, %s1027_s21  ;;  %p879_p5 = scmp.ge.s32.totalorder %s1039_s24, 2 }
   0x9   : > { %s1403_s4 = smov (%p31_p0, %s29_s4), 0  ;;  %p47_p3 = por %p46_p2, %p45_p1 }
   0xa   : > { %s35_s25 = ssub.s32 %s1035_s23, %s1403_s4  ;;  %193 = sbr.rel (%p879_p5) target bundleno = 23 (0x17), region = 32 }
   0xb   : > { %p36_p4 = scmp.eq.s32.totalorder %s35_s25, 0 }
   0xd   : > { %s1111_s27 = scalar_select %p36_p4, %s1027_s21, %s38_s26  }
   0xf   : > { %196 = sbr.rel (!%p47_p3) target bundleno = 23 (0x17), region = 36  ;;  %s198_s28 = sand.u32 (%p47_p3), 1, %s1027_s21  }
  0x10   : > { %s935_s29 = sshll.u32 (%p47_p3), %s1035_s23, 4  ;;  %s880_s30 = sshll.u32 (%p47_p3), %s198_s28, 5 }
  0x11   : > { %s204_s8 = scalar_lea.vmem (%p47_p3), %s1392_s0, %s935_s29  ;;  %s200_s9 = scalar_lea.vmem (%p47_p3), [#allocation3], %s880_s30 }
  0x12   : > { %v217_v1 = vld [vmem:[%s204_s8] sm:$0xff] (%p47_p3)  ;;  %v219_v2 = vld [vmem:[%s204_s8 + $0x8] sm:$0xff] (%p47_p3) }
  0x13   : > { %v221_v3 = vld [vmem:[%s204_s8 + $0x20] sm:$0xff] (%p47_p3)  ;;  %218 = vst [vmem:[%s200_s9] sm:$0xff] (%p47_p3), %v217_v1  ;;  %v223_v4 = vld [vmem:[%s204_s8 + $0x28] sm:$0xff] (%p47_p3) }
  0x14   : > { %220 = vst [vmem:[%s200_s9 + $0x8] sm:$0xff] %v219_v2 }
  0x15   : > { %222 = vst [vmem:[%s200_s9 + $0x10] sm:$0xff] %v221_v3 }
  0x16   : > { %224 = vst [vmem:[%s200_s9 + $0x18] sm:$0xff] %v223_v4 }
  0x17 PF: > { %p883_p6 = scmp.ge.s32.totalorder %s1039_s24, 1  ;;  %p229_p7 = scmp.lt.s32.totalorder %s1039_s24, 3 }
  0x19   : > { %p230_p8 = pnand %p883_p6, %p229_p7 }
  0x1a   : > { %s236_s16 = sand.u32 (!%p230_p8), 1, %s1023_s20   ;;  %p263_p9 = scmp.lt.s32.totalorder (!%p230_p8), %s1031_s22, 1 }
  0x1b   : > { %233 = sbr.rel (%p230_p8) target bundleno = 474 (0x1da), region = 59  ;;  %s884_s17 = sshll.u32 (!%p230_p8), %s236_s16, 5 }
  0x1c   : > { %s1131_s18 = scalar_lea.vmem (!%p230_p8), [#allocation3], %s884_s17 }
  0x20   : > { %v587_v5 = vld [vmem:[%s1395_s3] sm:$0xff]  ;;  %v291_v6 = vld [vmem:[%s1394_s2 + $0x10] sm:$0xff]  ;;  %v1041_v8 = vmov 0   ;;  %vm450_vm0 = vcmask 1043456   ;;  %v588_v16 = vld [vmem:[%s1395_s3 + $0x8] sm:$0xff]  ;;  %vm425_vm1 = vcmask 64512  }
  0x21   : > { %v289_v7 = vld [vmem:[%s1394_s2] sm:$0xff]  ;;  %992 = vset.pattern.permute.xlu2 %v1041_v8  ;;  %991 = vset.pattern.permute.xlu1 %v1041_v8  ;;  %v268_v10 = vld [vmem:[%s1131_s18 + $0x8] sm:$0xff]  ;;  %v292_v17 = vld [vmem:[%s1394_s2 + $0x18] sm:$0xff]  ;;  %vm788_vm2 = vcmask 1040384   ;;  %s1405_s22 = smov (!%p263_p9, %s1031_s22), 1 }
  0x22   : > { %990 = vset.pattern.permute.xlu0 %v1041_v8  ;;  %605 = vperm.xlu2 %992, %v587_v5   ;;  %v267_v9 = vld [vmem:[%s1131_s18] sm:$0xff]  ;;  %v272_v12 = vpack.c.bf16 %v268_v10, %v268_v10  ;;  %v589_v21 = vld [vmem:[%s1395_s3 + $0x10] sm:$0xff]  ;;  %v590_v26 = vld [vmem:[%s1395_s3 + $0x18] sm:$0xff]  ;;  %s265_s17 = scalar_lea.vmem %s1397_s5, %s1405_s22 }
  0x23   : > { %317 = vperm.xlu1 %991, %v291_v6   ;;  %307 = vperm.xlu0 %990, %v289_v7   ;;  %v271_v11 = vpack.c.bf16 %v267_v9, %v267_v9  ;;  %v936_v15 = vld [vmem:[%s1393_s1] sm:$0xff]  ;;  %v290_v18 = vld [vmem:[%s1394_s2 + $0x8] sm:$0xff]  ;;  %v295_v25 = vld [vmem:[%s1394_s2 + $0x30] sm:$0xff] }
  0x24   : > { %v455_v14 = vsel %vm450_vm0, %v272_v12, 0  ;;  %v940_v19 = vld [vmem:[%s1393_s1 + $0x20] sm:$0xff]  ;;  %v294_v20 = vld [vmem:[%s1394_s2 + $0x28] sm:$0xff]  ;;  %v296_v30 = vld [vmem:[%s1394_s2 + $0x38] sm:$0xff] }
  0x25   : > { %v452_v13 = vsel %vm450_vm0, %v271_v11, 0  ;;  %513 = vmatpush.bf16.msra.mxu1 %v455_v14  ;;  %945 = vmatpush.bf16.msra.mxu3 %v455_v14  ;;  %v293_v22 = vld [vmem:[%s1394_s2 + $0x20] sm:$0xff]  ;;  %v937_v23 = vld [vmem:[%s1393_s1 + $0x8] sm:$0xff]  ;;  %v938_v31 = vld [vmem:[%s1393_s1 + $0x10] sm:$0xff] }
  0x26   : > { %464 = vmatpush.bf16.msra.mxu0 %v452_v13  ;;  %944 = vmatpush.bf16.msra.mxu2 %v452_v13  ;;  %v591_v24 = vld [vmem:[%s1395_s3 + $0x20] sm:$0xff]  ;;  %v941_v27 = vld [vmem:[%s1393_s1 + $0x28] sm:$0xff]  ;;  %v594_v32 = vld [vmem:[%s1395_s3 + $0x38] sm:$0xff] }
  0x27   : > { %v297_v28 = vld [vmem:[%s1394_s2 + $0x40] sm:$0xff]  ;;  %v592_v29 = vld [vmem:[%s1395_s3 + $0x28] sm:$0xff]  ;;  %v593_v34 = vld [vmem:[%s1395_s3 + $0x30] sm:$0xff] }
  0x28   : > { %925 = vmatmul.msk.bf16.vlgmr.msra.gmra.mxu1 %vm425_vm1, %v936_v15  ;;  %929 = vmatmul.msk.bf16.vlgmr.msra.gmra.mxu3 %vm425_vm1, %v940_v19  ;;  %v298_v33 = vld [vmem:[%s1394_s2 + $0x48] sm:$0xff]  ;;  %v942_v35 = vld [vmem:[%s1393_s1 + $0x30] sm:$0xff]  ;;  %v300_v36 = vld [vmem:[%s1394_s2 + $0x58] sm:$0xff] }
  0x29   : > { %917 = vmatmul.msk.bf16.vlgmr.msra.gmra.mxu0 %vm425_vm1, %v936_v15  ;;  %921 = vmatmul.msk.bf16.vlgmr.msra.gmra.mxu2 %vm425_vm1, %v940_v19  ;;  %v595_v37 = vld [vmem:[%s1395_s3 + $0x40] sm:$0xff]  ;;  %v299_v38 = vld [vmem:[%s1394_s2 + $0x50] sm:$0xff]  ;;  %v939_v39 = vld [vmem:[%s1393_s1 + $0x18] sm:$0xff] }
  0x2a   : > { %610 = vperm.xlu2 %992, %v588_v16   ;;  %v597_v40 = vld [vmem:[%s1395_s3 + $0x50] sm:$0xff]  ;;  %v301_v41 = vld [vmem:[%s1394_s2 + $0x60] sm:$0xff]  ;;  %v596_v42 = vld [vmem:[%s1395_s3 + $0x48] sm:$0xff] }
  0x2b   : > { %322 = vperm.xlu1 %991, %v292_v17   ;;  %312 = vperm.xlu0 %990, %v290_v18   ;;  %v943_v43 = vld [vmem:[%s1393_s1 + $0x38] sm:$0xff]  ;;  %v303_v44 = vld [vmem:[%s1394_s2 + $0x70] sm:$0xff]  ;;  %v302_v46 = vld [vmem:[%s1394_s2 + $0x68] sm:$0xff] }
  0x2c   : > { %v598_v45 = vld [vmem:[%s1395_s3 + $0x58] sm:$0xff]  ;;  %v600_v47 = vld [vmem:[%s1395_s3 + $0x68] sm:$0xff]  ;;  %v599_v49 = vld [vmem:[%s1395_s3 + $0x60] sm:$0xff] }
  0x2d   : > { %v304_v48 = vld [vmem:[%s1394_s2 + $0x78] sm:$0xff]  ;;  %v757_v50 = vld [vmem:[#allocation2] sm:$0x1]  ;;  %v601_v52 = vld [vmem:[%s1395_s3 + $0x70] sm:$0xff] }
  0x2e   : > { %v602_v51 = vld [vmem:[%s1395_s3 + $0x78] sm:$0xff] }
  0x32   : > { %332 = vperm.xlu2 %992, %v294_v20  }
  0x33   : > { %615 = vperm.xlu1 %991, %v589_v21   ;;  %327 = vperm.xlu0 %990, %v293_v22  }
  0x38   : > { %926 = vmatmul.msk.bf16.gmra.mxu1 %vm425_vm1, %v937_v23  ;;  %930 = vmatmul.msk.bf16.gmra.mxu3 %vm425_vm1, %v941_v27 }
  0x39   : > { %918 = vmatmul.msk.bf16.gmra.mxu0 %vm425_vm1, %v937_v23  ;;  %922 = vmatmul.msk.bf16.gmra.mxu2 %vm425_vm1, %v941_v27 }
  0x3a   : > { %625 = vperm.xlu2 %992, %v591_v24  }
  0x3b   : > { %337 = vperm.xlu1 %991, %v295_v25   ;;  %620 = vperm.xlu0 %990, %v590_v26  }
  0x42   : > { %347 = vperm.xlu2 %992, %v297_v28  }
  0x43   : > { %630 = vperm.xlu1 %991, %v592_v29   ;;  %342 = vperm.xlu0 %990, %v296_v30  }
  0x48   : > { %927 = vmatmul.msk.bf16.gmra.mxu1 %vm425_vm1, %v938_v31  ;;  %931 = vmatmul.msk.bf16.gmra.mxu3 %vm425_vm1, %v942_v35 }
  0x49   : > { %919 = vmatmul.msk.bf16.gmra.mxu0 %vm425_vm1, %v938_v31  ;;  %923 = vmatmul.msk.bf16.gmra.mxu2 %vm425_vm1, %v942_v35 }
  0x4a   : > { %640 = vperm.xlu2 %992, %v594_v32  }
  0x4b   : > { %352 = vperm.xlu1 %991, %v298_v33   ;;  %635 = vperm.xlu0 %990, %v593_v34  }
  0x52   : > { %362 = vperm.xlu2 %992, %v300_v36  }
  0x53   : > { %645 = vperm.xlu1 %991, %v595_v37   ;;  %357 = vperm.xlu0 %990, %v299_v38  }
  0x58   : > { %928 = vmatmul.msk.bf16.gmra.mxu1 %vm425_vm1, %v939_v39  ;;  %932 = vmatmul.msk.bf16.gmra.mxu3 %vm425_vm1, %v943_v43 }
  0x59   : > { %920 = vmatmul.msk.bf16.gmra.mxu0 %vm425_vm1, %v939_v39  ;;  %924 = vmatmul.msk.bf16.gmra.mxu2 %vm425_vm1, %v943_v43 }
  0x5a   : > { %655 = vperm.xlu2 %992, %v597_v40  }
  0x5b   : > { %367 = vperm.xlu1 %991, %v301_v41   ;;  %650 = vperm.xlu0 %990, %v596_v42  }
  0x62   : > { %377 = vperm.xlu2 %992, %v303_v44  }
  0x63   : > { %660 = vperm.xlu1 %991, %v598_v45   ;;  %372 = vperm.xlu0 %990, %v302_v46  }
  0x6a   : > { %670 = vperm.xlu2 %992, %v600_v47  }
  0x6b   : > { %382 = vperm.xlu1 %991, %v304_v48   ;;  %665 = vperm.xlu0 %990, %v599_v49  }
  0x72   : > { %760 = vperm.xlu2 %992, %v757_v50  }
  0x73   : > { %680 = vperm.xlu1 %991, %v602_v51   ;;  %675 = vperm.xlu0 %990, %v601_v52  }
  0x7c   : > { %v1262_v53 = vpop.permute.xlu2 %605 }
  0x84   : > { %v611_v58 = vpop.permute.xlu2 %610 }
  0x8c   : > { %v333_v62 = vpop.permute.xlu2 %332 }
  0x94   : > { %v1274_v6 = vpop.permute.xlu2 %625 }
  0x95   : > { %v318_v54 = vpop.permute.xlu1 %317  ;;  %v308_v55 = vpop.permute.xlu0 %307 }
  0x9c   : > { %v1284_v13 = vpop.permute.xlu2 %347 }
  0x9d   : > { %v323_v56 = vpop.permute.xlu1 %322  ;;  %v313_v57 = vpop.permute.xlu0 %312 }
  0xa4   : > { %v1294_v20 = vpop.permute.xlu2 %640 }
  0xa5   : > { %v1264_v59 = vpop.permute.xlu1 %615  ;;  %v328_v60 = vpop.permute.xlu0 %327 }
  0xa6   : > { %v466_v61 = vpop.f32.mrf.mxu0  ;;  %v515_v63 = vpop.f32.mrf.mxu1 }
  0xa7   : > { %v467_v28 = vadd.f32 %v466_v61, %v308_v55  ;;  %v516_v35 = vadd.f32 %v515_v63, %v308_v55 }
  0xa9   : > { %v555_v41 = vmax.f32 %v467_v28, 0.0  ;;  %v556_v47 = vmax.f32 %v516_v35, 0.0 }
  0xab   : > { %v1272_v4 = vpop.f32.mrf.mxu3 }
  0xac   : > { %v1270_v2 = vpop.f32.mrf.mxu2  ;;  %v1306_v32 = vpop.permute.xlu2 %362 }
  0xad   : > { %v1266_v0 = vpop.permute.xlu1 %337  ;;  %v1268_v1 = vpop.permute.xlu0 %620 }
  0xae   : > { %v468_v3 = vpop.f32.mrf.mxu0  ;;  %v517_v5 = vpop.f32.mrf.mxu1 }
  0xaf   : > { %v469_v27 = vadd.f32 %v468_v3, %v313_v57  ;;  %v518_v29 = vadd.f32 %v517_v5, %v313_v57 }
  0xb1   : > { %v557_v39 = vmax.f32 %v469_v27, 0.0  ;;  %v558_v42 = vmax.f32 %v518_v29, 0.0 }
  0xb3   : > { %v1282_v11 = vpop.f32.mrf.mxu3  ;;  %v685_v50 = vmul.f32 %v611_v58, %v557_v39  ;;  %v686_v55 = vmul.f32 %v611_v58, %v558_v42 }
  0xb4   : > { %v1280_v9 = vpop.f32.mrf.mxu2  ;;  %v1323_v58 = vpop.permute.xlu2 %655 }
  0xb5   : > { %v1276_v7 = vpop.permute.xlu0 %342  ;;  %v1278_v8 = vpop.permute.xlu1 %630 }
  0xb6   : > { %v471_v10 = vpop.f32.mrf.mxu0  ;;  %v520_v12 = vpop.f32.mrf.mxu1 }
  0xb7   : > { %v472_v33 = vadd.f32 %v471_v10, %v318_v54  ;;  %v521_v36 = vadd.f32 %v520_v12, %v318_v54  ;;  %v683_v54 = vmul.f32 %v1262_v53, %v555_v41 }
  0xb9   : > { %v559_v44 = vmax.f32 %v472_v33, 0.0  ;;  %v560_v48 = vmax.f32 %v521_v36, 0.0 }
  0xbb   : > { %v1292_v18 = vpop.f32.mrf.mxu3  ;;  %v687_v3 = vmul.f32 %v1264_v59, %v559_v44 }
  0xbc   : > { %v1288_v15 = vpop.f32.mrf.mxu2 }
  0xbd   : > { %v1286_v14 = vpop.permute.xlu0 %635  ;;  %v1290_v17 = vpop.permute.xlu1 %352 }
  0xbe   : > { %v473_v16 = vpop.f32.mrf.mxu0  ;;  %v522_v19 = vpop.f32.mrf.mxu1 }
  0xbf   : > { %v474_v40 = vadd.f32 %v473_v16, %v323_v56  ;;  %v523_v43 = vadd.f32 %v522_v19, %v323_v56  ;;  %v688_v16 = vmul.f32 %v1264_v59, %v560_v48 }
  0xc1   : > { %v561_v51 = vmax.f32 %v474_v40, 0.0  ;;  %v562_v57 = vmax.f32 %v523_v43, 0.0 }
  0xc3   : > { %v1300_v24 = vpop.f32.mrf.mxu3  ;;  %v689_v27 = vmul.f32 %v1268_v1, %v561_v51  ;;  %v489_v51 = vadd.f32 %v1280_v9, %v1290_v17  ;;  %v538_v9 = vadd.f32 %v1282_v11, %v1290_v17 }
  0xc4   : > { %v1298_v22 = vpop.f32.mrf.mxu2  ;;  %v543_v17 = vadd.f32 %v1300_v24, %v1306_v32 }
  0xc5   : > { %v1296_v21 = vpop.permute.xlu0 %357  ;;  %v1302_v26 = vpop.permute.xlu1 %645  ;;  %v574_v11 = vmax.f32 %v538_v9, 0.0 }
  0xc6   : > { %v476_v23 = vpop.f32.mrf.mxu0  ;;  %v525_v25 = vpop.f32.mrf.mxu1 }
  0xc7   : > { %v477_v45 = vadd.f32 %v476_v23, %v328_v60  ;;  %v526_v49 = vadd.f32 %v525_v25, %v328_v60  ;;  %v684_v60 = vmul.f32 %v1262_v53, %v556_v47  ;;  %v715_v25 = vadd.f32 %v685_v50, %v683_v54 }
  0xc9   : > { %v563_v56 = vmax.f32 %v477_v45, 0.0  ;;  %v564_v19 = vmax.f32 %v526_v49, 0.0  ;;  %v716_v35 = vadd.f32 %v715_v25, %v687_v3 }
  0xcb   : > { %v1308_v34 = vpop.f32.mrf.mxu3  ;;  %v691_v36 = vmul.f32 %v1274_v6, %v563_v56  ;;  %v692_v39 = vmul.f32 %v1274_v6, %v564_v19  ;;  %v717_v40 = vadd.f32 %v716_v35, %v689_v27 }
  0xcc   : > { %v1304_v30 = vpop.f32.mrf.mxu2 }
  0xcd   : > { %v1310_v37 = vpop.permute.xlu0 %650  ;;  %v1312_v46 = vpop.permute.xlu1 %367  ;;  %v718_v48 = vadd.f32 %v717_v40, %v691_v36  ;;  %v578_v40 = vmax.f32 %v543_v17, 0.0 }
  0xce   : > { %v478_v31 = vpop.f32.mrf.mxu0  ;;  %v527_v38 = vpop.f32.mrf.mxu1 }
  0xcf   : > { %v479_v52 = vadd.f32 %v478_v31, %v333_v62  ;;  %v528_v5 = vadd.f32 %v527_v38, %v333_v62  ;;  %v736_v31 = vadd.f32 %v686_v55, %v684_v60  ;;  %v690_v62 = vmul.f32 %v1268_v1, %v562_v57 }
  0xd0   : > { %v536_v1 = vadd.f32 %v1272_v4, %v1284_v13 }
  0xd1   : > { %v565_v28 = vmax.f32 %v479_v52, 0.0  ;;  %v566_v53 = vmax.f32 %v528_v5, 0.0  ;;  %v737_v59 = vadd.f32 %v736_v31, %v688_v16  ;;  %v492_v52 = vadd.f32 %v1288_v15, %v1296_v21  ;;  %v378_v5 = vpop.permute.xlu2 %377 }
  0xd2   : > { %v572_v56 = vmax.f32 %v536_v1, 0.0 }
  0xd3   : > { %v1318_v10 = vpop.f32.mrf.mxu3  ;;  %v693_v41 = vmul.f32 %v1278_v8, %v565_v28  ;;  %v738_v44 = vadd.f32 %v737_v59, %v690_v62  ;;  %v694_v49 = vmul.f32 %v1278_v8, %v566_v53  ;;  %v575_v19 = vmax.f32 %v492_v52, 0.0 }
  0xd4   : > { %v1315_v61 = vpop.f32.mrf.mxu2  ;;  %v700_v62 = vmul.f32 %v1302_v26, %v572_v56 }
  0xd5   : > { %v373_v33 = vpop.permute.xlu0 %372  ;;  %v1331_v42 = vpop.permute.xlu1 %660  ;;  %v739_v4 = vadd.f32 %v738_v44, %v692_v39  ;;  %v719_v55 = vadd.f32 %v718_v48, %v693_v41  ;;  %v703_v53 = vmul.f32 %v1323_v58, %v575_v19 }
  0xd6   : > { %v481_v63 = vpop.f32.mrf.mxu0  ;;  %v530_v23 = vpop.f32.mrf.mxu1  ;;  %v499_v31 = vadd.f32 %v1315_v61, %v373_v33  ;;  %v548_v59 = vadd.f32 %v1318_v10, %v373_v33  ;;  %v702_v61 = vmul.f32 %v1310_v37, %v574_v11  ;;  %v706_v10 = vmul.f32 %v1331_v42, %v578_v40 }
  0xd7   : > { %v482_v12 = vadd.f32 %v481_v63, %v1266_v0  ;;  %v531_v29 = vadd.f32 %v530_v23, %v1266_v0  ;;  %v487_v0 = vadd.f32 %v1270_v2, %v1284_v13  ;;  %v541_v2 = vadd.f32 %v1292_v18, %v1296_v21 }
  0xd8   : > { %v573_v21 = vmax.f32 %v489_v51, 0.0  ;;  %v582_v33 = vmax.f32 %v548_v59, 0.0 }
  0xd9   : > { %v567_v38 = vmax.f32 %v482_v12, 0.0  ;;  %v568_v43 = vmax.f32 %v531_v29, 0.0  ;;  %v571_v3 = vmax.f32 %v487_v0, 0.0  ;;  %v740_v12 = vadd.f32 %v739_v4, %v694_v49 }
  0xda   : > { %v497_v29 = vadd.f32 %v1304_v30, %v1312_v46  ;;  %v701_v35 = vmul.f32 %v1310_v37, %v573_v21  ;;  %v581_v0 = vmax.f32 %v499_v31, 0.0 }
  0xdb   : > { %v695_v6 = vmul.f32 %v1286_v14, %v567_v38  ;;  %v550_v13 = vpop.f32.mrf.mxu3  ;;  %v696_v57 = vmul.f32 %v1286_v14, %v568_v43  ;;  %v699_v16 = vmul.f32 %v1302_v26, %v571_v3  ;;  %v494_v14 = vadd.f32 %v1298_v22, %v1306_v32 }
  0xdc   : > { %v501_v45 = vpop.f32.mrf.mxu2  ;;  %v579_v41 = vmax.f32 %v497_v29, 0.0  ;;  %v551_v49 = vadd.f32 %v550_v13, %v378_v5 }
  0xdd   : > { %v720_v15 = vadd.f32 %v719_v55, %v695_v6  ;;  %v666_v23 = vpop.permute.xlu0 %665  ;;  %v741_v25 = vadd.f32 %v740_v12, %v696_v57  ;;  %v577_v38 = vmax.f32 %v494_v14, 0.0  ;;  %v383_v24 = vpop.permute.xlu1 %382  ;;  %v502_v44 = vadd.f32 %v501_v45, %v378_v5 }
  0xde   : > { %v483_v47 = vpop.f32.mrf.mxu0  ;;  %v532_v54 = vpop.f32.mrf.mxu1  ;;  %v707_v6 = vmul.f32 %v666_v23, %v579_v41 }
  0xdf   : > { %v484_v50 = vadd.f32 %v483_v47, %v1276_v7  ;;  %v533_v63 = vadd.f32 %v532_v54, %v1276_v7  ;;  %v576_v7 = vmax.f32 %v541_v2, 0.0  ;;  %v705_v43 = vmul.f32 %v1331_v42, %v577_v38 }
  0xe0   : > { %v583_v54 = vmax.f32 %v502_v44, 0.0 }
  0xe1   : > { %v569_v8 = vmax.f32 %v484_v50, 0.0  ;;  %v570_v18 = vmax.f32 %v533_v63, 0.0  ;;  %v704_v30 = vmul.f32 %v1323_v58, %v576_v7  ;;  %v671_v58 = vpop.permute.xlu2 %670  ;;  %v584_v63 = vmax.f32 %v551_v49, 0.0 }
  0xe2   : > { %v709_v52 = vmul.f32 %v671_v58, %v581_v0  ;;  %v270_v0 = vld [vmem:[%s1131_s18 + $0x18] sm:$0xff] }
  0xe3   : > { %v697_v60 = vmul.f32 %v1294_v20, %v569_v8  ;;  %v698_v28 = vmul.f32 %v1294_v20, %v570_v18  ;;  %v546_v20 = vadd.f32 %v1308_v34, %v1312_v46  ;;  %v552_v1 = vpop.f32.mrf.mxu3  ;;  %v710_v8 = vmul.f32 %v671_v58, %v582_v33 }
  0xe4   : > { %v503_v32 = vpop.f32.mrf.mxu2  ;;  %v553_v51 = vadd.f32 %v552_v1, %v383_v24 }
  0xe5   : > { %v721_v27 = vadd.f32 %v720_v15, %v697_v60  ;;  %v742_v36 = vadd.f32 %v741_v25, %v698_v28  ;;  %v504_v34 = vadd.f32 %v503_v32, %v383_v24  ;;  %v580_v46 = vmax.f32 %v546_v20, 0.0  ;;  %v676_v4 = vpop.permute.xlu0 %675  ;;  %v681_v12 = vpop.permute.xlu1 %680 }
  0xe6   : > { %v711_v3 = vmul.f32 %v676_v4, %v583_v54  ;;  %v586_v42 = vmax.f32 %v553_v51, 0.0  ;;  %v712_v13 = vmul.f32 %v676_v4, %v584_v63  ;;  %v1042_v63 = vmov 0.0  }
  0xe7   : > { %v722_v22 = vadd.f32 %v721_v27, %v699_v16  ;;  %v743_v26 = vadd.f32 %v742_v36, %v700_v62  ;;  %v708_v2 = vmul.f32 %v666_v23, %v580_v46  ;;  %v585_v45 = vmax.f32 %v504_v34, 0.0  ;;  %807 = vst [vmem:[%s265_s17] sm:$0x1] %v1042_v63 }
  0xe8   : > { %v714_v16 = vmul.f32 %v681_v12, %v586_v42 }
  0xe9   : > { %v723_v39 = vadd.f32 %v722_v22, %v701_v35  ;;  %v744_v48 = vadd.f32 %v743_v26, %v702_v61  ;;  %v713_v60 = vmul.f32 %v681_v12, %v585_v45  ;;  %v761_v17 = vpop.permute.xlu2 %760 }
  0xea   : > { %v763_v62 = vperm.slane %v761_v17, 0 }
  0xeb   : > { %v724_v47 = vadd.f32 %v723_v39, %v703_v53  ;;  %v745_v37 = vadd.f32 %v744_v48, %v704_v30 }
  0xed   : > { %v725_v50 = vadd.f32 %v724_v47, %v705_v43  ;;  %v746_v57 = vadd.f32 %v745_v37, %v706_v10  ;;  %v269_v43 = vld [vmem:[%s1131_s18 + $0x10] sm:$0xff] }
  0xef   : > { %v726_v55 = vadd.f32 %v725_v50, %v707_v6  ;;  %v747_v9 = vadd.f32 %v746_v57, %v708_v2 }
  0xf1   : > { %v727_v56 = vadd.f32 %v726_v55, %v709_v52  ;;  %v748_v15 = vadd.f32 %v747_v9, %v710_v8  ;;  %v808_v9 = vld [vmem:[%s265_s17] sm:$0x1] }
  0xf3   : > { %v728_v5 = vadd.f32 %v727_v56, %v711_v3  ;;  %v749_v18 = vadd.f32 %v748_v15, %v712_v13  ;;  %v801_v3 = vlaneseq }
  0xf5   : > { %v729_v21 = vadd.f32 %v728_v5, %v713_v60  ;;  %v750_v14 = vadd.f32 %v749_v18, %v714_v16  ;;  %v802_v56 = vand.u32 127, %v801_v3 }
  0xf7   : > { %v730_v19 = vrot.slane %v729_v21, 4  ;;  %v751_v7 = vrot.slane %v750_v14, 4  ;;  %vm809_vm3 = vcmp.eq.s32.totalorder %v802_v56, 0 }
  0xf9   : > { %v731_v23 = vadd.f32 %v730_v19, %v729_v21  ;;  %v752_v27 = vadd.f32 %v751_v7, %v750_v14 }
  0xfb   : > { %v732_v25 = vrot.slane %v731_v23, 2  ;;  %v753_v11 = vrot.slane %v752_v27, 2 }
  0xfd   : > { %v733_v28 = vadd.f32 %v732_v25, %v731_v23  ;;  %v754_v31 = vadd.f32 %v753_v11, %v752_v27 }
  0xff   : > { %v734_v29 = vrot.slane %v733_v28, 1  ;;  %v755_v22 = vrot.slane %v754_v31, 1 }
 0x101   : > { %v735_v35 = vadd.f32 %v734_v29, %v733_v28  ;;  %v756_v36 = vadd.f32 %v755_v22, %v754_v31 }
 0x103   : > { %v764_v53 = vadd.f32 %v763_v62, %v735_v35  ;;  %v765_v38 = vadd.f32 %v763_v62, %v756_v36 }
 0x105   : > { %v772_v20 = vand.u32 2147483647, %v764_v53  ;;  %v773_v59 = vand.u32 2147483647, %v765_v38  ;;  %v766_v1 = vmax.f32 %v764_v53, 0.0  ;;  %v768_v44 = vmul.f32 %v764_v53, %v269_v43 }
 0x106   : > { %v767_v47 = vmax.f32 %v765_v38, 0.0  ;;  %v769_v48 = vmul.f32 %v765_v38, %v270_v0 }
 0x107   : > { %v774_v24 = vsub.f32 0.0, %v772_v20  ;;  %v775_v32 = vsub.f32 0.0, %v773_v59  ;;  %v770_v10 = vsub.f32 %v766_v1, %v768_v44 }
 0x108   : > { %v771_v49 = vsub.f32 %v767_v47, %v769_v48 }
 0x109   : > { %v776_v30 = vmul.f32 1.442695, %v774_v24  ;;  %v778_v61 = vmul.f32 1.442695, %v775_v32 }
 0x10b   : > { %993 = vpow2.f32 %v776_v30 }
 0x10c   : > { %995 = vpow2.f32 %v778_v61 }
 0x111   : > { %v994_v39 = vpop.eup %993 }
 0x112   : > { %v996_v26 = vpop.eup %995  ;;  %v780_v40 = vadd.f32 1.0, %v994_v39 }
 0x113   : > { %v781_v41 = vadd.f32 1.0, %v996_v26 }
 0x114   : > { %997 = vlog2.f32 %v780_v40 }
 0x115   : > { %999 = vlog2.f32 %v781_v41 }
 0x11a   : > { %v998_v34 = vpop.eup %997 }
 0x11b   : > { %v1000_v46 = vpop.eup %999  ;;  %v783_v33 = vmul.f32 0.6931472, %v998_v34 }
 0x11c   : > { %v785_v58 = vmul.f32 0.6931472, %v1000_v46 }
 0x11d   : > { %v786_v6 = vadd.f32 %v783_v33, %v770_v10 }
 0x11e   : > { %v787_v37 = vadd.f32 %v785_v58, %v771_v49 }
 0x11f   : > { %v789_v50 = vsel %vm788_vm2, %v786_v6, 0.0 }
 0x120   : > { %v790_v51 = vsel %vm788_vm2, %v787_v37, 0.0 }
 0x121   : > { %v791_v52 = vadd.f32 %v790_v51, %v789_v50 }
 0x123   : > { %792 = vadd.xlane.f32.xlu0 %v791_v52 }
 0x196   : > { %v793_v2 = vpop.xlane.xlu0 %792 }
 0x197   : > { %v794_v4 = vrot.slane %v793_v2, 4 }
 0x199   : > { %v795_v54 = vadd.f32 %v794_v4, %v793_v2 }
 0x19b   : > { %v796_v55 = vrot.slane %v795_v54, 2 }
 0x19d   : > { %v797_v57 = vadd.f32 %v796_v55, %v795_v54 }
 0x19f   : > { %v798_v45 = vrot.slane %v797_v57, 1 }
 0x1a1   : > { %v799_v8 = vadd.f32 %v798_v45, %v797_v57 }
 0x1a3   : > { %946 = vpush %v799_v8 }
 0x1d4   : > { %s947_s19 = spop %946 }
 0x1d5   : > { %v810_v42 = vstv %s947_s19 }
 0x1d6   : > { %v811_v12 = vsel %vm809_vm3, %v810_v42, 0.0 }
 0x1d7   : > { %v812_v13 = vadd.f32 %v811_v12, %v808_v9 }
 0x1d9   : > { %813 = vst [vmem:[%s265_s17] sm:$0x1] %v812_v13 }
 0x1da PF: > { %s17_s24 = sadd.s32 1, %s1039_s24   ;;  %s1398_s20 = smov %s1027_s21 }
 0x1db   : > { %p14_p10 = scmp.ge.s32.totalorder %s17_s24, 4   ;;  %s1399_s21 = smov %s1111_s27 }
 0x1dc   : > { %s1400_s22 = smov %s1035_s23  ;;  %s1401_s23 = smov %s1403_s4 }
 0x1dd   :  { %16 = sbr.rel (!%p14_p10) target bundleno = 6 (0x6), region = 102 }

// kernel: model_forward.3
= control target key start
LH: loop header
LB: loop body
LE: loop exit
PB: predicated region body
PF: predicated region fallthrough
CT: control target
= control target key end

     0   :  { %s5207_s27 = smov 0   ;;  %s5209_s28 = smov 0   ;;  %s8688_s0 = inlined_call_operand.vmem [shape: f32[16,256], index: 0, kind: input, shape index: {}]   ;;  %s8689_s1 = inlined_call_operand.vmem [shape: f32[8,256], index: 1, kind: input, shape index: {}]   ;;  %s8690_s2 = inlined_call_operand.vmem [shape: bf16[128,8], index: 2, kind: input, shape index: {}]   ;;  %s8691_s3 = inlined_call_operand.vmem [shape: f32[128,1], index: 3, kind: input, shape index: {}]   ;;  %s8692_s4 = inlined_call_operand.vmem [shape: bf16[128,128], index: 4, kind: input, shape index: {}]   ;;  %s8693_s5 = inlined_call_operand.vmem [shape: f32[128,1], index: 5, kind: input, shape index: {}]   ;;  %s8694_s6 = inlined_call_operand.vmem [shape: bf16[8,128], index: 6, kind: input, shape index: {}]   ;;  %s8695_s7 = inlined_call_operand.vmem [shape: f32[8,1], index: 7, kind: input, shape index: {}]   ;;  %s8696_s8 = inlined_call_operand.vmem [shape: f32[2,1,128], index: 8, kind: output, shape index: {}]  }
   0x1   :  { %s5211_s29 = smov 0   ;;  %s5213_s30 = smov 0  }
   0x2   :  { %s5215_s9 = smov 0  }
   0x3 LB: > { %s30_s10 = sadd.s32 1, %s5153_s30  ;;  %p46_p1 = scmp.ne.s32.totalorder %s5145_s28, %s5141_s27  ;;  %s5157_s9 = sphi %s5215_s9, %s18_s9   ;;  %s5153_s30 = sphi %s5213_s30, %s9323_s30   ;;  %s5149_s29 = sphi %s5211_s29, %s9322_s29   ;;  %s5145_s28 = sphi %s5209_s28, %s9321_s28   ;;  %s5141_s27 = sphi %s5207_s27, %s9320_s27  }
   0x4   : > { %p32_p0 = scmp.ge.s32.totalorder %s30_s10, 2  ;;  %p47_p2 = scmp.eq.s32.totalorder %s5157_s9, 0 }
   0x5   : > { %s39_s12 = sadd.s32 1, %s5145_s28  ;;  %p4835_p5 = scmp.ge.s32.totalorder %s5157_s9, 2 }
   0x6   : > { %s9325_s10 = smov (%p32_p0, %s30_s10), 0  ;;  %p48_p3 = por %p47_p2, %p46_p1 }
   0x7   : > { %s36_s11 = ssub.s32 %s5153_s30, %s9325_s10  ;;  %270 = sbr.rel (%p4835_p5) target bundleno = 18 (0x12), region = 40 }
   0x8   : > { %p37_p4 = scmp.eq.s32.totalorder %s36_s11, 0 }
   0xa   : > { %s5242_s13 = scalar_select %p37_p4, %s5145_s28, %s39_s12  }
   0xc   : > { %273 = sbr.rel (!%p48_p3) target bundleno = 18 (0x12), region = 44  ;;  %s275_s14 = sand.u32 (%p48_p3), 1, %s5145_s28  }
   0xd   : > { %s4837_s15 = sshll.u32 (%p48_p3), %s5153_s30, 3  ;;  %s4836_s16 = sshll.u32 (%p48_p3), %s275_s14, 4 }
   0xe   : > { %s280_s19 = scalar_lea.vmem (%p48_p3), %s8688_s0, %s4837_s15  ;;  %s277_s20 = scalar_lea.vmem (%p48_p3), [#allocation2], %s4836_s16 }
   0xf   : > { %v311_v0 = vld [vmem:[%s280_s19] sm:$0xff] (%p48_p3)  ;;  %v313_v1 = vld [vmem:[%s280_s19 + $0x10] sm:$0xff] (%p48_p3) }
  0x10   : > { %312 = vst [vmem:[%s277_s20] sm:$0xff] (%p48_p3), %v311_v0 }
  0x11   : > { %314 = vst [vmem:[%s277_s20 + $0x8] sm:$0xff] %v313_v1 }
  0x12 PF: > { %p4838_p6 = scmp.ge.s32.totalorder %s5157_s9, 1  ;;  %p328_p7 = scmp.lt.s32.totalorder %s5157_s9, 3 }
  0x14   : > { %p329_p8 = pnand %p4838_p6, %p328_p7 }
  0x16   : > { %332 = sbr.rel (%p329_p8) target bundleno = 1453 (0x5ad), region = 86 }
  0x1b   : > { %v417_v2 = vld [vmem:[%s8691_s3 + $0x70] sm:$0xff]  ;;  %s335_s23 = sand.u32 1, %s5141_s27   ;;  %v5159_v3 = vmov 0   ;;  %v415_v4 = vld [vmem:[%s8691_s3 + $0x60] sm:$0xff]  ;;  %vm564_vm0 = vcmask 1043456   ;;  %v418_v13 = vld [vmem:[%s8691_s3 + $0x78] sm:$0xff] }
  0x1c   : > { %5002 = vset.pattern.permute.xlu0 %v5159_v3  ;;  %s4839_s24 = sshll.u32 %s335_s23, 4  ;;  %5004 = vset.pattern.permute.xlu2 %v5159_v3  ;;  %v413_v5 = vld [vmem:[%s8691_s3 + $0x50] sm:$0xff]  ;;  %v4939_v12 = vld [vmem:[%s8690_s2] sm:$0xff]  ;;  %vm539_vm1 = vcmask 64512   ;;  %v416_v14 = vld [vmem:[%s8691_s3 + $0x68] sm:$0xff]  ;;  %p373_p9 = scmp.lt.s32.totalorder %s5149_s29, 1 }
  0x1d   : > { %491 = vperm.xlu0 %5002, %v417_v2   ;;  %5003 = vset.pattern.permute.xlu1 %v5159_v3  ;;  %s337_s14 = scalar_lea.vmem [#allocation2], %s4839_s24  ;;  %v414_v15 = vld [vmem:[%s8691_s3 + $0x58] sm:$0xff]  ;;  %v411_v16 = vld [vmem:[%s8691_s3 + $0x40] sm:$0xff]  ;;  %v412_v17 = vld [vmem:[%s8691_s3 + $0x48] sm:$0xff] }
  0x1e   : > { %v382_v6 = vld [vmem:[%s337_s14] sm:$0xff]  ;;  %v383_v7 = vld [vmem:[%s337_s14 + $0x8] sm:$0xff]  ;;  %481 = vperm.xlu1 %5003, %v415_v4   ;;  %471 = vperm.xlu2 %5004, %v413_v5   ;;  %s9327_s29 = smov (!%p373_p9, %s5149_s29), 1 }
  0x1f   : > { %v385_v8 = vpack.c.bf16 %v382_v6, %v382_v6  ;;  %v386_v9 = vpack.c.bf16 %v383_v7, %v383_v7  ;;  %v409_v18 = vld [vmem:[%s8691_s3 + $0x30] sm:$0xff]  ;;  %v4940_v19 = vld [vmem:[%s8690_s2 + $0x8] sm:$0xff]  ;;  %v410_v20 = vld [vmem:[%s8691_s3 + $0x38] sm:$0xff]  ;;  %s4840_s24 = sshll.u32 %s9327_s29, 3  ;;  %s380_s11 = scalar_lea.vmem %s8696_s8, %s9327_s29 }
  0x20   : > { %v407_v21 = vld [vmem:[%s8691_s3 + $0x20] sm:$0xff]  ;;  %v408_v22 = vld [vmem:[%s8691_s3 + $0x28] sm:$0xff]  ;;  %v405_v23 = vld [vmem:[%s8691_s3 + $0x10] sm:$0xff]  ;;  %s5410_s14 = scalar_lea.vmem %s8689_s1, %s4840_s24 }
  0x21   : > { %v566_v10 = vsel %vm564_vm0, %v385_v8, 0  ;;  %v618_v11 = vsel %vm564_vm0, %v386_v9, 0  ;;  %v406_v24 = vld [vmem:[%s8691_s3 + $0x18] sm:$0xff]  ;;  %v403_v25 = vld [vmem:[%s8691_s3] sm:$0xff]  ;;  %v4941_v26 = vld [vmem:[%s8690_s2 + $0x10] sm:$0xff] }
  0x22   : > { %575 = vmatpush.bf16.msra.mxu0 %v566_v10  ;;  %627 = vmatpush.bf16.msra.mxu1 %v618_v11  ;;  %v404_v27 = vld [vmem:[%s8691_s3 + $0x8] sm:$0xff]  ;;  %v4942_v28 = vld [vmem:[%s8690_s2 + $0x18] sm:$0xff]  ;;  %v2589_v29 = vld [vmem:[%s8693_s5 + $0x60] sm:$0xff] }
  0x23   : > { %v2591_v30 = vld [vmem:[%s8693_s5 + $0x70] sm:$0xff]  ;;  %v2590_v31 = vld [vmem:[%s8693_s5 + $0x68] sm:$0xff]  ;;  %v4943_v32 = vld [vmem:[%s8690_s2 + $0x20] sm:$0xff] }
  0x24   : > { %v2588_v33 = vld [vmem:[%s8693_s5 + $0x58] sm:$0xff]  ;;  %v2585_v34 = vld [vmem:[%s8693_s5 + $0x40] sm:$0xff]  ;;  %v2583_v35 = vld [vmem:[%s8693_s5 + $0x30] sm:$0xff] }
  0x25   : > { %496 = vperm.xlu0 %5002, %v418_v13   ;;  %4873 = vmatmul.msk.bf16.vlgmr.msra.gmra.mxu0 %vm539_vm1, %v4939_v12  ;;  %v2584_v36 = vld [vmem:[%s8693_s5 + $0x38] sm:$0xff]  ;;  %v4944_v37 = vld [vmem:[%s8690_s2 + $0x28] sm:$0xff]  ;;  %v2579_v40 = vld [vmem:[%s8693_s5 + $0x10] sm:$0xff] }
  0x26   : > { %4881 = vmatmul.msk.bf16.vlgmr.msra.gmra.mxu1 %vm539_vm1, %v4939_v12  ;;  %486 = vperm.xlu1 %5003, %v416_v14   ;;  %v2582_v38 = vld [vmem:[%s8693_s5 + $0x28] sm:$0xff]  ;;  %v2592_v39 = vld [vmem:[%s8693_s5 + $0x78] sm:$0xff]  ;;  %v2577_v41 = vld [vmem:[%s8693_s5] sm:$0xff] }
  0x27   : > { %476 = vperm.xlu2 %5004, %v414_v15   ;;  %v2587_v42 = vld [vmem:[%s8693_s5 + $0x50] sm:$0xff]  ;;  %v2578_v43 = vld [vmem:[%s8693_s5 + $0x8] sm:$0xff]  ;;  %v2581_v46 = vld [vmem:[%s8693_s5 + $0x20] sm:$0xff] }
  0x28   : > { %v4945_v44 = vld [vmem:[%s8690_s2 + $0x30] sm:$0xff]  ;;  %v2586_v45 = vld [vmem:[%s8693_s5 + $0x48] sm:$0xff]  ;;  %v4946_v48 = vld [vmem:[%s8690_s2 + $0x38] sm:$0xff] }
  0x29   : > { %v2580_v50 = vld [vmem:[%s8693_s5 + $0x18] sm:$0xff]  ;;  %v3890_v53 = vld [vmem:[%s8695_s7] sm:$0xff] }
  0x2a   : > { %v5413_v55 = vld [vmem:[%s5410_s14] sm:$0xff] }
  0x2b   : > { %v670_v59 = vrot.slane %v5413_v55, 7 }
  0x2d   : > { %461 = vperm.xlu0 %5002, %v411_v16   ;;  %v5425_v62 = vsub.f32 %v5413_v55, %v670_v59 }
  0x2e   : > { %466 = vperm.xlu1 %5003, %v412_v17  }
  0x2f   : > { %451 = vperm.xlu2 %5004, %v409_v18   ;;  %8807 = vst [vmem:[#allocation4_spill] sm:$0xff] %v5425_v62  ;;  %v673_v1 = vmul.f32 0.03125, %v5425_v62  ;;  %v743_v2 = vmul.f32 0.09375, %v5425_v62  ;;  %v813_v3 = vmul.f32 0.15625, %v5425_v62  ;;  %v883_v4 = vmul.f32 0.21875, %v5425_v62 }
  0x30   : > { %v953_v18 = vmul.f32 0.28125, %v5425_v62 }
  0x31   : > { %v675_v7 = vrot.slane %v673_v1, 1  ;;  %v745_v8 = vrot.slane %v743_v2, 1  ;;  %v815_v9 = vrot.slane %v813_v3, 1  ;;  %v885_v11 = vrot.slane %v883_v4, 1 }
  0x33   : > { %v677_v14 = vadd.f32 %v675_v7, %v5413_v55  ;;  %v747_v15 = vadd.f32 %v745_v8, %v5413_v55  ;;  %v817_v16 = vadd.f32 %v815_v9, %v5413_v55  ;;  %v887_v17 = vadd.f32 %v885_v11, %v5413_v55 }
  0x35   : > { %456 = vperm.xlu0 %5002, %v410_v20   ;;  %4874 = vmatmul.msk.bf16.gmra.mxu0 %vm539_vm1, %v4940_v19  ;;  %v5450_v20 = vperm.slane %v677_v14, 0 }
  0x36   : > { %4882 = vmatmul.msk.bf16.gmra.mxu1 %vm539_vm1, %v4940_v19  ;;  %441 = vperm.xlu1 %5003, %v407_v21   ;;  %v5452_v21 = vperm.slane %v747_v15, 0 }
  0x37   : > { %446 = vperm.xlu2 %5004, %v408_v22   ;;  %v5454_v22 = vperm.slane %v817_v16, 0 }
  0x3d   : > { %431 = vperm.xlu0 %5002, %v405_v23  }
  0x3e   : > { %436 = vperm.xlu1 %5003, %v406_v24   ;;  %v5456_v24 = vperm.slane %v887_v17, 0 }
  0x3f   : > { %421 = vperm.xlu2 %5004, %v403_v25  }
  0x45   : > { %426 = vperm.xlu0 %5002, %v404_v27   ;;  %4875 = vmatmul.msk.bf16.gmra.mxu0 %vm539_vm1, %v4941_v26  ;;  %v1023_v27 = vmul.f32 0.34375, %v5425_v62 }
  0x46   : > { %4883 = vmatmul.msk.bf16.gmra.mxu1 %vm539_vm1, %v4941_v26  ;;  %2665 = vperm.xlu1 %5003, %v2591_v30   ;;  %v955_v26 = vrot.slane %v953_v18, 1 }
  0x47   : > { %2670 = vperm.xlu2 %5004, %v2592_v39  }
  0x4d   : > { %2655 = vperm.xlu0 %5002, %v2589_v29   ;;  %v1163_v29 = vmul.f32 0.46875, %v5425_v62 }
  0x4e   : > { %2660 = vperm.xlu1 %5003, %v2590_v31  }
  0x4f   : > { %2645 = vperm.xlu2 %5004, %v2587_v42  }
  0x55   : > { %4876 = vmatmul.msk.bf16.gmra.mxu0 %vm539_vm1, %v4942_v28  ;;  %2650 = vperm.xlu0 %5002, %v2588_v33  }
  0x56   : > { %4884 = vmatmul.msk.bf16.gmra.mxu1 %vm539_vm1, %v4942_v28  ;;  %2635 = vperm.xlu1 %5003, %v2585_v34   ;;  %v1093_v28 = vmul.f32 0.40625, %v5425_v62 }
  0x57   : > { %2640 = vperm.xlu2 %5004, %v2586_v45  }
  0x58   : > { %v1095_v39 = vrot.slane %v1093_v28, 1 }
  0x5a   : > { %v1097_v2 = vadd.f32 %v1095_v39, %v5413_v55 }
  0x5d   : > { %2625 = vperm.xlu0 %5002, %v2583_v35  }
  0x5e   : > { %2630 = vperm.xlu1 %5003, %v2584_v36  }
  0x5f   : > { %2615 = vperm.xlu2 %5004, %v2581_v46  }
  0x65   : > { %4877 = vmatmul.msk.bf16.gmra.mxu0 %vm539_vm1, %v4943_v32  ;;  %2620 = vperm.xlu0 %5002, %v2582_v38   ;;  %v1025_v38 = vrot.slane %v1023_v27, 1 }
  0x66   : > { %4885 = vmatmul.msk.bf16.gmra.mxu1 %vm539_vm1, %v4943_v32  ;;  %2605 = vperm.xlu1 %5003, %v2579_v40   ;;  %v1165_v40 = vrot.slane %v1163_v29, 1  ;;  %v5511_v29 = vperm.slane %v1097_v2, 0 }
  0x67   : > { %2610 = vperm.xlu2 %5004, %v2580_v50   ;;  %v1027_v1 = vadd.f32 %v1025_v38, %v5413_v55 }
  0x68   : > { %v1167_v3 = vadd.f32 %v1165_v40, %v5413_v55 }
  0x69   : > { %v5509_v28 = vperm.slane %v1027_v1, 0 }
  0x6d   : > { %2595 = vperm.xlu0 %5002, %v2577_v41  }
  0x6e   : > { %2600 = vperm.xlu1 %5003, %v2578_v43  }
  0x6f   : > { %3893 = vperm.xlu2 %5004, %v3890_v53  }
  0x75   : > { %4878 = vmatmul.msk.bf16.gmra.mxu0 %vm539_vm1, %v4944_v37 }
  0x76   : > { %4886 = vmatmul.msk.bf16.gmra.mxu1 %vm539_vm1, %v4944_v37  ;;  %v957_v37 = vadd.f32 %v955_v26, %v5413_v55 }
  0x78   : > { %v5381_v47 = vpop.permute.xlu2 %471  ;;  %v5498_v11 = vperm.slane %v957_v37, 0 }
  0x81   : > { %v5399_v52 = vpop.permute.xlu2 %476 }
  0x85   : > { %4879 = vmatmul.msk.bf16.gmra.mxu0 %vm539_vm1, %v4945_v44 }
  0x86   : > { %4887 = vmatmul.msk.bf16.gmra.mxu1 %vm539_vm1, %v4945_v44 }
  0x89   : > { %v5420_v60 = vpop.permute.xlu2 %451 }
  0x8f   : > { %v5386_v49 = vpop.permute.xlu0 %491 }
  0x90   : > { %v5397_v51 = vpop.permute.xlu1 %481 }
  0x91   : > { %v5437_v6 = vpop.permute.xlu2 %446 }
  0x95   : > { %4880 = vmatmul.msk.bf16.gmra.mxu0 %vm539_vm1, %v4946_v48 }
  0x96   : > { %4888 = vmatmul.msk.bf16.gmra.mxu1 %vm539_vm1, %v4946_v48 }
  0x97   : > { %v5405_v54 = vpop.permute.xlu0 %496 }
  0x98   : > { %v5417_v58 = vpop.permute.xlu1 %486 }
  0x99   : > { %v422_v23 = vpop.permute.xlu2 %421 }
  0x9f   : > { %v5422_v61 = vpop.permute.xlu0 %461 }
  0xa0   : > { %v5435_v5 = vpop.permute.xlu1 %466 }
  0xa2   : > { %v577_v56 = vpop.f32.mrf.mxu0 }
  0xa3   : > { %v5415_v57 = vpop.f32.mrf.mxu1  ;;  %v5463_v32 = vadd.f32 %v577_v56, %v422_v23 }
  0xa4   : > { %8806 = vst [vmem:[#allocation3_spill] sm:$0xff] %v5415_v57  ;;  %v679_v33 = vmul.f32 %v5450_v20, %v5415_v57  ;;  %v749_v34 = vmul.f32 %v5452_v21, %v5415_v57  ;;  %v819_v35 = vmul.f32 %v5454_v22, %v5415_v57  ;;  %v889_v36 = vmul.f32 %v5456_v24, %v5415_v57 }
  0xa5   : > { %8811 = vst [vmem:[#allocation8_spill] sm:$0xff] %v5463_v32 }
  0xa6   : > { %v695_v46 = vadd.f32 %v679_v33, %v5463_v32  ;;  %v765_v48 = vadd.f32 %v749_v34, %v5463_v32  ;;  %v835_v50 = vadd.f32 %v819_v35, %v5463_v32  ;;  %v905_v53 = vadd.f32 %v889_v36, %v5463_v32 }
  0xa7   : > { %v5439_v10 = vpop.permute.xlu0 %456 }
  0xa8   : > { %v5448_v19 = vpop.permute.xlu1 %441  ;;  %v711_v14 = vmax.f32 %v695_v46, 0.0  ;;  %v781_v15 = vmax.f32 %v765_v48, 0.0  ;;  %v851_v16 = vmax.f32 %v835_v50, 0.0  ;;  %v921_v26 = vmax.f32 %v905_v53, 0.0 }
  0xaa   : > { %v5427_v63 = vpop.f32.mrf.mxu0  ;;  %v5520_v38 = vpack.c.bf16 %v711_v14, %v711_v14  ;;  %v5522_v39 = vpack.c.bf16 %v781_v15, %v781_v15 }
  0xab   : > { %v5429_v0 = vpop.f32.mrf.mxu1 }
  0xac   : > { %8808 = vst [vmem:[#allocation5_spill] sm:$0xff] %v5429_v0  ;;  %v750_v48 = vmul.f32 %v5452_v21, %v5429_v0  ;;  %v820_v50 = vmul.f32 %v5454_v22, %v5429_v0 }
  0xaf   : > { %v432_v30 = vpop.permute.xlu0 %431 }
  0xb0   : > { %v437_v56 = vpop.permute.xlu1 %436 }
  0xb2   : > { %v582_v12 = vpop.f32.mrf.mxu0 }
  0xb3   : > { %v5441_v13 = vpop.f32.mrf.mxu1  ;;  %v5474_v41 = vadd.f32 %v582_v12, %v432_v30  ;;  %v5513_v30 = vperm.slane %v1167_v3, 0 }
  0xb4   : > { %8809 = vst [vmem:[#allocation6_spill] sm:$0xff] %v5441_v13  ;;  %v681_v42 = vmul.f32 %v5450_v20, %v5441_v13  ;;  %v751_v43 = vmul.f32 %v5452_v21, %v5441_v13  ;;  %v821_v44 = vmul.f32 %v5454_v22, %v5441_v13  ;;  %v891_v45 = vmul.f32 %v5456_v24, %v5441_v13 }
  0xb5   : > { %8812 = vst [vmem:[#allocation9_spill] sm:$0xff] %v5474_v41 }
  0xb6   : > { %v697_v7 = vadd.f32 %v681_v42, %v5474_v41  ;;  %v767_v8 = vadd.f32 %v751_v43, %v5474_v41  ;;  %v837_v9 = vadd.f32 %v821_v44, %v5474_v41  ;;  %v907_v12 = vadd.f32 %v891_v45, %v5474_v41 }
  0xb7   : > { %v427_v17 = vpop.permute.xlu0 %426  ;;  %v5526_v43 = vpack.c.bf16 %v851_v16, %v851_v16  ;;  %v5528_v44 = vpack.c.bf16 %v921_v26, %v921_v26  ;;  %v890_v26 = vmul.f32 %v5456_v24, %v5429_v0 }
  0xb8   : > { %v713_v33 = vmax.f32 %v697_v7, 0.0  ;;  %v783_v34 = vmax.f32 %v767_v8, 0.0  ;;  %v5518_v36 = vadd.f32 %v5427_v63, %v427_v17  ;;  %v923_v37 = vmax.f32 %v907_v12, 0.0 }
  0xb9   : > { %v680_v63 = vmul.f32 %v5450_v20, %v5429_v0 }
  0xba   : > { %v584_v25 = vpop.f32.mrf.mxu0  ;;  %8815 = vst [vmem:[#allocation12_spill] sm:$0xff] %v5518_v36  ;;  %v5539_v1 = vpack.c.bf16 %v783_v34, %v783_v34  ;;  %v5544_v7 = vpack.c.bf16 %v923_v37, %v923_v37  ;;  %v836_v12 = vadd.f32 %v820_v50, %v5518_v36 }
  0xbb   : > { %v5461_v31 = vpop.f32.mrf.mxu1  ;;  %v5501_v18 = vadd.f32 %v584_v25, %v437_v56  ;;  %v853_v25 = vmax.f32 %v837_v9, 0.0  ;;  %v729_v56 = vpack.c.bf16 %v713_v33, %v713_v33  ;;  %v696_v8 = vadd.f32 %v680_v63, %v5518_v36 }
  0xbc   : > { %8810 = vst [vmem:[#allocation7_spill] sm:$0xff] %v5461_v31  ;;  %v682_v55 = vmul.f32 %v5450_v20, %v5461_v31  ;;  %v752_v23 = vmul.f32 %v5452_v21, %v5461_v31  ;;  %v822_v27 = vmul.f32 %v5454_v22, %v5461_v31  ;;  %v892_v35 = vmul.f32 %v5456_v24, %v5461_v31 }
  0xbd   : > { %8814 = vst [vmem:[#allocation11_spill] sm:$0xff] %v5501_v18  ;;  %v5541_v2 = vpack.c.bf16 %v853_v25, %v853_v25  ;;  %v766_v9 = vadd.f32 %v750_v48, %v5518_v36  ;;  %v1811_v33 = vunpack.c.l.b16 %v729_v56  ;;  %v1859_v34 = vunpack.c.l.b16 %v5539_v1 }
  0xbe   : > { %v698_v40 = vadd.f32 %v682_v55, %v5501_v18  ;;  %v768_v42 = vadd.f32 %v752_v23, %v5501_v18  ;;  %v838_v46 = vadd.f32 %v822_v27, %v5501_v18  ;;  %v908_v3 = vadd.f32 %v892_v35, %v5501_v18 }
  0xbf   : > { %v1907_v25 = vunpack.c.l.b16 %v5541_v2  ;;  %v1955_v37 = vunpack.c.l.b16 %v5544_v7  ;;  %v852_v63 = vmax.f32 %v836_v12, 0.0 }
  0xc0   : > { %v714_v14 = vmax.f32 %v698_v40, 0.0  ;;  %v784_v15 = vmax.f32 %v768_v42, 0.0  ;;  %v854_v55 = vmax.f32 %v838_v46, 0.0  ;;  %v924_v35 = vmax.f32 %v908_v3, 0.0 }
  0xc1   : > { %v712_v40 = vmax.f32 %v696_v8, 0.0  ;;  %v782_v42 = vmax.f32 %v766_v9, 0.0  ;;  %v868_v16 = vpack.c.bf16 %v852_v63, %v852_v63 }
  0xc2   : > { %v5488_v59 = vpop.f32.mrf.mxu0  ;;  %v730_v50 = vpack.c.bf16 %v714_v14, %v714_v14  ;;  %v800_v27 = vpack.c.bf16 %v784_v15, %v784_v15  ;;  %v870_v7 = vpack.c.bf16 %v854_v55, %v854_v55  ;;  %v906_v15 = vadd.f32 %v890_v26, %v5518_v36 }
  0xc3   : > { %v5493_v4 = vpop.f32.mrf.mxu1  ;;  %v5560_v46 = vadd.f32 %v5488_v59, %v5448_v19  ;;  %v728_v12 = vpack.c.bf16 %v712_v40, %v712_v40  ;;  %v798_v14 = vpack.c.bf16 %v782_v42, %v782_v42 }
  0xc4   : > { %8813 = vst [vmem:[#allocation10_spill] sm:$0xff] %v5493_v4  ;;  %v683_v48 = vmul.f32 %v5450_v20, %v5493_v4  ;;  %v753_v3 = vmul.f32 %v5452_v21, %v5493_v4  ;;  %v823_v59 = vmul.f32 %v5454_v22, %v5493_v4  ;;  %v1812_v17 = vunpack.c.l.b16 %v730_v50 }
  0xc5   : > { %8817 = vst [vmem:[#allocation14_spill] sm:$0xff] %v5560_v46  ;;  %v1860_v0 = vunpack.c.l.b16 %v800_v27  ;;  %v1810_v36 = vunpack.c.l.b16 %v728_v12  ;;  %v1858_v18 = vunpack.c.l.b16 %v798_v14  ;;  %v922_v41 = vmax.f32 %v906_v15, 0.0 }
  0xc6   : > { %v699_v55 = vadd.f32 %v683_v48, %v5560_v46  ;;  %v769_v32 = vadd.f32 %v753_v3, %v5560_v46  ;;  %v839_v40 = vadd.f32 %v823_v59, %v5560_v46  ;;  %v1906_v3 = vunpack.c.l.b16 %v868_v16 }
  0xc7   : > { %v8827_v16 = vunpack.c.l.b16 %v5522_v39 }
  0xc8   : > { %v715_v50 = vmax.f32 %v699_v55, 0.0  ;;  %v785_v31 = vmax.f32 %v769_v32, 0.0 }
  0xca   : > { %v589_v45 = vpop.f32.mrf.mxu0 }
  0xcb   : > { %v5537_v53 = vpop.f32.mrf.mxu1  ;;  %v5565_v56 = vadd.f32 %v589_v45, %v5437_v6  ;;  %v893_v6 = vmul.f32 %v5456_v24, %v5493_v4  ;;  %v940_v45 = vpack.c.bf16 %v924_v35, %v924_v35  ;;  %v1908_v35 = vunpack.c.l.b16 %v870_v7 }
  0xcc   : > { %8816 = vst [vmem:[#allocation13_spill] sm:$0xff] %v5537_v53  ;;  %v684_v2 = vmul.f32 %v5450_v20, %v5537_v53  ;;  %v754_v19 = vmul.f32 %v5452_v21, %v5537_v53  ;;  %v824_v9 = vmul.f32 %v5454_v22, %v5537_v53  ;;  %v894_v23 = vmul.f32 %v5456_v24, %v5537_v53 }
  0xcd   : > { %8818 = vst [vmem:[#allocation15_spill] sm:$0xff] %v5565_v56  ;;  %v909_v42 = vadd.f32 %v893_v6, %v5560_v46  ;;  %v1956_v26 = vunpack.c.l.b16 %v940_v45  ;;  %v5596_v59 = vpack.c.b16 %v1908_v35, %v1907_v25 }
  0xce   : > { %v700_v62 = vadd.f32 %v684_v2, %v5565_v56  ;;  %v770_v57 = vadd.f32 %v754_v19, %v5565_v56  ;;  %v840_v48 = vadd.f32 %v824_v9, %v5565_v56  ;;  %v910_v63 = vadd.f32 %v894_v23, %v5565_v56 }
  0xcf   : > { %v5592_v2 = vpack.c.b16 %v1812_v17, %v1811_v33  ;;  %v5594_v19 = vpack.c.b16 %v1860_v0, %v1859_v34  ;;  %8822 = vst [vmem:[#allocation19_spill] sm:$0xff] %v5596_v59  ;;  %v855_v9 = vmax.f32 %v839_v40, 0.0  ;;  %v925_v12 = vmax.f32 %v909_v42, 0.0 }
  0xd0   : > { %v716_v7 = vmax.f32 %v700_v62, 0.0  ;;  %v786_v45 = vmax.f32 %v770_v57, 0.0  ;;  %v5600_v14 = vpack.c.b16 %v1956_v26, %v1955_v37  ;;  %v856_v15 = vmax.f32 %v840_v48, 0.0 }
  0xd1   : > { %8820 = vst [vmem:[#allocation17_spill] sm:$0xff] %v5592_v2  ;;  %v8825_v23 = vunpack.c.l.b16 %v5520_v38  ;;  %v5608_v62 = vpack.c.b16 %v1858_v18, %v8827_v16  ;;  %v938_v0 = vpack.c.bf16 %v922_v41, %v922_v41  ;;  %v731_v33 = vpack.c.bf16 %v715_v50, %v715_v50 }
  0xd2   : > { %v592_v1 = vpop.f32.mrf.mxu0  ;;  %8821 = vst [vmem:[#allocation18_spill] sm:$0xff] %v5594_v19  ;;  %v926_v34 = vmax.f32 %v910_v63, 0.0  ;;  %v732_v37 = vpack.c.bf16 %v716_v7, %v716_v7  ;;  %v801_v38 = vpack.c.bf16 %v785_v31, %v785_v31  ;;  %v802_v18 = vpack.c.bf16 %v786_v45, %v786_v45 }
  0xd3   : > { %v5571_v8 = vpop.f32.mrf.mxu1  ;;  %8824 = vst [vmem:[#allocation21_spill] sm:$0xff] %v5600_v14  ;;  %v5604_v17 = vpack.c.b16 %v1810_v36, %v8825_v23  ;;  %v5611_v32 = vadd.f32 %v592_v1, %v5420_v60  ;;  %v8830_v36 = vunpack.c.l.b16 %v5526_v43  ;;  %v871_v39 = vpack.c.bf16 %v855_v9, %v855_v9 }
  0xd4   : > { %8819 = vst [vmem:[#allocation16_spill] sm:$0xff] %v5571_v8  ;;  %v685_v57 = vmul.f32 %v5450_v20, %v5571_v8  ;;  %v755_v25 = vmul.f32 %v5452_v21, %v5571_v8  ;;  %v825_v41 = vmul.f32 %v5454_v22, %v5571_v8  ;;  %v895_v60 = vmul.f32 %v5456_v24, %v5571_v8 }
  0xd5   : > { %8826 = vst [vmem:[#allocation22_spill] sm:$0xff] %v5604_v17  ;;  %v5619_v55 = vpack.c.b16 %v1906_v3, %v8830_v36  ;;  %v872_v40 = vpack.c.bf16 %v856_v15, %v856_v15  ;;  %v941_v31 = vpack.c.bf16 %v925_v12, %v925_v12  ;;  %v1813_v42 = vunpack.c.l.b16 %v731_v33 }
  0xd6   : > { %8828 = vst [vmem:[#allocation23_spill] sm:$0xff] %v5608_v62  ;;  %v701_v43 = vadd.f32 %v685_v57, %v5611_v32  ;;  %v942_v26 = vpack.c.bf16 %v926_v34, %v926_v34  ;;  %v1954_v48 = vunpack.c.l.b16 %v938_v0  ;;  %v771_v3 = vadd.f32 %v755_v25, %v5611_v32 }
  0xd7   : > { %8829 = vst [vmem:[#allocation24_spill] sm:$0xff] %v5611_v32  ;;  %v841_v45 = vadd.f32 %v825_v41, %v5611_v32  ;;  %v911_v12 = vadd.f32 %v895_v60, %v5611_v32  ;;  %v1862_v15 = vunpack.c.l.b16 %v802_v18  ;;  %v1861_v16 = vunpack.c.l.b16 %v801_v38 }
  0xd8   : > { %8831 = vst [vmem:[#allocation25_spill] sm:$0xff] %v5619_v55  ;;  %v1909_v0 = vunpack.c.l.b16 %v871_v39  ;;  %v1910_v57 = vunpack.c.l.b16 %v872_v40  ;;  %v717_v33 = vmax.f32 %v701_v43, 0.0  ;;  %v1957_v34 = vunpack.c.l.b16 %v941_v31 }
  0xd9   : > { %v1958_v25 = vunpack.c.l.b16 %v942_v26  ;;  %v787_v13 = vmax.f32 %v771_v3, 0.0  ;;  %v857_v60 = vmax.f32 %v841_v45, 0.0  ;;  %v927_v38 = vmax.f32 %v911_v12, 0.0 }
  0xda   : > { %v594_v27 = vpop.f32.mrf.mxu0  ;;  %v5652_v39 = vpack.c.b16 %v1862_v15, %v1861_v16  ;;  %v5659_v31 = vpack.c.b16 %v1910_v57, %v1909_v0  ;;  %v733_v26 = vpack.c.bf16 %v717_v33, %v717_v33 }
  0xdb   : > { %v5598_v6 = vpop.f32.mrf.mxu1  ;;  %v5626_v1 = vadd.f32 %v594_v27, %v5439_v10  ;;  %v1814_v27 = vunpack.c.l.b16 %v732_v37  ;;  %v8834_v37 = vunpack.c.l.b16 %v5528_v44  ;;  %v803_v3 = vpack.c.bf16 %v787_v13, %v787_v13 }
  0xdc   : > { %8823 = vst [vmem:[#allocation20_spill] sm:$0xff] %v5598_v6  ;;  %v686_v35 = vmul.f32 %v5450_v20, %v5598_v6  ;;  %v756_v63 = vmul.f32 %v5452_v21, %v5598_v6  ;;  %v826_v10 = vmul.f32 %v5454_v22, %v5598_v6  ;;  %v896_v9 = vmul.f32 %v5456_v24, %v5598_v6 }
  0xdd   : > { %8832 = vst [vmem:[#allocation26_spill] sm:$0xff] %v5626_v1  ;;  %v5645_v36 = vpack.c.b16 %v1954_v48, %v8834_v37  ;;  %v5649_v46 = vpack.c.b16 %v1814_v27, %v1813_v42  ;;  %v5665_v48 = vpack.c.b16 %v1958_v25, %v1957_v34  ;;  %v943_v15 = vpack.c.bf16 %v927_v38, %v927_v38 }
  0xde   : > { %v702_v23 = vadd.f32 %v686_v35, %v5626_v1  ;;  %v772_v41 = vadd.f32 %v756_v63, %v5626_v1  ;;  %v842_v56 = vadd.f32 %v826_v10, %v5626_v1  ;;  %v912_v18 = vadd.f32 %v896_v9, %v5626_v1  ;;  %8837 = vst [vmem:[#allocation30_spill] sm:$0xff] %v5652_v39 }
  0xdf   : > { %8835 = vst [vmem:[#allocation28_spill] sm:$0xff] %v5645_v36  ;;  %v873_v9 = vpack.c.bf16 %v857_v60, %v857_v60 }
  0xe0   : > { %8836 = vst [vmem:[#allocation29_spill] sm:$0xff] %v5649_v46  ;;  %v718_v40 = vmax.f32 %v702_v23, 0.0  ;;  %v858_v10 = vmax.f32 %v842_v56, 0.0  ;;  %v928_v12 = vmax.f32 %v912_v18, 0.0 }
  0xe1   : > { %8839 = vst [vmem:[#allocation32_spill] sm:$0xff] %v5659_v31 }
  0xe2   : > { %v597_v50 = vpop.f32.mrf.mxu0  ;;  %8840 = vst [vmem:[#allocation33_spill] sm:$0xff] %v5665_v48  ;;  %v734_v57 = vpack.c.bf16 %v718_v40, %v718_v40  ;;  %v1863_v40 = vunpack.c.l.b16 %v803_v3 }
  0xe3   : > { %v5636_v7 = vpop.f32.mrf.mxu1  ;;  %v5655_v35 = vadd.f32 %v597_v50, %v5422_v61  ;;  %v788_v50 = vmax.f32 %v772_v41, 0.0  ;;  %v874_v41 = vpack.c.bf16 %v858_v10, %v858_v10 }
  0xe4   : > { %8833 = vst [vmem:[#allocation27_spill] sm:$0xff] %v5636_v7  ;;  %v687_v44 = vmul.f32 %v5450_v20, %v5636_v7  ;;  %v757_v43 = vmul.f32 %v5452_v21, %v5636_v7  ;;  %v827_v42 = vmul.f32 %v5454_v22, %v5636_v7  ;;  %v897_v61 = vmul.f32 %v5456_v24, %v5636_v7 }
  0xe5   : > { %8838 = vst [vmem:[#allocation31_spill] sm:$0xff] %v5655_v35  ;;  %v804_v37 = vpack.c.bf16 %v788_v50, %v788_v50  ;;  %v1816_v32 = vunpack.c.l.b16 %v734_v57  ;;  %v1912_v10 = vunpack.c.l.b16 %v874_v41 }
  0xe6   : > { %v703_v16 = vadd.f32 %v687_v44, %v5655_v35  ;;  %v773_v13 = vadd.f32 %v757_v43, %v5655_v35  ;;  %v843_v56 = vadd.f32 %v827_v42, %v5655_v35  ;;  %v913_v25 = vadd.f32 %v897_v61, %v5655_v35 }
  0xe7   : > { %v1815_v44 = vunpack.c.l.b16 %v733_v26  ;;  %v1911_v43 = vunpack.c.l.b16 %v873_v9  ;;  %v1959_v42 = vunpack.c.l.b16 %v943_v15  ;;  %v1864_v50 = vunpack.c.l.b16 %v804_v37 }
  0xe8   : > { %v719_v53 = vmax.f32 %v703_v16, 0.0  ;;  %v789_v4 = vmax.f32 %v773_v13, 0.0  ;;  %v859_v1 = vmax.f32 %v843_v56, 0.0  ;;  %v929_v61 = vmax.f32 %v913_v25, 0.0 }
  0xe9   : > { %v5709_v8 = vpack.c.b16 %v1864_v50, %v1863_v40 }
  0xea   : > { %v599_v63 = vpop.f32.mrf.mxu0  ;;  %v735_v57 = vpack.c.bf16 %v719_v53, %v719_v53  ;;  %v875_v13 = vpack.c.bf16 %v859_v1, %v859_v1 }
  0xeb   : > { %v5670_v27 = vadd.f32 %v599_v63, %v5435_v5  ;;  %v5672_v45 = vpop.f32.mrf.mxu1  ;;  %v944_v63 = vpack.c.bf16 %v928_v12, %v928_v12  ;;  %8844 = vst [vmem:[#allocation37_spill] sm:$0xff] %v5709_v8 }
  0xec   : > { %8842 = vst [vmem:[#allocation35_spill] sm:$0xff] %v5672_v45  ;;  %v688_v23 = vmul.f32 %v5450_v20, %v5672_v45  ;;  %v758_v0 = vmul.f32 %v5452_v21, %v5672_v45  ;;  %v828_v5 = vmul.f32 %v5454_v22, %v5672_v45  ;;  %v898_v33 = vmul.f32 %v5456_v24, %v5672_v45 }
  0xed   : > { %8841 = vst [vmem:[#allocation34_spill] sm:$0xff] %v5670_v27  ;;  %v1960_v56 = vunpack.c.l.b16 %v944_v63  ;;  %v1817_v63 = vunpack.c.l.b16 %v735_v57 }
  0xee   : > { %v704_v34 = vadd.f32 %v688_v23, %v5670_v27  ;;  %v774_v60 = vadd.f32 %v758_v0, %v5670_v27  ;;  %v844_v18 = vadd.f32 %v828_v5, %v5670_v27  ;;  %v914_v38 = vadd.f32 %v898_v33, %v5670_v27 }
  0xf0   : > { %v720_v6 = vmax.f32 %v704_v34, 0.0  ;;  %v790_v33 = vmax.f32 %v774_v60, 0.0  ;;  %v860_v26 = vmax.f32 %v844_v18, 0.0  ;;  %v930_v3 = vmax.f32 %v914_v38, 0.0 }
  0xf1   : > { %v945_v38 = vpack.c.bf16 %v929_v61, %v929_v61 }
  0xf2   : > { %v602_v23 = vpop.f32.mrf.mxu0  ;;  %v736_v60 = vpack.c.bf16 %v720_v6, %v720_v6  ;;  %v806_v18 = vpack.c.bf16 %v790_v33, %v790_v33  ;;  %v876_v36 = vpack.c.bf16 %v860_v26, %v860_v26  ;;  %v946_v55 = vpack.c.bf16 %v930_v3, %v930_v3 }
  0xf3   : > { %v5691_v0 = vadd.f32 %v602_v23, %v5381_v47  ;;  %v5693_v5 = vpop.f32.mrf.mxu1  ;;  %v805_v47 = vpack.c.bf16 %v789_v4, %v789_v4  ;;  %v5707_v23 = vpack.c.b16 %v1816_v32, %v1815_v44  ;;  %v5711_v4 = vpack.c.b16 %v1912_v10, %v1911_v43 }
  0xf4   : > { %v689_v9 = vmul.f32 %v5450_v20, %v5693_v5  ;;  %v759_v12 = vmul.f32 %v5452_v21, %v5693_v5  ;;  %v829_v15 = vmul.f32 %v5454_v22, %v5693_v5  ;;  %v899_v16 = vmul.f32 %v5456_v24, %v5693_v5 }
  0xf5   : > { %8843 = vst [vmem:[#allocation36_spill] sm:$0xff] %v5707_v23  ;;  %v1913_v6 = vunpack.c.l.b16 %v875_v13  ;;  %v1818_v44 = vunpack.c.l.b16 %v736_v60  ;;  %v1866_v40 = vunpack.c.l.b16 %v806_v18  ;;  %v1961_v50 = vunpack.c.l.b16 %v945_v38 }
  0xf6   : > { %v705_v34 = vadd.f32 %v689_v9, %v5691_v0  ;;  %v775_v25 = vadd.f32 %v759_v12, %v5691_v0  ;;  %v845_v37 = vadd.f32 %v829_v15, %v5691_v0  ;;  %v915_v41 = vadd.f32 %v899_v16, %v5691_v0  ;;  %8845 = vst [vmem:[#allocation38_spill] sm:$0xff] %v5711_v4 }
  0xf7   : > { %v5713_v9 = vpack.c.b16 %v1960_v56, %v1959_v42  ;;  %v1865_v16 = vunpack.c.l.b16 %v805_v47  ;;  %v1914_v10 = vunpack.c.l.b16 %v876_v36  ;;  %v1962_v33 = vunpack.c.l.b16 %v946_v55 }
  0xf8   : > { %v721_v53 = vmax.f32 %v705_v34, 0.0  ;;  %v791_v1 = vmax.f32 %v775_v25, 0.0  ;;  %v861_v15 = vmax.f32 %v845_v37, 0.0  ;;  %v931_v62 = vmax.f32 %v915_v41, 0.0 }
  0xf9   : > { %8846 = vst [vmem:[#allocation39_spill] sm:$0xff] %v5713_v9  ;;  %v5732_v36 = vpack.c.b16 %v1818_v44, %v1817_v63  ;;  %v5734_v55 = vpack.c.b16 %v1866_v40, %v1865_v16  ;;  %v5736_v18 = vpack.c.b16 %v1914_v10, %v1913_v6  ;;  %v5738_v38 = vpack.c.b16 %v1962_v33, %v1961_v50 }
  0xfa   : > { %v604_v12 = vpop.f32.mrf.mxu0  ;;  %v737_v26 = vpack.c.bf16 %v721_v53, %v721_v53  ;;  %v807_v3 = vpack.c.bf16 %v791_v1, %v791_v1  ;;  %v877_v56 = vpack.c.bf16 %v861_v15, %v861_v15  ;;  %v947_v34 = vpack.c.bf16 %v931_v62, %v931_v62 }
  0xfb   : > { %v5716_v61 = vadd.f32 %v604_v12, %v5399_v52  ;;  %v5718_v32 = vpop.f32.mrf.mxu1  ;;  %8847 = vst [vmem:[#allocation40_spill] sm:$0xff] %v5738_v38  ;;  %v5747_v6 = vmul.f32 %v5498_v11, %v5693_v5 }
  0xfc   : > { %v690_v43 = vmul.f32 %v5450_v20, %v5718_v32  ;;  %v760_v42 = vmul.f32 %v5452_v21, %v5718_v32  ;;  %v830_v57 = vmul.f32 %v5454_v22, %v5718_v32  ;;  %v900_v52 = vmul.f32 %v5456_v24, %v5718_v32 }
  0xfd   : > { %v1819_v53 = vunpack.c.l.b16 %v737_v26  ;;  %v1867_v1 = vunpack.c.l.b16 %v807_v3  ;;  %v1963_v17 = vunpack.c.l.b16 %v947_v34 }
  0xfe   : > { %v706_v47 = vadd.f32 %v690_v43, %v5716_v61  ;;  %v776_v13 = vadd.f32 %v760_v42, %v5716_v61  ;;  %v846_v25 = vadd.f32 %v830_v57, %v5716_v61  ;;  %v916_v37 = vadd.f32 %v900_v52, %v5716_v61 }
  0xff   : > { %v1915_v57 = vunpack.c.l.b16 %v877_v56 }
 0x100   : > { %v722_v41 = vmax.f32 %v706_v47, 0.0  ;;  %v792_v60 = vmax.f32 %v776_v13, 0.0  ;;  %v862_v12 = vmax.f32 %v846_v25, 0.0  ;;  %v932_v43 = vmax.f32 %v916_v37, 0.0 }
 0x102   : > { %v607_v15 = vpop.f32.mrf.mxu0  ;;  %v738_v62 = vpack.c.bf16 %v722_v41, %v722_v41  ;;  %v808_v42 = vpack.c.bf16 %v792_v60, %v792_v60  ;;  %v878_v44 = vpack.c.bf16 %v862_v12, %v862_v12  ;;  %v948_v40 = vpack.c.bf16 %v932_v43, %v932_v43 }
 0x103   : > { %v5741_v63 = vadd.f32 %v607_v15, %v5397_v51  ;;  %v5743_v16 = vpop.f32.mrf.mxu1 }
 0x104   : > { %8848 = vst [vmem:[#allocation41_spill] sm:$0xff] %v5743_v16  ;;  %v691_v50 = vmul.f32 %v5450_v20, %v5743_v16  ;;  %v761_v10 = vmul.f32 %v5452_v21, %v5743_v16  ;;  %v831_v33 = vmul.f32 %v5454_v22, %v5743_v16  ;;  %v901_v51 = vmul.f32 %v5456_v24, %v5743_v16 }
 0x105   : > { %v1820_v26 = vunpack.c.l.b16 %v738_v62  ;;  %v1868_v3 = vunpack.c.l.b16 %v808_v42  ;;  %v1916_v52 = vunpack.c.l.b16 %v878_v44  ;;  %v1964_v47 = vunpack.c.l.b16 %v948_v40 }
 0x106   : > { %v707_v13 = vadd.f32 %v691_v50, %v5741_v63  ;;  %v777_v56 = vadd.f32 %v761_v10, %v5741_v63  ;;  %v847_v34 = vadd.f32 %v831_v33, %v5741_v63  ;;  %v917_v25 = vadd.f32 %v901_v51, %v5741_v63 }
 0x107   : > { %v5761_v37 = vpack.c.b16 %v1820_v26, %v1819_v53  ;;  %v5763_v41 = vpack.c.b16 %v1868_v3, %v1867_v1  ;;  %v5765_v60 = vpack.c.b16 %v1916_v52, %v1915_v57  ;;  %v5767_v12 = vpack.c.b16 %v1964_v47, %v1963_v17 }
 0x108   : > { %v723_v43 = vmax.f32 %v707_v13, 0.0  ;;  %v793_v15 = vmax.f32 %v777_v56, 0.0  ;;  %v863_v62 = vmax.f32 %v847_v34, 0.0  ;;  %v933_v42 = vmax.f32 %v917_v25, 0.0 }
 0x109   : > { %v971_v44 = vmul.f32 %v5498_v11, %v5743_v16  ;;  %v1041_v40 = vmul.f32 %v5509_v28, %v5743_v16  ;;  %v1111_v53 = vmul.f32 %v5511_v29, %v5743_v16  ;;  %v5777_v1 = vmul.f32 %v5513_v30, %v5743_v16 }
 0x10a   : > { %v609_v57 = vpop.f32.mrf.mxu0  ;;  %v739_v17 = vpack.c.bf16 %v723_v43, %v723_v43  ;;  %v809_v50 = vpack.c.bf16 %v793_v15, %v793_v15  ;;  %v879_v10 = vpack.c.bf16 %v863_v62, %v863_v62  ;;  %v949_v33 = vpack.c.bf16 %v933_v42, %v933_v42 }
 0x10b   : > { %v5780_v51 = vadd.f32 %v609_v57, %v5417_v58  ;;  %v5782_v26 = vpop.f32.mrf.mxu1  ;;  %v987_v3 = vadd.f32 %v971_v44, %v5741_v63  ;;  %v1057_v52 = vadd.f32 %v1041_v40, %v5741_v63  ;;  %v5787_v47 = vadd.f32 %v1111_v53, %v5741_v63 }
 0x10c   : > { %v692_v13 = vmul.f32 %v5450_v20, %v5782_v26  ;;  %v1821_v56 = vunpack.c.l.b16 %v739_v17  ;;  %v762_v34 = vmul.f32 %v5452_v21, %v5782_v26  ;;  %v1869_v25 = vunpack.c.l.b16 %v809_v50 }
 0x10d   : > { %v832_v58 = vmul.f32 %v5454_v22, %v5782_v26  ;;  %v1917_v43 = vunpack.c.l.b16 %v879_v10  ;;  %v902_v15 = vmul.f32 %v5456_v24, %v5782_v26  ;;  %v1965_v62 = vunpack.c.l.b16 %v949_v33 }
 0x10e   : > { %v708_v42 = vadd.f32 %v692_v13, %v5780_v51  ;;  %v778_v44 = vadd.f32 %v762_v34, %v5780_v51  ;;  %v972_v40 = vmul.f32 %v5498_v11, %v5782_v26  ;;  %v1003_v53 = vmax.f32 %v987_v3, 0.0 }
 0x10f   : > { %v848_v57 = vadd.f32 %v832_v58, %v5780_v51  ;;  %v918_v17 = vadd.f32 %v902_v15, %v5780_v51  ;;  %v1042_v50 = vmul.f32 %v5509_v28, %v5782_v26  ;;  %v1073_v10 = vmax.f32 %v1057_v52, 0.0 }
 0x110   : > { %v724_v16 = vmax.f32 %v708_v42, 0.0  ;;  %v794_v14 = vmax.f32 %v778_v44, 0.0  ;;  %v5806_v33 = vadd.f32 %v972_v40, %v5780_v51  ;;  %v5808_v13 = vpack.c.bf16 %v1003_v53, %v1003_v53 }
 0x111   : > { %v864_v34 = vmax.f32 %v848_v57, 0.0  ;;  %v934_v59 = vmax.f32 %v918_v17, 0.0  ;;  %v5811_v19 = vadd.f32 %v1042_v50, %v5780_v51  ;;  %v5813_v3 = vpack.c.bf16 %v1073_v10, %v1073_v10 }
 0x112   : > { %v612_v58 = vpop.f32.mrf.mxu0  ;;  %v740_v15 = vpack.c.bf16 %v724_v16, %v724_v16  ;;  %v810_v2 = vpack.c.bf16 %v794_v14, %v794_v14 }
 0x113   : > { %v5818_v42 = vadd.f32 %v612_v58, %v5386_v49  ;;  %v5820_v44 = vpop.f32.mrf.mxu1  ;;  %v880_v40 = vpack.c.bf16 %v864_v34, %v864_v34  ;;  %v950_v53 = vpack.c.bf16 %v934_v59, %v934_v59 }
 0x114   : > { %8849 = vst [vmem:[#allocation42_spill] sm:$0xff] %v5820_v44  ;;  %v693_v17 = vmul.f32 %v5450_v20, %v5820_v44  ;;  %v763_v16 = vmul.f32 %v5452_v21, %v5820_v44  ;;  %v833_v14 = vmul.f32 %v5454_v22, %v5820_v44  ;;  %v903_v50 = vmul.f32 %v5456_v24, %v5820_v44 }
 0x115   : > { %v1822_v49 = vunpack.c.l.b16 %v740_v15  ;;  %v1870_v10 = vunpack.c.l.b16 %v810_v2  ;;  %v1918_v58 = vunpack.c.l.b16 %v880_v40  ;;  %v1966_v52 = vunpack.c.l.b16 %v950_v53 }
 0x116   : > { %v709_v59 = vadd.f32 %v693_v17, %v5818_v42  ;;  %v779_v34 = vadd.f32 %v763_v16, %v5818_v42  ;;  %v849_v57 = vadd.f32 %v833_v14, %v5818_v42  ;;  %v919_v48 = vadd.f32 %v903_v50, %v5818_v42 }
 0x117   : > { %v5835_v31 = vpack.c.b16 %v1822_v49, %v1821_v56  ;;  %v5837_v27 = vpack.c.b16 %v1870_v10, %v1869_v25  ;;  %v5839_v39 = vpack.c.b16 %v1918_v58, %v1917_v43  ;;  %v5841_v46 = vpack.c.b16 %v1966_v52, %v1965_v62 }
 0x118   : > { %v725_v15 = vmax.f32 %v709_v59, 0.0  ;;  %v795_v2 = vmax.f32 %v779_v34, 0.0  ;;  %v865_v40 = vmax.f32 %v849_v57, 0.0  ;;  %v935_v53 = vmax.f32 %v919_v48, 0.0 }
 0x119   : > { %v973_v17 = vmul.f32 %v5498_v11, %v5820_v44  ;;  %v1043_v16 = vmul.f32 %v5509_v28, %v5820_v44  ;;  %v1113_v56 = vmul.f32 %v5511_v29, %v5820_v44  ;;  %v5851_v25 = vmul.f32 %v5513_v30, %v5820_v44 }
 0x11a   : > { %v614_v43 = vpop.f32.mrf.mxu0  ;;  %v741_v62 = vpack.c.bf16 %v725_v15, %v725_v15  ;;  %v811_v52 = vpack.c.bf16 %v795_v2, %v795_v2  ;;  %v881_v14 = vpack.c.bf16 %v865_v40, %v865_v40  ;;  %v951_v50 = vpack.c.bf16 %v935_v53, %v935_v53 }
 0x11b   : > { %v5854_v48 = vadd.f32 %v614_v43, %v5405_v54  ;;  %v5856_v57 = vpop.f32.mrf.mxu1  ;;  %v989_v49 = vadd.f32 %v973_v17, %v5818_v42  ;;  %v1059_v10 = vadd.f32 %v1043_v16, %v5818_v42  ;;  %v1129_v58 = vadd.f32 %v1113_v56, %v5818_v42 }
 0x11c   : > { %8850 = vst [vmem:[#allocation43_spill] sm:$0xff] %v5856_v57  ;;  %v694_v59 = vmul.f32 %v5450_v20, %v5856_v57  ;;  %v1823_v34 = vunpack.c.l.b16 %v741_v62  ;;  %v764_v15 = vmul.f32 %v5452_v21, %v5856_v57  ;;  %v1871_v2 = vunpack.c.l.b16 %v811_v52 }
 0x11d   : > { %v834_v54 = vmul.f32 %v5454_v22, %v5856_v57  ;;  %v1919_v40 = vunpack.c.l.b16 %v881_v14  ;;  %v904_v53 = vmul.f32 %v5456_v24, %v5856_v57  ;;  %v1967_v17 = vunpack.c.l.b16 %v951_v50 }
 0x11e   : > { %v710_v16 = vadd.f32 %v694_v59, %v5854_v48  ;;  %v780_v56 = vadd.f32 %v764_v15, %v5854_v48  ;;  %v974_v20 = vmul.f32 %v5498_v11, %v5856_v57  ;;  %v1005_v43 = vmax.f32 %v989_v49, 0.0 }
 0x11f   : > { %v850_v62 = vadd.f32 %v834_v54, %v5854_v48  ;;  %v920_v21 = vadd.f32 %v904_v53, %v5854_v48  ;;  %v1044_v22 = vmul.f32 %v5509_v28, %v5856_v57  ;;  %v1075_v52 = vmax.f32 %v1059_v10, 0.0 }
 0x120   : > { %v726_v14 = vmax.f32 %v710_v16, 0.0  ;;  %v796_v44 = vmax.f32 %v780_v56, 0.0  ;;  %v990_v24 = vadd.f32 %v974_v20, %v5854_v48  ;;  %v1021_v50 = vpack.c.bf16 %v1005_v43, %v1005_v43 }
 0x121   : > { %v866_v59 = vmax.f32 %v850_v62, 0.0  ;;  %v936_v35 = vmax.f32 %v920_v21, 0.0  ;;  %v1060_v15 = vadd.f32 %v1044_v22, %v5854_v48  ;;  %v1091_v45 = vpack.c.bf16 %v1075_v52, %v1075_v52 }
 0x122   : > { %v742_v7 = vpack.c.bf16 %v726_v14, %v726_v14  ;;  %v812_v49 = vpack.c.bf16 %v796_v44, %v796_v44  ;;  %v1006_v9 = vmax.f32 %v990_v24, 0.0  ;;  %v2015_v54 = vunpack.c.l.b16 %v1021_v50 }
 0x123   : > { %v882_v4 = vpack.c.bf16 %v866_v59, %v866_v59  ;;  %v952_v53 = vpack.c.bf16 %v936_v35, %v936_v35  ;;  %v1076_v8 = vmax.f32 %v1060_v15, 0.0  ;;  %v2063_v23 = vunpack.c.l.b16 %v1091_v45 }
 0x124   : > { %v1824_v38 = vunpack.c.l.b16 %v742_v7  ;;  %v1872_v10 = vunpack.c.l.b16 %v812_v49  ;;  %v1022_v16 = vpack.c.bf16 %v1006_v9, %v1006_v9  ;;  %v1114_v56 = vmul.f32 %v5511_v29, %v5856_v57 }
 0x125   : > { %v1920_v20 = vunpack.c.l.b16 %v882_v4  ;;  %v1968_v43 = vunpack.c.l.b16 %v952_v53  ;;  %v1092_v62 = vpack.c.bf16 %v1076_v8, %v1076_v8  ;;  %v1145_v21 = vmax.f32 %v1129_v58, 0.0 }
 0x126   : > { %v1832_v22 = vpack.c.b16 %v1824_v38, %v1823_v34  ;;  %v1880_v52 = vpack.c.b16 %v1872_v10, %v1871_v2  ;;  %v2016_v14 = vunpack.c.l.b16 %v1022_v16  ;;  %v1130_v44 = vadd.f32 %v1114_v56, %v5854_v48 }
 0x127   : > { %v1928_v24 = vpack.c.b16 %v1920_v20, %v1919_v40  ;;  %v1976_v50 = vpack.c.b16 %v1968_v43, %v1967_v17  ;;  %v2064_v35 = vunpack.c.l.b16 %v1092_v62  ;;  %v1161_v59 = vpack.c.bf16 %v1145_v21, %v1145_v21 }
 0x128   : > { %2721 = vmatpush.bf16.msra.mxu2 %v1832_v22  ;;  %2770 = vmatpush.bf16.msra.mxu3 %v1880_v52  ;;  %v5882_v7 = vpack.c.b16 %v2016_v14, %v2015_v54  ;;  %v1146_v45 = vmax.f32 %v1130_v44, 0.0  ;;  %v1184_v4 = vmul.f32 %v5513_v30, %v5856_v57  ;;  %v1199_v8 = vadd.f32 %v5851_v25, %v5818_v42 }
 0x129   : > { %2819 = vmatpush.bf16.msrb.mxu0 %v1928_v24  ;;  %2868 = vmatpush.bf16.msrb.mxu1 %v1976_v50  ;;  %v5888_v9 = vpack.c.b16 %v2064_v35, %v2063_v23  ;;  %v2111_v38 = vunpack.c.l.b16 %v1161_v59  ;;  %v8851_v58 = vmax.f32 %v5806_v33, 0.0  ;;  %v8852_v2 = vmax.f32 %v5811_v19, 0.0 }
 0x12a   : > { %v1162_v17 = vpack.c.bf16 %v1146_v45, %v1146_v45  ;;  %v1200_v15 = vadd.f32 %v1184_v4, %v5854_v48  ;;  %v1215_v49 = vmax.f32 %v1199_v8, 0.0  ;;  %v2061_v54 = vunpack.c.l.b16 %v5813_v3 }
 0x12b   : > { %v1020_v34 = vpack.c.bf16 %v8851_v58, %v8851_v58  ;;  %v1090_v40 = vpack.c.bf16 %v8852_v2, %v8852_v2  ;;  %v1112_v23 = vmul.f32 %v5511_v29, %v5782_v26  ;;  %v1143_v10 = vmax.f32 %v5787_v47, 0.0 }
 0x12c   : > { %2722 = vmatpush.bf16.msra.mxu2 %v5835_v31  ;;  %2771 = vmatpush.bf16.msra.mxu3 %v5837_v27  ;;  %v2112_v19 = vunpack.c.l.b16 %v1162_v17  ;;  %v1216_v33 = vmax.f32 %v1200_v15, 0.0  ;;  %v1231_v16 = vpack.c.bf16 %v1215_v49, %v1215_v49  ;;  %v1182_v56 = vmul.f32 %v5513_v30, %v5782_v26 }
 0x12d   : > { %v2014_v25 = vunpack.c.l.b16 %v1020_v34  ;;  %v2062_v53 = vunpack.c.l.b16 %v1090_v40  ;;  %2820 = vmatpush.bf16.msrb.mxu0 %v5839_v39  ;;  %2869 = vmatpush.bf16.msrb.mxu1 %v5841_v46  ;;  %v8853_v3 = vunpack.c.l.b16 %v5808_v13  ;;  %v1128_v31 = vadd.f32 %v1112_v23, %v5780_v51  ;;  %v8854_v40 = vld [vmem:[#allocation40_spill] sm:$0xff] }
 0x12e   : > { %v5914_v47 = vpack.c.b16 %v2112_v19, %v2111_v38  ;;  %v1232_v27 = vpack.c.bf16 %v1216_v33, %v1216_v33  ;;  %v2159_v62 = vunpack.c.l.b16 %v1231_v16  ;;  %v1159_v21 = vpack.c.bf16 %v1143_v10, %v1143_v10  ;;  %v8855_v33 = vld [vmem:[#allocation36_spill] sm:$0xff]  ;;  %v8856_v16 = vld [vmem:[#allocation37_spill] sm:$0xff] }
 0x12f   : > { %v5909_v20 = vpack.c.b16 %v2014_v25, %v8853_v3  ;;  %v5911_v43 = vpack.c.b16 %v2062_v53, %v2061_v54  ;;  %v1144_v22 = vmax.f32 %v1128_v31, 0.0  ;;  %v1197_v52 = vadd.f32 %v5777_v1, %v5741_v63 }
 0x130   : > { %v1198_v39 = vadd.f32 %v1182_v56, %v5780_v51  ;;  %v970_v46 = vmul.f32 %v5498_v11, %v5718_v32  ;;  %2723 = vmatpush.bf16.msra.mxu2 %v5761_v37  ;;  %2772 = vmatpush.bf16.msra.mxu3 %v5763_v41  ;;  %v2160_v13 = vunpack.c.l.b16 %v1232_v27  ;;  %v2109_v14 = vunpack.c.l.b16 %v1159_v21  ;;  %v8858_v21 = vld [vmem:[#allocation39_spill] sm:$0xff] }
 0x131   : > { %v985_v44 = vadd.f32 %v5747_v6, %v5691_v0  ;;  %v1039_v24 = vmul.f32 %v5509_v28, %v5693_v5  ;;  %2821 = vmatpush.bf16.msrb.mxu0 %v5765_v60  ;;  %2870 = vmatpush.bf16.msrb.mxu1 %v5767_v12  ;;  %v1160_v1 = vpack.c.bf16 %v1144_v22, %v1144_v22  ;;  %v1213_v50 = vmax.f32 %v1197_v52, 0.0 }
 0x132   : > { %v1214_v35 = vmax.f32 %v1198_v39, 0.0  ;;  %v986_v59 = vadd.f32 %v970_v46, %v5716_v61  ;;  %v5930_v37 = vpack.c.b16 %v2160_v13, %v2159_v62  ;;  %v1040_v45 = vmul.f32 %v5509_v28, %v5718_v32  ;;  %v8857_v62 = vld [vmem:[#allocation38_spill] sm:$0xff]  ;;  %v8859_v46 = vld [vmem:[#allocation27_spill] sm:$0xff] }
 0x133   : > { %v1001_v41 = vmax.f32 %v985_v44, 0.0  ;;  %v1055_v6 = vadd.f32 %v1039_v24, %v5691_v0  ;;  %v2110_v4 = vunpack.c.l.b16 %v1160_v1  ;;  %v1229_v8 = vpack.c.bf16 %v1213_v50, %v1213_v50  ;;  %v8860_v1 = vld [vmem:[#allocation35_spill] sm:$0xff] }
 0x134   : > { %v1230_v38 = vpack.c.bf16 %v1214_v35, %v1214_v35  ;;  %v1002_v58 = vmax.f32 %v986_v59, 0.0  ;;  %2724 = vmatpush.bf16.msra.mxu2 %v5732_v36  ;;  %2773 = vmatpush.bf16.msra.mxu3 %v5734_v55  ;;  %v1056_v12 = vadd.f32 %v1040_v45, %v5716_v61  ;;  %v1109_v2 = vmul.f32 %v5511_v29, %v5693_v5 }
 0x135   : > { %v1017_v60 = vpack.c.bf16 %v1001_v41, %v1001_v41  ;;  %v1071_v34 = vmax.f32 %v1055_v6, 0.0  ;;  %2822 = vmatpush.bf16.msrb.mxu0 %v5736_v18  ;;  %2871 = vmatpush.bf16.msrb.mxu1 %v8854_v40  ;;  %v5942_v17 = vpack.c.b16 %v2110_v4, %v2109_v14  ;;  %v2157_v15 = vunpack.c.l.b16 %v1229_v8  ;;  %v8861_v41 = vld [vmem:[#allocation31_spill] sm:$0xff]  ;;  %v8862_v4 = vld [vmem:[#allocation29_spill] sm:$0xff]  ;;  %v8863_v8 = vld [vmem:[#allocation30_spill] sm:$0xff] }
 0x136   : > { %v2158_v49 = vunpack.c.l.b16 %v1230_v38  ;;  %v1018_v54 = vpack.c.bf16 %v1002_v58, %v1002_v58  ;;  %v1072_v36 = vmax.f32 %v1056_v12, 0.0  ;;  %v1110_v55 = vmul.f32 %v5511_v29, %v5718_v32  ;;  %v8864_v12 = vld [vmem:[#allocation34_spill] sm:$0xff]  ;;  %v8866_v40 = vld [vmem:[#allocation33_spill] sm:$0xff] }
 0x137   : > { %v2011_v25 = vunpack.c.l.b16 %v1017_v60  ;;  %v1087_v53 = vpack.c.bf16 %v1071_v34, %v1071_v34  ;;  %v1125_v19 = vadd.f32 %v1109_v2, %v5691_v0  ;;  %v1179_v18 = vmul.f32 %v5513_v30, %v5693_v5  ;;  %v8865_v2 = vld [vmem:[#allocation32_spill] sm:$0xff] }
 0x138   : > { %v5946_v23 = vpack.c.b16 %v2158_v49, %v2157_v15  ;;  %v2012_v10 = vunpack.c.l.b16 %v1018_v54  ;;  %2725 = vmatpush.bf16.msra.mxu2 %v8855_v33  ;;  %2774 = vmatpush.bf16.msra.mxu3 %v8856_v16  ;;  %v1088_v56 = vpack.c.bf16 %v1072_v36, %v1072_v36  ;;  %v1126_v31 = vadd.f32 %v1110_v55, %v5716_v61 }
 0x139   : > { %v2059_v3 = vunpack.c.l.b16 %v1087_v53  ;;  %v1180_v27 = vmul.f32 %v5513_v30, %v5718_v32  ;;  %2823 = vmatpush.bf16.msrb.mxu0 %v8857_v62  ;;  %2872 = vmatpush.bf16.msrb.mxu1 %v8858_v21  ;;  %v1141_v52 = vmax.f32 %v1125_v19, 0.0  ;;  %v1195_v39 = vadd.f32 %v1179_v18, %v5691_v0 }
 0x13a   : > { %v5958_v22 = vpack.c.b16 %v2012_v10, %v2011_v25  ;;  %v967_v13 = vmul.f32 %v5498_v11, %v8859_v46  ;;  %v2060_v14 = vunpack.c.l.b16 %v1088_v56  ;;  %v1142_v44 = vmax.f32 %v1126_v31, 0.0  ;;  %v8867_v56 = vld [vmem:[#allocation17_spill] sm:$0xff] }
 0x13b   : > { %v1196_v24 = vadd.f32 %v1180_v27, %v5716_v61  ;;  %v968_v50 = vmul.f32 %v5498_v11, %v8860_v1  ;;  %v1157_v35 = vpack.c.bf16 %v1141_v52, %v1141_v52  ;;  %v1211_v59 = vmax.f32 %v1195_v39, 0.0  ;;  %v8869_v52 = vld [vmem:[#allocation19_spill] sm:$0xff]  ;;  %v8870_v39 = vld [vmem:[#allocation21_spill] sm:$0xff] }
 0x13c   : > { %v983_v45 = vadd.f32 %v967_v13, %v8861_v41  ;;  %v1037_v6 = vmul.f32 %v5509_v28, %v8859_v46  ;;  %2726 = vmatpush.bf16.msra.mxu2 %v8862_v4  ;;  %2775 = vmatpush.bf16.msra.mxu3 %v8863_v8  ;;  %v5971_v38 = vpack.c.b16 %v2060_v14, %v2059_v3  ;;  %v8868_v3 = vld [vmem:[#allocation18_spill] sm:$0xff] }
 0x13d   : > { %v1158_v58 = vpack.c.bf16 %v1142_v44, %v1142_v44  ;;  %v1212_v60 = vmax.f32 %v1196_v24, 0.0  ;;  %v984_v34 = vadd.f32 %v968_v50, %v8864_v12  ;;  %2824 = vmatpush.bf16.msrb.mxu0 %v8865_v2  ;;  %2873 = vmatpush.bf16.msrb.mxu1 %v8866_v40  ;;  %v2107_v15 = vunpack.c.l.b16 %v1157_v35  ;;  %v4947_v2 = vld [vmem:[%s8692_s4] sm:$0xff] }
 0x13e   : > { %v1227_v49 = vpack.c.bf16 %v1211_v59, %v1211_v59  ;;  %v999_v54 = vmax.f32 %v983_v45, 0.0  ;;  %v1038_v25 = vmul.f32 %v5509_v28, %v8860_v1  ;;  %v1053_v10 = vadd.f32 %v1037_v6, %v8861_v41 }
 0x13f   : > { %v2108_v36 = vunpack.c.l.b16 %v1158_v58  ;;  %v1228_v53 = vpack.c.bf16 %v1212_v60, %v1212_v60  ;;  %v1000_v55 = vmax.f32 %v984_v34, 0.0  ;;  %v1107_v16 = vmul.f32 %v5511_v29, %v8859_v46  ;;  %v8871_v60 = vld [vmem:[#allocation22_spill] sm:$0xff]  ;;  %v8872_v34 = vld [vmem:[#allocation23_spill] sm:$0xff] }
 0x140   : > { %v2155_v19 = vunpack.c.l.b16 %v1227_v49  ;;  %v1015_v18 = vpack.c.bf16 %v999_v54, %v999_v54  ;;  %v1054_v33 = vadd.f32 %v1038_v25, %v8864_v12  ;;  %2727 = vmatpush.bf16.msra.mxu2 %v8867_v56  ;;  %2776 = vmatpush.bf16.msra.mxu3 %v8868_v3  ;;  %v1069_v21 = vmax.f32 %v1053_v10, 0.0  ;;  %v8873_v54 = vld [vmem:[#allocation16_spill] sm:$0xff] }
 0x141   : > { %v5984_v31 = vpack.c.b16 %v2108_v36, %v2107_v15  ;;  %v2156_v27 = vunpack.c.l.b16 %v1228_v53  ;;  %v1016_v62 = vpack.c.bf16 %v1000_v55, %v1000_v55  ;;  %2825 = vmatpush.bf16.msrb.mxu0 %v8869_v52  ;;  %2874 = vmatpush.bf16.msrb.mxu1 %v8870_v39  ;;  %v1108_v44 = vmul.f32 %v5511_v29, %v8860_v1  ;;  %v8874_v36 = vld [vmem:[#allocation25_spill] sm:$0xff]  ;;  %v8875_v53 = vld [vmem:[#allocation28_spill] sm:$0xff] }
 0x142   : > { %v2009_v13 = vunpack.c.l.b16 %v1015_v18  ;;  %v1070_v14 = vmax.f32 %v1054_v33, 0.0  ;;  %v1123_v24 = vadd.f32 %v1107_v16, %v8861_v41  ;;  %v1085_v59 = vpack.c.bf16 %v1069_v21, %v1069_v21  ;;  %v8876_v16 = vld [vmem:[#allocation20_spill] sm:$0xff] }
 0x143   : > { %v5991_v50 = vpack.c.b16 %v2156_v27, %v2155_v19  ;;  %v2010_v35 = vunpack.c.l.b16 %v1016_v62  ;;  %v1177_v45 = vmul.f32 %v5513_v30, %v8859_v46  ;;  %v1124_v4 = vadd.f32 %v1108_v44, %v8864_v12  ;;  %v8877_v3 = vld [vmem:[#allocation24_spill] sm:$0xff] }
 0x144   : > { %v1086_v6 = vpack.c.bf16 %v1070_v14, %v1070_v14  ;;  %v1139_v8 = vmax.f32 %v1123_v24, 0.0  ;;  %v1178_v58 = vmul.f32 %v5513_v30, %v8860_v1  ;;  %2728 = vmatpush.bf16.msra.mxu2 %v8871_v60  ;;  %2777 = vmatpush.bf16.msra.mxu3 %v8872_v34  ;;  %v2057_v15 = vunpack.c.l.b16 %v1085_v59 }
 0x145   : > { %v6003_v40 = vpack.c.b16 %v2010_v35, %v2009_v13  ;;  %v1193_v49 = vadd.f32 %v1177_v45, %v8861_v41  ;;  %v965_v25 = vmul.f32 %v5498_v11, %v8873_v54  ;;  %2826 = vmatpush.bf16.msrb.mxu0 %v8874_v36  ;;  %2875 = vmatpush.bf16.msrb.mxu1 %v8875_v53  ;;  %v1140_v10 = vmax.f32 %v1124_v4, 0.0 }
 0x146   : > { %v2058_v55 = vunpack.c.l.b16 %v1086_v6  ;;  %v1155_v19 = vpack.c.bf16 %v1139_v8, %v1139_v8  ;;  %v1194_v18 = vadd.f32 %v1178_v58, %v8864_v12  ;;  %v966_v56 = vmul.f32 %v5498_v11, %v8876_v16 }
 0x147   : > { %v1209_v33 = vmax.f32 %v1193_v49, 0.0  ;;  %v981_v27 = vadd.f32 %v965_v25, %v8877_v3  ;;  %v1035_v62 = vmul.f32 %v5509_v28, %v8873_v54  ;;  %v1156_v52 = vpack.c.bf16 %v1140_v10, %v1140_v10  ;;  %2729 = vmatmul.bf16.vlgmr.msra.gmra.mxu2 %v4947_v2  ;;  %2778 = vmatmul.bf16.vlgmr.msra.gmra.mxu3 %v4947_v2 }
 0x148   : > { %2917 = vmatpush.bf16.msrb.mxu2 %v5882_v7  ;;  %2966 = vmatpush.bf16.msrb.mxu3 %v5888_v9  ;;  %v2069_v21 = vpack.c.b16 %v2058_v55, %v2057_v15  ;;  %v2105_v39 = vunpack.c.l.b16 %v1155_v19  ;;  %v1210_v13 = vmax.f32 %v1194_v18, 0.0  ;;  %v8878_v9 = vld [vmem:[#allocation26_spill] sm:$0xff]  ;;  %v1036_v24 = vmul.f32 %v5509_v28, %v8876_v16 }
 0x149   : > { %3015 = vmatpush.bf16.msra.mxu0 %v5914_v47  ;;  %3064 = vmatpush.bf16.msra.mxu1 %v5930_v37  ;;  %v1225_v7 = vpack.c.bf16 %v1209_v33, %v1209_v33  ;;  %v982_v14 = vadd.f32 %v966_v56, %v8878_v9  ;;  %v997_v44 = vmax.f32 %v981_v27, 0.0  ;;  %v2106_v35 = vunpack.c.l.b16 %v1156_v52  ;;  %v8879_v27 = vld [vmem:[#allocation10_spill] sm:$0xff] }
 0x14a   : > { %2827 = vmatmul.bf16.vlgmr.msrb.gmra.mxu0 %v4947_v2  ;;  %2876 = vmatmul.bf16.vlgmr.msrb.gmra.mxu1 %v4947_v2  ;;  %v1226_v59 = vpack.c.bf16 %v1210_v13, %v1210_v13  ;;  %v1051_v47 = vadd.f32 %v1035_v62, %v8877_v3  ;;  %v1105_v37 = vmul.f32 %v5511_v29, %v8873_v54 }
 0x14b   : > { %v2153_v45 = vunpack.c.l.b16 %v1225_v7  ;;  %v998_v6 = vmax.f32 %v982_v14, 0.0  ;;  %v1013_v4 = vpack.c.bf16 %v997_v44, %v997_v44  ;;  %v1052_v8 = vadd.f32 %v1036_v24, %v8878_v9  ;;  %v8880_v14 = vld [vmem:[#allocation13_spill] sm:$0xff] }
 0x14c   : > { %2918 = vmatpush.bf16.msrb.mxu2 %v5909_v20  ;;  %2967 = vmatpush.bf16.msrb.mxu3 %v5911_v43  ;;  %v2117_v58 = vpack.c.b16 %v2106_v35, %v2105_v39  ;;  %v2154_v60 = vunpack.c.l.b16 %v1226_v59  ;;  %v1067_v34 = vmax.f32 %v1051_v47, 0.0  ;;  %v1106_v2 = vmul.f32 %v5511_v29, %v8876_v16 }
 0x14d   : > { %3016 = vmatpush.bf16.msra.mxu0 %v5942_v17  ;;  %3065 = vmatpush.bf16.msra.mxu1 %v5946_v23  ;;  %v1014_v15 = vpack.c.bf16 %v998_v6, %v998_v6  ;;  %v2007_v49 = vunpack.c.l.b16 %v1013_v4  ;;  %v1068_v20 = vmax.f32 %v1052_v8, 0.0  ;;  %v1121_v43 = vadd.f32 %v1105_v37, %v8877_v3  ;;  %v8882_v6 = vld [vmem:[#allocation15_spill] sm:$0xff] }
 0x14e   : > { %v2165_v25 = vpack.c.b16 %v2154_v60, %v2153_v45  ;;  %v1083_v36 = vpack.c.bf16 %v1067_v34, %v1067_v34  ;;  %v1122_v53 = vadd.f32 %v1106_v2, %v8878_v9  ;;  %v1175_v17 = vmul.f32 %v5513_v30, %v8873_v54  ;;  %v4948_v34 = vld [vmem:[%s8692_s4 + $0x8] sm:$0xff] }
 0x14f   : > { %v2008_v23 = vunpack.c.l.b16 %v1014_v15  ;;  %v1084_v55 = vpack.c.bf16 %v1068_v20, %v1068_v20  ;;  %v1137_v10 = vmax.f32 %v1121_v43, 0.0  ;;  %v1176_v19 = vmul.f32 %v5513_v30, %v8876_v16 }
 0x150   : > { %2919 = vmatpush.bf16.msrb.mxu2 %v5958_v22  ;;  %2968 = vmatpush.bf16.msrb.mxu3 %v5971_v38  ;;  %v2055_v18 = vunpack.c.l.b16 %v1083_v36  ;;  %v1138_v33 = vmax.f32 %v1122_v53, 0.0  ;;  %v1191_v56 = vadd.f32 %v1175_v17, %v8877_v3  ;;  %v963_v62 = vmul.f32 %v5498_v11, %v8879_v27 }
 0x151   : > { %3017 = vmatpush.bf16.msra.mxu0 %v5984_v31  ;;  %3066 = vmatpush.bf16.msra.mxu1 %v5991_v50  ;;  %v2020_v22 = vpack.c.b16 %v2008_v23, %v2007_v49  ;;  %v2056_v52 = vunpack.c.l.b16 %v1084_v55  ;;  %v1153_v38 = vpack.c.bf16 %v1137_v10, %v1137_v10  ;;  %v1192_v39 = vadd.f32 %v1176_v19, %v8878_v9  ;;  %v8881_v31 = vld [vmem:[#allocation14_spill] sm:$0xff] }
 0x152   : > { %v1154_v13 = vpack.c.bf16 %v1138_v33, %v1138_v33  ;;  %v1207_v7 = vmax.f32 %v1191_v56, 0.0  ;;  %v964_v44 = vmul.f32 %v5498_v11, %v8880_v14  ;;  %v979_v24 = vadd.f32 %v963_v62, %v8881_v31 }
 0x153   : > { %v2068_v50 = vpack.c.b16 %v2056_v52, %v2055_v18  ;;  %v2103_v35 = vunpack.c.l.b16 %v1153_v38  ;;  %v1208_v59 = vmax.f32 %v1192_v39, 0.0  ;;  %v1033_v47 = vmul.f32 %v5509_v28, %v8879_v27 }
 0x154   : > { %2920 = vmatpush.bf16.msrb.mxu2 %v6003_v40  ;;  %2969 = vmatpush.bf16.msrb.mxu3 %v2069_v21  ;;  %v2104_v37 = vunpack.c.l.b16 %v1154_v13  ;;  %v1223_v45 = vpack.c.bf16 %v1207_v7, %v1207_v7  ;;  %v980_v4 = vadd.f32 %v964_v44, %v8882_v6  ;;  %v995_v8 = vmax.f32 %v979_v24, 0.0  ;;  %v8883_v44 = vld [vmem:[#allocation6_spill] sm:$0xff] }
 0x155   : > { %3018 = vmatpush.bf16.msra.mxu0 %v2117_v58  ;;  %3067 = vmatpush.bf16.msra.mxu1 %v2165_v25  ;;  %v1224_v60 = vpack.c.bf16 %v1208_v59, %v1208_v59  ;;  %v1034_v40 = vmul.f32 %v5509_v28, %v8880_v14  ;;  %v1049_v21 = vadd.f32 %v1033_v47, %v8881_v31 }
 0x156   : > { %v1103_v2 = vmul.f32 %v5511_v29, %v8879_v27  ;;  %v2116_v58 = vpack.c.b16 %v2104_v37, %v2103_v35  ;;  %v2151_v15 = vunpack.c.l.b16 %v1223_v45  ;;  %v996_v49 = vmax.f32 %v980_v4, 0.0  ;;  %v8884_v4 = vld [vmem:[#allocation7_spill] sm:$0xff] }
 0x157   : > { %v1011_v20 = vpack.c.bf16 %v995_v8, %v995_v8  ;;  %v2152_v43 = vunpack.c.l.b16 %v1224_v60  ;;  %v1050_v25 = vadd.f32 %v1034_v40, %v8882_v6  ;;  %v1065_v36 = vmax.f32 %v1049_v21, 0.0  ;;  %2734 = vmatmul.bf16.gmra.mxu2 %v4948_v34  ;;  %2783 = vmatmul.bf16.gmra.mxu3 %v4948_v34  ;;  %v8885_v60 = vld [vmem:[#allocation9_spill] sm:$0xff] }
 0x158   : > { %2921 = vmatpush.bf16.msrb.mxu2 %v2020_v22  ;;  %2970 = vmatpush.bf16.msrb.mxu3 %v2068_v50  ;;  %v1104_v53 = vmul.f32 %v5511_v29, %v8880_v14  ;;  %v1012_v17 = vpack.c.bf16 %v996_v49, %v996_v49  ;;  %v1119_v55 = vadd.f32 %v1103_v2, %v8881_v31 }
 0x159   : > { %3019 = vmatpush.bf16.msra.mxu0 %v2116_v58  ;;  %v2005_v23 = vunpack.c.l.b16 %v1011_v20  ;;  %v1173_v10 = vmul.f32 %v5513_v30, %v8879_v27  ;;  %v2164_v19 = vpack.c.b16 %v2152_v43, %v2151_v15  ;;  %v1066_v18 = vmax.f32 %v1050_v25, 0.0  ;;  %v8886_v20 = vld [vmem:[#allocation11_spill] sm:$0xff] }
 0x15a   : > { %v1081_v33 = vpack.c.bf16 %v1065_v36, %v1065_v36  ;;  %v1120_v56 = vadd.f32 %v1104_v53, %v8882_v6  ;;  %2832 = vmatmul.bf16.gmra.mxu0 %v4948_v34  ;;  %2881 = vmatmul.bf16.gmra.mxu1 %v4948_v34  ;;  %v2006_v62 = vunpack.c.l.b16 %v1012_v17  ;;  %v1135_v22 = vmax.f32 %v1119_v55, 0.0 }
 0x15b   : > { %v1174_v52 = vmul.f32 %v5513_v30, %v8880_v14  ;;  %v1189_v38 = vadd.f32 %v1173_v10, %v8881_v31  ;;  %3068 = vmatpush.bf16.msra.mxu1 %v2164_v19  ;;  %v1082_v39 = vpack.c.bf16 %v1066_v18, %v1066_v18  ;;  %v961_v24 = vmul.f32 %v5498_v11, %v8883_v44 }
 0x15c   : > { %v2053_v13 = vunpack.c.l.b16 %v1081_v33  ;;  %v1136_v7 = vmax.f32 %v1120_v56, 0.0  ;;  %v2019_v50 = vpack.c.b16 %v2006_v62, %v2005_v23  ;;  %v1151_v35 = vpack.c.bf16 %v1135_v22, %v1135_v22 }
 0x15d   : > { %v1190_v59 = vadd.f32 %v1174_v52, %v8882_v6  ;;  %v1205_v47 = vmax.f32 %v1189_v38, 0.0  ;;  %v2054_v37 = vunpack.c.l.b16 %v1082_v39  ;;  %v962_v8 = vmul.f32 %v5498_v11, %v8884_v4 }
 0x15e   : > { %v1152_v45 = vpack.c.bf16 %v1136_v7, %v1136_v7  ;;  %v977_v34 = vadd.f32 %v961_v24, %v8885_v60  ;;  %2922 = vmatpush.bf16.msrb.mxu2 %v2019_v50  ;;  %v2101_v40 = vunpack.c.l.b16 %v1151_v35  ;;  %v1031_v58 = vmul.f32 %v5509_v28, %v8883_v44 }
 0x15f   : > { %v1206_v21 = vmax.f32 %v1190_v59, 0.0  ;;  %v1221_v2 = vpack.c.bf16 %v1205_v47, %v1205_v47  ;;  %v2067_v15 = vpack.c.b16 %v2054_v37, %v2053_v13  ;;  %v978_v43 = vadd.f32 %v962_v8, %v8886_v20 }
 0x160   : > { %v2102_v49 = vunpack.c.l.b16 %v1152_v45  ;;  %v993_v25 = vmax.f32 %v977_v34, 0.0  ;;  %v1032_v17 = vmul.f32 %v5509_v28, %v8884_v4  ;;  %v1047_v23 = vadd.f32 %v1031_v58, %v8885_v60 }
 0x161   : > { %v1222_v36 = vpack.c.bf16 %v1206_v21, %v1206_v21  ;;  %v2149_v53 = vunpack.c.l.b16 %v1221_v2  ;;  %2971 = vmatpush.bf16.msrb.mxu3 %v2067_v15  ;;  %v994_v10 = vmax.f32 %v978_v43, 0.0  ;;  %v1101_v18 = vmul.f32 %v5511_v29, %v8883_v44  ;;  %v8887_v21 = vld [vmem:[#allocation3_spill] sm:$0xff] }
 0x162   : > { %v2115_v55 = vpack.c.b16 %v2102_v49, %v2101_v40  ;;  %v1009_v19 = vpack.c.bf16 %v993_v25, %v993_v25  ;;  %v1048_v56 = vadd.f32 %v1032_v17, %v8886_v20  ;;  %v1063_v62 = vmax.f32 %v1047_v23, 0.0  ;;  %v8889_v23 = vld [vmem:[#allocation8_spill] sm:$0xff] }
 0x163   : > { %v2150_v33 = vunpack.c.l.b16 %v1222_v36  ;;  %v1102_v22 = vmul.f32 %v5511_v29, %v8884_v4  ;;  %v1010_v52 = vpack.c.bf16 %v994_v10, %v994_v10  ;;  %v1117_v39 = vadd.f32 %v1101_v18, %v8885_v60 }
 0x164   : > { %3020 = vmatpush.bf16.msra.mxu0 %v2115_v55  ;;  %v2003_v38 = vunpack.c.l.b16 %v1009_v19  ;;  %v1171_v13 = vmul.f32 %v5513_v30, %v8883_v44  ;;  %v1064_v24 = vmax.f32 %v1048_v56, 0.0  ;;  %v1079_v50 = vpack.c.bf16 %v1063_v62, %v1063_v62 }
 0x165   : > { %v2163_v7 = vpack.c.b16 %v2150_v33, %v2149_v53  ;;  %v1118_v35 = vadd.f32 %v1102_v22, %v8886_v20  ;;  %v2004_v59 = vunpack.c.l.b16 %v1010_v52  ;;  %v1133_v47 = vmax.f32 %v1117_v39, 0.0  ;;  %v8888_v53 = vld [vmem:[#allocation5_spill] sm:$0xff]  ;;  %v8890_v22 = vld [vmem:[#allocation12_spill] sm:$0xff] }
 0x166   : > { %v1172_v37 = vmul.f32 %v5513_v30, %v8884_v4  ;;  %v1187_v45 = vadd.f32 %v1171_v13, %v8885_v60  ;;  %v1080_v8 = vpack.c.bf16 %v1064_v24, %v1064_v24  ;;  %v2051_v34 = vunpack.c.l.b16 %v1079_v50 }
 0x167   : > { %3069 = vmatpush.bf16.msra.mxu1 %v2163_v7  ;;  %v1134_v40 = vmax.f32 %v1118_v35, 0.0  ;;  %v959_v2 = vmul.f32 %v5498_v11, %v8887_v21  ;;  %v2018_v58 = vpack.c.b16 %v2004_v59, %v2003_v38  ;;  %v1149_v15 = vpack.c.bf16 %v1133_v47, %v1133_v47 }
 0x168   : > { %v1188_v49 = vadd.f32 %v1172_v37, %v8886_v20  ;;  %v1203_v43 = vmax.f32 %v1187_v45, 0.0  ;;  %v2052_v25 = vunpack.c.l.b16 %v1080_v8  ;;  %v960_v17 = vmul.f32 %v5498_v11, %v8888_v53 }
 0x169   : > { %v1150_v36 = vpack.c.bf16 %v1134_v40, %v1134_v40  ;;  %v975_v55 = vadd.f32 %v959_v2, %v8889_v23  ;;  %2923 = vmatpush.bf16.msrb.mxu2 %v2018_v58  ;;  %v2099_v10 = vunpack.c.l.b16 %v1149_v15  ;;  %v1029_v33 = vmul.f32 %v5509_v28, %v8887_v21 }
 0x16a   : > { %v1204_v19 = vmax.f32 %v1188_v49, 0.0  ;;  %v1219_v18 = vpack.c.bf16 %v1203_v43, %v1203_v43  ;;  %v2066_v56 = vpack.c.b16 %v2052_v25, %v2051_v34  ;;  %v976_v52 = vadd.f32 %v960_v17, %v8890_v22 }
 0x16b   : > { %v2100_v62 = vunpack.c.l.b16 %v1150_v36  ;;  %v991_v38 = vmax.f32 %v975_v55, 0.0  ;;  %v1030_v7 = vmul.f32 %v5509_v28, %v8888_v53  ;;  %v1045_v11 = vadd.f32 %v1029_v33, %v8889_v23 }
 0x16c   : > { %v1220_v39 = vpack.c.bf16 %v1204_v19, %v1204_v19  ;;  %v2147_v13 = vunpack.c.l.b16 %v1219_v18  ;;  %2972 = vmatpush.bf16.msrb.mxu3 %v2066_v56  ;;  %v992_v50 = vmax.f32 %v976_v52, 0.0  ;;  %v1099_v59 = vmul.f32 %v5511_v29, %v8887_v21  ;;  %v8891_v18 = vld [vmem:[#allocation4_spill] sm:$0xff] }
 0x16d   : > { %v2114_v24 = vpack.c.b16 %v2100_v62, %v2099_v10  ;;  %v1007_v35 = vpack.c.bf16 %v991_v38, %v991_v38  ;;  %v1046_v37 = vadd.f32 %v1030_v7, %v8890_v22  ;;  %v1061_v45 = vmax.f32 %v1045_v11, 0.0 }
 0x16e   : > { %v2148_v47 = vunpack.c.l.b16 %v1220_v39  ;;  %v1100_v8 = vmul.f32 %v5511_v29, %v8888_v53  ;;  %v1008_v34 = vpack.c.bf16 %v992_v50, %v992_v50  ;;  %v1115_v28 = vadd.f32 %v1099_v59, %v8889_v23 }
 0x16f   : > { %3021 = vmatpush.bf16.msra.mxu0 %v2114_v24  ;;  %v2001_v40 = vunpack.c.l.b16 %v1007_v35  ;;  %v1169_v2 = vmul.f32 %v5513_v30, %v8887_v21  ;;  %v1062_v15 = vmax.f32 %v1046_v37, 0.0  ;;  %v1077_v49 = vpack.c.bf16 %v1061_v45, %v1061_v45  ;;  %v6125_v37 = vld [vmem:[%s5410_s14] sm:$0xff] }
 0x170   : > { %v2162_v58 = vpack.c.b16 %v2148_v47, %v2147_v13  ;;  %v1116_v43 = vadd.f32 %v1100_v8, %v8890_v22  ;;  %v2002_v25 = vunpack.c.l.b16 %v1008_v34  ;;  %v1131_v36 = vmax.f32 %v1115_v28, 0.0 }
 0x171   : > { %v1170_v17 = vmul.f32 %v5513_v30, %v8888_v53  ;;  %v1185_v29 = vadd.f32 %v1169_v2, %v8889_v23  ;;  %v1078_v55 = vpack.c.bf16 %v1062_v15, %v1062_v15  ;;  %v2049_v10 = vunpack.c.l.b16 %v1077_v49  ;;  %v4949_v2 = vld [vmem:[%s8692_s4 + $0x10] sm:$0xff] }
 0x172   : > { %3070 = vmatpush.bf16.msra.mxu1 %v2162_v58  ;;  %v1132_v19 = vmax.f32 %v1116_v43, 0.0  ;;  %v1233_v33 = vmul.f32 0.53125, %v8891_v18  ;;  %v2017_v56 = vpack.c.b16 %v2002_v25, %v2001_v40  ;;  %v1147_v62 = vpack.c.bf16 %v1131_v36, %v1131_v36  ;;  %2739 = vmatmul.bf16.gmra.mxu2 %v4949_v2 }
 0x173   : > { %v1186_v52 = vadd.f32 %v1170_v17, %v8890_v22  ;;  %v1201_v38 = vmax.f32 %v1185_v29, 0.0  ;;  %v2050_v39 = vunpack.c.l.b16 %v1078_v55  ;;  %v1303_v11 = vmul.f32 0.59375, %v8891_v18  ;;  %2788 = vmatmul.bf16.gmra.mxu3 %v4949_v2  ;;  %v8892_v29 = vld [vmem:[#allocation42_spill] sm:$0xff]  ;;  %2886 = vmatmul.bf16.gmra.mxu1 %v4949_v2 }
 0x174   : > { %v1148_v13 = vpack.c.bf16 %v1132_v19, %v1132_v19  ;;  %v1235_v7 = vrot.slane %v1233_v33, 1  ;;  %2924 = vmatpush.bf16.msrb.mxu2 %v2017_v56  ;;  %v2097_v30 = vunpack.c.l.b16 %v1147_v62  ;;  %v1373_v35 = vmul.f32 0.65625, %v8891_v18  ;;  %v8893_v33 = vld [vmem:[#allocation41_spill] sm:$0xff]  ;;  %2837 = vmatmul.bf16.gmra.mxu0 %v4949_v2 }
 0x175   : > { %v1202_v24 = vmax.f32 %v1186_v52, 0.0  ;;  %v1217_v50 = vpack.c.bf16 %v1201_v38, %v1201_v38  ;;  %v2065_v59 = vpack.c.b16 %v2050_v39, %v2049_v10  ;;  %v1305_v8 = vrot.slane %v1303_v11, 1 }
 0x176   : > { %v2098_v47 = vunpack.c.l.b16 %v1148_v13  ;;  %v1237_v45 = vadd.f32 %v6125_v37, %v1235_v7  ;;  %v1375_v40 = vrot.slane %v1373_v35, 1  ;;  %v1443_v28 = vmul.f32 0.71875, %v8891_v18 }
 0x177   : > { %v1218_v34 = vpack.c.bf16 %v1202_v24, %v1202_v24  ;;  %2973 = vmatpush.bf16.msrb.mxu3 %v2065_v59  ;;  %v1307_v49 = vadd.f32 %v6125_v37, %v1305_v8  ;;  %v2145_v43 = vunpack.c.l.b16 %v1217_v50 }
 0x178   : > { %v2113_v58 = vpack.c.b16 %v2098_v47, %v2097_v30  ;;  %v6132_v15 = vperm.slane %v1237_v45, 0  ;;  %v1377_v36 = vadd.f32 %v6125_v37, %v1375_v40  ;;  %v1445_v17 = vrot.slane %v1443_v28, 1 }
 0x179   : > { %v2146_v25 = vunpack.c.l.b16 %v1218_v34  ;;  %v6140_v19 = vperm.slane %v1307_v49, 0 }
 0x17a   : > { %3022 = vmatpush.bf16.msra.mxu0 %v2113_v58  ;;  %v1253_v55 = vmul.f32 %v6132_v15, %v8892_v29  ;;  %v1254_v10 = vmul.f32 %v6132_v15, %v5856_v57  ;;  %v1251_v56 = vmul.f32 %v6132_v15, %v8893_v33  ;;  %v6144_v52 = vperm.slane %v1377_v36, 0 }
 0x17b   : > { %v2161_v62 = vpack.c.b16 %v2146_v25, %v2145_v43  ;;  %v1447_v38 = vadd.f32 %v6125_v37, %v1445_v17  ;;  %v1252_v39 = vmul.f32 %v6132_v15, %v5782_v26  ;;  %v1323_v11 = vmul.f32 %v6140_v19, %v8892_v29 }
 0x17c   : > { %v1269_v13 = vadd.f32 %v1253_v55, %v5818_v42  ;;  %v1270_v7 = vadd.f32 %v1254_v10, %v5854_v48  ;;  %v1324_v30 = vmul.f32 %v6140_v19, %v5856_v57  ;;  %v1393_v24 = vmul.f32 %v6144_v52, %v8892_v29 }
 0x17d   : > { %3071 = vmatpush.bf16.msra.mxu1 %v2161_v62  ;;  %v1394_v50 = vmul.f32 %v6144_v52, %v5856_v57  ;;  %v6159_v35 = vperm.slane %v1447_v38, 0  ;;  %v1267_v59 = vadd.f32 %v1251_v56, %v5741_v63  ;;  %v1339_v8 = vadd.f32 %v1323_v11, %v5818_v42 }
 0x17e   : > { %v1285_v47 = vmax.f32 %v1269_v13, 0.0  ;;  %v1286_v45 = vmax.f32 %v1270_v7, 0.0  ;;  %v1340_v34 = vadd.f32 %v1324_v30, %v5854_v48  ;;  %v1409_v40 = vadd.f32 %v1393_v24, %v5818_v42 }
 0x17f   : > { %v1410_v28 = vadd.f32 %v1394_v50, %v5854_v48  ;;  %v1463_v2 = vmul.f32 %v6159_v35, %v8892_v29  ;;  %v1464_v58 = vmul.f32 %v6159_v35, %v5856_v57  ;;  %v1355_v25 = vmax.f32 %v1339_v8, 0.0 }
 0x180   : > { %v1301_v49 = vpack.c.bf16 %v1285_v47, %v1285_v47  ;;  %v1302_v43 = vpack.c.bf16 %v1286_v45, %v1286_v45  ;;  %v1356_v36 = vmax.f32 %v1340_v34, 0.0  ;;  %v1425_v17 = vmax.f32 %v1409_v40, 0.0 }
 0x181   : > { %v1426_v55 = vmax.f32 %v1410_v28, 0.0  ;;  %v1479_v10 = vadd.f32 %v1463_v2, %v5818_v42  ;;  %v1480_v56 = vadd.f32 %v1464_v58, %v5854_v48  ;;  %v1371_v13 = vpack.c.bf16 %v1355_v25, %v1355_v25 }
 0x182   : > { %v2207_v62 = vunpack.c.l.b16 %v1301_v49  ;;  %v2208_v38 = vunpack.c.l.b16 %v1302_v43  ;;  %v1372_v7 = vpack.c.bf16 %v1356_v36, %v1356_v36  ;;  %v1441_v11 = vpack.c.bf16 %v1425_v17, %v1425_v17 }
 0x183   : > { %v1442_v30 = vpack.c.bf16 %v1426_v55, %v1426_v55  ;;  %v1495_v24 = vmax.f32 %v1479_v10, 0.0  ;;  %v1496_v50 = vmax.f32 %v1480_v56, 0.0  ;;  %v2255_v57 = vunpack.c.l.b16 %v1371_v13 }
 0x184   : > { %v2216_v29 = vpack.c.b16 %v2208_v38, %v2207_v62  ;;  %v2256_v47 = vunpack.c.l.b16 %v1372_v7  ;;  %v1268_v45 = vadd.f32 %v1252_v39, %v5780_v51  ;;  %v2303_v8 = vunpack.c.l.b16 %v1441_v11 }
 0x185   : > { %v2304_v34 = vunpack.c.l.b16 %v1442_v30  ;;  %v1511_v40 = vpack.c.bf16 %v1495_v24, %v1495_v24  ;;  %v1512_v28 = vpack.c.bf16 %v1496_v50, %v1496_v50  ;;  %v1283_v58 = vmax.f32 %v1267_v59, 0.0 }
 0x186   : > { %3113 = vmatpush.bf16.msra.mxu2 %v2216_v29  ;;  %v2264_v2 = vpack.c.b16 %v2256_v47, %v2255_v57  ;;  %v1284_v49 = vmax.f32 %v1268_v45, 0.0  ;;  %v1321_v43 = vmul.f32 %v6140_v19, %v8893_v33  ;;  %v1322_v55 = vmul.f32 %v6140_v19, %v5782_v26 }
 0x187   : > { %v2312_v25 = vpack.c.b16 %v2304_v34, %v2303_v8  ;;  %v2351_v36 = vunpack.c.l.b16 %v1511_v40  ;;  %v2352_v17 = vunpack.c.l.b16 %v1512_v28  ;;  %v1299_v10 = vpack.c.bf16 %v1283_v58, %v1283_v58 }
 0x188   : > { %3162 = vmatpush.bf16.msra.mxu3 %v2264_v2  ;;  %v1300_v39 = vpack.c.bf16 %v1284_v49, %v1284_v49  ;;  %v1337_v56 = vadd.f32 %v1321_v43, %v5741_v63  ;;  %v1391_v29 = vmul.f32 %v6144_v52, %v8893_v33  ;;  %v1338_v59 = vadd.f32 %v1322_v55, %v5780_v51 }
 0x189   : > { %3211 = vmatpush.bf16.msrb.mxu0 %v2312_v25  ;;  %v2360_v57 = vpack.c.b16 %v2352_v17, %v2351_v36  ;;  %v1392_v62 = vmul.f32 %v6144_v52, %v5782_v26  ;;  %v1461_v38 = vmul.f32 %v6159_v35, %v8893_v33  ;;  %v2205_v13 = vunpack.c.l.b16 %v1299_v10 }
 0x18a   : > { %v2206_v7 = vunpack.c.l.b16 %v1300_v39  ;;  %v1353_v11 = vmax.f32 %v1337_v56, 0.0  ;;  %v1407_v30 = vadd.f32 %v1391_v29, %v5741_v63  ;;  %v1354_v24 = vmax.f32 %v1338_v59, 0.0 }
 0x18b   : > { %3260 = vmatpush.bf16.msrb.mxu1 %v2360_v57  ;;  %v1408_v50 = vadd.f32 %v1392_v62, %v5780_v51  ;;  %v1462_v47 = vmul.f32 %v6159_v35, %v5782_v26  ;;  %v1477_v45 = vadd.f32 %v1461_v38, %v5741_v63  ;;  %v1249_v28 = vmul.f32 %v6132_v15, %v5693_v5 }
 0x18c   : > { %v2215_v8 = vpack.c.b16 %v2206_v7, %v2205_v13  ;;  %v1369_v34 = vpack.c.bf16 %v1353_v11, %v1353_v11  ;;  %v1423_v40 = vmax.f32 %v1407_v30, 0.0  ;;  %v1370_v2 = vpack.c.bf16 %v1354_v24, %v1354_v24 }
 0x18d   : > { %v1424_v58 = vmax.f32 %v1408_v50, 0.0  ;;  %v1478_v49 = vadd.f32 %v1462_v47, %v5780_v51  ;;  %v1493_v43 = vmax.f32 %v1477_v45, 0.0  ;;  %v1250_v17 = vmul.f32 %v6132_v15, %v5718_v32 }
 0x18e   : > { %3114 = vmatpush.bf16.msra.mxu2 %v2215_v8  ;;  %v2253_v25 = vunpack.c.l.b16 %v1369_v34  ;;  %v1439_v36 = vpack.c.bf16 %v1423_v40, %v1423_v40  ;;  %v1265_v55 = vadd.f32 %v1249_v28, %v5691_v0  ;;  %v2254_v10 = vunpack.c.l.b16 %v1370_v2 }
 0x18f   : > { %v1440_v39 = vpack.c.bf16 %v1424_v58, %v1424_v58  ;;  %v1494_v56 = vmax.f32 %v1478_v49, 0.0  ;;  %v1509_v29 = vpack.c.bf16 %v1493_v43, %v1493_v43  ;;  %v1266_v59 = vadd.f32 %v1250_v17, %v5716_v61 }
 0x190   : > { %v2301_v57 = vunpack.c.l.b16 %v1439_v36  ;;  %v1281_v62 = vmax.f32 %v1265_v55, 0.0  ;;  %v1319_v38 = vmul.f32 %v6140_v19, %v5693_v5  ;;  %v2263_v13 = vpack.c.b16 %v2254_v10, %v2253_v25 }
 0x191   : > { %v2302_v7 = vunpack.c.l.b16 %v1440_v39  ;;  %v1510_v11 = vpack.c.bf16 %v1494_v56, %v1494_v56  ;;  %v2349_v30 = vunpack.c.l.b16 %v1509_v29  ;;  %v1282_v24 = vmax.f32 %v1266_v59, 0.0 }
 0x192   : > { %v1297_v50 = vpack.c.bf16 %v1281_v62, %v1281_v62  ;;  %v1320_v47 = vmul.f32 %v6140_v19, %v5718_v32  ;;  %v1335_v45 = vadd.f32 %v1319_v38, %v5691_v0  ;;  %3163 = vmatpush.bf16.msra.mxu3 %v2263_v13  ;;  %v1389_v40 = vmul.f32 %v6144_v52, %v5693_v5 }
 0x193   : > { %v2311_v8 = vpack.c.b16 %v2302_v7, %v2301_v57  ;;  %v2350_v34 = vunpack.c.l.b16 %v1510_v11  ;;  %v1390_v28 = vmul.f32 %v6144_v52, %v5718_v32  ;;  %v1298_v2 = vpack.c.bf16 %v1282_v24, %v1282_v24 }
 0x194   : > { %v2203_v58 = vunpack.c.l.b16 %v1297_v50  ;;  %v1336_v49 = vadd.f32 %v1320_v47, %v5716_v61  ;;  %v1351_v43 = vmax.f32 %v1335_v45, 0.0  ;;  %v1405_v36 = vadd.f32 %v1389_v40, %v5691_v0 }
 0x195   : > { %3212 = vmatpush.bf16.msrb.mxu0 %v2311_v8  ;;  %v2359_v25 = vpack.c.b16 %v2350_v34, %v2349_v30  ;;  %v1406_v17 = vadd.f32 %v1390_v28, %v5716_v61  ;;  %v1459_v55 = vmul.f32 %v6159_v35, %v5693_v5  ;;  %v2204_v10 = vunpack.c.l.b16 %v1298_v2 }
 0x196   : > { %v1352_v39 = vmax.f32 %v1336_v49, 0.0  ;;  %v1367_v56 = vpack.c.bf16 %v1351_v43, %v1351_v43  ;;  %v1460_v29 = vmul.f32 %v6159_v35, %v5718_v32  ;;  %v1421_v57 = vmax.f32 %v1405_v36, 0.0 }
 0x197   : > { %3261 = vmatpush.bf16.msrb.mxu1 %v2359_v25  ;;  %v1422_v59 = vmax.f32 %v1406_v17, 0.0  ;;  %v1475_v62 = vadd.f32 %v1459_v55, %v5691_v0  ;;  %v1247_v38 = vmul.f32 %v6132_v15, %v8859_v46  ;;  %v2214_v13 = vpack.c.b16 %v2204_v10, %v2203_v58 }
 0x198   : > { %v1368_v7 = vpack.c.bf16 %v1352_v39, %v1352_v39  ;;  %v2251_v11 = vunpack.c.l.b16 %v1367_v56  ;;  %v1476_v30 = vadd.f32 %v1460_v29, %v5716_v61  ;;  %v1437_v24 = vpack.c.bf16 %v1421_v57, %v1421_v57 }
 0x199   : > { %v1438_v50 = vpack.c.bf16 %v1422_v59, %v1422_v59  ;;  %v1491_v47 = vmax.f32 %v1475_v62, 0.0  ;;  %v1248_v45 = vmul.f32 %v6132_v15, %v8860_v1  ;;  %3115 = vmatpush.bf16.msra.mxu2 %v2214_v13  ;;  %v1263_v40 = vadd.f32 %v1247_v38, %v8861_v41 }
 0x19a   : > { %v2252_v8 = vunpack.c.l.b16 %v1368_v7  ;;  %v1492_v34 = vmax.f32 %v1476_v30, 0.0  ;;  %v1317_v28 = vmul.f32 %v6140_v19, %v8859_v46  ;;  %v2299_v2 = vunpack.c.l.b16 %v1437_v24 }
 0x19b   : > { %v2300_v58 = vunpack.c.l.b16 %v1438_v50  ;;  %v1507_v49 = vpack.c.bf16 %v1491_v47, %v1491_v47  ;;  %v1264_v43 = vadd.f32 %v1248_v45, %v8864_v12  ;;  %v1279_v17 = vmax.f32 %v1263_v40, 0.0 }
 0x19c   : > { %v2262_v25 = vpack.c.b16 %v2252_v8, %v2251_v11  ;;  %v1508_v36 = vpack.c.bf16 %v1492_v34, %v1492_v34  ;;  %v1318_v55 = vmul.f32 %v6140_v19, %v8860_v1  ;;  %v1333_v29 = vadd.f32 %v1317_v28, %v8861_v41 }
 0x19d   : > { %v2310_v10 = vpack.c.b16 %v2300_v58, %v2299_v2  ;;  %v2347_v39 = vunpack.c.l.b16 %v1507_v49  ;;  %v1280_v56 = vmax.f32 %v1264_v43, 0.0  ;;  %v1295_v59 = vpack.c.bf16 %v1279_v17, %v1279_v17 }
 0x19e   : > { %3164 = vmatpush.bf16.msra.mxu3 %v2262_v25  ;;  %v2348_v57 = vunpack.c.l.b16 %v1508_v36  ;;  %v1334_v62 = vadd.f32 %v1318_v55, %v8864_v12  ;;  %v1387_v38 = vmul.f32 %v6144_v52, %v8859_v46  ;;  %v1349_v7 = vmax.f32 %v1333_v29, 0.0 }
 0x19f   : > { %3213 = vmatpush.bf16.msrb.mxu0 %v2310_v10  ;;  %v1296_v13 = vpack.c.bf16 %v1280_v56, %v1280_v56  ;;  %v1388_v11 = vmul.f32 %v6144_v52, %v8860_v1  ;;  %v1457_v30 = vmul.f32 %v6159_v35, %v8859_v46  ;;  %v2201_v50 = vunpack.c.l.b16 %v1295_v59 }
 0x1a0   : > { %v2358_v24 = vpack.c.b16 %v2348_v57, %v2347_v39  ;;  %v1350_v47 = vmax.f32 %v1334_v62, 0.0  ;;  %v1403_v45 = vadd.f32 %v1387_v38, %v8861_v41  ;;  %v1365_v34 = vpack.c.bf16 %v1349_v7, %v1349_v7  ;;  %v4950_v57 = vld [vmem:[%s8692_s4 + $0x18] sm:$0xff] }
 0x1a1   : > { %v2202_v8 = vunpack.c.l.b16 %v1296_v13  ;;  %v1404_v40 = vadd.f32 %v1388_v11, %v8864_v12  ;;  %v1458_v28 = vmul.f32 %v6159_v35, %v8860_v1  ;;  %v1473_v49 = vadd.f32 %v1457_v30, %v8861_v41  ;;  %2744 = vmatmul.bf16.gmra.mxu2 %v4950_v57  ;;  %2793 = vmatmul.bf16.gmra.mxu3 %v4950_v57 }
 0x1a2   : > { %3262 = vmatpush.bf16.msrb.mxu1 %v2358_v24  ;;  %v1366_v2 = vpack.c.bf16 %v1350_v47, %v1350_v47  ;;  %v1419_v58 = vmax.f32 %v1403_v45, 0.0  ;;  %v1245_v43 = vmul.f32 %v6132_v15, %v8873_v54  ;;  %v2249_v36 = vunpack.c.l.b16 %v1365_v34  ;;  %2842 = vmatmul.bf16.gmra.mxu0 %v4950_v57 }
 0x1a3   : > { %v2213_v25 = vpack.c.b16 %v2202_v8, %v2201_v50  ;;  %v1420_v17 = vmax.f32 %v1404_v40, 0.0  ;;  %v1474_v55 = vadd.f32 %v1458_v28, %v8864_v12  ;;  %v1489_v56 = vmax.f32 %v1473_v49, 0.0  ;;  %2891 = vmatmul.bf16.gmra.mxu1 %v4950_v57 }
 0x1a4   : > { %v2250_v10 = vunpack.c.l.b16 %v1366_v2  ;;  %v1435_v39 = vpack.c.bf16 %v1419_v58, %v1419_v58  ;;  %v1246_v29 = vmul.f32 %v6132_v15, %v8876_v16  ;;  %v1261_v38 = vadd.f32 %v1245_v43, %v8877_v3 }
 0x1a5   : > { %3116 = vmatpush.bf16.msra.mxu2 %v2213_v25  ;;  %v1436_v59 = vpack.c.bf16 %v1420_v17, %v1420_v17  ;;  %v1490_v62 = vmax.f32 %v1474_v55, 0.0  ;;  %v1315_v13 = vmul.f32 %v6140_v19, %v8873_v54  ;;  %v1505_v30 = vpack.c.bf16 %v1489_v56, %v1489_v56 }
 0x1a6   : > { %v2261_v7 = vpack.c.b16 %v2250_v10, %v2249_v36  ;;  %v2297_v11 = vunpack.c.l.b16 %v1435_v39  ;;  %v1262_v24 = vadd.f32 %v1246_v29, %v8878_v9  ;;  %v1277_v45 = vmax.f32 %v1261_v38, 0.0 }
 0x1a7   : > { %v2298_v50 = vunpack.c.l.b16 %v1436_v59  ;;  %v1506_v47 = vpack.c.bf16 %v1490_v62, %v1490_v62  ;;  %v1316_v8 = vmul.f32 %v6140_v19, %v8876_v16  ;;  %v2345_v34 = vunpack.c.l.b16 %v1505_v30 }
 0x1a8   : > { %3165 = vmatpush.bf16.msra.mxu3 %v2261_v7  ;;  %v1278_v40 = vmax.f32 %v1262_v24, 0.0  ;;  %v1331_v28 = vadd.f32 %v1315_v13, %v8877_v3  ;;  %v1385_v2 = vmul.f32 %v6144_v52, %v8873_v54  ;;  %v1293_v43 = vpack.c.bf16 %v1277_v45, %v1277_v45 }
 0x1a9   : > { %v2309_v58 = vpack.c.b16 %v2298_v50, %v2297_v11  ;;  %v2346_v49 = vunpack.c.l.b16 %v1506_v47  ;;  %v1332_v25 = vadd.f32 %v1316_v8, %v8878_v9  ;;  %v1386_v55 = vmul.f32 %v6144_v52, %v8876_v16 }
 0x1aa   : > { %v1294_v36 = vpack.c.bf16 %v1278_v40, %v1278_v40  ;;  %v1347_v17 = vmax.f32 %v1331_v28, 0.0  ;;  %v1401_v10 = vadd.f32 %v1385_v2, %v8877_v3  ;;  %v2199_v56 = vunpack.c.l.b16 %v1293_v43 }
 0x1ab   : > { %3214 = vmatpush.bf16.msrb.mxu0 %v2309_v58  ;;  %v2357_v39 = vpack.c.b16 %v2346_v49, %v2345_v34  ;;  %v1348_v29 = vmax.f32 %v1332_v25, 0.0  ;;  %v1455_v57 = vmul.f32 %v6159_v35, %v8873_v54  ;;  %v1402_v38 = vadd.f32 %v1386_v55, %v8878_v9 }
 0x1ac   : > { %v2200_v59 = vunpack.c.l.b16 %v1294_v36  ;;  %v1363_v62 = vpack.c.bf16 %v1347_v17, %v1347_v17  ;;  %v1417_v13 = vmax.f32 %v1401_v10, 0.0  ;;  %v1456_v11 = vmul.f32 %v6159_v35, %v8876_v16 }
 0x1ad   : > { %3263 = vmatpush.bf16.msrb.mxu1 %v2357_v39  ;;  %v1364_v7 = vpack.c.bf16 %v1348_v29, %v1348_v29  ;;  %v1471_v30 = vadd.f32 %v1455_v57, %v8877_v3  ;;  %v1243_v24 = vmul.f32 %v6132_v15, %v8879_v27  ;;  %v1418_v45 = vmax.f32 %v1402_v38, 0.0 }
 0x1ae   : > { %v2212_v50 = vpack.c.b16 %v2200_v59, %v2199_v56  ;;  %v2247_v47 = vunpack.c.l.b16 %v1363_v62  ;;  %v1433_v8 = vpack.c.bf16 %v1417_v13, %v1417_v13  ;;  %v1472_v40 = vadd.f32 %v1456_v11, %v8878_v9 }
 0x1af   : > { %v2248_v34 = vunpack.c.l.b16 %v1364_v7  ;;  %v1487_v28 = vmax.f32 %v1471_v30, 0.0  ;;  %v1244_v2 = vmul.f32 %v6132_v15, %v8880_v14  ;;  %v1434_v58 = vpack.c.bf16 %v1418_v45, %v1418_v45 }
 0x1b0   : > { %3117 = vmatpush.bf16.msra.mxu2 %v2212_v50  ;;  %v2295_v49 = vunpack.c.l.b16 %v1433_v8  ;;  %v1259_v43 = vadd.f32 %v1243_v24, %v8881_v31  ;;  %v1313_v25 = vmul.f32 %v6140_v19, %v8879_v27  ;;  %v1488_v17 = vmax.f32 %v1472_v40, 0.0 }
 0x1b1   : > { %v2260_v36 = vpack.c.b16 %v2248_v34, %v2247_v47  ;;  %v1503_v55 = vpack.c.bf16 %v1487_v28, %v1487_v28  ;;  %v1260_v10 = vadd.f32 %v1244_v2, %v8882_v6  ;;  %v2296_v39 = vunpack.c.l.b16 %v1434_v58 }
 0x1b2   : > { %v1275_v56 = vmax.f32 %v1259_v43, 0.0  ;;  %v1314_v29 = vmul.f32 %v6140_v19, %v8880_v14  ;;  %v1329_v57 = vadd.f32 %v1313_v25, %v8881_v31  ;;  %v1504_v59 = vpack.c.bf16 %v1488_v17, %v1488_v17 }
 0x1b3   : > { %3166 = vmatpush.bf16.msra.mxu3 %v2260_v36  ;;  %v2343_v62 = vunpack.c.l.b16 %v1503_v55  ;;  %v1276_v38 = vmax.f32 %v1260_v10, 0.0  ;;  %v1383_v13 = vmul.f32 %v6144_v52, %v8879_v27  ;;  %v2308_v7 = vpack.c.b16 %v2296_v39, %v2295_v49 }
 0x1b4   : > { %v1291_v11 = vpack.c.bf16 %v1275_v56, %v1275_v56  ;;  %v1330_v30 = vadd.f32 %v1314_v29, %v8882_v6  ;;  %v1345_v24 = vmax.f32 %v1329_v57, 0.0  ;;  %v2344_v50 = vunpack.c.l.b16 %v1504_v59 }
 0x1b5   : > { %v1292_v47 = vpack.c.bf16 %v1276_v38, %v1276_v38  ;;  %v1384_v45 = vmul.f32 %v6144_v52, %v8880_v14  ;;  %v1399_v8 = vadd.f32 %v1383_v13, %v8881_v31  ;;  %3215 = vmatpush.bf16.msrb.mxu0 %v2308_v7  ;;  %v1453_v2 = vmul.f32 %v6159_v35, %v8879_v27  ;;  %v4951_v7 = vld [vmem:[%s8692_s4 + $0x20] sm:$0xff] }
 0x1b6   : > { %v2197_v34 = vunpack.c.l.b16 %v1291_v11  ;;  %v1346_v40 = vmax.f32 %v1330_v30, 0.0  ;;  %v1361_v28 = vpack.c.bf16 %v1345_v24, %v1345_v24  ;;  %v2356_v58 = vpack.c.b16 %v2344_v50, %v2343_v62  ;;  %2749 = vmatmul.bf16.gmra.mxu2 %v4951_v7  ;;  %2798 = vmatmul.bf16.gmra.mxu3 %v4951_v7 }
 0x1b7   : > { %v2198_v49 = vunpack.c.l.b16 %v1292_v47  ;;  %v1400_v43 = vadd.f32 %v1384_v45, %v8882_v6  ;;  %v1415_v25 = vmax.f32 %v1399_v8, 0.0  ;;  %v1454_v55 = vmul.f32 %v6159_v35, %v8880_v14  ;;  %2847 = vmatmul.bf16.gmra.mxu0 %v4951_v7  ;;  %2896 = vmatmul.bf16.gmra.mxu1 %v4951_v7 }
 0x1b8   : > { %v1362_v36 = vpack.c.bf16 %v1346_v40, %v1346_v40  ;;  %v2245_v17 = vunpack.c.l.b16 %v1361_v28  ;;  %v1469_v10 = vadd.f32 %v1453_v2, %v8881_v31  ;;  %3264 = vmatpush.bf16.msrb.mxu1 %v2356_v58  ;;  %v1241_v57 = vmul.f32 %v6132_v15, %v8883_v44 }
 0x1b9   : > { %v2211_v39 = vpack.c.b16 %v2198_v49, %v2197_v34  ;;  %v1416_v56 = vmax.f32 %v1400_v43, 0.0  ;;  %v1431_v29 = vpack.c.bf16 %v1415_v25, %v1415_v25  ;;  %v1470_v62 = vadd.f32 %v1454_v55, %v8882_v6 }
 0x1ba   : > { %v2246_v59 = vunpack.c.l.b16 %v1362_v36  ;;  %v1485_v38 = vmax.f32 %v1469_v10, 0.0  ;;  %v1242_v13 = vmul.f32 %v6132_v15, %v8884_v4  ;;  %v1257_v24 = vadd.f32 %v1241_v57, %v8885_v60 }
 0x1bb   : > { %3118 = vmatpush.bf16.msra.mxu2 %v2211_v39  ;;  %v1432_v11 = vpack.c.bf16 %v1416_v56, %v1416_v56  ;;  %v2293_v30 = vunpack.c.l.b16 %v1431_v29  ;;  %v1311_v50 = vmul.f32 %v6140_v19, %v8883_v44  ;;  %v1486_v45 = vmax.f32 %v1470_v62, 0.0 }
 0x1bc   : > { %v2259_v47 = vpack.c.b16 %v2246_v59, %v2245_v17  ;;  %v1501_v8 = vpack.c.bf16 %v1485_v38, %v1485_v38  ;;  %v1258_v34 = vadd.f32 %v1242_v13, %v8886_v20  ;;  %v1273_v28 = vmax.f32 %v1257_v24, 0.0 }
 0x1bd   : > { %v2294_v40 = vunpack.c.l.b16 %v1432_v11  ;;  %v1312_v2 = vmul.f32 %v6140_v19, %v8884_v4  ;;  %v1327_v58 = vadd.f32 %v1311_v50, %v8885_v60  ;;  %v1502_v49 = vpack.c.bf16 %v1486_v45, %v1486_v45 }
 0x1be   : > { %3167 = vmatpush.bf16.msra.mxu3 %v2259_v47  ;;  %v2341_v43 = vunpack.c.l.b16 %v1501_v8  ;;  %v1274_v25 = vmax.f32 %v1258_v34, 0.0  ;;  %v1381_v36 = vmul.f32 %v6144_v52, %v8883_v44  ;;  %v1289_v55 = vpack.c.bf16 %v1273_v28, %v1273_v28 }
 0x1bf   : > { %v2307_v17 = vpack.c.b16 %v2294_v40, %v2293_v30  ;;  %v1328_v10 = vadd.f32 %v1312_v2, %v8886_v20  ;;  %v1343_v39 = vmax.f32 %v1327_v58, 0.0  ;;  %v2342_v56 = vunpack.c.l.b16 %v1502_v49 }
 0x1c0   : > { %v1290_v29 = vpack.c.bf16 %v1274_v25, %v1274_v25  ;;  %v1382_v57 = vmul.f32 %v6144_v52, %v8884_v4  ;;  %v1397_v59 = vadd.f32 %v1381_v36, %v8885_v60  ;;  %v2195_v62 = vunpack.c.l.b16 %v1289_v55 }
 0x1c1   : > { %3216 = vmatpush.bf16.msrb.mxu0 %v2307_v17  ;;  %v1344_v38 = vmax.f32 %v1328_v10, 0.0  ;;  %v1359_v13 = vpack.c.bf16 %v1343_v39, %v1343_v39  ;;  %v1451_v7 = vmul.f32 %v6159_v35, %v8883_v44  ;;  %v2355_v11 = vpack.c.b16 %v2342_v56, %v2341_v43 }
 0x1c2   : > { %v2196_v30 = vunpack.c.l.b16 %v1290_v29  ;;  %v1398_v24 = vadd.f32 %v1382_v57, %v8886_v20  ;;  %v1413_v50 = vmax.f32 %v1397_v59, 0.0  ;;  %v1452_v8 = vmul.f32 %v6159_v35, %v8884_v4 }
 0x1c3   : > { %v1360_v47 = vpack.c.bf16 %v1344_v38, %v1344_v38  ;;  %v2243_v45 = vunpack.c.l.b16 %v1359_v13  ;;  %v1467_v34 = vadd.f32 %v1451_v7, %v8885_v60  ;;  %3265 = vmatpush.bf16.msrb.mxu1 %v2355_v11  ;;  %v1239_v58 = vmul.f32 %v6132_v15, %v8887_v21  ;;  %v4952_v7 = vld [vmem:[%s8692_s4 + $0x28] sm:$0xff] }
 0x1c4   : > { %v2210_v40 = vpack.c.b16 %v2196_v30, %v2195_v62  ;;  %v1414_v28 = vmax.f32 %v1398_v24, 0.0  ;;  %v1429_v2 = vpack.c.bf16 %v1413_v50, %v1413_v50  ;;  %v1468_v43 = vadd.f32 %v1452_v8, %v8886_v20 }
 0x1c5   : > { %v2244_v49 = vunpack.c.l.b16 %v1360_v47  ;;  %v1483_v25 = vmax.f32 %v1467_v34, 0.0  ;;  %v1240_v36 = vmul.f32 %v6132_v15, %v8888_v53  ;;  %v1255_v10 = vadd.f32 %v1239_v58, %v8889_v23 }
 0x1c6   : > { %3119 = vmatpush.bf16.msra.mxu2 %v2210_v40  ;;  %v1430_v17 = vpack.c.bf16 %v1414_v28, %v1414_v28  ;;  %v2291_v55 = vunpack.c.l.b16 %v1429_v2  ;;  %v1309_v39 = vmul.f32 %v6140_v19, %v8887_v21  ;;  %v1484_v29 = vmax.f32 %v1468_v43, 0.0  ;;  %2803 = vmatmul.bf16.gmra.mxu3 %v4952_v7 }
 0x1c7   : > { %v2258_v56 = vpack.c.b16 %v2244_v49, %v2243_v45  ;;  %v1499_v57 = vpack.c.bf16 %v1483_v25, %v1483_v25  ;;  %v1256_v59 = vadd.f32 %v1240_v36, %v8890_v22  ;;  %v1271_v38 = vmax.f32 %v1255_v10, 0.0  ;;  %2754 = vmatmul.bf16.gmra.mxu2 %v4952_v7  ;;  %2852 = vmatmul.bf16.gmra.mxu0 %v4952_v7 }
 0x1c8   : > { %v2292_v62 = vunpack.c.l.b16 %v1430_v17  ;;  %v1310_v13 = vmul.f32 %v6140_v19, %v8888_v53  ;;  %v1325_v15 = vadd.f32 %v1309_v39, %v8889_v23  ;;  %v1500_v11 = vpack.c.bf16 %v1484_v29, %v1484_v29  ;;  %2901 = vmatmul.bf16.gmra.mxu1 %v4952_v7 }
 0x1c9   : > { %3168 = vmatpush.bf16.msra.mxu3 %v2258_v56  ;;  %v2339_v30 = vunpack.c.l.b16 %v1499_v57  ;;  %v1272_v24 = vmax.f32 %v1256_v59, 0.0  ;;  %v1379_v50 = vmul.f32 %v6144_v52, %v8887_v21  ;;  %v1287_v45 = vpack.c.bf16 %v1271_v38, %v1271_v38 }
 0x1ca   : > { %v2306_v47 = vpack.c.b16 %v2292_v62, %v2291_v55  ;;  %v1326_v8 = vadd.f32 %v1310_v13, %v8890_v22  ;;  %v1341_v34 = vmax.f32 %v1325_v15, 0.0  ;;  %v2340_v40 = vunpack.c.l.b16 %v1500_v11 }
 0x1cb   : > { %v1288_v19 = vpack.c.bf16 %v1272_v24, %v1272_v24  ;;  %v1380_v28 = vmul.f32 %v6144_v52, %v8888_v53  ;;  %v1395_v2 = vadd.f32 %v1379_v50, %v8889_v23  ;;  %v2193_v58 = vunpack.c.l.b16 %v1287_v45 }
 0x1cc   : > { %3217 = vmatpush.bf16.msrb.mxu0 %v2306_v47  ;;  %v1342_v49 = vmax.f32 %v1326_v8, 0.0  ;;  %v1357_v43 = vpack.c.bf16 %v1341_v34, %v1341_v34  ;;  %v1449_v25 = vmul.f32 %v6159_v35, %v8887_v21  ;;  %v2354_v36 = vpack.c.b16 %v2340_v40, %v2339_v30 }
 0x1cd   : > { %v2194_v17 = vunpack.c.l.b16 %v1288_v19  ;;  %v1396_v55 = vadd.f32 %v1380_v28, %v8890_v22  ;;  %v1411_v10 = vmax.f32 %v1395_v2, 0.0  ;;  %v1450_v52 = vmul.f32 %v6159_v35, %v8888_v53 }
 0x1ce   : > { %v1358_v39 = vpack.c.bf16 %v1342_v49, %v1342_v49  ;;  %v1465_v56 = vadd.f32 %v1449_v25, %v8889_v23  ;;  %3266 = vmatpush.bf16.msrb.mxu1 %v2354_v36  ;;  %v2241_v62 = vunpack.c.l.b16 %v1357_v43  ;;  %v1513_v30 = vmul.f32 0.78125, %v8891_v18 }
 0x1cf   : > { %v2209_v29 = vpack.c.b16 %v2194_v17, %v2193_v58  ;;  %v1412_v57 = vmax.f32 %v1396_v55, 0.0  ;;  %v1427_v59 = vpack.c.bf16 %v1411_v10, %v1411_v10  ;;  %v1466_v13 = vadd.f32 %v1450_v52, %v8890_v22  ;;  %v6351_v17 = vld [vmem:[%s8692_s4 + $0x30] sm:$0xff] }
 0x1d0   : > { %v2242_v38 = vunpack.c.l.b16 %v1358_v39  ;;  %v1481_v15 = vmax.f32 %v1465_v56, 0.0  ;;  %v1583_v7 = vmul.f32 0.84375, %v8891_v18  ;;  %v1653_v8 = vmul.f32 0.90625, %v8891_v18 }
 0x1d1   : > { %3120 = vmatpush.bf16.msra.mxu2 %v2209_v29  ;;  %v1428_v11 = vpack.c.bf16 %v1412_v57, %v1412_v57  ;;  %v1482_v50 = vmax.f32 %v1466_v13, 0.0  ;;  %v2289_v35 = vunpack.c.l.b16 %v1427_v59  ;;  %v1515_v40 = vrot.slane %v1513_v30, 1 }
 0x1d2   : > { %v2257_v24 = vpack.c.b16 %v2242_v38, %v2241_v62  ;;  %v1497_v47 = vpack.c.bf16 %v1481_v15, %v1481_v15  ;;  %v1723_v19 = vmul.f32 0.96875, %v8891_v18  ;;  %v1585_v2 = vrot.slane %v1583_v7, 1  ;;  %v8894_v62 = vld [vmem:[#allocation42_spill] sm:$0xff]  ;;  %v8895_v38 = vld [vmem:[#allocation43_spill] sm:$0xff] }
 0x1d3   : > { %v2290_v45 = vunpack.c.l.b16 %v1428_v11  ;;  %v1498_v34 = vpack.c.bf16 %v1482_v50, %v1482_v50  ;;  %v1655_v58 = vrot.slane %v1653_v8, 1  ;;  %v1517_v55 = vadd.f32 %v6125_v37, %v1515_v40 }
 0x1d4   : > { %3169 = vmatpush.bf16.msra.mxu3 %v2257_v24  ;;  %v2337_v49 = vunpack.c.l.b16 %v1497_v47  ;;  %v1725_v25 = vrot.slane %v1723_v19, 1  ;;  %v1587_v10 = vadd.f32 %v6125_v37, %v1585_v2 }
 0x1d5   : > { %v2305_v28 = vpack.c.b16 %v2290_v45, %v2289_v35  ;;  %v2338_v43 = vunpack.c.l.b16 %v1498_v34  ;;  %v1657_v39 = vadd.f32 %v6125_v37, %v1655_v58  ;;  %v6358_v56 = vperm.slane %v1517_v55, 0 }
 0x1d6   : > { %v1727_v52 = vadd.f32 %v6125_v37, %v1725_v25  ;;  %v6360_v29 = vperm.slane %v1587_v10, 0  ;;  %2808 = vmatmul.bf16.gmra.mxu3 %v6351_v17 }
 0x1d7   : > { %3218 = vmatpush.bf16.msrb.mxu0 %v2305_v28  ;;  %v2353_v36 = vpack.c.b16 %v2338_v43, %v2337_v49  ;;  %2759 = vmatmul.bf16.gmra.mxu2 %v6351_v17  ;;  %v6364_v57 = vperm.slane %v1657_v39, 0  ;;  %v1533_v37 = vmul.f32 %v6358_v56, %v8894_v62  ;;  %v1534_v13 = vmul.f32 %v6358_v56, %v8895_v38 }
 0x1d8   : > { %2857 = vmatmul.bf16.gmra.mxu0 %v6351_v17  ;;  %v6366_v59 = vperm.slane %v1727_v52, 0  ;;  %2906 = vmatmul.bf16.gmra.mxu1 %v6351_v17  ;;  %v1603_v15 = vmul.f32 %v6360_v29, %v8894_v62  ;;  %v1604_v11 = vmul.f32 %v6360_v29, %v8895_v38 }
 0x1d9   : > { %3267 = vmatpush.bf16.msrb.mxu1 %v2353_v36  ;;  %v1673_v30 = vmul.f32 %v6364_v57, %v8894_v62  ;;  %v1674_v24 = vmul.f32 %v6364_v57, %v8895_v38  ;;  %v1549_v35 = vadd.f32 %v1533_v37, %v5818_v42  ;;  %v1550_v45 = vadd.f32 %v1534_v13, %v5854_v48  ;;  %v6396_v13 = vld [vmem:[%s8692_s4 + $0x38] sm:$0xff] }
 0x1da   : > { %v1743_v50 = vmul.f32 %v6366_v59, %v8894_v62  ;;  %v1744_v47 = vmul.f32 %v6366_v59, %v8895_v38  ;;  %v1619_v7 = vadd.f32 %v1603_v15, %v5818_v42  ;;  %v1620_v8 = vadd.f32 %v1604_v11, %v5854_v48  ;;  %8896 = vst [vmem:[#allocation40_spill] sm:$0xff] %v6396_v13 }
 0x1db   : > { %v1689_v34 = vadd.f32 %v1673_v30, %v5818_v42  ;;  %v1690_v40 = vadd.f32 %v1674_v24, %v5854_v48  ;;  %v1565_v2 = vmax.f32 %v1549_v35, 0.0  ;;  %v1566_v58 = vmax.f32 %v1550_v45, 0.0 }
 0x1dc   : > { %v1759_v19 = vadd.f32 %v1743_v50, %v5818_v42  ;;  %v1760_v28 = vadd.f32 %v1744_v47, %v5854_v48  ;;  %v1636_v49 = vmax.f32 %v1620_v8, 0.0  ;;  %v1635_v55 = vmax.f32 %v1619_v7, 0.0 }
 0x1dd   : > { %v1706_v43 = vmax.f32 %v1690_v40, 0.0  ;;  %v1581_v36 = vpack.c.bf16 %v1565_v2, %v1565_v2  ;;  %v1705_v10 = vmax.f32 %v1689_v34, 0.0  ;;  %v1582_v52 = vpack.c.bf16 %v1566_v58, %v1566_v58 }
 0x1de   : > { %v1776_v25 = vmax.f32 %v1760_v28, 0.0  ;;  %v1775_v39 = vmax.f32 %v1759_v19, 0.0  ;;  %v1652_v62 = vpack.c.bf16 %v1636_v49, %v1636_v49  ;;  %v1651_v48 = vpack.c.bf16 %v1635_v55, %v1635_v55 }
 0x1df   : > { %v1722_v37 = vpack.c.bf16 %v1706_v43, %v1706_v43  ;;  %v2399_v42 = vunpack.c.l.b16 %v1581_v36  ;;  %v1721_v15 = vpack.c.bf16 %v1705_v10, %v1705_v10  ;;  %v2400_v30 = vunpack.c.l.b16 %v1582_v52 }
 0x1e0   : > { %v1792_v38 = vpack.c.bf16 %v1776_v25, %v1776_v25  ;;  %v1791_v11 = vpack.c.bf16 %v1775_v39, %v1775_v39  ;;  %v2448_v24 = vunpack.c.l.b16 %v1652_v62  ;;  %v1531_v50 = vmul.f32 %v6358_v56, %v8893_v33 }
 0x1e1   : > { %v1532_v47 = vmul.f32 %v6358_v56, %v5782_v26  ;;  %v2496_v35 = vunpack.c.l.b16 %v1722_v37  ;;  %v1601_v7 = vmul.f32 %v6360_v29, %v8893_v33  ;;  %v1602_v8 = vmul.f32 %v6360_v29, %v5782_v26 }
 0x1e2   : > { %v2544_v45 = vunpack.c.l.b16 %v1792_v38  ;;  %v1547_v34 = vadd.f32 %v1531_v50, %v5741_v63  ;;  %v1671_v19 = vmul.f32 %v6364_v57, %v8893_v33  ;;  %v1672_v28 = vmul.f32 %v6364_v57, %v5782_v26 }
 0x1e3   : > { %v1548_v40 = vadd.f32 %v1532_v47, %v5780_v51  ;;  %v1617_v2 = vadd.f32 %v1601_v7, %v5741_v63  ;;  %v1618_v58 = vadd.f32 %v1602_v8, %v5780_v51  ;;  %v1741_v49 = vmul.f32 %v6366_v59, %v8893_v33 }
 0x1e4   : > { %v1742_v43 = vmul.f32 %v6366_v59, %v5782_v26  ;;  %v1563_v25 = vmax.f32 %v1547_v34, 0.0  ;;  %v1687_v55 = vadd.f32 %v1671_v19, %v5741_v63  ;;  %v1688_v10 = vadd.f32 %v1672_v28, %v5780_v51 }
 0x1e5   : > { %v1564_v36 = vmax.f32 %v1548_v40, 0.0  ;;  %v1633_v39 = vmax.f32 %v1617_v2, 0.0  ;;  %v1634_v52 = vmax.f32 %v1618_v58, 0.0  ;;  %v1757_v62 = vadd.f32 %v1741_v49, %v5741_v63 }
 0x1e6   : > { %2813 = vmatmul.bf16.gmra.mxu3 %v6396_v13  ;;  %v1758_v33 = vadd.f32 %v1742_v43, %v5780_v51  ;;  %v1579_v37 = vpack.c.bf16 %v1563_v25, %v1563_v25  ;;  %v1703_v38 = vmax.f32 %v1687_v55, 0.0  ;;  %v1704_v50 = vmax.f32 %v1688_v10, 0.0 }
 0x1e7   : > { %2764 = vmatmul.bf16.gmra.mxu2 %v6396_v13  ;;  %v1580_v26 = vpack.c.bf16 %v1564_v36, %v1564_v36  ;;  %v1649_v47 = vpack.c.bf16 %v1633_v39, %v1633_v39  ;;  %v1650_v7 = vpack.c.bf16 %v1634_v52, %v1634_v52  ;;  %v1773_v8 = vmax.f32 %v1757_v62, 0.0 }
 0x1e8   : > { %2862 = vmatmul.bf16.gmra.mxu0 %v6396_v13  ;;  %2911 = vmatmul.bf16.gmra.mxu1 %v6396_v13  ;;  %v1774_v34 = vmax.f32 %v1758_v33, 0.0  ;;  %v2447_v40 = vunpack.c.l.b16 %v1651_v48  ;;  %v2495_v19 = vunpack.c.l.b16 %v1721_v15  ;;  %v6426_v28 = vpack.c.bf16 %v1703_v38, %v1703_v38  ;;  %v6457_v38 = vpop.f32.mrf.mxu0 }
 0x1e9   : > { %v2398_v18 = vunpack.c.l.b16 %v1580_v26  ;;  %v2543_v13 = vunpack.c.l.b16 %v1791_v11  ;;  %v6428_v2 = vpack.c.bf16 %v1704_v50, %v1704_v50  ;;  %v2408_v63 = vpack.c.b16 %v2400_v30, %v2399_v42  ;;  %8897 = vst [vmem:[#allocation36_spill] sm:$0xff] %v6457_v38  ;;  %v6459_v50 = vpop.f32.mrf.mxu1 }
 0x1ea   : > { %v6430_v58 = vpack.c.bf16 %v1774_v34, %v1774_v34  ;;  %v2456_v51 = vpack.c.b16 %v2448_v24, %v2447_v40  ;;  %v2504_v49 = vpack.c.b16 %v2496_v35, %v2495_v19  ;;  %v2397_v43 = vunpack.c.l.b16 %v1579_v37  ;;  %8898 = vst [vmem:[#allocation37_spill] sm:$0xff] %v6459_v50  ;;  %v6463_v40 = vpop.f32.mrf.mxu2  ;;  %v6465_v19 = vpop.f32.mrf.mxu3 }
 0x1eb   : > { %v2552_v25 = vpack.c.b16 %v2544_v45, %v2543_v13  ;;  %v2445_v36 = vunpack.c.l.b16 %v1649_v47  ;;  %v2446_v55 = vunpack.c.l.b16 %v1650_v7  ;;  %v1789_v10 = vpack.c.bf16 %v1773_v8, %v1773_v8 }
 0x1ec   : > { %v6432_v39 = vpack.c.b16 %v2398_v18, %v2397_v43  ;;  %v2493_v48 = vunpack.c.l.b16 %v6426_v28  ;;  %v1529_v15 = vmul.f32 %v6358_v56, %v5693_v5  ;;  %v1530_v11 = vmul.f32 %v6358_v56, %v5718_v32 }
 0x1ed   : > { %v2494_v52 = vunpack.c.l.b16 %v6428_v2  ;;  %v2542_v42 = vunpack.c.l.b16 %v6430_v58  ;;  %v1599_v13 = vmul.f32 %v6360_v29, %v5693_v5  ;;  %v1600_v30 = vmul.f32 %v6360_v29, %v5718_v32 }
 0x1ee   : > { %v1545_v18 = vadd.f32 %v1529_v15, %v5691_v0  ;;  %v1546_v24 = vadd.f32 %v1530_v11, %v5716_v61  ;;  %v1669_v35 = vmul.f32 %v6364_v57, %v5693_v5  ;;  %v1670_v45 = vmul.f32 %v6364_v57, %v5718_v32 }
 0x1ef   : > { %v1615_v62 = vadd.f32 %v1599_v13, %v5691_v0  ;;  %v1616_v33 = vadd.f32 %v1600_v30, %v5716_v61  ;;  %v1739_v37 = vmul.f32 %v6366_v59, %v5693_v5  ;;  %v1740_v26 = vmul.f32 %v6366_v59, %v5718_v32  ;;  %v6472_v13 = vld [vmem:[%s8692_s4] sm:$0xff] }
 0x1f0   : > { %v1561_v47 = vmax.f32 %v1545_v18, 0.0  ;;  %v1562_v7 = vmax.f32 %v1546_v24, 0.0  ;;  %v1685_v8 = vadd.f32 %v1669_v35, %v5691_v0  ;;  %v1686_v34 = vadd.f32 %v1670_v45, %v5716_v61 }
 0x1f1   : > { %v1631_v28 = vmax.f32 %v1615_v62, 0.0  ;;  %v1632_v2 = vmax.f32 %v1616_v33, 0.0  ;;  %v1755_v5 = vadd.f32 %v1739_v37, %v5691_v0  ;;  %v1756_v32 = vadd.f32 %v1740_v26, %v5716_v61 }
 0x1f2   : > { %v1577_v58 = vpack.c.bf16 %v1561_v47, %v1561_v47  ;;  %v1578_v43 = vpack.c.bf16 %v1562_v7, %v1562_v7  ;;  %v1701_v15 = vmax.f32 %v1685_v8, 0.0  ;;  %v1702_v11 = vmax.f32 %v1686_v34, 0.0 }
 0x1f3   : > { %v1647_v30 = vpack.c.bf16 %v1631_v28, %v1631_v28  ;;  %v1648_v18 = vpack.c.bf16 %v1632_v2, %v1632_v2  ;;  %v1771_v24 = vmax.f32 %v1755_v5, 0.0  ;;  %v1772_v35 = vmax.f32 %v1756_v32, 0.0 }
 0x1f4   : > { %v2455_v0 = vpack.c.b16 %v2446_v55, %v2445_v36  ;;  %v2396_v61 = vunpack.c.l.b16 %v1578_v43  ;;  %v1717_v45 = vpack.c.bf16 %v1701_v15, %v1701_v15  ;;  %v1718_v62 = vpack.c.bf16 %v1702_v11, %v1702_v11  ;;  %v6495_v11 = vpop.f32.mrf.mxu2 }
 0x1f5   : > { %v2541_v33 = vunpack.c.l.b16 %v1789_v10  ;;  %v2444_v37 = vunpack.c.l.b16 %v1648_v18  ;;  %v1787_v26 = vpack.c.bf16 %v1771_v24, %v1771_v24  ;;  %v1788_v47 = vpack.c.bf16 %v1772_v35, %v1772_v35 }
 0x1f6   : > { %2974 = vmatmul.bf16.vlgmr.msrb.gmra.mxu3 %v6472_v13  ;;  %v2503_v7 = vpack.c.b16 %v2494_v52, %v2493_v48  ;;  %v2395_v8 = vunpack.c.l.b16 %v1577_v58  ;;  %v2443_v34 = vunpack.c.l.b16 %v1647_v30  ;;  %v2492_v28 = vunpack.c.l.b16 %v1718_v62  ;;  %v6487_v52 = vpop.f32.mrf.mxu0  ;;  %v6497_v30 = vpop.f32.mrf.mxu3 }
 0x1f7   : > { %2925 = vmatmul.bf16.vlgmr.msrb.gmra.mxu2 %v6472_v13  ;;  %3358 = vmatpush.bf16.msrb.mxu3 %v2456_v51  ;;  %v2551_v2 = vpack.c.b16 %v2542_v42, %v2541_v33  ;;  %v2491_v5 = vunpack.c.l.b16 %v1717_v45  ;;  %v2539_v36 = vunpack.c.l.b16 %v1787_v26  ;;  %v2540_v55 = vunpack.c.l.b16 %v1788_v47  ;;  %8899 = vst [vmem:[#allocation38_spill] sm:$0xff] %v6487_v52  ;;  %v6489_v42 = vpop.f32.mrf.mxu1 }
 0x1f8   : > { %3023 = vmatmul.bf16.vlgmr.msra.gmra.mxu0 %v6472_v13  ;;  %3072 = vmatmul.bf16.vlgmr.msra.gmra.mxu1 %v6472_v13  ;;  %v2406_v32 = vpack.c.b16 %v2396_v61, %v2395_v8  ;;  %v2454_v43 = vpack.c.b16 %v2444_v37, %v2443_v34  ;;  %v1528_v10 = vmul.f32 %v6358_v56, %v8860_v1 }
 0x1f9   : > { %3309 = vmatpush.bf16.msrb.mxu2 %v2408_v63  ;;  %3407 = vmatpush.bf16.msra.mxu0 %v2504_v49  ;;  %v1527_v63 = vmul.f32 %v6358_v56, %v8859_v46  ;;  %v2502_v51 = vpack.c.b16 %v2492_v28, %v2491_v5  ;;  %v2550_v49 = vpack.c.b16 %v2540_v55, %v2539_v36 }
 0x1fa   : > { %3456 = vmatpush.bf16.msra.mxu1 %v2552_v25  ;;  %v1597_v48 = vmul.f32 %v6360_v29, %v8859_v46  ;;  %v1598_v25 = vmul.f32 %v6360_v29, %v8860_v1  ;;  %8900 = vst [vmem:[#allocation39_spill] sm:$0xff] %v6489_v42  ;;  %v1544_v15 = vadd.f32 %v1528_v10, %v8864_v12 }
 0x1fb   : > { %3359 = vmatpush.bf16.msrb.mxu3 %v2455_v0  ;;  %v1543_v58 = vadd.f32 %v1527_v63, %v8861_v41  ;;  %v1668_v35 = vmul.f32 %v6364_v57, %v8860_v1  ;;  %v1737_v0 = vmul.f32 %v6366_v59, %v8859_v46  ;;  %v1738_v33 = vmul.f32 %v6366_v59, %v8860_v1 }
 0x1fc   : > { %v1613_v18 = vadd.f32 %v1597_v48, %v8861_v41  ;;  %v1614_v24 = vadd.f32 %v1598_v25, %v8864_v12  ;;  %v1560_v45 = vmax.f32 %v1544_v15, 0.0 }
 0x1fd   : > { %3310 = vmatpush.bf16.msrb.mxu2 %v6432_v39  ;;  %3408 = vmatpush.bf16.msra.mxu0 %v2503_v7  ;;  %v1667_v39 = vmul.f32 %v6364_v57, %v8859_v46  ;;  %v1559_v61 = vmax.f32 %v1543_v58, 0.0  ;;  %v1684_v47 = vadd.f32 %v1668_v35, %v8864_v12  ;;  %v1753_v7 = vadd.f32 %v1737_v0, %v8861_v41 }
 0x1fe   : > { %3457 = vmatpush.bf16.msra.mxu1 %v2551_v2  ;;  %v1629_v37 = vmax.f32 %v1613_v18, 0.0  ;;  %v1630_v26 = vmax.f32 %v1614_v24, 0.0  ;;  %v1576_v34 = vpack.c.bf16 %v1560_v45, %v1560_v45  ;;  %v1754_v46 = vadd.f32 %v1738_v33, %v8864_v12  ;;  %v6514_v12 = vld [vmem:[%s8692_s4 + $0x8] sm:$0xff]  ;;  %v6517_v35 = vpop.f32.mrf.mxu0 }
 0x1ff   : > { %v1683_v62 = vadd.f32 %v1667_v39, %v8861_v41  ;;  %3360 = vmatpush.bf16.msrb.mxu3 %v2454_v43  ;;  %v1575_v8 = vpack.c.bf16 %v1559_v61, %v1559_v61  ;;  %v1700_v36 = vmax.f32 %v1684_v47, 0.0  ;;  %v1769_v55 = vmax.f32 %v1753_v7, 0.0  ;;  %8901 = vst [vmem:[#allocation27_spill] sm:$0xff] %v6517_v35  ;;  %v6519_v0 = vpop.f32.mrf.mxu1  ;;  %v6533_v47 = vpop.f32.mrf.mxu3 }
 0x200   : > { %v1645_v2 = vpack.c.bf16 %v1629_v37, %v1629_v37  ;;  %v1646_v5 = vpack.c.bf16 %v1630_v26, %v1630_v26  ;;  %v1770_v10 = vmax.f32 %v1754_v46, 0.0  ;;  %8902 = vst [vmem:[#allocation35_spill] sm:$0xff] %v6519_v0  ;;  %v1525_v61 = vmul.f32 %v6358_v56, %v8873_v54  ;;  %v6531_v26 = vpop.f32.mrf.mxu2 }
 0x201   : > { %3311 = vmatpush.bf16.msrb.mxu2 %v2406_v32  ;;  %3409 = vmatpush.bf16.msra.mxu0 %v2502_v51  ;;  %v1699_v28 = vmax.f32 %v1683_v62, 0.0  ;;  %v2393_v1 = vunpack.c.l.b16 %v1575_v8  ;;  %v2394_v32 = vunpack.c.l.b16 %v1576_v34  ;;  %v1716_v58 = vpack.c.bf16 %v1700_v36, %v1700_v36 }
 0x202   : > { %3458 = vmatpush.bf16.msra.mxu1 %v2550_v49  ;;  %v2441_v48 = vunpack.c.l.b16 %v1645_v2  ;;  %v2442_v25 = vunpack.c.l.b16 %v1646_v5  ;;  %v1785_v41 = vpack.c.bf16 %v1769_v55, %v1769_v55  ;;  %v1786_v51 = vpack.c.bf16 %v1770_v10, %v1770_v10 }
 0x203   : > { %v1715_v63 = vpack.c.bf16 %v1699_v28, %v1699_v28  ;;  %v2405_v43 = vpack.c.b16 %v2394_v32, %v2393_v1  ;;  %v2490_v18 = vunpack.c.l.b16 %v1716_v58  ;;  %v1526_v45 = vmul.f32 %v6358_v56, %v8876_v16 }
 0x204   : > { %v2453_v15 = vpack.c.b16 %v2442_v25, %v2441_v48  ;;  %v2537_v49 = vunpack.c.l.b16 %v1785_v41  ;;  %v2538_v24 = vunpack.c.l.b16 %v1786_v51  ;;  %v1595_v33 = vmul.f32 %v6360_v29, %v8873_v54 }
 0x205   : > { %v2489_v39 = vunpack.c.l.b16 %v1715_v63  ;;  %3312 = vmatpush.bf16.msrb.mxu2 %v2405_v43  ;;  %v1596_v37 = vmul.f32 %v6360_v29, %v8876_v16  ;;  %v1541_v8 = vadd.f32 %v1525_v61, %v8877_v3  ;;  %v1542_v34 = vadd.f32 %v1526_v45, %v8878_v9 }
 0x206   : > { %2979 = vmatmul.bf16.gmra.mxu3 %v6514_v12  ;;  %v2549_v7 = vpack.c.b16 %v2538_v24, %v2537_v49  ;;  %v1665_v28 = vmul.f32 %v6364_v57, %v8873_v54  ;;  %v1611_v46 = vadd.f32 %v1595_v33, %v8877_v3  ;;  %v1666_v5 = vmul.f32 %v6364_v57, %v8876_v16 }
 0x207   : > { %2930 = vmatmul.bf16.gmra.mxu2 %v6514_v12  ;;  %3361 = vmatpush.bf16.msrb.mxu3 %v2453_v15  ;;  %v2501_v62 = vpack.c.b16 %v2490_v18, %v2489_v39  ;;  %v1612_v2 = vadd.f32 %v1596_v37, %v8878_v9  ;;  %v1735_v36 = vmul.f32 %v6366_v59, %v8873_v54  ;;  %v1557_v55 = vmax.f32 %v1541_v8, 0.0 }
 0x208   : > { %3028 = vmatmul.bf16.gmra.mxu0 %v6514_v12  ;;  %3077 = vmatmul.bf16.gmra.mxu1 %v6514_v12  ;;  %v1558_v1 = vmax.f32 %v1542_v34, 0.0  ;;  %v1681_v32 = vadd.f32 %v1665_v28, %v8877_v3  ;;  %v1736_v63 = vmul.f32 %v6366_v59, %v8876_v16  ;;  %v1627_v10 = vmax.f32 %v1611_v46, 0.0  ;;  %v6554_v28 = vpop.f32.mrf.mxu1 }
 0x209   : > { %3410 = vmatpush.bf16.msra.mxu0 %v2501_v62  ;;  %3459 = vmatpush.bf16.msra.mxu1 %v2549_v7  ;;  %v1628_v48 = vmax.f32 %v1612_v2, 0.0  ;;  %v1682_v25 = vadd.f32 %v1666_v5, %v8878_v9  ;;  %v1751_v58 = vadd.f32 %v1735_v36, %v8877_v3  ;;  %v1573_v41 = vpack.c.bf16 %v1557_v55, %v1557_v55  ;;  %v6552_v3 = vpop.f32.mrf.mxu0  ;;  %v6556_v5 = vpop.f32.mrf.mxu2 }
 0x20a   : > { %v1574_v43 = vpack.c.bf16 %v1558_v1, %v1558_v1  ;;  %v1697_v51 = vmax.f32 %v1681_v32, 0.0  ;;  %v1752_v15 = vadd.f32 %v1736_v63, %v8878_v9  ;;  %v1643_v54 = vpack.c.bf16 %v1627_v10, %v1627_v10  ;;  %8903 = vst [vmem:[#allocation31_spill] sm:$0xff] %v6552_v3  ;;  %v6558_v36 = vpop.f32.mrf.mxu3 }
 0x20b   : > { %v1644_v39 = vpack.c.bf16 %v1628_v48, %v1628_v48  ;;  %v1698_v18 = vmax.f32 %v1682_v25, 0.0  ;;  %v1767_v49 = vmax.f32 %v1751_v58, 0.0  ;;  %v2391_v24 = vunpack.c.l.b16 %v1573_v41  ;;  %8904 = vst [vmem:[#allocation29_spill] sm:$0xff] %v6554_v28 }
 0x20c   : > { %v2392_v61 = vunpack.c.l.b16 %v1574_v43  ;;  %v1713_v45 = vpack.c.bf16 %v1697_v51, %v1697_v51  ;;  %v1768_v62 = vmax.f32 %v1752_v15, 0.0  ;;  %v2439_v16 = vunpack.c.l.b16 %v1643_v54 }
 0x20d   : > { %v2440_v33 = vunpack.c.l.b16 %v1644_v39  ;;  %v1714_v37 = vpack.c.bf16 %v1698_v18, %v1698_v18  ;;  %v1783_v7 = vpack.c.bf16 %v1767_v49, %v1767_v49  ;;  %v1523_v32 = vmul.f32 %v6358_v56, %v8879_v27 }
 0x20e   : > { %v2404_v8 = vpack.c.b16 %v2392_v61, %v2391_v24  ;;  %v1784_v34 = vpack.c.bf16 %v1768_v62, %v1768_v62  ;;  %v2487_v9 = vunpack.c.l.b16 %v1713_v45  ;;  %v1524_v63 = vmul.f32 %v6358_v56, %v8880_v14  ;;  %v6584_v62 = vld [vmem:[%s8692_s4 + $0x10] sm:$0xff] }
 0x20f   : > { %v2452_v46 = vpack.c.b16 %v2440_v33, %v2439_v16  ;;  %v2488_v2 = vunpack.c.l.b16 %v1714_v37  ;;  %v2535_v55 = vunpack.c.l.b16 %v1783_v7  ;;  %v1593_v48 = vmul.f32 %v6360_v29, %v8879_v27 }
 0x210   : > { %3313 = vmatpush.bf16.msrb.mxu2 %v2404_v8  ;;  %v2536_v1 = vunpack.c.l.b16 %v1784_v34  ;;  %v1594_v25 = vmul.f32 %v6360_v29, %v8880_v14  ;;  %v1539_v41 = vadd.f32 %v1523_v32, %v8881_v31  ;;  %v1540_v43 = vadd.f32 %v1524_v63, %v8882_v6 }
 0x211   : > { %3362 = vmatpush.bf16.msrb.mxu3 %v2452_v46  ;;  %v2500_v10 = vpack.c.b16 %v2488_v2, %v2487_v9  ;;  %v1663_v51 = vmul.f32 %v6364_v57, %v8879_v27  ;;  %v1609_v15 = vadd.f32 %v1593_v48, %v8881_v31  ;;  %v1664_v39 = vmul.f32 %v6364_v57, %v8880_v14  ;;  %v6595_v48 = vpop.f32.mrf.mxu1 }
 0x212   : > { %v2548_v58 = vpack.c.b16 %v2536_v1, %v2535_v55  ;;  %v1610_v54 = vadd.f32 %v1594_v25, %v8882_v6  ;;  %v1733_v18 = vmul.f32 %v6366_v59, %v8879_v27  ;;  %v1555_v49 = vmax.f32 %v1539_v41, 0.0  ;;  %8906 = vst [vmem:[#allocation34_spill] sm:$0xff] %v6595_v48 }
 0x213   : > { %3411 = vmatpush.bf16.msra.mxu0 %v2500_v10  ;;  %v1556_v24 = vmax.f32 %v1540_v43, 0.0  ;;  %v1679_v61 = vadd.f32 %v1663_v51, %v8881_v31  ;;  %v1734_v45 = vmul.f32 %v6366_v59, %v8880_v14  ;;  %v1625_v16 = vmax.f32 %v1609_v15, 0.0  ;;  %v6597_v51 = vpop.f32.mrf.mxu2 }
 0x214   : > { %3460 = vmatpush.bf16.msra.mxu1 %v2548_v58  ;;  %v1626_v33 = vmax.f32 %v1610_v54, 0.0  ;;  %v1680_v37 = vadd.f32 %v1664_v39, %v8882_v6  ;;  %v1749_v27 = vadd.f32 %v1733_v18, %v8881_v31  ;;  %v1571_v7 = vpack.c.bf16 %v1555_v49, %v1555_v49  ;;  %v6593_v31 = vpop.f32.mrf.mxu0 }
 0x215   : > { %v1572_v8 = vpack.c.bf16 %v1556_v24, %v1556_v24  ;;  %v1695_v14 = vmax.f32 %v1679_v61, 0.0  ;;  %v1750_v34 = vadd.f32 %v1734_v45, %v8882_v6  ;;  %v1641_v46 = vpack.c.bf16 %v1625_v16, %v1625_v16  ;;  %8905 = vst [vmem:[#allocation30_spill] sm:$0xff] %v6593_v31  ;;  %v6599_v6 = vpop.f32.mrf.mxu3 }
 0x216   : > { %2984 = vmatmul.bf16.gmra.mxu3 %v6584_v62  ;;  %v1642_v9 = vpack.c.bf16 %v1626_v33, %v1626_v33  ;;  %v1696_v2 = vmax.f32 %v1680_v37, 0.0  ;;  %v1765_v55 = vmax.f32 %v1749_v27, 0.0  ;;  %v2389_v1 = vunpack.c.l.b16 %v1571_v7 }
 0x217   : > { %2935 = vmatmul.bf16.gmra.mxu2 %v6584_v62  ;;  %v2390_v32 = vunpack.c.l.b16 %v1572_v8  ;;  %v1711_v63 = vpack.c.bf16 %v1695_v14, %v1695_v14  ;;  %v1766_v10 = vmax.f32 %v1750_v34, 0.0  ;;  %v2437_v25 = vunpack.c.l.b16 %v1641_v46 }
 0x218   : > { %3033 = vmatmul.bf16.gmra.mxu0 %v6584_v62  ;;  %3082 = vmatmul.bf16.gmra.mxu1 %v6584_v62  ;;  %v2438_v58 = vunpack.c.l.b16 %v1642_v9  ;;  %v1712_v41 = vpack.c.bf16 %v1696_v2, %v1696_v2  ;;  %v1781_v43 = vpack.c.bf16 %v1765_v55, %v1765_v55  ;;  %v1521_v45 = vmul.f32 %v6358_v56, %v8883_v44 }
 0x219   : > { %v2403_v15 = vpack.c.b16 %v2390_v32, %v2389_v1  ;;  %v1782_v54 = vpack.c.bf16 %v1766_v10, %v1766_v10  ;;  %v2485_v18 = vunpack.c.l.b16 %v1711_v63  ;;  %v1522_v16 = vmul.f32 %v6358_v56, %v8884_v4 }
 0x21a   : > { %v2451_v39 = vpack.c.b16 %v2438_v58, %v2437_v25  ;;  %v2486_v49 = vunpack.c.l.b16 %v1712_v41  ;;  %v2533_v24 = vunpack.c.l.b16 %v1781_v43  ;;  %v1591_v37 = vmul.f32 %v6360_v29, %v8883_v44  ;;  %v6624_v58 = vpop.f32.mrf.mxu1 }
 0x21b   : > { %3314 = vmatpush.bf16.msrb.mxu2 %v2403_v15  ;;  %v2534_v61 = vunpack.c.l.b16 %v1782_v54  ;;  %v1592_v27 = vmul.f32 %v6360_v29, %v8884_v4  ;;  %v1537_v8 = vadd.f32 %v1521_v45, %v8885_v60  ;;  %v1538_v14 = vadd.f32 %v1522_v16, %v8886_v20  ;;  %8908 = vst [vmem:[#allocation33_spill] sm:$0xff] %v6624_v58 }
 0x21c   : > { %3363 = vmatpush.bf16.msrb.mxu3 %v2451_v39  ;;  %v2499_v33 = vpack.c.b16 %v2486_v49, %v2485_v18  ;;  %v1661_v34 = vmul.f32 %v6364_v57, %v8883_v44  ;;  %v1607_v46 = vadd.f32 %v1591_v37, %v8885_v60  ;;  %v1662_v2 = vmul.f32 %v6364_v57, %v8884_v4  ;;  %v6622_v25 = vpop.f32.mrf.mxu0  ;;  %v6628_v39 = vpop.f32.mrf.mxu2 }
 0x21d   : > { %v2547_v7 = vpack.c.b16 %v2534_v61, %v2533_v24  ;;  %v1608_v9 = vadd.f32 %v1592_v27, %v8886_v20  ;;  %v1731_v55 = vmul.f32 %v6366_v59, %v8883_v44  ;;  %v1553_v1 = vmax.f32 %v1537_v8, 0.0  ;;  %8907 = vst [vmem:[#allocation32_spill] sm:$0xff] %v6622_v25  ;;  %v6630_v44 = vpop.f32.mrf.mxu3 }
 0x21e   : > { %3412 = vmatpush.bf16.msra.mxu0 %v2499_v33  ;;  %v1554_v32 = vmax.f32 %v1538_v14, 0.0  ;;  %v1677_v63 = vadd.f32 %v1661_v34, %v8885_v60  ;;  %v1732_v10 = vmul.f32 %v6366_v59, %v8884_v4  ;;  %v1623_v41 = vmax.f32 %v1607_v46, 0.0 }
 0x21f   : > { %3461 = vmatpush.bf16.msra.mxu1 %v2547_v7  ;;  %v1624_v43 = vmax.f32 %v1608_v9, 0.0  ;;  %v1678_v15 = vadd.f32 %v1662_v2, %v8886_v20  ;;  %v1747_v54 = vadd.f32 %v1731_v55, %v8885_v60  ;;  %v1569_v18 = vpack.c.bf16 %v1553_v1, %v1553_v1  ;;  %v6636_v60 = vld [vmem:[%s8692_s4 + $0x18] sm:$0xff] }
 0x220   : > { %v1570_v49 = vpack.c.bf16 %v1554_v32, %v1554_v32  ;;  %v1693_v24 = vmax.f32 %v1677_v63, 0.0  ;;  %v1748_v61 = vadd.f32 %v1732_v10, %v8886_v20  ;;  %v1639_v4 = vpack.c.bf16 %v1623_v41, %v1623_v41 }
 0x221   : > { %v1640_v45 = vpack.c.bf16 %v1624_v43, %v1624_v43  ;;  %v1694_v16 = vmax.f32 %v1678_v15, 0.0  ;;  %v1763_v33 = vmax.f32 %v1747_v54, 0.0  ;;  %v2387_v37 = vunpack.c.l.b16 %v1569_v18 }
 0x222   : > { %v2388_v27 = vunpack.c.l.b16 %v1570_v49  ;;  %v1709_v7 = vpack.c.bf16 %v1693_v24, %v1693_v24  ;;  %v1764_v8 = vmax.f32 %v1748_v61, 0.0  ;;  %v2435_v14 = vunpack.c.l.b16 %v1639_v4  ;;  %v6648_v54 = vpop.f32.mrf.mxu1 }
 0x223   : > { %v2436_v34 = vunpack.c.l.b16 %v1640_v45  ;;  %v1710_v46 = vpack.c.bf16 %v1694_v16, %v1694_v16  ;;  %v1779_v9 = vpack.c.bf16 %v1763_v33, %v1763_v33  ;;  %v1519_v41 = vmul.f32 %v6358_v56, %v8887_v21  ;;  %8910 = vst [vmem:[#allocation18_spill] sm:$0xff] %v6648_v54 }
 0x224   : > { %v2402_v20 = vpack.c.b16 %v2388_v27, %v2387_v37  ;;  %v1780_v2 = vpack.c.bf16 %v1764_v8, %v1764_v8  ;;  %v2483_v1 = vunpack.c.l.b16 %v1709_v7  ;;  %v1520_v43 = vmul.f32 %v6358_v56, %v8888_v53  ;;  %v6646_v15 = vpop.f32.mrf.mxu0  ;;  %v6654_v61 = vpop.f32.mrf.mxu2 }
 0x225   : > { %v2450_v55 = vpack.c.b16 %v2436_v34, %v2435_v14  ;;  %v2484_v32 = vunpack.c.l.b16 %v1710_v46  ;;  %v2531_v63 = vunpack.c.l.b16 %v1779_v9  ;;  %8909 = vst [vmem:[#allocation17_spill] sm:$0xff] %v6646_v15  ;;  %v1589_v49 = vmul.f32 %v6360_v29, %v8887_v21  ;;  %v6656_v4 = vpop.f32.mrf.mxu3  ;;  %v8933_v15 = vld [vmem:[#allocation40_spill] sm:$0xff] }
 0x226   : > { %2989 = vmatmul.bf16.gmra.mxu3 %v6636_v60  ;;  %3315 = vmatpush.bf16.msrb.mxu2 %v2402_v20  ;;  %v2532_v10 = vunpack.c.l.b16 %v1780_v2  ;;  %v1590_v24 = vmul.f32 %v6360_v29, %v8888_v53  ;;  %v1535_v16 = vadd.f32 %v1519_v41, %v8889_v23  ;;  %v1536_v56 = vadd.f32 %v1520_v43, %v8890_v22 }
 0x227   : > { %2940 = vmatmul.bf16.gmra.mxu2 %v6636_v60  ;;  %3364 = vmatpush.bf16.msrb.mxu3 %v2450_v55  ;;  %v2498_v18 = vpack.c.b16 %v2484_v32, %v2483_v1  ;;  %v1659_v33 = vmul.f32 %v6364_v57, %v8887_v21  ;;  %v1605_v37 = vadd.f32 %v1589_v49, %v8889_v23 }
 0x228   : > { %3038 = vmatmul.bf16.gmra.mxu0 %v6636_v60  ;;  %3087 = vmatmul.bf16.gmra.mxu1 %v6636_v60  ;;  %v2546_v45 = vpack.c.b16 %v2532_v10, %v2531_v63  ;;  %v1606_v27 = vadd.f32 %v1590_v24, %v8890_v22  ;;  %v1660_v29 = vmul.f32 %v6364_v57, %v8888_v53  ;;  %v1551_v8 = vmax.f32 %v1535_v16, 0.0 }
 0x229   : > { %3413 = vmatpush.bf16.msra.mxu0 %v2498_v18  ;;  %v1729_v7 = vmul.f32 %v6366_v59, %v8887_v21  ;;  %v1552_v14 = vmax.f32 %v1536_v56, 0.0  ;;  %v1675_v34 = vadd.f32 %v1659_v33, %v8889_v23  ;;  %v1730_v46 = vmul.f32 %v6366_v59, %v8888_v53 }
 0x22a   : > { %3462 = vmatpush.bf16.msra.mxu1 %v2546_v45  ;;  %v1621_v9 = vmax.f32 %v1605_v37, 0.0  ;;  %v1622_v20 = vmax.f32 %v1606_v27, 0.0  ;;  %v1676_v2 = vadd.f32 %v1660_v29, %v8890_v22  ;;  %v1567_v1 = vpack.c.bf16 %v1551_v8, %v1551_v8  ;;  %v6676_v59 = vpop.f32.mrf.mxu1 }
 0x22b   : > { %v1745_v55 = vadd.f32 %v1729_v7, %v8889_v23  ;;  %v1568_v32 = vpack.c.bf16 %v1552_v14, %v1552_v14  ;;  %v1691_v57 = vmax.f32 %v1675_v34, 0.0  ;;  %v1746_v63 = vadd.f32 %v1730_v46, %v8890_v22  ;;  %8912 = vst [vmem:[#allocation21_spill] sm:$0xff] %v6676_v59 }
 0x22c   : > { %v1637_v21 = vpack.c.bf16 %v1621_v9, %v1621_v9  ;;  %v1638_v10 = vpack.c.bf16 %v1622_v20, %v1622_v20  ;;  %v1692_v41 = vmax.f32 %v1676_v2, 0.0  ;;  %v2385_v18 = vunpack.c.l.b16 %v1567_v1  ;;  %v6674_v53 = vpop.f32.mrf.mxu0  ;;  %v6678_v37 = vpop.f32.mrf.mxu2  ;;  %v6685_v20 = vld [vmem:[%s8692_s4 + $0x20] sm:$0xff] }
 0x22d   : > { %v1761_v43 = vmax.f32 %v1745_v55, 0.0  ;;  %v2386_v49 = vunpack.c.l.b16 %v1568_v32  ;;  %v1707_v24 = vpack.c.bf16 %v1691_v57, %v1691_v57  ;;  %v1762_v45 = vmax.f32 %v1746_v63, 0.0  ;;  %8911 = vst [vmem:[#allocation19_spill] sm:$0xff] %v6674_v53  ;;  %v6680_v27 = vpop.f32.mrf.mxu3  ;;  %v6699_v63 = vpop.permute.xlu1 %2665 }
 0x22e   : > { %v2433_v16 = vunpack.c.l.b16 %v1637_v21  ;;  %v2434_v56 = vunpack.c.l.b16 %v1638_v10  ;;  %v1708_v23 = vpack.c.bf16 %v1692_v41, %v1692_v41  ;;  %8915 = vst [vmem:[#allocation16_spill] sm:$0xff] %v6699_v63  ;;  %v6701_v21 = vpop.permute.xlu2 %2670 }
 0x22f   : > { %v1777_v33 = vpack.c.bf16 %v1761_v43, %v1761_v43  ;;  %v2401_v22 = vpack.c.b16 %v2386_v49, %v2385_v18  ;;  %v1778_v29 = vpack.c.bf16 %v1762_v45, %v1762_v45  ;;  %v2481_v8 = vunpack.c.l.b16 %v1707_v24  ;;  %8916 = vst [vmem:[#allocation25_spill] sm:$0xff] %v6701_v21  ;;  %v6714_v49 = vld [vmem:[%s8692_s4 + $0x28] sm:$0xff] }
 0x230   : > { %v2449_v7 = vpack.c.b16 %v2434_v56, %v2433_v16  ;;  %v2482_v14 = vunpack.c.l.b16 %v1708_v23 }
 0x231   : > { %3316 = vmatpush.bf16.msrb.mxu2 %v2401_v22  ;;  %v2529_v34 = vunpack.c.l.b16 %v1777_v33  ;;  %v2530_v46 = vunpack.c.l.b16 %v1778_v29  ;;  %v6732_v22 = vpop.permute.xlu0 %2655 }
 0x232   : > { %3365 = vmatpush.bf16.msrb.mxu3 %v2449_v7  ;;  %v2497_v9 = vpack.c.b16 %v2482_v14, %v2481_v8  ;;  %8923 = vst [vmem:[#allocation14_spill] sm:$0xff] %v6732_v22 }
 0x233   : > { %v2545_v2 = vpack.c.b16 %v2530_v46, %v2529_v34 }
 0x234   : > { %3414 = vmatpush.bf16.msra.mxu0 %v2497_v9  ;;  %v6691_v55 = vpop.f32.mrf.mxu0  ;;  %v6693_v1 = vpop.f32.mrf.mxu1 }
 0x235   : > { %3463 = vmatpush.bf16.msra.mxu1 %v2545_v2  ;;  %8913 = vst [vmem:[#allocation22_spill] sm:$0xff] %v6691_v55  ;;  %v6719_v24 = vpop.permute.xlu1 %2660 }
 0x236   : > { %2994 = vmatmul.bf16.gmra.mxu3 %v6685_v20  ;;  %8914 = vst [vmem:[#allocation23_spill] sm:$0xff] %v6693_v1  ;;  %v6721_v45 = vpop.permute.xlu2 %2645 }
 0x237   : > { %2945 = vmatmul.bf16.gmra.mxu2 %v6685_v20  ;;  %8919 = vst [vmem:[#allocation24_spill] sm:$0xff] %v6719_v24 }
 0x238   : > { %3043 = vmatmul.bf16.gmra.mxu0 %v6685_v20  ;;  %3092 = vmatmul.bf16.gmra.mxu1 %v6685_v20  ;;  %8920 = vst [vmem:[#allocation26_spill] sm:$0xff] %v6721_v45 }
 0x239   : > { %v6695_v32 = vpop.f32.mrf.mxu2  ;;  %v6697_v57 = vpop.f32.mrf.mxu3 }
 0x23a   : > { %v6746_v9 = vpop.permute.xlu0 %2650 }
 0x23b   : > { %8928 = vst [vmem:[#allocation11_spill] sm:$0xff] %v6746_v9 }
 0x23c   : > { %v6703_v10 = vpop.f32.mrf.mxu0  ;;  %v6705_v41 = vpop.f32.mrf.mxu1 }
 0x23d   : > { %8917 = vst [vmem:[#allocation28_spill] sm:$0xff] %v6703_v10  ;;  %v6742_v34 = vpop.permute.xlu1 %2635 }
 0x23e   : > { %8918 = vst [vmem:[#allocation20_spill] sm:$0xff] %v6705_v41  ;;  %v6744_v46 = vpop.permute.xlu2 %2640 }
 0x23f   : > { %8926 = vst [vmem:[#allocation7_spill] sm:$0xff] %v6742_v34 }
 0x240   : > { %8927 = vst [vmem:[#allocation9_spill] sm:$0xff] %v6744_v46 }
 0x241   : > { %v6707_v43 = vpop.f32.mrf.mxu2  ;;  %v6709_v18 = vpop.f32.mrf.mxu3 }
 0x242   : > { %v6760_v35 = vpop.permute.xlu0 %2625 }
 0x243   : > { %8932 = vst [vmem:[#allocation12_spill] sm:$0xff] %v6760_v35  ;;  %v2746_v58 = vadd.f32 %v6654_v61, %v6760_v35  ;;  %v2795_v25 = vadd.f32 %v6656_v4, %v6760_v35 }
 0x244   : > { %v6724_v16 = vpop.f32.mrf.mxu0 }
 0x245   : > { %8921 = vst [vmem:[#allocation10_spill] sm:$0xff] %v6724_v16  ;;  %v6726_v56 = vpop.f32.mrf.mxu1  ;;  %v6756_v52 = vpop.permute.xlu1 %2630 }
 0x246   : > { %2999 = vmatmul.bf16.gmra.mxu3 %v6714_v49  ;;  %8922 = vst [vmem:[#allocation13_spill] sm:$0xff] %v6726_v56  ;;  %v6758_v0 = vpop.permute.xlu2 %2615  ;;  %v2797_v54 = vadd.f32 %v6680_v27, %v6756_v52 }
 0x247   : > { %2950 = vmatmul.bf16.gmra.mxu2 %v6714_v49  ;;  %8930 = vst [vmem:[#allocation5_spill] sm:$0xff] %v6756_v52  ;;  %v2741_v41 = vadd.f32 %v6597_v51, %v6758_v0 }
 0x248   : > { %3048 = vmatmul.bf16.gmra.mxu0 %v6714_v49  ;;  %3097 = vmatmul.bf16.gmra.mxu1 %v6714_v49  ;;  %8931 = vst [vmem:[#allocation8_spill] sm:$0xff] %v6758_v0  ;;  %v3618_v27 = vmax.f32 %v2797_v54, 0.0  ;;  %v3602_v54 = vmax.f32 %v2795_v25, 0.0 }
 0x249   : > { %v6730_v33 = vpop.f32.mrf.mxu3 }
 0x24a   : > { %v6728_v23 = vpop.f32.mrf.mxu2  ;;  %v6786_v56 = vpop.permute.xlu0 %2620 }
 0x24b   : > { %8936 = vst [vmem:[#allocation43_spill] sm:$0xff] %v6786_v56 }
 0x24c   : > { %v6734_v29 = vpop.f32.mrf.mxu0 }
 0x24d   : > { %8924 = vst [vmem:[#allocation15_spill] sm:$0xff] %v6734_v29  ;;  %v6736_v7 = vpop.f32.mrf.mxu1  ;;  %v6777_v59 = vpop.permute.xlu1 %2605 }
 0x24e   : > { %8925 = vst [vmem:[#allocation6_spill] sm:$0xff] %v6736_v7  ;;  %v6779_v53 = vpop.permute.xlu2 %2610  ;;  %v2736_v61 = vadd.f32 %v6531_v26, %v6777_v59  ;;  %v2785_v4 = vadd.f32 %v6533_v47, %v6777_v59  ;;  %v2790_v26 = vadd.f32 %v6599_v6, %v6758_v0  ;;  %v2743_v47 = vadd.f32 %v6628_v39, %v6786_v56 }
 0x24f   : > { %8934 = vst [vmem:[#allocation41_spill] sm:$0xff] %v6777_v59  ;;  %v2738_v16 = vadd.f32 %v6556_v5, %v6779_v53  ;;  %v2792_v59 = vadd.f32 %v6630_v44, %v6786_v56  ;;  %v6802_v5 = vpack.c.bf16 %v3618_v27, %v3602_v54  ;;  %v3569_v39 = vmax.f32 %v2741_v41, 0.0 }
 0x250   : > { %8935 = vst [vmem:[#allocation42_spill] sm:$0xff] %v6779_v53  ;;  %v3537_v7 = vmax.f32 %v2736_v61, 0.0  ;;  %v3570_v29 = vmax.f32 %v2790_v26, 0.0 }
 0x251   : > { %v6740_v14 = vpop.f32.mrf.mxu3  ;;  %v3553_v51 = vmax.f32 %v2738_v16, 0.0  ;;  %v3586_v44 = vmax.f32 %v2792_v59, 0.0 }
 0x252   : > { %v6738_v8 = vpop.f32.mrf.mxu2 }
 0x255   : > { %v6752_v2 = vpop.f32.mrf.mxu0  ;;  %v6754_v50 = vpop.f32.mrf.mxu1 }
 0x256   : > { %3004 = vmatmul.bf16.gmra.mxu3 %v6351_v17  ;;  %8929 = vst [vmem:[#allocation3_spill] sm:$0xff] %v6754_v50  ;;  %v3585_v50 = vmax.f32 %v2743_v47, 0.0 }
 0x257   : > { %2955 = vmatmul.bf16.gmra.mxu2 %v6351_v17 }
 0x258   : > { %3053 = vmatmul.bf16.gmra.mxu0 %v6351_v17  ;;  %3102 = vmatmul.bf16.gmra.mxu1 %v6351_v17  ;;  %v2748_v17 = vadd.f32 %v6678_v37, %v6756_v52  ;;  %v6816_v47 = vpack.c.bf16 %v3585_v50, %v3569_v39 }
 0x259   : > { %v2809_v42 = vpop.f32.mrf.mxu3 }
 0x25a   : > { %v2760_v38 = vpop.f32.mrf.mxu2  ;;  %v3617_v37 = vmax.f32 %v2748_v17, 0.0  ;;  %v3601_v17 = vmax.f32 %v2746_v58, 0.0  ;;  %v2810_v27 = vadd.f32 %v2809_v42, %v6732_v22 }
 0x25c   : > { %v6800_v10 = vpack.c.bf16 %v3617_v37, %v3601_v17  ;;  %v2761_v37 = vadd.f32 %v2760_v38, %v6732_v22 }
 0x25d   : > { %v6762_v28 = vpop.f32.mrf.mxu0  ;;  %v6764_v3 = vpop.f32.mrf.mxu1 }
 0x261   : > { %v2811_v31 = vpop.f32.mrf.mxu3 }
 0x262   : > { %v2762_v48 = vpop.f32.mrf.mxu2 }
 0x263   : > { %v2763_v61 = vadd.f32 %v2762_v48, %v6719_v24 }
 0x265   : > { %v2863_v52 = vpop.f32.mrf.mxu0  ;;  %v2912_v1 = vpop.f32.mrf.mxu1  ;;  %v3713_v50 = vmax.f32 %v2763_v61, 0.0  ;;  %v2753_v61 = vadd.f32 %v6707_v43, %v6744_v46 }
 0x266   : > { %3009 = vmatmul.bf16.gmra.mxu3 %v8933_v15  ;;  %v2864_v25 = vadd.f32 %v2863_v52, %v6699_v63  ;;  %v2913_v58 = vadd.f32 %v2912_v1, %v6699_v63  ;;  %v2812_v52 = vadd.f32 %v2811_v31, %v6719_v24  ;;  %v6818_v31 = vpack.c.bf16 %v3586_v44, %v3570_v29 }
 0x267   : > { %2960 = vmatmul.bf16.gmra.mxu2 %v8933_v15  ;;  %v3649_v43 = vmax.f32 %v2753_v61, 0.0 }
 0x268   : > { %3058 = vmatmul.bf16.gmra.mxu0 %v8933_v15  ;;  %3107 = vmatmul.bf16.gmra.mxu1 %v8933_v15  ;;  %v2787_v15 = vadd.f32 %v6558_v36, %v6779_v53  ;;  %v3538_v36 = vmax.f32 %v2785_v4, 0.0  ;;  %v3731_v16 = vmax.f32 %v2864_v25, 0.0  ;;  %v3714_v29 = vmax.f32 %v2812_v52, 0.0 }
 0x269   : > { %v2814_v55 = vpop.f32.mrf.mxu3 }
 0x26a   : > { %v2765_v35 = vpop.f32.mrf.mxu2  ;;  %v3554_v53 = vmax.f32 %v2787_v15, 0.0  ;;  %v2815_v0 = vadd.f32 %v2814_v55, %v6699_v63  ;;  %v3732_v15 = vmax.f32 %v2913_v58, 0.0 }
 0x26b   : > { %v2766_v6 = vadd.f32 %v2765_v35, %v6699_v63  ;;  %v6820_v63 = vpack.c.bf16 %v3553_v51, %v3537_v7  ;;  %v2805_v7 = vadd.f32 %v6730_v33, %v6721_v45 }
 0x26c   : > { %v3730_v59 = vmax.f32 %v2815_v0, 0.0  ;;  %v2807_v0 = vadd.f32 %v6740_v14, %v6746_v9  ;;  %v3698_v14 = vmax.f32 %v2810_v27, 0.0 }
 0x26d   : > { %v2865_v4 = vpop.f32.mrf.mxu0  ;;  %v2914_v1 = vpop.f32.mrf.mxu1  ;;  %v3729_v54 = vmax.f32 %v2766_v6, 0.0  ;;  %v2758_v6 = vadd.f32 %v6738_v8, %v6746_v9  ;;  %v3697_v8 = vmax.f32 %v2761_v37, 0.0 }
 0x26e   : > { %v2866_v35 = vadd.f32 %v2865_v4, %v6701_v21  ;;  %v2915_v55 = vadd.f32 %v2914_v1, %v6701_v21  ;;  %v6822_v4 = vpack.c.bf16 %v3554_v53, %v3538_v36  ;;  %v2756_v53 = vadd.f32 %v6728_v23, %v6721_v45 }
 0x26f   : > { %v3682_v33 = vmax.f32 %v2807_v0, 0.0  ;;  %v3857_v37 = vpack.c.bf16 %v3713_v50, %v3697_v8  ;;  %v3858_v27 = vpack.c.bf16 %v3714_v29, %v3698_v14 }
 0x270   : > { %v3747_v26 = vmax.f32 %v2866_v35, 0.0  ;;  %v3748_v48 = vmax.f32 %v2915_v55, 0.0  ;;  %v2800_v55 = vadd.f32 %v6697_v57, %v6742_v34 }
 0x271   : > { %v2816_v17 = vpop.f32.mrf.mxu3 }
 0x272   : > { %v2767_v41 = vpop.f32.mrf.mxu2  ;;  %v2817_v42 = vadd.f32 %v2816_v17, %v6701_v21  ;;  %v6828_v1 = vpack.c.bf16 %v3747_v26, %v3731_v16  ;;  %v6830_v35 = vpack.c.bf16 %v3748_v48, %v3732_v15  ;;  %v3681_v16 = vmax.f32 %v2758_v6, 0.0  ;;  %v6867_v6 = vpop.permute.xlu1 %2600 }
 0x273   : > { %v2768_v38 = vadd.f32 %v2767_v41, %v6701_v21  ;;  %v2751_v15 = vadd.f32 %v6695_v32, %v6742_v34  ;;  %v3665_v41 = vmax.f32 %v2756_v53, 0.0  ;;  %v3666_v17 = vmax.f32 %v2805_v7, 0.0  ;;  %v6884_v7 = vpop.permute.xlu0 %2595 }
 0x274   : > { %v3746_v58 = vmax.f32 %v2817_v42, 0.0  ;;  %v3634_v42 = vmax.f32 %v2800_v55, 0.0  ;;  %v2782_v53 = vadd.f32 %v6497_v30, %v6867_v6  ;;  %8943 = vst [vmem:[#allocation49_spill] sm:$0xff] %v6884_v7 }
 0x275   : > { %v3745_v25 = vmax.f32 %v2768_v38, 0.0  ;;  %v6840_v36 = vpop.f32.mrf.mxu0  ;;  %v6842_v51 = vpop.f32.mrf.mxu1  ;;  %v3633_v38 = vmax.f32 %v2751_v15, 0.0 }
 0x276   : > { %v3874_v44 = vpack.c.bf16 %v3746_v58, %v3730_v59  ;;  %3170 = vmatmul.bf16.vlgmr.msra.gmra.mxu3 %v6472_v13  ;;  %8937 = vst [vmem:[#allocation40_spill] sm:$0xff] %v6840_v36  ;;  %v3842_v59 = vpack.c.bf16 %v3682_v33, %v3666_v17  ;;  %v3522_v8 = vmax.f32 %v2782_v53, 0.0  ;;  %v2861_v36 = vadd.f32 %v6762_v28, %v6719_v24 }
 0x277   : > { %3121 = vmatmul.bf16.vlgmr.msra.gmra.mxu2 %v6472_v13  ;;  %v3873_v39 = vpack.c.bf16 %v3745_v25, %v3729_v54  ;;  %8938 = vst [vmem:[#allocation44_spill] sm:$0xff] %v6842_v51  ;;  %v3841_v54 = vpack.c.bf16 %v3681_v16, %v3665_v41  ;;  %v3825_v57 = vpack.c.bf16 %v3649_v43, %v3633_v38 }
 0x278   : > { %3219 = vmatmul.bf16.vlgmr.msrb.gmra.mxu0 %v6472_v13  ;;  %3268 = vmatmul.bf16.vlgmr.msrb.gmra.mxu1 %v6472_v13  ;;  %v2802_v13 = vadd.f32 %v6709_v18, %v6744_v46 }
 0x279   : > { %3896 = vmatpush.bf16.msra.mxu2 %v3873_v39  ;;  %3909 = vmatpush.bf16.msra.mxu3 %v3874_v44  ;;  %v6850_v23 = vpop.f32.mrf.mxu3  ;;  %v2733_v44 = vadd.f32 %v6495_v11, %v6867_v6 }
 0x27a   : > { %v6848_v52 = vpop.f32.mrf.mxu2  ;;  %v3650_v18 = vmax.f32 %v2802_v13, 0.0 }
 0x27c   : > { %v3826_v58 = vpack.c.bf16 %v3650_v18, %v3634_v42 }
 0x27d   : > { %3897 = vmatpush.bf16.msra.mxu2 %v3857_v37  ;;  %3910 = vmatpush.bf16.msra.mxu3 %v3858_v27  ;;  %v6856_v26 = vpop.f32.mrf.mxu0  ;;  %v6858_v48 = vpop.f32.mrf.mxu1 }
 0x27e   : > { %8939 = vst [vmem:[#allocation45_spill] sm:$0xff] %v6856_v26  ;;  %v8976_v26 = vld [vmem:[#allocation3_spill] sm:$0xff] }
 0x27f   : > { %8940 = vst [vmem:[#allocation46_spill] sm:$0xff] %v6858_v48  ;;  %v2859_v48 = vadd.f32 %v6752_v2, %v6732_v22 }
 0x281   : > { %3898 = vmatpush.bf16.msra.mxu2 %v3841_v54  ;;  %3911 = vmatpush.bf16.msra.mxu3 %v3842_v59  ;;  %v6862_v25 = vpop.f32.mrf.mxu3  ;;  %v3699_v2 = vmax.f32 %v2859_v48, 0.0 }
 0x282   : > { %v6860_v32 = vpop.f32.mrf.mxu2 }
 0x285   : > { %3899 = vmatpush.bf16.msra.mxu2 %v3825_v57  ;;  %3912 = vmatpush.bf16.msra.mxu3 %v3826_v58  ;;  %v6870_v0 = vpop.f32.mrf.mxu0  ;;  %v6872_v50 = vpop.f32.mrf.mxu1 }
 0x286   : > { %3175 = vmatmul.bf16.gmra.mxu3 %v6514_v12  ;;  %8941 = vst [vmem:[#allocation47_spill] sm:$0xff] %v6870_v0  ;;  %v6989_v0 = vld [vmem:[%s8692_s4 + $0x30] sm:$0xff] }
 0x287   : > { %3126 = vmatmul.bf16.gmra.mxu2 %v6514_v12  ;;  %8942 = vst [vmem:[#allocation48_spill] sm:$0xff] %v6872_v50 }
 0x288   : > { %3224 = vmatmul.bf16.gmra.mxu0 %v6514_v12  ;;  %3273 = vmatmul.bf16.gmra.mxu1 %v6514_v12  ;;  %v2731_v12 = vadd.f32 %v6463_v40, %v6884_v7 }
 0x289   : > { %3900 = vmatpush.bf16.msra.mxu2 %v6800_v10  ;;  %3913 = vmatpush.bf16.msra.mxu3 %v6802_v5  ;;  %v6878_v39 = vpop.f32.mrf.mxu3  ;;  %v2780_v10 = vadd.f32 %v6465_v19, %v6884_v7  ;;  %v3521_v5 = vmax.f32 %v2733_v44, 0.0 }
 0x28a   : > { %v6876_v29 = vpop.f32.mrf.mxu2  ;;  %v3505_v14 = vmax.f32 %v2731_v12, 0.0 }
 0x28b   : > { %v3506_v61 = vmax.f32 %v2780_v10, 0.0 }
 0x28c   : > { %v3761_v19 = vpack.c.bf16 %v3521_v5, %v3505_v14 }
 0x28d   : > { %3901 = vmatpush.bf16.msra.mxu2 %v6816_v47  ;;  %3914 = vmatpush.bf16.msra.mxu3 %v6818_v31  ;;  %v6892_v11 = vpop.f32.mrf.mxu0  ;;  %v6894_v13 = vpop.f32.mrf.mxu1  ;;  %v3762_v47 = vpack.c.bf16 %v3522_v8, %v3506_v61 }
 0x28e   : > { %8944 = vst [vmem:[#allocation50_spill] sm:$0xff] %v6892_v11  ;;  %v2908_v11 = vadd.f32 %v8976_v26, %v6732_v22  ;;  %v8980_v26 = vld [vmem:[#allocation15_spill] sm:$0xff] }
 0x28f   : > { %8945 = vst [vmem:[#allocation51_spill] sm:$0xff] %v6894_v13  ;;  %v2910_v13 = vadd.f32 %v6764_v3, %v6719_v24  ;;  %v3715_v3 = vmax.f32 %v2861_v36, 0.0 }
 0x291   : > { %3902 = vmatpush.bf16.msra.mxu2 %v6820_v63  ;;  %3915 = vmatpush.bf16.msra.mxu3 %v6822_v4  ;;  %v6900_v30 = vpop.f32.mrf.mxu3  ;;  %v3716_v28 = vmax.f32 %v2910_v13, 0.0  ;;  %v8983_v13 = vld [vmem:[#allocation20_spill] sm:$0xff] }
 0x292   : > { %v6898_v40 = vpop.f32.mrf.mxu2 }
 0x295   : > { %3903 = vmatpush.bf16.msra.mxu2 %v3761_v19  ;;  %3916 = vmatpush.bf16.msra.mxu3 %v3762_v47  ;;  %v6906_v31 = vpop.f32.mrf.mxu0  ;;  %v6908_v63 = vpop.f32.mrf.mxu1 }
 0x296   : > { %3180 = vmatmul.bf16.gmra.mxu3 %v6584_v62  ;;  %8946 = vst [vmem:[#allocation52_spill] sm:$0xff] %v6906_v31 }
 0x297   : > { %3131 = vmatmul.bf16.gmra.mxu2 %v6584_v62  ;;  %8947 = vst [vmem:[#allocation53_spill] sm:$0xff] %v6908_v63 }
 0x298   : > { %3229 = vmatmul.bf16.gmra.mxu0 %v6584_v62  ;;  %3278 = vmatmul.bf16.gmra.mxu1 %v6584_v62 }
 0x299   : > { %v6912_v16 = vpop.f32.mrf.mxu3 }
 0x29a   : > { %v6910_v4 = vpop.f32.mrf.mxu2 }
 0x29d   : > { %v6914_v33 = vpop.f32.mrf.mxu0  ;;  %v6916_v37 = vpop.f32.mrf.mxu1 }
 0x29e   : > { %8948 = vst [vmem:[#allocation54_spill] sm:$0xff] %v6914_v33  ;;  %v9004_v33 = vld [vmem:[#allocation29_spill] sm:$0xff] }
 0x29f   : > { %8949 = vst [vmem:[#allocation55_spill] sm:$0xff] %v6916_v37 }
 0x2a1   : > { %v6920_v15 = vpop.f32.mrf.mxu3 }
 0x2a2   : > { %v6918_v27 = vpop.f32.mrf.mxu2  ;;  %8951 = vst [vmem:[#allocation57_spill] sm:$0xff] %v6920_v15 }
 0x2a3   : > { %8950 = vst [vmem:[#allocation56_spill] sm:$0xff] %v6918_v27 }
 0x2a5   : > { %v6926_v62 = vpop.f32.mrf.mxu0  ;;  %v6928_v55 = vpop.f32.mrf.mxu1 }
 0x2a6   : > { %3185 = vmatmul.bf16.gmra.mxu3 %v6636_v60  ;;  %8952 = vst [vmem:[#allocation58_spill] sm:$0xff] %v6926_v62 }
 0x2a7   : > { %3136 = vmatmul.bf16.gmra.mxu2 %v6636_v60  ;;  %8953 = vst [vmem:[#allocation59_spill] sm:$0xff] %v6928_v55 }
 0x2a8   : > { %3234 = vmatmul.bf16.gmra.mxu0 %v6636_v60  ;;  %3283 = vmatmul.bf16.gmra.mxu1 %v6636_v60 }
 0x2a9   : > { %v6932_v17 = vpop.f32.mrf.mxu3 }
 0x2aa   : > { %v6930_v41 = vpop.f32.mrf.mxu2  ;;  %8955 = vst [vmem:[#allocation61_spill] sm:$0xff] %v6932_v17 }
 0x2ab   : > { %8954 = vst [vmem:[#allocation60_spill] sm:$0xff] %v6930_v41  ;;  %v9007_v41 = vld [vmem:[#allocation35_spill] sm:$0xff] }
 0x2ad   : > { %v6934_v43 = vpop.f32.mrf.mxu0  ;;  %v6936_v18 = vpop.f32.mrf.mxu1 }
 0x2ae   : > { %8956 = vst [vmem:[#allocation62_spill] sm:$0xff] %v6934_v43 }
 0x2af   : > { %8957 = vst [vmem:[#allocation63_spill] sm:$0xff] %v6936_v18 }
 0x2b1   : > { %v6940_v59 = vpop.f32.mrf.mxu3 }
 0x2b2   : > { %v6938_v54 = vpop.f32.mrf.mxu2  ;;  %8959 = vst [vmem:[#allocation65_spill] sm:$0xff] %v6940_v59 }
 0x2b3   : > { %8958 = vst [vmem:[#allocation64_spill] sm:$0xff] %v6938_v54 }
 0x2b5   : > { %v6946_v38 = vpop.f32.mrf.mxu0  ;;  %v6948_v42 = vpop.f32.mrf.mxu1 }
 0x2b6   : > { %3190 = vmatmul.bf16.gmra.mxu3 %v6685_v20  ;;  %8960 = vst [vmem:[#allocation66_spill] sm:$0xff] %v6946_v38  ;;  %v3700_v38 = vmax.f32 %v2908_v11, 0.0  ;;  %v8985_v11 = vld [vmem:[#allocation13_spill] sm:$0xff] }
 0x2b7   : > { %3141 = vmatmul.bf16.gmra.mxu2 %v6685_v20  ;;  %8961 = vst [vmem:[#allocation67_spill] sm:$0xff] %v6948_v42 }
 0x2b8   : > { %3239 = vmatmul.bf16.gmra.mxu0 %v6685_v20  ;;  %3288 = vmatmul.bf16.gmra.mxu1 %v6685_v20  ;;  %v7017_v18 = vpack.c.bf16 %v3716_v28, %v3700_v38 }
 0x2b9   : > { %v6952_v58 = vpop.f32.mrf.mxu3 }
 0x2ba   : > { %v6950_v57 = vpop.f32.mrf.mxu2  ;;  %8963 = vst [vmem:[#allocation69_spill] sm:$0xff] %v6952_v58 }
 0x2bb   : > { %8962 = vst [vmem:[#allocation68_spill] sm:$0xff] %v6950_v57 }
 0x2bd   : > { %v6954_v44 = vpop.f32.mrf.mxu0  ;;  %v6956_v53 = vpop.f32.mrf.mxu1 }
 0x2be   : > { %8964 = vst [vmem:[#allocation70_spill] sm:$0xff] %v6954_v44  ;;  %v7015_v44 = vpack.c.bf16 %v3715_v3, %v3699_v2 }
 0x2bf   : > { %8965 = vst [vmem:[#allocation71_spill] sm:$0xff] %v6956_v53  ;;  %v2900_v53 = vadd.f32 %v8983_v13, %v6744_v46 }
 0x2c1   : > { %v6960_v10 = vpop.f32.mrf.mxu3  ;;  %v3652_v13 = vmax.f32 %v2900_v53, 0.0 }
 0x2c2   : > { %v6958_v12 = vpop.f32.mrf.mxu2  ;;  %8967 = vst [vmem:[#allocation73_spill] sm:$0xff] %v6960_v10  ;;  %v8991_v10 = vld [vmem:[#allocation19_spill] sm:$0xff] }
 0x2c3   : > { %8966 = vst [vmem:[#allocation72_spill] sm:$0xff] %v6958_v12 }
 0x2c5   : > { %v6966_v5 = vpop.f32.mrf.mxu0  ;;  %v6968_v8 = vpop.f32.mrf.mxu1 }
 0x2c6   : > { %3195 = vmatmul.bf16.gmra.mxu3 %v6714_v49  ;;  %8968 = vst [vmem:[#allocation74_spill] sm:$0xff] %v6966_v5  ;;  %v8982_v5 = vld [vmem:[#allocation28_spill] sm:$0xff] }
 0x2c7   : > { %3146 = vmatmul.bf16.gmra.mxu2 %v6714_v49  ;;  %8969 = vst [vmem:[#allocation75_spill] sm:$0xff] %v6968_v8  ;;  %v2851_v36 = vadd.f32 %v8982_v5, %v6744_v46 }
 0x2c8   : > { %3244 = vmatmul.bf16.gmra.mxu0 %v6714_v49  ;;  %3293 = vmatmul.bf16.gmra.mxu1 %v6714_v49 }
 0x2c9   : > { %v6972_v61 = vpop.f32.mrf.mxu3 }
 0x2ca   : > { %v6970_v14 = vpop.f32.mrf.mxu2  ;;  %8971 = vst [vmem:[#allocation77_spill] sm:$0xff] %v6972_v61  ;;  %v3651_v61 = vmax.f32 %v2851_v36, 0.0 }
 0x2cb   : > { %8970 = vst [vmem:[#allocation76_spill] sm:$0xff] %v6970_v14 }
 0x2cd   : > { %v6974_v19 = vpop.f32.mrf.mxu0  ;;  %v6976_v47 = vpop.f32.mrf.mxu1 }
 0x2ce   : > { %8972 = vst [vmem:[#allocation78_spill] sm:$0xff] %v6974_v19  ;;  %v8981_v19 = vld [vmem:[#allocation6_spill] sm:$0xff] }
 0x2cf   : > { %8973 = vst [vmem:[#allocation79_spill] sm:$0xff] %v6976_v47  ;;  %v2856_v47 = vadd.f32 %v8980_v26, %v6746_v9  ;;  %v2905_v8 = vadd.f32 %v8981_v19, %v6746_v9  ;;  %v8986_v26 = vld [vmem:[#allocation22_spill] sm:$0xff]  ;;  %v8987_v19 = vld [vmem:[#allocation23_spill] sm:$0xff] }
 0x2d0   : > { %v2849_v59 = vadd.f32 %v8986_v26, %v6742_v34  ;;  %v2898_v54 = vadd.f32 %v8987_v19, %v6742_v34  ;;  %v8990_v26 = vld [vmem:[#allocation5_spill] sm:$0xff]  ;;  %v8993_v19 = vld [vmem:[#allocation32_spill] sm:$0xff]  ;;  %v8997_v9 = vld [vmem:[#allocation18_spill] sm:$0xff] }
 0x2d1   : > { %v6980_v51 = vpop.f32.mrf.mxu3  ;;  %v3683_v5 = vmax.f32 %v2856_v47, 0.0  ;;  %v3684_v43 = vmax.f32 %v2905_v8, 0.0  ;;  %v8992_v47 = vld [vmem:[#allocation21_spill] sm:$0xff]  ;;  %v9002_v34 = vld [vmem:[#allocation42_spill] sm:$0xff] }
 0x2d2   : > { %v6978_v50 = vpop.f32.mrf.mxu2  ;;  %8975 = vst [vmem:[#allocation81_spill] sm:$0xff] %v6980_v51  ;;  %v2846_v51 = vadd.f32 %v8991_v10, %v8990_v26  ;;  %v2895_v8 = vadd.f32 %v8992_v47, %v8990_v26  ;;  %v2885_v17 = vadd.f32 %v9004_v33, %v9002_v34 }
 0x2d3   : > { %8974 = vst [vmem:[#allocation80_spill] sm:$0xff] %v6978_v50  ;;  %v8996_v50 = vld [vmem:[#allocation17_spill] sm:$0xff] }
 0x2d4   : > { %v3556_v31 = vmax.f32 %v2885_v17, 0.0 }
 0x2d5   : > { %v6999_v63 = vpop.f32.mrf.mxu0  ;;  %v7001_v55 = vpop.f32.mrf.mxu1 }
 0x2d6   : > { %3200 = vmatmul.bf16.gmra.mxu3 %v6989_v0  ;;  %8977 = vst [vmem:[#allocation3_spill] sm:$0xff] %v6999_v63  ;;  %v2903_v63 = vadd.f32 %v8985_v11, %v6721_v45  ;;  %v3635_v11 = vmax.f32 %v2849_v59, 0.0 }
 0x2d7   : > { %3151 = vmatmul.bf16.gmra.mxu2 %v6989_v0  ;;  %8978 = vst [vmem:[#allocation82_spill] sm:$0xff] %v7001_v55  ;;  %v8984_v55 = vld [vmem:[#allocation10_spill] sm:$0xff] }
 0x2d8   : > { %3249 = vmatmul.bf16.gmra.mxu0 %v6989_v0  ;;  %3298 = vmatmul.bf16.gmra.mxu1 %v6989_v0  ;;  %v2854_v48 = vadd.f32 %v8984_v55, %v6721_v45  ;;  %v3668_v2 = vmax.f32 %v2903_v63, 0.0  ;;  %v3636_v45 = vmax.f32 %v2898_v54, 0.0  ;;  %v8994_v63 = vld [vmem:[#allocation33_spill] sm:$0xff]  ;;  %v8995_v54 = vld [vmem:[#allocation12_spill] sm:$0xff] }
 0x2d9   : > { %v7005_v42 = vpop.f32.mrf.mxu3  ;;  %v2844_v10 = vadd.f32 %v8996_v50, %v8995_v54  ;;  %v2893_v47 = vadd.f32 %v8997_v9, %v8995_v54  ;;  %v3619_v50 = vmax.f32 %v2846_v51, 0.0 }
 0x2da   : > { %v7003_v62 = vpop.f32.mrf.mxu2  ;;  %8979 = vst [vmem:[#allocation83_spill] sm:$0xff] %v7005_v42  ;;  %v3667_v28 = vmax.f32 %v2854_v48, 0.0  ;;  %v7041_v53 = vpack.c.bf16 %v3684_v43, %v3668_v2  ;;  %v2841_v48 = vadd.f32 %v8993_v19, %v6786_v56  ;;  %v7049_v59 = vpack.c.bf16 %v3652_v13, %v3636_v45  ;;  %v7058_v43 = vld [vmem:[%s8692_s4 + $0x38] sm:$0xff] }
 0x2db   : > { %8998 = vst [vmem:[#allocation28_spill] sm:$0xff] %v7058_v43  ;;  %v3620_v13 = vmax.f32 %v2895_v8, 0.0  ;;  %v3603_v26 = vmax.f32 %v2844_v10, 0.0  ;;  %v3604_v12 = vmax.f32 %v2893_v47, 0.0  ;;  %v9006_v10 = vld [vmem:[#allocation27_spill] sm:$0xff] }
 0x2dc   : > { %v7039_v36 = vpack.c.bf16 %v3683_v5, %v3667_v28  ;;  %v8999_v5 = vld [vmem:[#allocation8_spill] sm:$0xff]  ;;  %v9000_v28 = vld [vmem:[#allocation30_spill] sm:$0xff]  ;;  %v3587_v9 = vmax.f32 %v2841_v48, 0.0  ;;  %v9005_v48 = vld [vmem:[#allocation41_spill] sm:$0xff] }
 0x2dd   : > { %v7027_v3 = vpop.f32.mrf.mxu0  ;;  %v7029_v38 = vpop.f32.mrf.mxu1  ;;  %v2839_v2 = vadd.f32 %v9000_v28, %v8999_v5  ;;  %v3811_v51 = vpack.c.bf16 %v3619_v50, %v3603_v26  ;;  %v7072_v8 = vpack.c.bf16 %v3620_v13, %v3604_v12  ;;  %v2834_v47 = vadd.f32 %v9006_v10, %v9005_v48 }
 0x2de   : > { %8988 = vst [vmem:[#allocation15_spill] sm:$0xff] %v7027_v3  ;;  %v7047_v3 = vpack.c.bf16 %v3651_v61, %v3635_v11  ;;  %v9001_v61 = vld [vmem:[#allocation34_spill] sm:$0xff] }
 0x2df   : > { %8989 = vst [vmem:[#allocation6_spill] sm:$0xff] %v7029_v38  ;;  %v2890_v38 = vadd.f32 %v8994_v63, %v6786_v56  ;;  %v2888_v45 = vadd.f32 %v9001_v61, %v8999_v5  ;;  %v3571_v28 = vmax.f32 %v2839_v2, 0.0  ;;  %v9003_v61 = vld [vmem:[#allocation31_spill] sm:$0xff]  ;;  %v2883_v2 = vadd.f32 %v9007_v41, %v9005_v48 }
 0x2e0   : > { %v2836_v37 = vadd.f32 %v9003_v61, %v9002_v34 }
 0x2e1   : > { %v7033_v14 = vpop.f32.mrf.mxu3  ;;  %v3588_v11 = vmax.f32 %v2890_v38, 0.0  ;;  %v3572_v57 = vmax.f32 %v2888_v45, 0.0  ;;  %v9008_v45 = vld [vmem:[#allocation16_spill] sm:$0xff]  ;;  %v3540_v13 = vmax.f32 %v2883_v2, 0.0 }
 0x2e2   : > { %v7031_v55 = vpop.f32.mrf.mxu2  ;;  %v3555_v15 = vmax.f32 %v2836_v37, 0.0 }
 0x2e3   : > { %v7076_v38 = vpack.c.bf16 %v3588_v11, %v3572_v57  ;;  %v3539_v57 = vmax.f32 %v2834_v47, 0.0 }
 0x2e5   : > { %v3059_v19 = vpop.f32.mrf.mxu0  ;;  %v3108_v63 = vpop.f32.mrf.mxu1  ;;  %v3779_v27 = vpack.c.bf16 %v3555_v15, %v3539_v57 }
 0x2e6   : > { %3205 = vmatmul.bf16.gmra.mxu3 %v7058_v43  ;;  %v3060_v54 = vadd.f32 %v3059_v19, %v9008_v45  ;;  %v3109_v61 = vadd.f32 %v3108_v63, %v9008_v45 }
 0x2e7   : > { %3156 = vmatmul.bf16.gmra.mxu2 %v7058_v43 }
 0x2e8   : > { %3254 = vmatmul.bf16.gmra.mxu0 %v7058_v43  ;;  %3303 = vmatmul.bf16.gmra.mxu1 %v7058_v43  ;;  %v7074_v43 = vpack.c.bf16 %v3587_v9, %v3571_v28  ;;  %v3735_v10 = vmax.f32 %v3060_v54, 0.0  ;;  %v3736_v19 = vmax.f32 %v3109_v61, 0.0  ;;  %v5114_v54 = vld [vmem:[%s8692_s4] sm:$0xff] }
 0x2e9   : > { %v3010_v58 = vpop.f32.mrf.mxu3 }
 0x2ea   : > { %v2961_v46 = vpop.f32.mrf.mxu2  ;;  %v3011_v12 = vadd.f32 %v3010_v58, %v9008_v45  ;;  %v3780_v58 = vpack.c.bf16 %v3556_v31, %v3540_v13  ;;  %v9020_v13 = vld [vmem:[#allocation39_spill] sm:$0xff] }
 0x2eb   : > { %v2962_v33 = vadd.f32 %v2961_v46, %v9008_v45 }
 0x2ec   : > { %v3734_v56 = vmax.f32 %v3011_v12, 0.0 }
 0x2ed   : > { %v3061_v26 = vpop.f32.mrf.mxu0  ;;  %v3110_v50 = vpop.f32.mrf.mxu1  ;;  %v3733_v45 = vmax.f32 %v2962_v33, 0.0 }
 0x2ee   : > { %v3062_v9 = vadd.f32 %v3061_v26, %v6701_v21  ;;  %v3111_v11 = vadd.f32 %v3110_v50, %v6701_v21 }
 0x2f0   : > { %v3751_v17 = vmax.f32 %v3062_v9, 0.0  ;;  %v3752_v46 = vmax.f32 %v3111_v11, 0.0  ;;  %v2880_v9 = vadd.f32 %v9020_v13, %v6867_v6  ;;  %v9021_v11 = vld [vmem:[#allocation36_spill] sm:$0xff] }
 0x2f1   : > { %v3012_v41 = vpop.f32.mrf.mxu3 }
 0x2f2   : > { %v2963_v28 = vpop.f32.mrf.mxu2  ;;  %v3013_v37 = vadd.f32 %v3012_v41, %v6701_v21  ;;  %v7090_v42 = vpack.c.bf16 %v3751_v17, %v3735_v10  ;;  %v7092_v26 = vpack.c.bf16 %v3752_v46, %v3736_v19  ;;  %v3524_v10 = vmax.f32 %v2880_v9, 0.0 }
 0x2f3   : > { %v2964_v63 = vadd.f32 %v2963_v28, %v6701_v21  ;;  %v2829_v28 = vadd.f32 %v9021_v11, %v6884_v7 }
 0x2f4   : > { %v3750_v2 = vmax.f32 %v3013_v37, 0.0  ;;  %9009 = vst [vmem:[#allocation20_spill] sm:$0xff] %v7090_v42 }
 0x2f5   : > { %v3749_v47 = vmax.f32 %v2964_v63, 0.0  ;;  %9010 = vst [vmem:[#allocation10_spill] sm:$0xff] %v7092_v26  ;;  %v7102_v31 = vpop.f32.mrf.mxu0  ;;  %v7104_v15 = vpop.f32.mrf.mxu1  ;;  %v3507_v19 = vmax.f32 %v2829_v28, 0.0  ;;  %v9063_v26 = vld [vmem:[#allocation12_spill] sm:$0xff] }
 0x2f6   : > { %v7099_v50 = vpack.c.bf16 %v3750_v2, %v3734_v56  ;;  %3366 = vmatmul.bf16.vlgmr.msrb.gmra.mxu3 %v5114_v54  ;;  %9013 = vst [vmem:[#allocation23_spill] sm:$0xff] %v7102_v31 }
 0x2f7   : > { %3317 = vmatmul.bf16.vlgmr.msrb.gmra.mxu2 %v5114_v54  ;;  %v7097_v61 = vpack.c.bf16 %v3749_v47, %v3733_v45  ;;  %9014 = vst [vmem:[#allocation19_spill] sm:$0xff] %v7104_v15  ;;  %3935 = vmatpush.bf16.msrb.mxu3 %v6830_v35  ;;  %v5115_v35 = vld [vmem:[%s8692_s4 + $0x8] sm:$0xff] }
 0x2f8   : > { %9012 = vst [vmem:[#allocation22_spill] sm:$0xff] %v7099_v50  ;;  %3415 = vmatmul.bf16.vlgmr.msra.gmra.mxu0 %v5114_v54  ;;  %3464 = vmatmul.bf16.vlgmr.msra.gmra.mxu1 %v5114_v54 }
 0x2f9   : > { %9011 = vst [vmem:[#allocation13_spill] sm:$0xff] %v7097_v61  ;;  %3922 = vmatpush.bf16.msrb.mxu2 %v6828_v1  ;;  %v7109_v12 = vpop.f32.mrf.mxu3 }
 0x2fa   : > { %v7107_v33 = vpop.f32.mrf.mxu2 }
 0x2fb   : > { %3936 = vmatpush.bf16.msrb.mxu3 %v7017_v18 }
 0x2fd   : > { %3923 = vmatpush.bf16.msrb.mxu2 %v7015_v44  ;;  %v7114_v56 = vpop.f32.mrf.mxu0  ;;  %v7116_v45 = vpop.f32.mrf.mxu1 }
 0x2fe   : > { %9015 = vst [vmem:[#allocation21_spill] sm:$0xff] %v7114_v56 }
 0x2ff   : > { %9016 = vst [vmem:[#allocation32_spill] sm:$0xff] %v7116_v45  ;;  %3937 = vmatpush.bf16.msrb.mxu3 %v7041_v53 }
 0x301   : > { %3924 = vmatpush.bf16.msrb.mxu2 %v7039_v36  ;;  %v7121_v57 = vpop.f32.mrf.mxu3  ;;  %v9019_v36 = vld [vmem:[#allocation38_spill] sm:$0xff] }
 0x302   : > { %v7119_v1 = vpop.f32.mrf.mxu2 }
 0x303   : > { %3938 = vmatpush.bf16.msrb.mxu3 %v7049_v59 }
 0x305   : > { %3925 = vmatpush.bf16.msrb.mxu2 %v7047_v3  ;;  %v7128_v18 = vpop.f32.mrf.mxu0  ;;  %v7130_v44 = vpop.f32.mrf.mxu1  ;;  %v2831_v3 = vadd.f32 %v9019_v36, %v6867_v6 }
 0x306   : > { %3371 = vmatmul.bf16.gmra.mxu3 %v5115_v35  ;;  %9017 = vst [vmem:[#allocation33_spill] sm:$0xff] %v7128_v18 }
 0x307   : > { %3322 = vmatmul.bf16.gmra.mxu2 %v5115_v35  ;;  %9018 = vst [vmem:[#allocation17_spill] sm:$0xff] %v7130_v44  ;;  %3939 = vmatpush.bf16.msrb.mxu3 %v7072_v8  ;;  %v3523_v8 = vmax.f32 %v2831_v3, 0.0  ;;  %v9059_v44 = vld [vmem:[#allocation56_spill] sm:$0xff] }
 0x308   : > { %3420 = vmatmul.bf16.gmra.mxu0 %v5115_v35  ;;  %3469 = vmatmul.bf16.gmra.mxu1 %v5115_v35 }
 0x309   : > { %3926 = vmatpush.bf16.msrb.mxu2 %v3811_v51  ;;  %v7137_v59 = vpop.f32.mrf.mxu3  ;;  %v9022_v51 = vld [vmem:[#allocation37_spill] sm:$0xff] }
 0x30a   : > { %v7135_v53 = vpop.f32.mrf.mxu2  ;;  %v2878_v41 = vadd.f32 %v9022_v51, %v6884_v7 }
 0x30b   : > { %3940 = vmatpush.bf16.msrb.mxu3 %v7076_v38  ;;  %v5116_v38 = vld [vmem:[%s8692_s4 + $0x10] sm:$0xff] }
 0x30c   : > { %v3508_v63 = vmax.f32 %v2878_v41, 0.0 }
 0x30d   : > { %3927 = vmatpush.bf16.msrb.mxu2 %v7074_v43  ;;  %v7147_v37 = vpop.f32.mrf.mxu0  ;;  %v7149_v17 = vpop.f32.mrf.mxu1  ;;  %v3763_v43 = vpack.c.bf16 %v3523_v8, %v3507_v19 }
 0x30e   : > { %9023 = vst [vmem:[#allocation18_spill] sm:$0xff] %v7147_v37  ;;  %v3764_v2 = vpack.c.bf16 %v3524_v10, %v3508_v63  ;;  %v9058_v37 = vld [vmem:[#allocation43_spill] sm:$0xff] }
 0x30f   : > { %9024 = vst [vmem:[#allocation8_spill] sm:$0xff] %v7149_v17  ;;  %3941 = vmatpush.bf16.msrb.mxu3 %v3780_v58  ;;  %v7236_v17 = vadd.f32 %v6850_v23, %v6884_v7  ;;  %v7256_v23 = vadd.f32 %v6878_v39, %v9005_v48  ;;  %v7274_v39 = vadd.f32 %v6910_v4, %v8999_v5  ;;  %v9060_v4 = vld [vmem:[#allocation52_spill] sm:$0xff] }
 0x310   : > { %v7300_v31 = vadd.f32 %v9060_v4, %v8999_v5 }
 0x311   : > { %3928 = vmatpush.bf16.msrb.mxu2 %v3779_v27  ;;  %v7153_v47 = vpop.f32.mrf.mxu3  ;;  %9048 = vst [vmem:[#allocation95_spill] sm:$0xff] %v7236_v17 }
 0x312   : > { %v7151_v46 = vpop.f32.mrf.mxu2  ;;  %9054 = vst [vmem:[#allocation101_spill] sm:$0xff] %v7256_v23 }
 0x313   : > { %3942 = vmatpush.bf16.msrb.mxu3 %v3764_v2 }
 0x315   : > { %3929 = vmatpush.bf16.msrb.mxu2 %v3763_v43  ;;  %v7158_v27 = vpop.f32.mrf.mxu0  ;;  %v7160_v54 = vpop.f32.mrf.mxu1 }
 0x316   : > { %3376 = vmatmul.bf16.gmra.mxu3 %v5116_v38  ;;  %9025 = vst [vmem:[#allocation30_spill] sm:$0xff] %v7158_v27  ;;  %v7232_v27 = vadd.f32 %v6848_v52, %v6884_v7  ;;  %v7252_v52 = vadd.f32 %v6876_v29, %v9005_v48 }
 0x317   : > { %3327 = vmatmul.bf16.gmra.mxu2 %v5116_v38  ;;  %9026 = vst [vmem:[#allocation34_spill] sm:$0xff] %v7160_v54 }
 0x318   : > { %3425 = vmatmul.bf16.gmra.mxu0 %v5116_v38  ;;  %3474 = vmatmul.bf16.gmra.mxu1 %v5116_v38  ;;  %9047 = vst [vmem:[#allocation94_spill] sm:$0xff] %v7232_v27 }
 0x319   : > { %v7164_v35 = vpop.f32.mrf.mxu3  ;;  %9053 = vst [vmem:[#allocation100_spill] sm:$0xff] %v7252_v52 }
 0x31a   : > { %v7162_v58 = vpop.f32.mrf.mxu2 }
 0x31d   : > { %v7166_v36 = vpop.f32.mrf.mxu0  ;;  %v7168_v3 = vpop.f32.mrf.mxu1 }
 0x31e   : > { %9027 = vst [vmem:[#allocation42_spill] sm:$0xff] %v7166_v36 }
 0x31f   : > { %9028 = vst [vmem:[#allocation31_spill] sm:$0xff] %v7168_v3 }
 0x321   : > { %v7172_v9 = vpop.f32.mrf.mxu3 }
 0x322   : > { %v7170_v13 = vpop.f32.mrf.mxu2 }
 0x325   : > { %v7178_v11 = vpop.f32.mrf.mxu0  ;;  %v7180_v28 = vpop.f32.mrf.mxu1 }
 0x326   : > { %3381 = vmatmul.bf16.gmra.mxu3 %v6636_v60  ;;  %9029 = vst [vmem:[#allocation29_spill] sm:$0xff] %v7178_v11 }
 0x327   : > { %3332 = vmatmul.bf16.gmra.mxu2 %v6636_v60  ;;  %9030 = vst [vmem:[#allocation41_spill] sm:$0xff] %v7180_v28 }
 0x328   : > { %3430 = vmatmul.bf16.gmra.mxu0 %v6636_v60  ;;  %3479 = vmatmul.bf16.gmra.mxu1 %v6636_v60 }
 0x329   : > { %v7184_v41 = vpop.f32.mrf.mxu3 }
 0x32a   : > { %v7182_v51 = vpop.f32.mrf.mxu2 }
 0x32d   : > { %v7186_v8 = vpop.f32.mrf.mxu0  ;;  %v7188_v10 = vpop.f32.mrf.mxu1 }
 0x32e   : > { %9031 = vst [vmem:[#allocation27_spill] sm:$0xff] %v7186_v8  ;;  %v9062_v8 = vld [vmem:[#allocation57_spill] sm:$0xff] }
 0x32f   : > { %9032 = vst [vmem:[#allocation35_spill] sm:$0xff] %v7188_v10  ;;  %v3008_v10 = vadd.f32 %v7033_v14, %v6719_v24  ;;  %v9057_v14 = vld [vmem:[#allocation83_spill] sm:$0xff] }
 0x330   : > { %v3006_v29 = vadd.f32 %v9057_v14, %v6732_v22  ;;  %9061 = vst [vmem:[#allocation83_spill] sm:$0xff] %v7300_v31  ;;  %v9067_v14 = vld [vmem:[#allocation61_spill] sm:$0xff] }
 0x331   : > { %v7192_v63 = vpop.f32.mrf.mxu3  ;;  %v3718_v11 = vmax.f32 %v3008_v10, 0.0  ;;  %v7318_v4 = vadd.f32 %v9067_v14, %v9063_v26  ;;  %v9074_v10 = vld [vmem:[#allocation69_spill] sm:$0xff] }
 0x332   : > { %v7190_v19 = vpop.f32.mrf.mxu2  ;;  %v9075_v14 = vld [vmem:[#allocation9_spill] sm:$0xff] }
 0x335   : > { %v7198_v60 = vpop.f32.mrf.mxu0  ;;  %v7200_v43 = vpop.f32.mrf.mxu1 }
 0x336   : > { %3386 = vmatmul.bf16.gmra.mxu3 %v6685_v20  ;;  %9033 = vst [vmem:[#allocation38_spill] sm:$0xff] %v7198_v60 }
 0x337   : > { %3337 = vmatmul.bf16.gmra.mxu2 %v6685_v20  ;;  %9034 = vst [vmem:[#allocation39_spill] sm:$0xff] %v7200_v43 }
 0x338   : > { %3435 = vmatmul.bf16.gmra.mxu0 %v6685_v20  ;;  %3484 = vmatmul.bf16.gmra.mxu1 %v6685_v20 }
 0x339   : > { %v7204_v38 = vpop.f32.mrf.mxu3 }
 0x33a   : > { %v7202_v2 = vpop.f32.mrf.mxu2  ;;  %9036 = vst [vmem:[#allocation37_spill] sm:$0xff] %v7204_v38  ;;  %v9068_v38 = vld [vmem:[#allocation54_spill] sm:$0xff] }
 0x33b   : > { %9035 = vst [vmem:[#allocation36_spill] sm:$0xff] %v7202_v2  ;;  %v9070_v2 = vld [vmem:[#allocation55_spill] sm:$0xff] }
 0x33d   : > { %v7206_v45 = vpop.f32.mrf.mxu0  ;;  %v7208_v56 = vpop.f32.mrf.mxu1 }
 0x33e   : > { %9037 = vst [vmem:[#allocation84_spill] sm:$0xff] %v7206_v45 }
 0x33f   : > { %9038 = vst [vmem:[#allocation85_spill] sm:$0xff] %v7208_v56 }
 0x341   : > { %v7212_v3 = vpop.f32.mrf.mxu3 }
 0x342   : > { %v7210_v54 = vpop.f32.mrf.mxu2  ;;  %9040 = vst [vmem:[#allocation87_spill] sm:$0xff] %v7212_v3 }
 0x343   : > { %9039 = vst [vmem:[#allocation86_spill] sm:$0xff] %v7210_v54  ;;  %v9072_v54 = vld [vmem:[#allocation7_spill] sm:$0xff] }
 0x345   : > { %v7218_v20 = vpop.f32.mrf.mxu0  ;;  %v7220_v43 = vpop.f32.mrf.mxu1 }
 0x346   : > { %3391 = vmatmul.bf16.gmra.mxu3 %v6714_v49  ;;  %9041 = vst [vmem:[#allocation88_spill] sm:$0xff] %v7218_v20 }
 0x347   : > { %3342 = vmatmul.bf16.gmra.mxu2 %v6714_v49  ;;  %9042 = vst [vmem:[#allocation89_spill] sm:$0xff] %v7220_v43  ;;  %v7244_v43 = vadd.f32 %v6860_v32, %v6867_v6  ;;  %v7264_v32 = vadd.f32 %v6900_v30, %v9002_v34  ;;  %v7280_v30 = vadd.f32 %v6912_v16, %v8999_v5 }
 0x348   : > { %3440 = vmatmul.bf16.gmra.mxu0 %v6714_v49  ;;  %3489 = vmatmul.bf16.gmra.mxu1 %v6714_v49  ;;  %v7293_v16 = vadd.f32 %v9059_v44, %v9058_v37  ;;  %v7305_v44 = vadd.f32 %v9062_v8, %v9058_v37  ;;  %v7322_v8 = vadd.f32 %v9068_v38, %v9058_v37  ;;  %v9086_v38 = vld [vmem:[#allocation5_spill] sm:$0xff] }
 0x349   : > { %v7224_v45 = vpop.f32.mrf.mxu3  ;;  %9051 = vst [vmem:[#allocation98_spill] sm:$0xff] %v7244_v43  ;;  %v9076_v43 = vld [vmem:[#allocation72_spill] sm:$0xff] }
 0x34a   : > { %v7222_v60 = vpop.f32.mrf.mxu2  ;;  %9044 = vst [vmem:[#allocation91_spill] sm:$0xff] %v7224_v45  ;;  %v2996_v45 = vadd.f32 %v9074_v10, %v9072_v54  ;;  %v9082_v10 = vld [vmem:[#allocation73_spill] sm:$0xff] }
 0x34b   : > { %9043 = vst [vmem:[#allocation90_spill] sm:$0xff] %v7222_v60 }
 0x34c   : > { %9056 = vst [vmem:[#allocation103_spill] sm:$0xff] %v7264_v32  ;;  %v9081_v32 = vld [vmem:[#allocation81_spill] sm:$0xff] }
 0x34d   : > { %v7226_v56 = vpop.f32.mrf.mxu0  ;;  %v7228_v36 = vpop.f32.mrf.mxu1  ;;  %9069 = vst [vmem:[#allocation57_spill] sm:$0xff] %v7322_v8  ;;  %v9080_v8 = vld [vmem:[#allocation80_spill] sm:$0xff] }
 0x34e   : > { %9045 = vst [vmem:[#allocation92_spill] sm:$0xff] %v7226_v56  ;;  %v7248_v56 = vadd.f32 %v6862_v25, %v6867_v6  ;;  %v2959_v25 = vadd.f32 %v7031_v55, %v6719_v24  ;;  %v2957_v55 = vadd.f32 %v7003_v62, %v6732_v22 }
 0x34f   : > { %9046 = vst [vmem:[#allocation93_spill] sm:$0xff] %v7228_v36  ;;  %v7260_v36 = vadd.f32 %v6898_v40, %v9002_v34  ;;  %v3702_v40 = vmax.f32 %v3006_v29, 0.0 }
 0x350   : > { %9052 = vst [vmem:[#allocation99_spill] sm:$0xff] %v7248_v56  ;;  %v3717_v28 = vmax.f32 %v2959_v25, 0.0  ;;  %v3701_v31 = vmax.f32 %v2957_v55, 0.0  ;;  %v9073_v56 = vld [vmem:[#allocation68_spill] sm:$0xff]  ;;  %v2949_v55 = vadd.f32 %v9076_v43, %v9075_v14  ;;  %v9083_v43 = vld [vmem:[#allocation26_spill] sm:$0xff] }
 0x351   : > { %v7240_v20 = vpop.f32.mrf.mxu3  ;;  %9055 = vst [vmem:[#allocation102_spill] sm:$0xff] %v7260_v36  ;;  %v2947_v17 = vadd.f32 %v9073_v56, %v9072_v54  ;;  %v7337_v27 = vpack.c.bf16 %v3718_v11, %v3702_v40  ;;  %v2998_v54 = vadd.f32 %v9082_v10, %v9075_v14  ;;  %v9085_v11 = vld [vmem:[#allocation77_spill] sm:$0xff]  ;;  %v3638_v36 = vmax.f32 %v2996_v45, 0.0 }
 0x352   : > { %v7238_v49 = vpop.f32.mrf.mxu2  ;;  %9050 = vst [vmem:[#allocation97_spill] sm:$0xff] %v7240_v20  ;;  %v7335_v29 = vpack.c.bf16 %v3717_v28, %v3701_v31  ;;  %v9084_v31 = vld [vmem:[#allocation76_spill] sm:$0xff]  ;;  %v3001_v40 = vadd.f32 %v9085_v11, %v9083_v43  ;;  %v9090_v10 = vld [vmem:[#allocation65_spill] sm:$0xff]  ;;  %v3653_v52 = vmax.f32 %v2949_v55, 0.0 }
 0x353   : > { %9049 = vst [vmem:[#allocation96_spill] sm:$0xff] %v7238_v49  ;;  %v2952_v28 = vadd.f32 %v9084_v31, %v9083_v43  ;;  %v7364_v50 = vadd.f32 %v9090_v10, %v9086_v38  ;;  %v3637_v31 = vmax.f32 %v2947_v17, 0.0  ;;  %v9091_v10 = vld [vmem:[#allocation3_spill] sm:$0xff] }
 0x354   : > { %9078 = vst [vmem:[#allocation61_spill] sm:$0xff] %v7337_v27  ;;  %v9087_v27 = vld [vmem:[#allocation62_spill] sm:$0xff]  ;;  %v3670_v49 = vmax.f32 %v3001_v40, 0.0  ;;  %v7374_v17 = vadd.f32 %v9091_v10, %v6732_v22  ;;  %v9097_v10 = vld [vmem:[#allocation63_spill] sm:$0xff] }
 0x355   : > { %v3250_v18 = vpop.f32.mrf.mxu0  ;;  %v3299_v15 = vpop.f32.mrf.mxu1 }
 0x356   : > { %3396 = vmatmul.bf16.gmra.mxu3 %v6989_v0  ;;  %v3300_v23 = vadd.f32 %v3299_v15, %v6732_v22  ;;  %v3654_v15 = vmax.f32 %v2998_v54, 0.0  ;;  %v3140_v54 = vadd.f32 %v7190_v19, %v9086_v38  ;;  %v3622_v19 = vmax.f32 %v7364_v50, 0.0  ;;  %v9099_v50 = vld [vmem:[#allocation71_spill] sm:$0xff] }
 0x357   : > { %3347 = vmatmul.bf16.gmra.mxu2 %v6989_v0 }
 0x358   : > { %3445 = vmatmul.bf16.gmra.mxu0 %v6989_v0  ;;  %3494 = vmatmul.bf16.gmra.mxu1 %v6989_v0  ;;  %v9064_v0 = vld [vmem:[#allocation60_spill] sm:$0xff]  ;;  %v3708_v55 = vmax.f32 %v3300_v23, 0.0 }
 0x359   : > { %v7309_v42 = vadd.f32 %v9064_v0, %v9063_v26  ;;  %v7313_v25 = vpop.f32.mrf.mxu3  ;;  %v7326_v0 = vadd.f32 %v9070_v2, %v9058_v37  ;;  %9077 = vst [vmem:[#allocation60_spill] sm:$0xff] %v7335_v29  ;;  %v7354_v2 = vadd.f32 %v9087_v27, %v9086_v38  ;;  %v9096_v23 = vld [vmem:[#allocation28_spill] sm:$0xff] }
 0x35a   : > { %v7311_v62 = vpop.f32.mrf.mxu2  ;;  %9066 = vst [vmem:[#allocation52_spill] sm:$0xff] %v7313_v25 }
 0x35b   : > { %9065 = vst [vmem:[#allocation56_spill] sm:$0xff] %v7311_v62  ;;  %v3669_v62 = vmax.f32 %v2952_v28, 0.0  ;;  %v3189_v28 = vadd.f32 %v7192_v63, %v9086_v38  ;;  %v9098_v63 = vld [vmem:[#allocation70_spill] sm:$0xff] }
 0x35c   : > { %9071 = vst [vmem:[#allocation12_spill] sm:$0xff] %v7326_v0  ;;  %v9079_v0 = vld [vmem:[#allocation11_spill] sm:$0xff] }
 0x35d   : > { %v2954_v3 = vadd.f32 %v9080_v8, %v9079_v0  ;;  %v3003_v56 = vadd.f32 %v9081_v32, %v9079_v0  ;;  %9088 = vst [vmem:[#allocation54_spill] sm:$0xff] %v7354_v2  ;;  %v9089_v8 = vld [vmem:[#allocation64_spill] sm:$0xff]  ;;  %v3251_v32 = vadd.f32 %v3250_v18, %v6732_v22  ;;  %v3252_v11 = vpop.f32.mrf.mxu0  ;;  %v3301_v61 = vpop.f32.mrf.mxu1 }
 0x35e   : > { %v7358_v29 = vadd.f32 %v9089_v8, %v9086_v38  ;;  %v3253_v2 = vadd.f32 %v3252_v11, %v6719_v24  ;;  %v3302_v8 = vadd.f32 %v3301_v61, %v6719_v24  ;;  %v9093_v61 = vld [vmem:[#allocation15_spill] sm:$0xff] }
 0x35f   : > { %v3685_v20 = vmax.f32 %v2954_v3, 0.0  ;;  %v3686_v27 = vmax.f32 %v3003_v56, 0.0  ;;  %v3707_v45 = vmax.f32 %v3251_v32, 0.0  ;;  %v9092_v56 = vld [vmem:[#allocation82_spill] sm:$0xff]  ;;  %v7382_v60 = vadd.f32 %v9093_v61, %v6719_v24 }
 0x360   : > { %v3723_v0 = vmax.f32 %v3253_v2, 0.0  ;;  %v3724_v3 = vmax.f32 %v3302_v8, 0.0  ;;  %v7378_v11 = vadd.f32 %v9092_v56, %v6732_v22  ;;  %v7399_v56 = vadd.f32 %v9097_v10, %v9086_v38 }
 0x361   : > { %v7370_v18 = vpop.f32.mrf.mxu3  ;;  %v7393_v2 = vpack.c.bf16 %v3685_v20, %v3669_v62  ;;  %v7395_v8 = vpack.c.bf16 %v3686_v27, %v3670_v49  ;;  %v3621_v61 = vmax.f32 %v7358_v29, 0.0  ;;  %v3138_v20 = vadd.f32 %v7182_v51, %v9063_v26 }
 0x362   : > { %v7368_v25 = vpop.f32.mrf.mxu2  ;;  %v7388_v40 = vpack.c.bf16 %v3723_v0, %v3707_v45  ;;  %v7390_v32 = vpack.c.bf16 %v3724_v3, %v3708_v55  ;;  %v7405_v0 = vadd.f32 %v9098_v63, %v9075_v14  ;;  %v3187_v49 = vadd.f32 %v7184_v41, %v9063_v26  ;;  %v9100_v3 = vld [vmem:[#allocation6_spill] sm:$0xff] }
 0x363   : > { %v7414_v62 = vpack.c.bf16 %v3653_v52, %v3637_v31  ;;  %v7416_v29 = vpack.c.bf16 %v3654_v15, %v3638_v36  ;;  %v7420_v27 = vadd.f32 %v9099_v50, %v9075_v14  ;;  %v7426_v51 = vadd.f32 %v9100_v3, %v6719_v24 }
 0x364   : > { %9094 = vst [vmem:[#allocation55_spill] sm:$0xff] %v7388_v40  ;;  %v7435_v36 = vadd.f32 %v7119_v1, %v6867_v6  ;;  %v3625_v31 = vmax.f32 %v3140_v54, 0.0  ;;  %v3626_v15 = vmax.f32 %v3189_v28, 0.0  ;;  %v7439_v50 = vadd.f32 %v7121_v57, %v6867_v6 }
 0x365   : > { %9095 = vst [vmem:[#allocation68_spill] sm:$0xff] %v7390_v32  ;;  %v7428_v10 = vpop.f32.mrf.mxu0  ;;  %v7430_v41 = vpop.f32.mrf.mxu1  ;;  %v3128_v3 = vadd.f32 %v7135_v53, %v9005_v48  ;;  %v3177_v55 = vadd.f32 %v7137_v59, %v9005_v48  ;;  %v3130_v52 = vadd.f32 %v7151_v46, %v9002_v34  ;;  %v3179_v1 = vadd.f32 %v7153_v47, %v9002_v34 }
 0x366   : > { %3401 = vmatmul.bf16.gmra.mxu3 %v9096_v23  ;;  %9101 = vst [vmem:[#allocation69_spill] sm:$0xff] %v7428_v10  ;;  %v3133_v54 = vadd.f32 %v7162_v58, %v8999_v5  ;;  %v3609_v28 = vmax.f32 %v3138_v20, 0.0  ;;  %v3610_v45 = vmax.f32 %v3187_v49, 0.0  ;;  %v3135_v57 = vadd.f32 %v7170_v13, %v9058_v37 }
 0x367   : > { %3352 = vmatmul.bf16.gmra.mxu2 %v9096_v23  ;;  %9102 = vst [vmem:[#allocation72_spill] sm:$0xff] %v7430_v41  ;;  %v3184_v53 = vadd.f32 %v7172_v9, %v9058_v37  ;;  %v9103_v32 = vmax.f32 %v7309_v42, 0.0  ;;  %v9104_v46 = vmax.f32 %v7318_v4, 0.0  ;;  %v9105_v58 = vmax.f32 %v7274_v39, 0.0 }
 0x368   : > { %3450 = vmatmul.bf16.gmra.mxu0 %v9096_v23  ;;  %3499 = vmatmul.bf16.gmra.mxu1 %v9096_v23  ;;  %v7463_v47 = vpack.c.bf16 %v3625_v31, %v3609_v28  ;;  %v7465_v41 = vpack.c.bf16 %v3626_v15, %v3610_v45  ;;  %v9106_v20 = vmax.f32 %v7293_v16, 0.0  ;;  %v9107_v9 = vmax.f32 %v7280_v30, 0.0  ;;  %v9109_v15 = vld [vmem:[#allocation16_spill] sm:$0xff] }
 0x369   : > { %v3206_v63 = vpop.f32.mrf.mxu3  ;;  %v7457_v59 = vpack.c.bf16 %v3621_v61, %v9103_v32  ;;  %v7461_v40 = vpack.c.bf16 %v3622_v19, %v9104_v46  ;;  %v9108_v42 = vmax.f32 %v7305_v44, 0.0  ;;  %v7482_v61 = vadd.f32 %v7107_v33, %v6884_v7 }
 0x36a   : > { %v3157_v23 = vpop.f32.mrf.mxu2  ;;  %v7471_v13 = vpack.c.bf16 %v9106_v20, %v9105_v58  ;;  %v7486_v19 = vadd.f32 %v7109_v12, %v6884_v7  ;;  %v3182_v39 = vadd.f32 %v7164_v35, %v8999_v5  ;;  %v3545_v44 = vmax.f32 %v3128_v3, 0.0 }
 0x36b   : > { %v7477_v32 = vpack.c.bf16 %v9108_v42, %v9107_v9  ;;  %v3546_v49 = vmax.f32 %v3177_v55, 0.0  ;;  %v3561_v45 = vmax.f32 %v3130_v52, 0.0  ;;  %v3562_v31 = vmax.f32 %v3179_v1, 0.0  ;;  %v9112_v1 = vld [vmem:[#allocation90_spill] sm:$0xff] }
 0x36c   : > { %v3158_v28 = vadd.f32 %v3157_v23, %v9109_v15  ;;  %v3207_v33 = vadd.f32 %v3206_v63, %v9109_v15  ;;  %v3577_v12 = vmax.f32 %v3133_v54, 0.0  ;;  %v3593_v20 = vmax.f32 %v3135_v57, 0.0  ;;  %v7507_v63 = vld [vmem:[%s8694_s6] sm:$0xf]  ;;  %v9117_v15 = vld [vmem:[#allocation97_spill] sm:$0xff] }
 0x36d   : > { %v7494_v46 = vpop.f32.mrf.mxu0  ;;  %v7496_v58 = vpop.f32.mrf.mxu1  ;;  %v3594_v9 = vmax.f32 %v3184_v53, 0.0  ;;  %v3155_v35 = vadd.f32 %v7368_v25, %v6719_v24  ;;  %v3578_v3 = vmax.f32 %v3182_v39, 0.0  ;;  %v3204_v55 = vadd.f32 %v7370_v18, %v6719_v24  ;;  %v9113_v57 = vld [vmem:[#allocation11_spill] sm:$0xff]  ;;  %v9114_v25 = vld [vmem:[#allocation96_spill] sm:$0xff] }
 0x36e   : > { %9110 = vst [vmem:[#allocation80_spill] sm:$0xff] %v7494_v46  ;;  %v3148_v54 = vadd.f32 %v9112_v1, %v9083_v43  ;;  %v3150_v53 = vadd.f32 %v9114_v25, %v9113_v57  ;;  %v9115_v39 = vld [vmem:[#allocation56_spill] sm:$0xff]  ;;  %v3738_v24 = vmax.f32 %v3207_v33, 0.0  ;;  %v7520_v1 = vpack.c.bf16 %v3593_v20, %v3577_v12  ;;  %v9126_v20 = vld [vmem:[#allocation103_spill] sm:$0xff] }
 0x36f   : > { %9111 = vst [vmem:[#allocation81_spill] sm:$0xff] %v7496_v58  ;;  %v3153_v30 = vadd.f32 %v9115_v39, %v6732_v22  ;;  %v9116_v18 = vld [vmem:[#allocation52_spill] sm:$0xff]  ;;  %v3199_v58 = vadd.f32 %v9117_v15, %v9113_v57  ;;  %v3721_v46 = vmax.f32 %v3155_v35, 0.0  ;;  %v3722_v25 = vmax.f32 %v3204_v55, 0.0  ;;  %v9123_v15 = vld [vmem:[#allocation22_spill] sm:$0xff]  ;;  %v9124_v35 = vld [vmem:[#allocation101_spill] sm:$0xff] }
 0x370   : > { %v3202_v16 = vadd.f32 %v9116_v18, %v6732_v22  ;;  %v9118_v18 = vld [vmem:[#allocation13_spill] sm:$0xff]  ;;  %v9125_v12 = vmax.f32 %v9124_v35, 0.0  ;;  %v7539_v55 = vpack.c.bf16 %v3561_v45, %v3545_v44  ;;  %v9135_v45 = vld [vmem:[#allocation99_spill] sm:$0xff] }
 0x371   : > { %v3208_v4 = vpop.f32.mrf.mxu3 }
 0x372   : > { %v3159_v42 = vpop.f32.mrf.mxu2  ;;  %v3209_v23 = vadd.f32 %v3208_v4, %v6701_v21 }
 0x373   : > { %v3160_v52 = vadd.f32 %v3159_v42, %v6701_v21  ;;  %v3737_v42 = vmax.f32 %v3158_v28, 0.0  ;;  %v7522_v21 = vpack.c.bf16 %v3594_v9, %v3578_v3  ;;  %v9119_v28 = vld [vmem:[#allocation100_spill] sm:$0xff]  ;;  %v9127_v9 = vmax.f32 %v9126_v20, 0.0 }
 0x374   : > { %v3754_v10 = vmax.f32 %v3209_v23, 0.0  ;;  %v9120_v33 = vmax.f32 %v9119_v28, 0.0  ;;  %v3513_v20 = vmax.f32 %v7482_v61, 0.0  ;;  %v9144_v61 = vld [vmem:[#allocation36_spill] sm:$0xff] }
 0x375   : > { %v3753_v4 = vmax.f32 %v3160_v52, 0.0  ;;  %v9121_v52 = vld [vmem:[#allocation102_spill] sm:$0xff]  ;;  %v7537_v3 = vpack.c.bf16 %v9127_v9, %v9125_v12  ;;  %v3416_v35 = vpop.f32.mrf.mxu0  ;;  %v3465_v38 = vpop.f32.mrf.mxu1  ;;  %v9133_v12 = vld [vmem:[#allocation95_spill] sm:$0xff]  ;;  %v3514_v9 = vmax.f32 %v7486_v19, 0.0  ;;  %v9145_v19 = vld [vmem:[#allocation37_spill] sm:$0xff] }
 0x376   : > { %v3882_v39 = vpack.c.bf16 %v3754_v10, %v3738_v24  ;;  %3917 = vmatmul.bf16.vlgmr.msra.gmra.mxu3 %v7507_v63  ;;  %v9122_v23 = vmax.f32 %v9121_v52, 0.0  ;;  %v7541_v24 = vpack.c.bf16 %v3562_v31, %v3546_v49  ;;  %v9128_v10 = vld [vmem:[#allocation94_spill] sm:$0xff]  ;;  %v9134_v44 = vmax.f32 %v9133_v12, 0.0 }
 0x377   : > { %3904 = vmatmul.bf16.vlgmr.msra.gmra.mxu2 %v7507_v63  ;;  %v3881_v37 = vpack.c.bf16 %v3753_v4, %v3737_v42  ;;  %3961 = vmatpush.bf16.msra.mxu3 %v9123_v15  ;;  %v9129_v42 = vmax.f32 %v9128_v10, 0.0  ;;  %v9130_v4 = vld [vmem:[#allocation98_spill] sm:$0xff]  ;;  %v3706_v15 = vmax.f32 %v3202_v16, 0.0  ;;  %v9136_v49 = vmax.f32 %v9135_v45, 0.0  ;;  %v9143_v45 = vld [vmem:[#allocation7_spill] sm:$0xff] }
 0x378   : > { %3948 = vmatpush.bf16.msra.mxu2 %v9118_v18  ;;  %v7530_v22 = vpack.c.bf16 %v9122_v23, %v9120_v33  ;;  %v9131_v18 = vmax.f32 %v9130_v4, 0.0  ;;  %v9132_v33 = vld [vmem:[#allocation91_spill] sm:$0xff]  ;;  %v3705_v23 = vmax.f32 %v3153_v30, 0.0  ;;  %4013 = vmatpush.bf16.msrb.mxu1 %v3882_v39  ;;  %v9138_v10 = vld [vmem:[#allocation86_spill] sm:$0xff]  ;;  %v3689_v39 = vmax.f32 %v3150_v53, 0.0 }
 0x379   : > { %v3197_v52 = vadd.f32 %v9132_v33, %v9083_v43  ;;  %4000 = vmatpush.bf16.msrb.mxu0 %v3881_v37  ;;  %v7555_v31 = vpack.c.bf16 %v9136_v49, %v9134_v44  ;;  %v9139_v30 = vld [vmem:[#allocation87_spill] sm:$0xff]  ;;  %v7565_v37 = vpop.f32.mrf.mxu3  ;;  %v9142_v33 = vld [vmem:[#allocation60_spill] sm:$0xff]  ;;  %v3866_v44 = vpack.c.bf16 %v3722_v25, %v3706_v15  ;;  %v3143_v49 = vadd.f32 %v9144_v61, %v9143_v45 }
 0x37a   : > { %v7547_v28 = vpack.c.bf16 %v9131_v18, %v9129_v42  ;;  %v3145_v42 = vadd.f32 %v9138_v10, %v9075_v14  ;;  %v3194_v16 = vadd.f32 %v9139_v30, %v9075_v14  ;;  %v7563_v4 = vpop.f32.mrf.mxu2  ;;  %9141 = vst [vmem:[#allocation76_spill] sm:$0xff] %v7565_v37  ;;  %v3690_v18 = vmax.f32 %v3199_v58, 0.0  ;;  %v9146_v10 = vld [vmem:[#allocation61_spill] sm:$0xff] }
 0x37b   : > { %9137 = vst [vmem:[#allocation73_spill] sm:$0xff] %v7555_v31  ;;  %v3865_v12 = vpack.c.bf16 %v3721_v46, %v3705_v23  ;;  %v3192_v31 = vadd.f32 %v9145_v19, %v9143_v45  ;;  %3962 = vmatpush.bf16.msra.mxu3 %v9146_v10  ;;  %v9147_v30 = vmax.f32 %v7435_v36, 0.0  ;;  %v9148_v37 = vmax.f32 %v7439_v50, 0.0  ;;  %v9153_v50 = vld [vmem:[#allocation74_spill] sm:$0xff] }
 0x37c   : > { %9140 = vst [vmem:[#allocation26_spill] sm:$0xff] %v7563_v4  ;;  %3949 = vmatpush.bf16.msra.mxu2 %v9142_v33  ;;  %v3673_v58 = vmax.f32 %v3148_v54, 0.0  ;;  %v3674_v33 = vmax.f32 %v3197_v52, 0.0  ;;  %4014 = vmatpush.bf16.msrb.mxu1 %v3866_v44  ;;  %v9149_v46 = vmax.f32 %v7374_v17, 0.0  ;;  %v9150_v25 = vmax.f32 %v7382_v60, 0.0  ;;  %v9154_v54 = vld [vmem:[#allocation75_spill] sm:$0xff] }
 0x37d   : > { %v7575_v14 = vpack.c.bf16 %v9147_v30, %v3513_v20  ;;  %v7579_v53 = vpack.c.bf16 %v9148_v37, %v3514_v9  ;;  %4001 = vmatpush.bf16.msrb.mxu0 %v3865_v12  ;;  %v9151_v15 = vmax.f32 %v7378_v11, 0.0  ;;  %v9152_v36 = vmax.f32 %v7426_v51, 0.0  ;;  %v9155_v37 = vld [vmem:[#allocation78_spill] sm:$0xff]  ;;  %v9156_v17 = vld [vmem:[#allocation79_spill] sm:$0xff] }
 0x37e   : > { %v7585_v23 = vpack.c.bf16 %v9150_v25, %v9149_v46  ;;  %v3050_v9 = vadd.f32 %v9153_v50, %v9083_v43  ;;  %v3099_v52 = vadd.f32 %v9154_v54, %v9083_v43  ;;  %v3052_v12 = vadd.f32 %v9155_v37, %v9113_v57  ;;  %v9157_v19 = vld [vmem:[#allocation66_spill] sm:$0xff]  ;;  %v9158_v30 = vld [vmem:[#allocation67_spill] sm:$0xff] }
 0x37f   : > { %v7591_v20 = vpack.c.bf16 %v9152_v36, %v9151_v15  ;;  %v3101_v60 = vadd.f32 %v9156_v17, %v9113_v57  ;;  %v3657_v44 = vmax.f32 %v3145_v42, 0.0  ;;  %v3658_v61 = vmax.f32 %v3194_v16, 0.0  ;;  %3963 = vmatpush.bf16.msra.mxu3 %v7395_v8 }
 0x380   : > { %3950 = vmatpush.bf16.msra.mxu2 %v7393_v2  ;;  %v3849_v11 = vpack.c.bf16 %v3689_v39, %v3673_v58  ;;  %v3850_v51 = vpack.c.bf16 %v3690_v18, %v3674_v33  ;;  %v3045_v10 = vadd.f32 %v9157_v19, %v9143_v45  ;;  %v3094_v46 = vadd.f32 %v9158_v30, %v9143_v45  ;;  %v3418_v39 = vpop.f32.mrf.mxu0  ;;  %v3467_v18 = vpop.f32.mrf.mxu1 }
 0x381   : > { %v3417_v25 = vadd.f32 %v3416_v35, %v6884_v7  ;;  %v3466_v15 = vadd.f32 %v3465_v38, %v6884_v7  ;;  %v3655_v36 = vmax.f32 %v7405_v0, 0.0  ;;  %v3656_v42 = vmax.f32 %v7420_v27, 0.0  ;;  %v7615_v38 = vpop.f32.mrf.mxu3 }
 0x382   : > { %v3641_v16 = vmax.f32 %v3143_v49, 0.0  ;;  %v3642_v2 = vmax.f32 %v3192_v31, 0.0  ;;  %4002 = vmatpush.bf16.msrb.mxu0 %v3849_v11  ;;  %4015 = vmatpush.bf16.msrb.mxu1 %v3850_v51  ;;  %v3687_v58 = vmax.f32 %v3052_v12, 0.0  ;;  %v3688_v33 = vmax.f32 %v3101_v60, 0.0  ;;  %v7613_v54 = vpop.f32.mrf.mxu2  ;;  %9160 = vst [vmem:[#allocation62_spill] sm:$0xff] %v7615_v38  ;;  %v9161_v12 = vld [vmem:[#allocation58_spill] sm:$0xff] }
 0x383   : > { %v3419_v50 = vadd.f32 %v3418_v39, %v6867_v6  ;;  %v3468_v35 = vadd.f32 %v3467_v18, %v6867_v6  ;;  %9159 = vst [vmem:[#allocation77_spill] sm:$0xff] %v7613_v54  ;;  %v3671_v8 = vmax.f32 %v3050_v9, 0.0  ;;  %v3672_v0 = vmax.f32 %v3099_v52, 0.0  ;;  %3964 = vmatpush.bf16.msra.mxu3 %v7416_v29  ;;  %v9162_v51 = vld [vmem:[#allocation59_spill] sm:$0xff]  ;;  %v9165_v29 = vld [vmem:[#allocation53_spill] sm:$0xff] }
 0x384   : > { %3951 = vmatpush.bf16.msra.mxu2 %v7414_v62  ;;  %v3833_v27 = vpack.c.bf16 %v3657_v44, %v3641_v16  ;;  %v3834_v31 = vpack.c.bf16 %v3658_v61, %v3642_v2  ;;  %v3519_v49 = vmax.f32 %v3417_v25, 0.0  ;;  %v3520_v37 = vmax.f32 %v3466_v15, 0.0  ;;  %v9166_v25 = vld [vmem:[#allocation54_spill] sm:$0xff]  ;;  %v9167_v2 = vld [vmem:[#allocation57_spill] sm:$0xff] }
 0x385   : > { %v3535_v17 = vmax.f32 %v3419_v50, 0.0  ;;  %v3536_v11 = vmax.f32 %v3468_v35, 0.0  ;;  %v3040_v60 = vadd.f32 %v9161_v12, %v9063_v26  ;;  %v3089_v19 = vadd.f32 %v9162_v51, %v9063_v26  ;;  %v9173_v12 = vld [vmem:[#allocation47_spill] sm:$0xff] }
 0x386   : > { %v3639_v30 = vmax.f32 %v3045_v10, 0.0  ;;  %v3640_v39 = vmax.f32 %v3094_v46, 0.0  ;;  %4003 = vmatpush.bf16.msrb.mxu0 %v3833_v27  ;;  %4016 = vmatpush.bf16.msrb.mxu1 %v3834_v31  ;;  %v7628_v52 = vpack.c.bf16 %v3687_v58, %v3671_v8  ;;  %v7630_v44 = vpack.c.bf16 %v3688_v33, %v3672_v0  ;;  %v9168_v58 = vld [vmem:[#allocation12_spill] sm:$0xff]  ;;  %v9169_v0 = vld [vmem:[#allocation83_spill] sm:$0xff] }
 0x387   : > { %v7623_v9 = vpack.c.bf16 %v3535_v17, %v3519_v49  ;;  %v7625_v62 = vpack.c.bf16 %v3536_v11, %v3520_v37  ;;  %3930 = vmatmul.bf16.vlgmr.msrb.gmra.mxu2 %v7507_v63  ;;  %v3084_v61 = vadd.f32 %v9165_v29, %v8999_v5  ;;  %3943 = vmatmul.bf16.vlgmr.msrb.gmra.mxu3 %v7507_v63  ;;  %v3623_v15 = vmax.f32 %v9166_v25, 0.0  ;;  %v9170_v49 = vld [vmem:[#allocation50_spill] sm:$0xff]  ;;  %v9171_v17 = vld [vmem:[#allocation45_spill] sm:$0xff]  ;;  %v9176_v29 = vld [vmem:[#allocation44_spill] sm:$0xff] }
 0x388   : > { %3952 = vmatpush.bf16.msra.mxu2 %v7457_v59  ;;  %v7636_v10 = vpack.c.bf16 %v3655_v36, %v3639_v30  ;;  %v7638_v46 = vpack.c.bf16 %v3656_v42, %v3640_v39  ;;  %v3624_v16 = vmax.f32 %v7399_v56, 0.0  ;;  %3965 = vmatpush.bf16.msra.mxu3 %v7461_v40  ;;  %v3591_v18 = vmax.f32 %v9167_v2, 0.0  ;;  %v3421_v50 = vpop.f32.mrf.mxu0  ;;  %v3470_v35 = vpop.f32.mrf.mxu1  ;;  %v9175_v30 = vld [vmem:[#allocation40_spill] sm:$0xff] }
 0x389   : > { %9163 = vst [vmem:[#allocation64_spill] sm:$0xff] %v7623_v9  ;;  %v3592_v33 = vmax.f32 %v9168_v58, 0.0  ;;  %v3607_v59 = vmax.f32 %v3040_v60, 0.0  ;;  %v3608_v36 = vmax.f32 %v3089_v19, 0.0  ;;  %v7649_v8 = vpop.f32.mrf.mxu3  ;;  %v3575_v56 = vmax.f32 %v9169_v0, 0.0  ;;  %v9177_v25 = vld [vmem:[#allocation48_spill] sm:$0xff] }
 0x38a   : > { %9164 = vst [vmem:[#allocation65_spill] sm:$0xff] %v7625_v62  ;;  %4004 = vmatpush.bf16.msrb.mxu0 %v7463_v47  ;;  %4017 = vmatpush.bf16.msrb.mxu1 %v7465_v41  ;;  %v7647_v42 = vpop.f32.mrf.mxu2  ;;  %v3576_v27 = vmax.f32 %v3084_v61, 0.0  ;;  %v3032_v37 = vadd.f32 %v9170_v49, %v9002_v34  ;;  %v3030_v60 = vadd.f32 %v9173_v12, %v9005_v48  ;;  %v9179_v49 = vld [vmem:[#allocation20_spill] sm:$0xff]  ;;  %v9180_v12 = vld [vmem:[#allocation10_spill] sm:$0xff] }
 0x38b   : > { %v7654_v40 = vpack.c.bf16 %v3623_v15, %v3607_v59  ;;  %v7656_v31 = vpack.c.bf16 %v3624_v16, %v3608_v36  ;;  %v7660_v41 = vpack.c.bf16 %v3591_v18, %v3575_v56  ;;  %v3471_v19 = vadd.f32 %v3470_v35, %v9005_v48  ;;  %v9200_v9 = vld [vmem:[#allocation80_spill] sm:$0xff] }
 0x38c   : > { %3953 = vmatpush.bf16.msra.mxu2 %v7471_v13  ;;  %3966 = vmatpush.bf16.msra.mxu3 %v7477_v32  ;;  %v7662_v47 = vpack.c.bf16 %v3592_v33, %v3576_v27  ;;  %v3027_v13 = vadd.f32 %v9171_v17, %v6867_v6  ;;  %v9172_v32 = vld [vmem:[#allocation46_spill] sm:$0xff]  ;;  %v3025_v39 = vadd.f32 %v9175_v30, %v6884_v7  ;;  %v3543_v59 = vmax.f32 %v3030_v60, 0.0  ;;  %v9183_v30 = vld [vmem:[#allocation23_spill] sm:$0xff] }
 0x38d   : > { %v3076_v11 = vadd.f32 %v9172_v32, %v6867_v6  ;;  %v3074_v61 = vadd.f32 %v9176_v29, %v6884_v7  ;;  %v3079_v15 = vadd.f32 %v9177_v25, %v9005_v48  ;;  %v3552_v56 = vmax.f32 %v3471_v19, 0.0 }
 0x38e   : > { %4005 = vmatpush.bf16.msrb.mxu0 %v7520_v1  ;;  %4018 = vmatpush.bf16.msrb.mxu1 %v7522_v21  ;;  %v9174_v1 = vld [vmem:[#allocation51_spill] sm:$0xff]  ;;  %v3422_v21 = vadd.f32 %v3421_v50, %v9005_v48  ;;  %v3527_v50 = vmax.f32 %v3027_v13, 0.0 }
 0x38f   : > { %v3081_v51 = vadd.f32 %v9174_v1, %v9002_v34  ;;  %v3528_v35 = vmax.f32 %v3076_v11, 0.0  ;;  %v3512_v17 = vmax.f32 %v3074_v61, 0.0  ;;  %v3544_v32 = vmax.f32 %v3079_v15, 0.0  ;;  %v9185_v61 = vld [vmem:[#allocation33_spill] sm:$0xff] }
 0x390   : > { %3954 = vmatpush.bf16.msra.mxu2 %v7530_v22  ;;  %3967 = vmatpush.bf16.msra.mxu3 %v7537_v3  ;;  %v3423_v16 = vpop.f32.mrf.mxu0  ;;  %v3472_v2 = vpop.f32.mrf.mxu1  ;;  %v3559_v22 = vmax.f32 %v3032_v37, 0.0  ;;  %v3551_v0 = vmax.f32 %v3422_v21, 0.0  ;;  %v3511_v37 = vmax.f32 %v3025_v39, 0.0  ;;  %v7719_v39 = vadd.f32 %v9183_v30, %v6884_v7 }
 0x391   : > { %v3424_v18 = vadd.f32 %v3423_v16, %v9002_v34  ;;  %v3473_v3 = vadd.f32 %v3472_v2, %v9002_v34  ;;  %v7690_v33 = vpop.f32.mrf.mxu3  ;;  %v3560_v36 = vmax.f32 %v3081_v51, 0.0  ;;  %v7710_v51 = vpack.c.bf16 %v3528_v35, %v3512_v17  ;;  %v9187_v16 = vld [vmem:[#allocation41_spill] sm:$0xff]  ;;  %v9196_v17 = vld [vmem:[#allocation42_spill] sm:$0xff] }
 0x392   : > { %4006 = vmatpush.bf16.msrb.mxu0 %v7539_v55  ;;  %4019 = vmatpush.bf16.msrb.mxu1 %v7541_v24  ;;  %v7688_v58 = vpop.f32.mrf.mxu2  ;;  %v9178_v24 = vld [vmem:[#allocation73_spill] sm:$0xff]  ;;  %v7708_v1 = vpack.c.bf16 %v3527_v50, %v3511_v37  ;;  %v7728_v25 = vadd.f32 %v9185_v61, %v9005_v48  ;;  %v9191_v50 = vld [vmem:[#allocation27_spill] sm:$0xff] }
 0x393   : > { %v3567_v55 = vmax.f32 %v3424_v18, 0.0  ;;  %v3568_v27 = vmax.f32 %v3473_v3, 0.0  ;;  %v7706_v60 = vpack.c.bf16 %v3560_v36, %v3544_v32  ;;  %v9188_v2 = vld [vmem:[#allocation17_spill] sm:$0xff]  ;;  %v9195_v37 = vld [vmem:[#allocation43_spill] sm:$0xff] }
 0x394   : > { %3955 = vmatpush.bf16.msra.mxu2 %v7547_v28  ;;  %3968 = vmatpush.bf16.msra.mxu3 %v9178_v24  ;;  %v7703_v28 = vpack.c.bf16 %v3559_v22, %v3543_v59  ;;  %v7736_v22 = vadd.f32 %v9188_v2, %v9005_v48  ;;  %v9190_v3 = vld [vmem:[#allocation5_spill] sm:$0xff]  ;;  %v9192_v59 = vld [vmem:[#allocation35_spill] sm:$0xff]  ;;  %v3233_v32 = vadd.f32 %v9196_v17, %v9195_v37 }
 0x395   : > { %v7697_v13 = vpack.c.bf16 %v3567_v55, %v3551_v0  ;;  %v7699_v11 = vpack.c.bf16 %v3568_v27, %v3552_v56  ;;  %v3238_v35 = vadd.f32 %v9191_v50, %v9190_v3  ;;  %v3287_v36 = vadd.f32 %v9192_v59, %v9190_v3  ;;  %v9193_v0 = vld [vmem:[#allocation8_spill] sm:$0xff]  ;;  %v9194_v55 = vld [vmem:[#allocation30_spill] sm:$0xff] }
 0x396   : > { %4007 = vmatpush.bf16.msrb.mxu0 %v7575_v14  ;;  %4020 = vmatpush.bf16.msrb.mxu1 %v7579_v53  ;;  %v7748_v56 = vadd.f32 %v9193_v0, %v9002_v34  ;;  %v7752_v27 = vadd.f32 %v9194_v55, %v8999_v5 }
 0x397   : > { %9181 = vst [vmem:[#allocation3_spill] sm:$0xff] %v7697_v13  ;;  %3956 = vmatmul.bf16.vlgmr.msra.gmra.mxu2 %v7507_v63  ;;  %3969 = vmatmul.bf16.vlgmr.msra.gmra.mxu3 %v7507_v63  ;;  %v3627_v59 = vmax.f32 %v3238_v35, 0.0  ;;  %v3628_v0 = vmax.f32 %v3287_v36, 0.0  ;;  %v9199_v36 = vld [vmem:[#allocation25_spill] sm:$0xff] }
 0x398   : > { %3974 = vmatpush.bf16.msrb.mxu2 %v9179_v49  ;;  %3987 = vmatpush.bf16.msrb.mxu3 %v9180_v12  ;;  %9182 = vst [vmem:[#allocation82_spill] sm:$0xff] %v7699_v11  ;;  %v3426_v14 = vpop.f32.mrf.mxu0  ;;  %v3475_v21 = vpop.f32.mrf.mxu1  ;;  %v9197_v12 = vld [vmem:[#allocation31_spill] sm:$0xff] }
 0x399   : > { %4008 = vmatmul.bf16.vlgmr.msrb.gmra.mxu0 %v7507_v63  ;;  %4021 = vmatmul.bf16.vlgmr.msrb.gmra.mxu1 %v7507_v63  ;;  %v3377_v19 = vpop.f32.mrf.mxu3  ;;  %v3427_v24 = vadd.f32 %v3426_v14, %v8999_v5  ;;  %v3476_v49 = vadd.f32 %v3475_v21, %v8999_v5  ;;  %v3282_v30 = vadd.f32 %v9197_v12, %v9195_v37 }
 0x39a   : > { %v3328_v53 = vpop.f32.mrf.mxu2  ;;  %v3378_v61 = vadd.f32 %v3377_v19, %v8999_v5 }
 0x39b   : > { %v3583_v17 = vmax.f32 %v3427_v24, 0.0  ;;  %v3584_v19 = vmax.f32 %v3476_v49, 0.0 }
 0x39c   : > { %3975 = vmatpush.bf16.msrb.mxu2 %v7585_v23  ;;  %3988 = vmatpush.bf16.msrb.mxu3 %v7591_v20  ;;  %v9184_v23 = vld [vmem:[#allocation19_spill] sm:$0xff]  ;;  %v9186_v20 = vld [vmem:[#allocation29_spill] sm:$0xff] }
 0x39d   : > { %v7724_v29 = vadd.f32 %v9184_v23, %v6884_v7  ;;  %v3236_v15 = vadd.f32 %v9186_v20, %v9063_v26  ;;  %v3329_v23 = vadd.f32 %v3328_v53, %v8999_v5 }
 0x39f   : > { %v3611_v2 = vmax.f32 %v3236_v15, 0.0  ;;  %v3582_v15 = vmax.f32 %v3378_v61, 0.0  ;;  %v3595_v61 = vmax.f32 %v3233_v32, 0.0  ;;  %v3515_v32 = vmax.f32 %v7719_v39, 0.0 }
 0x3a0   : > { %3976 = vmatpush.bf16.msrb.mxu2 %v7628_v52  ;;  %3989 = vmatpush.bf16.msrb.mxu3 %v7630_v44  ;;  %v3285_v52 = vadd.f32 %v9187_v16, %v9063_v26  ;;  %v9189_v44 = vld [vmem:[#allocation18_spill] sm:$0xff]  ;;  %v3428_v20 = vpop.f32.mrf.mxu0  ;;  %v3477_v16 = vpop.f32.mrf.mxu1 }
 0x3a1   : > { %v7740_v18 = vadd.f32 %v9189_v44, %v9002_v34  ;;  %v3429_v21 = vadd.f32 %v3428_v20, %v9195_v37  ;;  %v3379_v50 = vpop.f32.mrf.mxu3 }
 0x3a2   : > { %v3612_v14 = vmax.f32 %v3285_v52, 0.0  ;;  %v3330_v44 = vpop.f32.mrf.mxu2  ;;  %v3380_v53 = vadd.f32 %v3379_v50, %v9195_v37  ;;  %v3564_v50 = vmax.f32 %v7748_v56, 0.0  ;;  %v3547_v56 = vmax.f32 %v7728_v25, 0.0 }
 0x3a3   : > { %v3331_v55 = vadd.f32 %v3330_v44, %v9195_v37  ;;  %v3599_v12 = vmax.f32 %v3429_v21, 0.0  ;;  %v3258_v44 = vadd.f32 %v9200_v9, %v9199_v36  ;;  %v9205_v21 = vld [vmem:[#allocation81_spill] sm:$0xff] }
 0x3a4   : > { %3977 = vmatpush.bf16.msrb.mxu2 %v7636_v10  ;;  %3990 = vmatpush.bf16.msrb.mxu3 %v7638_v46  ;;  %v3478_v10 = vadd.f32 %v3477_v16, %v9195_v37  ;;  %v3581_v46 = vmax.f32 %v3329_v23, 0.0  ;;  %v3598_v20 = vmax.f32 %v3380_v53, 0.0  ;;  %v9198_v16 = vld [vmem:[#allocation34_spill] sm:$0xff]  ;;  %v7784_v23 = vpack.c.bf16 %v3628_v0, %v3612_v14  ;;  %v9206_v9 = vld [vmem:[#allocation21_spill] sm:$0xff]  ;;  %v9209_v53 = vld [vmem:[#allocation72_spill] sm:$0xff] }
 0x3a5   : > { %v3597_v52 = vmax.f32 %v3331_v55, 0.0  ;;  %v3280_v35 = vadd.f32 %v9198_v16, %v8999_v5  ;;  %v7774_v11 = vpack.c.bf16 %v3599_v12, %v3583_v17  ;;  %v3307_v5 = vadd.f32 %v9205_v21, %v9199_v36  ;;  %v9207_v55 = vld [vmem:[#allocation16_spill] sm:$0xff] }
 0x3a6   : > { %v3600_v62 = vmax.f32 %v3478_v10, 0.0  ;;  %v7780_v37 = vpack.c.bf16 %v3598_v20, %v3582_v15  ;;  %v7791_v10 = vadd.f32 %v9206_v9, %v6867_v6  ;;  %v3305_v17 = vadd.f32 %v9209_v53, %v9207_v55  ;;  %v9218_v53 = vld [vmem:[#allocation84_spill] sm:$0xff] }
 0x3a7   : > { %9201 = vst [vmem:[#allocation15_spill] sm:$0xff] %v7774_v11  ;;  %v7778_v49 = vpack.c.bf16 %v3597_v52, %v3581_v46  ;;  %v3548_v46 = vmax.f32 %v7736_v22, 0.0  ;;  %v3755_v15 = vmax.f32 %v3258_v44, 0.0  ;;  %v9210_v52 = vld [vmem:[#allocation32_spill] sm:$0xff]  ;;  %v3756_v20 = vmax.f32 %v3307_v5, 0.0  ;;  %v9211_v22 = vld [vmem:[#allocation38_spill] sm:$0xff] }
 0x3a8   : > { %3978 = vmatpush.bf16.msrb.mxu2 %v7654_v40  ;;  %3991 = vmatpush.bf16.msrb.mxu3 %v7656_v31  ;;  %v7776_v24 = vpack.c.bf16 %v3600_v62, %v3584_v19  ;;  %9204 = vst [vmem:[#allocation70_spill] sm:$0xff] %v7780_v37  ;;  %v7782_v40 = vpack.c.bf16 %v3627_v59, %v3611_v2  ;;  %v3596_v31 = vmax.f32 %v3282_v30, 0.0  ;;  %v3563_v62 = vmax.f32 %v7740_v18, 0.0  ;;  %v9208_v2 = vld [vmem:[#allocation69_spill] sm:$0xff]  ;;  %v3431_v14 = vpop.f32.mrf.mxu0  ;;  %v3480_v0 = vpop.f32.mrf.mxu1  ;;  %v9212_v5 = vld [vmem:[#allocation88_spill] sm:$0xff] }
 0x3a9   : > { %9203 = vst [vmem:[#allocation63_spill] sm:$0xff] %v7778_v49  ;;  %v3256_v59 = vadd.f32 %v9208_v2, %v9207_v55  ;;  %v3579_v30 = vmax.f32 %v7752_v27, 0.0  ;;  %v3382_v12 = vpop.f32.mrf.mxu3  ;;  %v3516_v18 = vmax.f32 %v7724_v29, 0.0  ;;  %v7816_v25 = vpack.c.bf16 %v3564_v50, %v3548_v46  ;;  %v9216_v50 = vld [vmem:[#allocation93_spill] sm:$0xff] }
 0x3aa   : > { %9202 = vst [vmem:[#allocation28_spill] sm:$0xff] %v7776_v24  ;;  %v3333_v19 = vpop.f32.mrf.mxu2  ;;  %v7814_v29 = vpack.c.bf16 %v3563_v62, %v3547_v56  ;;  %v7820_v44 = vadd.f32 %v9211_v22, %v9143_v45  ;;  %v3740_v9 = vmax.f32 %v3305_v17, 0.0  ;;  %v3481_v22 = vadd.f32 %v3480_v0, %v9063_v26 }
 0x3ab   : > { %v7808_v27 = vpack.c.bf16 %v3595_v61, %v3579_v30  ;;  %v3739_v21 = vmax.f32 %v3256_v59, 0.0  ;;  %v9213_v61 = vld [vmem:[#allocation89_spill] sm:$0xff]  ;;  %v3297_v59 = vadd.f32 %v9216_v50, %v9113_v57 }
 0x3ac   : > { %3979 = vmatpush.bf16.msrb.mxu2 %v7660_v41  ;;  %3992 = vmatpush.bf16.msrb.mxu3 %v7662_v47  ;;  %v3580_v41 = vmax.f32 %v3280_v35, 0.0  ;;  %v3272_v47 = vadd.f32 %v9210_v52, %v6867_v6  ;;  %v3531_v35 = vmax.f32 %v7791_v10, 0.0  ;;  %v9214_v10 = vld [vmem:[#allocation39_spill] sm:$0xff]  ;;  %v3884_v46 = vpack.c.bf16 %v3756_v20, %v3740_v9 }
 0x3ad   : > { %v3290_v2 = vadd.f32 %v9214_v10, %v9143_v45  ;;  %v3883_v30 = vpack.c.bf16 %v3755_v15, %v3739_v21  ;;  %v3432_v52 = vadd.f32 %v3431_v14, %v9063_v26  ;;  %v3334_v10 = vadd.f32 %v3333_v19, %v9063_v26 }
 0x3ae   : > { %v7810_v16 = vpack.c.bf16 %v3596_v31, %v3580_v41  ;;  %v3295_v31 = vadd.f32 %v9213_v61, %v9083_v43  ;;  %v9217_v41 = vld [vmem:[#allocation9_spill] sm:$0xff]  ;;  %v3532_v17 = vmax.f32 %v3272_v47, 0.0 }
 0x3af   : > { %v3243_v56 = vadd.f32 %v9218_v53, %v9217_v41  ;;  %v3692_v53 = vmax.f32 %v3297_v59, 0.0 }
 0x3b0   : > { %3980 = vmatpush.bf16.msrb.mxu2 %v7703_v28  ;;  %3993 = vmatpush.bf16.msrb.mxu3 %v7706_v60  ;;  %v3246_v28 = vadd.f32 %v9212_v5, %v9083_v43  ;;  %v9215_v60 = vld [vmem:[#allocation92_spill] sm:$0xff]  ;;  %v9219_v5 = vld [vmem:[#allocation85_spill] sm:$0xff]  ;;  %v3433_v50 = vpop.f32.mrf.mxu0  ;;  %v3482_v15 = vpop.f32.mrf.mxu1  ;;  %v3676_v21 = vmax.f32 %v3295_v31, 0.0  ;;  %v3613_v31 = vmax.f32 %v3334_v10, 0.0 }
 0x3b1   : > { %v3248_v62 = vadd.f32 %v9215_v60, %v9113_v57  ;;  %v3292_v61 = vadd.f32 %v9219_v5, %v9217_v41  ;;  %v3383_v60 = vadd.f32 %v3382_v12, %v9063_v26  ;;  %v3434_v14 = vadd.f32 %v3433_v50, %v9190_v3  ;;  %v3384_v47 = vpop.f32.mrf.mxu3 }
 0x3b2   : > { %v3675_v20 = vmax.f32 %v3246_v28, 0.0  ;;  %v3483_v0 = vadd.f32 %v3482_v15, %v9190_v3  ;;  %v3385_v26 = vadd.f32 %v3384_v47, %v9190_v3  ;;  %v3615_v12 = vmax.f32 %v3432_v52, 0.0  ;;  %v9220_v15 = vld [vmem:[#allocation55_spill] sm:$0xff] }
 0x3b3   : > { %v3691_v9 = vmax.f32 %v3248_v62, 0.0  ;;  %v3614_v5 = vmax.f32 %v3383_v60, 0.0  ;;  %v3772_v52 = vpack.c.bf16 %v3532_v17, %v3516_v18  ;;  %v3660_v60 = vmax.f32 %v3292_v61, 0.0 }
 0x3b4   : > { %3981 = vmatpush.bf16.msrb.mxu2 %v7708_v1  ;;  %3994 = vmatpush.bf16.msrb.mxu3 %v7710_v51  ;;  %v3335_v1 = vpop.f32.mrf.mxu2  ;;  %v3616_v51 = vmax.f32 %v3481_v22, 0.0  ;;  %v3632_v28 = vmax.f32 %v3483_v0, 0.0  ;;  %v3659_v22 = vmax.f32 %v3243_v56, 0.0  ;;  %v3852_v47 = vpack.c.bf16 %v3692_v53, %v3676_v21 }
 0x3b5   : > { %v3336_v19 = vadd.f32 %v3335_v1, %v9190_v3  ;;  %v9221_v1 = vld [vmem:[#allocation68_spill] sm:$0xff]  ;;  %v3771_v3 = vpack.c.bf16 %v3531_v35, %v3515_v32  ;;  %v3851_v10 = vpack.c.bf16 %v3691_v9, %v3675_v20 }
 0x3b6   : > { %v7851_v59 = vpack.c.bf16 %v3632_v28, %v3616_v51  ;;  %v3644_v51 = vmax.f32 %v3290_v2, 0.0 }
 0x3b7   : > { %3982 = vmatmul.bf16.vlgmr.msrb.gmra.mxu2 %v7507_v63  ;;  %3995 = vmatmul.bf16.vlgmr.msrb.gmra.mxu3 %v7507_v63  ;;  %v3629_v50 = vmax.f32 %v3336_v19, 0.0  ;;  %v3643_v19 = vmax.f32 %v7820_v44, 0.0 }
 0x3b8   : > { %4026 = vmatpush.bf16.msra.mxu2 %v3883_v30  ;;  %4039 = vmatpush.bf16.msra.mxu3 %v3884_v46  ;;  %v3631_v30 = vmax.f32 %v3434_v14, 0.0  ;;  %v3630_v46 = vmax.f32 %v3385_v26, 0.0  ;;  %v3436_v26 = vpop.f32.mrf.mxu0  ;;  %v3836_v32 = vpack.c.bf16 %v3660_v60, %v3644_v51 }
 0x3b9   : > { %v7856_v14 = vpack.c.bf16 %v3629_v50, %v3613_v31  ;;  %v3387_v28 = vpop.f32.mrf.mxu3  ;;  %v3835_v39 = vpack.c.bf16 %v3659_v22, %v3643_v19  ;;  %v7875_v22 = vadd.f32 %v3436_v26, %v9143_v45 }
 0x3ba   : > { %v7849_v62 = vpack.c.bf16 %v3631_v30, %v3615_v12  ;;  %v7858_v0 = vpack.c.bf16 %v3630_v46, %v3614_v5  ;;  %v3485_v12 = vpop.f32.mrf.mxu1  ;;  %v7884_v60 = vadd.f32 %v3387_v28, %v9143_v45 }
 0x3bc   : > { %4027 = vmatpush.bf16.msra.mxu2 %v9220_v15  ;;  %4040 = vmatpush.bf16.msra.mxu3 %v9221_v1  ;;  %v3338_v30 = vpop.f32.mrf.mxu2 }
 0x3c0   : > { %4028 = vmatpush.bf16.msra.mxu2 %v3851_v10  ;;  %4041 = vmatpush.bf16.msra.mxu3 %v3852_v47  ;;  %v3438_v18 = vpop.f32.mrf.mxu0  ;;  %v7881_v10 = vadd.f32 %v3338_v30, %v9143_v45 }
 0x3c1   : > { %v3389_v17 = vpop.f32.mrf.mxu3  ;;  %v7872_v1 = vadd.f32 %v3438_v18, %v9217_v41  ;;  %v9222_v18 = vld [vmem:[#allocation14_spill] sm:$0xff] }
 0x3c2   : > { %v3487_v35 = vpop.f32.mrf.mxu1  ;;  %v7893_v51 = vadd.f32 %v3389_v17, %v9217_v41 }
 0x3c3   : > { %v7887_v47 = vadd.f32 %v3487_v35, %v9217_v41 }
 0x3c4   : > { %4029 = vmatpush.bf16.msra.mxu2 %v3835_v39  ;;  %4042 = vmatpush.bf16.msra.mxu3 %v3836_v32  ;;  %v3340_v56 = vpop.f32.mrf.mxu2 }
 0x3c5   : > { %v7890_v19 = vadd.f32 %v3340_v56, %v9217_v41 }
 0x3c8   : > { %4030 = vmatpush.bf16.msra.mxu2 %v7782_v40  ;;  %4043 = vmatpush.bf16.msra.mxu3 %v7784_v23  ;;  %v3441_v44 = vpop.f32.mrf.mxu0 }
 0x3c9   : > { %v7867_v20 = vpop.f32.mrf.mxu3 }
 0x3ca   : > { %v3490_v2 = vpop.f32.mrf.mxu1 }
 0x3cb   : > { %v7900_v30 = vadd.f32 %v3490_v2, %v9083_v43 }
 0x3cc   : > { %4031 = vmatpush.bf16.msra.mxu2 %v7808_v27  ;;  %4044 = vmatpush.bf16.msra.mxu3 %v7810_v16  ;;  %v3343_v61 = vpop.f32.mrf.mxu2 }
 0x3d0   : > { %4032 = vmatpush.bf16.msra.mxu2 %v7814_v29  ;;  %4045 = vmatpush.bf16.msra.mxu3 %v7816_v25  ;;  %v3443_v40 = vpop.f32.mrf.mxu0 }
 0x3d1   : > { %v3394_v21 = vpop.f32.mrf.mxu3  ;;  %v7906_v28 = vadd.f32 %v3443_v40, %v9113_v57 }
 0x3d2   : > { %v3492_v23 = vpop.f32.mrf.mxu1  ;;  %v7915_v32 = vadd.f32 %v3394_v21, %v9113_v57 }
 0x3d3   : > { %v7909_v39 = vadd.f32 %v3492_v23, %v9113_v57 }
 0x3d4   : > { %4033 = vmatpush.bf16.msra.mxu2 %v3771_v3  ;;  %4046 = vmatpush.bf16.msra.mxu3 %v3772_v52  ;;  %v3345_v27 = vpop.f32.mrf.mxu2 }
 0x3d5   : > { %v7912_v41 = vadd.f32 %v3345_v27, %v9113_v57  ;;  %v9223_v57 = vld [vmem:[#allocation24_spill] sm:$0xff] }
 0x3d7   : > { %4034 = vmatmul.bf16.vlgmr.msra.gmra.mxu2 %v7507_v63  ;;  %4047 = vmatmul.bf16.vlgmr.msra.gmra.mxu3 %v7507_v63  ;;  %v7878_v63 = vadd.f32 %v3485_v12, %v9143_v45  ;;  %v7897_v12 = vadd.f32 %v3441_v44, %v9083_v43  ;;  %v7903_v45 = vadd.f32 %v3343_v61, %v9083_v43 }
 0x3d8   : > { %v3446_v16 = vpop.f32.mrf.mxu0 }
 0x3d9   : > { %v3397_v31 = vpop.f32.mrf.mxu3  ;;  %v3447_v35 = vadd.f32 %v3446_v16, %v9222_v18 }
 0x3da   : > { %v3495_v9 = vpop.f32.mrf.mxu1  ;;  %v3398_v61 = vadd.f32 %v3397_v31, %v9222_v18 }
 0x3db   : > { %v3496_v56 = vadd.f32 %v3495_v9, %v9222_v18 }
 0x3dc   : > { %v3348_v53 = vpop.f32.mrf.mxu2 }
 0x3dd   : > { %v3349_v2 = vadd.f32 %v3348_v53, %v9222_v18 }
 0x3e0   : > { %v3448_v29 = vpop.f32.mrf.mxu0 }
 0x3e1   : > { %v3399_v50 = vpop.f32.mrf.mxu3  ;;  %v3449_v21 = vadd.f32 %v3448_v29, %v9223_v57 }
 0x3e2   : > { %v3497_v5 = vpop.f32.mrf.mxu1  ;;  %v3400_v31 = vadd.f32 %v3399_v50, %v9223_v57 }
 0x3e3   : > { %v3498_v16 = vadd.f32 %v3497_v5, %v9223_v57  ;;  %v3727_v11 = vmax.f32 %v3449_v21, 0.0  ;;  %v9224_v21 = vld [vmem:[#allocation4_spill] sm:$0xff] }
 0x3e4   : > { %v3350_v25 = vpop.f32.mrf.mxu2 }
 0x3e5   : > { %v3351_v53 = vadd.f32 %v3350_v25, %v9223_v57  ;;  %v3726_v25 = vmax.f32 %v3400_v31, 0.0  ;;  %v3709_v57 = vmax.f32 %v3349_v2, 0.0  ;;  %v3679_v2 = vmax.f32 %v7897_v12, 0.0 }
 0x3e7   : > { %v3725_v38 = vmax.f32 %v3351_v53, 0.0 }
 0x3e8   : > { %v3451_v46 = vpop.f32.mrf.mxu0 }
 0x3e9   : > { %v3402_v52 = vpop.f32.mrf.mxu3  ;;  %v3452_v17 = vadd.f32 %v3451_v46, %v9207_v55 }
 0x3ea   : > { %v3500_v15 = vpop.f32.mrf.mxu1  ;;  %v3403_v23 = vadd.f32 %v3402_v52, %v9207_v55 }
 0x3eb   : > { %v3501_v44 = vadd.f32 %v3500_v15, %v9207_v55  ;;  %v3743_v52 = vmax.f32 %v3452_v17, 0.0  ;;  %v3711_v17 = vmax.f32 %v3447_v35, 0.0 }
 0x3ec   : > { %v3353_v3 = vpop.f32.mrf.mxu2  ;;  %v3742_v5 = vmax.f32 %v3403_v23, 0.0  ;;  %v3696_v23 = vmax.f32 %v7909_v39, 0.0 }
 0x3ed   : > { %v3354_v40 = vadd.f32 %v3353_v3, %v9207_v55  ;;  %v3744_v18 = vmax.f32 %v3501_v44, 0.0  ;;  %v3712_v44 = vmax.f32 %v3496_v56, 0.0 }
 0x3ef   : > { %v3741_v49 = vmax.f32 %v3354_v40, 0.0  ;;  %v7936_v40 = vpop.permute.xlu2 %3893 }
 0x3f0   : > { %v3453_v27 = vpop.f32.mrf.mxu0 }
 0x3f1   : > { %v3454_v9 = vadd.f32 %v3453_v27, %v9199_v36  ;;  %v3404_v15 = vpop.f32.mrf.mxu3 }
 0x3f2   : > { %v3502_v26 = vpop.f32.mrf.mxu1  ;;  %v3405_v55 = vadd.f32 %v3404_v15, %v9199_v36 }
 0x3f3   : > { %v3503_v46 = vadd.f32 %v3502_v26, %v9199_v36  ;;  %v3759_v37 = vmax.f32 %v3454_v9, 0.0  ;;  %v3728_v26 = vmax.f32 %v3498_v16, 0.0 }
 0x3f4   : > { %v3355_v13 = vpop.f32.mrf.mxu2  ;;  %v3758_v27 = vmax.f32 %v3405_v55, 0.0  ;;  %v3648_v55 = vmax.f32 %v7878_v63, 0.0 }
 0x3f5   : > { %v3356_v3 = vadd.f32 %v3355_v13, %v9199_v36  ;;  %v3760_v29 = vmax.f32 %v3503_v46, 0.0  ;;  %v3887_v4 = vpack.c.bf16 %v3759_v37, %v3743_v52  ;;  %v3393_v13 = vadd.f32 %v7867_v20, %v9083_v43 }
 0x3f6   : > { %v3886_v50 = vpack.c.bf16 %v3758_v27, %v3742_v5  ;;  %v3695_v36 = vmax.f32 %v7906_v28, 0.0  ;;  %v3710_v37 = vmax.f32 %v3398_v61, 0.0  ;;  %v3694_v43 = vmax.f32 %v7915_v32, 0.0 }
 0x3f7   : > { %v3757_v24 = vmax.f32 %v3356_v3, 0.0  ;;  %v3888_v7 = vpack.c.bf16 %v3760_v29, %v3744_v18  ;;  %4078 = vmatpush.bf16.msrb.mxu2 %v3887_v4  ;;  %v3871_v20 = vpack.c.bf16 %v3727_v11, %v3711_v17  ;;  %v3872_v28 = vpack.c.bf16 %v3728_v26, %v3712_v44  ;;  %v9226_v17 = vld [vmem:[#allocation77_spill] sm:$0xff]  ;;  %v9227_v44 = vld [vmem:[#allocation62_spill] sm:$0xff] }
 0x3f8   : > { %4065 = vmatpush.bf16.msra.mxu1 %v3886_v50  ;;  %v3869_v4 = vpack.c.bf16 %v3725_v38, %v3709_v57  ;;  %v3677_v32 = vmax.f32 %v7903_v45, 0.0  ;;  %v3678_v11 = vmax.f32 %v3393_v13, 0.0  ;;  %v3661_v46 = vmax.f32 %v7890_v19, 0.0 }
 0x3f9   : > { %v3885_v54 = vpack.c.bf16 %v3757_v24, %v3741_v49  ;;  %4091 = vmatpush.bf16.msrb.mxu3 %v3888_v7  ;;  %v4424_v24 = vmul.f32 0.0625, %v9224_v21  ;;  %v3693_v49 = vmax.f32 %v7912_v41, 0.0  ;;  %v3918_v56 = vpop.f32.mrf.mxu3  ;;  %v3870_v7 = vpack.c.bf16 %v3726_v25, %v3710_v37  ;;  %v9231_v21 = vld [vmem:[#allocation76_spill] sm:$0xff] }
 0x3fa   : > { %v7946_v39 = vadd.f32 %v3918_v56, %v7936_v40  ;;  %v3680_v41 = vmax.f32 %v7900_v30, 0.0  ;;  %v3855_v12 = vpack.c.bf16 %v3695_v36, %v3679_v2  ;;  %v3854_v53 = vpack.c.bf16 %v3694_v43, %v3678_v11  ;;  %v9233_v43 = vld [vmem:[#allocation28_spill] sm:$0xff] }
 0x3fb   : > { %4052 = vmatpush.bf16.msra.mxu0 %v3885_v54  ;;  %v3664_v54 = vmax.f32 %v7887_v47, 0.0  ;;  %4079 = vmatpush.bf16.msrb.mxu2 %v3871_v20  ;;  %v7953_v61 = vrot.slane %v4424_v24, 6  ;;  %v3662_v47 = vmax.f32 %v7893_v51, 0.0  ;;  %v3853_v30 = vpack.c.bf16 %v3693_v49, %v3677_v32  ;;  %v9232_v49 = vld [vmem:[#allocation15_spill] sm:$0xff] }
 0x3fc   : > { %v3905_v35 = vpop.f32.mrf.mxu2  ;;  %v4409_v9 = vmax.f32 %v7946_v39, 0.0  ;;  %4066 = vmatpush.bf16.msra.mxu1 %v3870_v7  ;;  %v3856_v15 = vpack.c.bf16 %v3696_v23, %v3680_v41  ;;  %v3647_v3 = vmax.f32 %v7875_v22, 0.0  ;;  %v3645_v52 = vmax.f32 %v7881_v10, 0.0  ;;  %v9235_v7 = vld [vmem:[#allocation70_spill] sm:$0xff] }
 0x3fd   : > { %v7943_v16 = vadd.f32 %v3905_v35, %v7936_v40  ;;  %4092 = vmatpush.bf16.msrb.mxu3 %v3872_v28  ;;  %v3646_v18 = vmax.f32 %v7884_v60, 0.0  ;;  %v9225_v29 = vmax.f32 %v7872_v1, 0.0  ;;  %v3840_v27 = vpack.c.bf16 %v3664_v54, %v3648_v55 }
 0x3fe   : > { %v4426_v31 = vsub.f32 0.0, %v4409_v9  ;;  %v3837_v25 = vpack.c.bf16 %v3661_v46, %v3645_v52  ;;  %v3326_v10 = vadd.f32 %v7688_v58, %v9002_v34  ;;  %v3375_v1 = vadd.f32 %v7690_v33, %v9002_v34 }
 0x3ff   : > { %v4408_v38 = vmax.f32 %v7943_v16, 0.0  ;;  %4053 = vmatpush.bf16.msra.mxu0 %v3869_v4  ;;  %4080 = vmatpush.bf16.msrb.mxu2 %v3855_v12  ;;  %v3839_v5 = vpack.c.bf16 %v9225_v29, %v3647_v3  ;;  %v3838_v63 = vpack.c.bf16 %v3662_v47, %v3646_v18  ;;  %v3324_v60 = vadd.f32 %v7647_v42, %v9005_v48  ;;  %v9234_v4 = vld [vmem:[#allocation63_spill] sm:$0xff]  ;;  %v9237_v12 = vld [vmem:[#allocation82_spill] sm:$0xff]  ;;  %v9239_v29 = vld [vmem:[#allocation64_spill] sm:$0xff] }
 0x400   : > { %v4448_v51 = vmul.f32 %v7953_v61, %v4426_v31  ;;  %4067 = vmatpush.bf16.msra.mxu1 %v3854_v53  ;;  %v3373_v36 = vadd.f32 %v7649_v8, %v9005_v48  ;;  %v3321_v58 = vadd.f32 %v9226_v17, %v6867_v6  ;;  %v3370_v34 = vadd.f32 %v9227_v44, %v6867_v6  ;;  %v9236_v47 = vld [vmem:[#allocation3_spill] sm:$0xff] }
 0x401   : > { %v4425_v45 = vsub.f32 0.0, %v4408_v38  ;;  %4093 = vmatpush.bf16.msrb.mxu3 %v3856_v15  ;;  %v3920_v22 = vpop.f32.mrf.mxu3  ;;  %v3566_v57 = vmax.f32 %v3375_v1, 0.0  ;;  %v3549_v6 = vmax.f32 %v3324_v60, 0.0 }
 0x402   : > { %v4465_v13 = vmul.f32 1.442695, %v4448_v51  ;;  %v3550_v20 = vmax.f32 %v3373_v36, 0.0  ;;  %v3533_v54 = vmax.f32 %v3321_v58, 0.0  ;;  %v3534_v2 = vmax.f32 %v3370_v34, 0.0 }
 0x403   : > { %v4447_v19 = vmul.f32 %v7953_v61, %v4425_v45  ;;  %4054 = vmatpush.bf16.msra.mxu0 %v3853_v30  ;;  %4081 = vmatpush.bf16.msrb.mxu2 %v3839_v5  ;;  %v9240_v5 = vld [vmem:[#allocation65_spill] sm:$0xff] }
 0x404   : > { %v3907_v26 = vpop.f32.mrf.mxu2  ;;  %4068 = vmatpush.bf16.msra.mxu1 %v3838_v63  ;;  %v3790_v9 = vpack.c.bf16 %v3566_v57, %v3550_v20 }
 0x405   : > { %v4463_v50 = vmul.f32 1.442695, %v4447_v19  ;;  %4094 = vmatpush.bf16.msrb.mxu3 %v3840_v27 }
 0x407   : > { %5005 = vpow2.f32 %v4463_v50  ;;  %4055 = vmatpush.bf16.msra.mxu0 %v3837_v25  ;;  %4082 = vmatpush.bf16.msrb.mxu2 %v7849_v62  ;;  %v3565_v62 = vmax.f32 %v3326_v10, 0.0  ;;  %v5117_v25 = vld [vmem:[%s8694_s6] sm:$0xf] }
 0x408   : > { %5007 = vpow2.f32 %v4465_v13  ;;  %4069 = vmatpush.bf16.msra.mxu1 %v7858_v0  ;;  %v9230_v0 = vld [vmem:[#allocation26_spill] sm:$0xff] }
 0x409   : > { %4095 = vmatpush.bf16.msrb.mxu3 %v7851_v59  ;;  %v3789_v38 = vpack.c.bf16 %v3565_v62, %v3549_v6 }
 0x40a   : > { %v3944_v23 = vpop.f32.mrf.mxu3 }
 0x40b   : > { %4056 = vmatpush.bf16.msra.mxu0 %v7856_v14  ;;  %v7988_v48 = vadd.f32 %v3944_v23, %v7936_v40  ;;  %v9229_v14 = vld [vmem:[#allocation49_spill] sm:$0xff]  ;;  %4083 = vmatpush.bf16.msrb.mxu2 %v9232_v49 }
 0x40c   : > { %v3931_v33 = vpop.f32.mrf.mxu2  ;;  %v3319_v37 = vadd.f32 %v9230_v0, %v9229_v14  ;;  %v3368_v24 = vadd.f32 %v9231_v21, %v9229_v14  ;;  %4070 = vmatpush.bf16.msra.mxu1 %v9235_v7 }
 0x40d   : > { %v7982_v42 = vpop.eup %5005  ;;  %v7985_v59 = vadd.f32 %v3931_v33, %v7936_v40  ;;  %4096 = vmatpush.bf16.msrb.mxu3 %v9233_v43  ;;  %v4411_v41 = vmax.f32 %v7988_v48, 0.0 }
 0x40e   : > { %9228 = vst [vmem:[#allocation71_spill] sm:$0xff] %v7982_v42  ;;  %v5008_v8 = vpop.eup %5007  ;;  %v4526_v32 = vrot.slane %v7982_v42, 3  ;;  %v3517_v15 = vmax.f32 %v3319_v37, 0.0  ;;  %v3518_v30 = vmax.f32 %v3368_v24, 0.0 }
 0x40f   : > { %v4496_v28 = vsub.f32 1.0, %v5008_v8  ;;  %v4511_v35 = vmul.f32 %v5008_v8, %v7982_v42  ;;  %v4410_v56 = vmax.f32 %v7985_v59, 0.0  ;;  %4057 = vmatpush.bf16.msra.mxu0 %v9234_v4  ;;  %4084 = vmatpush.bf16.msrb.mxu2 %v9236_v47  ;;  %v4428_v45 = vsub.f32 0.0, %v4411_v41 }
 0x410   : > { %4071 = vmatpush.bf16.msra.mxu1 %v3790_v9  ;;  %v3773_v18 = vpack.c.bf16 %v3533_v54, %v3517_v15  ;;  %v3774_v19 = vpack.c.bf16 %v3534_v2, %v3518_v30 }
 0x411   : > { %v4587_v11 = vrot.slane %v4496_v28, 3  ;;  %v4427_v46 = vsub.f32 0.0, %v4410_v56  ;;  %4097 = vmatpush.bf16.msrb.mxu3 %v9237_v12  ;;  %v4450_v52 = vmul.f32 %v7953_v61, %v4428_v45  ;;  %v4529_v58 = vrot.slane %v4511_v35, 3 }
 0x412   : > { %v3946_v55 = vpop.f32.mrf.mxu3 }
 0x413   : > { %v8004_v53 = vmul.f32 %v4587_v11, %v4526_v32  ;;  %4058 = vmatpush.bf16.msra.mxu0 %v3789_v38  ;;  %v4449_v31 = vmul.f32 %v7953_v61, %v4427_v46  ;;  %4085 = vmatpush.bf16.msrb.mxu2 %v9239_v29  ;;  %v4469_v27 = vmul.f32 1.442695, %v4450_v52 }
 0x414   : > { %v3933_v3 = vpop.f32.mrf.mxu2  ;;  %4072 = vmatpush.bf16.msra.mxu1 %v3774_v19 }
 0x415   : > { %9238 = vst [vmem:[#allocation6_spill] sm:$0xff] %v8004_v53  ;;  %v4467_v51 = vmul.f32 1.442695, %v4449_v31  ;;  %4098 = vmatpush.bf16.msrb.mxu3 %v9240_v5 }
 0x416   : > { %v4009_v26 = vpop.f32.mrf.mxu0  ;;  %v4022_v22 = vpop.f32.mrf.mxu1  ;;  %4086 = vmatmul.bf16.vlgmr.msrb.gmra.mxu2 %v5117_v25 }
 0x417   : > { %4059 = vmatpush.bf16.msra.mxu0 %v3773_v18  ;;  %5009 = vpow2.f32 %v4467_v51  ;;  %4073 = vmatmul.bf16.vlgmr.msra.gmra.mxu1 %v5117_v25  ;;  %v8028_v7 = vadd.f32 %v4009_v26, %v7936_v40  ;;  %v8031_v32 = vadd.f32 %v4022_v22, %v7936_v40 }
 0x418   : > { %5011 = vpow2.f32 %v4469_v27  ;;  %4099 = vmatmul.bf16.vlgmr.msrb.gmra.mxu3 %v5117_v25 }
 0x419   : > { %v4416_v9 = vmax.f32 %v8028_v7, 0.0  ;;  %v4417_v45 = vmax.f32 %v8031_v32, 0.0 }
 0x41a   : > { %4060 = vmatmul.bf16.vlgmr.msra.gmra.mxu0 %v5117_v25  ;;  %v3970_v50 = vpop.f32.mrf.mxu3 }
 0x41b   : > { %v8022_v37 = vadd.f32 %v3970_v50, %v7936_v40  ;;  %v4433_v18 = vsub.f32 0.0, %v4416_v9  ;;  %v4434_v5 = vsub.f32 0.0, %v4417_v45 }
 0x41c   : > { %v3957_v63 = vpop.f32.mrf.mxu2 }
 0x41d   : > { %v8014_v13 = vadd.f32 %v3957_v63, %v7936_v40  ;;  %v5010_v10 = vpop.eup %5009  ;;  %v4413_v43 = vmax.f32 %v8022_v37, 0.0  ;;  %v4455_v22 = vmul.f32 %v7953_v61, %v4433_v18  ;;  %v4921_v18 = vmul.f32 -1.442695, %v7943_v16 }
 0x41e   : > { %v5012_v1 = vpop.eup %5011  ;;  %v4497_v60 = vsub.f32 1.0, %v5010_v10  ;;  %v4512_v36 = vmul.f32 %v5010_v10, %v4511_v35  ;;  %v4011_v17 = vpop.f32.mrf.mxu0  ;;  %v4456_v10 = vmul.f32 %v7953_v61, %v4434_v5  ;;  %v4924_v16 = vmul.f32 -1.442695, %v7988_v48 }
 0x41f   : > { %v4498_v44 = vsub.f32 1.0, %v5012_v1  ;;  %v4024_v34 = vpop.f32.mrf.mxu1  ;;  %v4412_v57 = vmax.f32 %v8014_v13, 0.0  ;;  %v4430_v28 = vsub.f32 0.0, %v4413_v43  ;;  %v4479_v17 = vmul.f32 1.442695, %v4455_v22 }
 0x420   : > { %v4532_v33 = vrot.slane %v4512_v36, 3  ;;  %v4588_v23 = vrot.slane %v4497_v60, 3  ;;  %v4513_v62 = vmul.f32 %v5012_v1, %v4512_v36  ;;  %v4922_v22 = vmul.f32 -1.442695, %v7946_v39 }
 0x421   : > { %v4589_v8 = vrot.slane %v4498_v44, 3  ;;  %v4429_v6 = vsub.f32 0.0, %v4412_v57  ;;  %v4452_v35 = vmul.f32 %v7953_v61, %v4430_v28  ;;  %v4930_v39 = vmul.f32 -1.442695, %v8031_v32 }
 0x422   : > { %v8017_v14 = vmul.f32 %v4588_v23, %v4529_v58  ;;  %v3972_v24 = vpop.f32.mrf.mxu3  ;;  %v4535_v41 = vrot.slane %v4513_v62, 3  ;;  %v4481_v58 = vmul.f32 1.442695, %v4456_v10 }
 0x423   : > { %v8019_v0 = vmul.f32 %v4589_v8, %v4532_v33  ;;  %v4451_v49 = vmul.f32 %v7953_v61, %v4429_v6  ;;  %v4473_v56 = vmul.f32 1.442695, %v4452_v35 }
 0x424   : > { %9241 = vst [vmem:[#allocation90_spill] sm:$0xff] %v8017_v14  ;;  %v3959_v21 = vpop.f32.mrf.mxu2 }
 0x425   : > { %9242 = vst [vmem:[#allocation11_spill] sm:$0xff] %v8019_v0  ;;  %v4471_v20 = vmul.f32 1.442695, %v4451_v49 }
 0x427   : > { %5013 = vpow2.f32 %v4471_v20 }
 0x428   : > { %5015 = vpow2.f32 %v4473_v56 }
 0x42d   : > { %v5014_v4 = vpop.eup %5013 }
 0x42e   : > { %v4499_v54 = vsub.f32 1.0, %v5014_v4  ;;  %v4514_v2 = vmul.f32 %v5014_v4, %v4513_v62  ;;  %v5016_v38 = vpop.eup %5015 }
 0x42f   : > { %v4500_v12 = vsub.f32 1.0, %v5016_v38 }
 0x430   : > { %v4590_v11 = vrot.slane %v4499_v54, 3  ;;  %v4538_v47 = vrot.slane %v4514_v2, 3  ;;  %v4515_v15 = vmul.f32 %v5016_v38, %v4514_v2 }
 0x431   : > { %v4591_v55 = vrot.slane %v4500_v12, 3 }
 0x432   : > { %v8034_v46 = vmul.f32 %v4590_v11, %v4535_v41  ;;  %v4541_v62 = vrot.slane %v4515_v15, 3 }
 0x433   : > { %v8044_v51 = vmul.f32 %v4591_v55, %v4538_v47 }
 0x43a   : > { %v3983_v30 = vpop.f32.mrf.mxu2  ;;  %v3996_v3 = vpop.f32.mrf.mxu3 }
 0x43b   : > { %v8038_v31 = vadd.f32 %v3983_v30, %v7936_v40  ;;  %v8041_v52 = vadd.f32 %v3996_v3, %v7936_v40 }
 0x43d   : > { %v4414_v19 = vmax.f32 %v8038_v31, 0.0  ;;  %v4415_v29 = vmax.f32 %v8041_v52, 0.0 }
 0x43f   : > { %v4431_v27 = vsub.f32 0.0, %v4414_v19  ;;  %v4432_v26 = vsub.f32 0.0, %v4415_v29 }
 0x441   : > { %v4453_v25 = vmul.f32 %v7953_v61, %v4431_v27  ;;  %v4454_v63 = vmul.f32 %v7953_v61, %v4432_v26 }
 0x442   : > { %v3985_v50 = vpop.f32.mrf.mxu2  ;;  %v3998_v60 = vpop.f32.mrf.mxu3 }
 0x443   : > { %v4475_v1 = vmul.f32 1.442695, %v4453_v25  ;;  %v4477_v36 = vmul.f32 1.442695, %v4454_v63  ;;  %v4923_v63 = vmul.f32 -1.442695, %v7985_v59 }
 0x444   : > { %v4929_v60 = vmul.f32 -1.442695, %v8028_v7  ;;  %v4925_v59 = vmul.f32 -1.442695, %v8014_v13  ;;  %v4928_v13 = vmul.f32 -1.442695, %v8041_v52 }
 0x445   : > { %5017 = vpow2.f32 %v4475_v1 }
 0x446   : > { %5019 = vpow2.f32 %v4477_v36 }
 0x447   : > { %5021 = vpow2.f32 %v4479_v17 }
 0x448   : > { %5023 = vpow2.f32 %v4481_v58  ;;  %v4926_v58 = vmul.f32 -1.442695, %v8022_v37 }
 0x44b   : > { %v5018_v44 = vpop.eup %5017 }
 0x44c   : > { %v4501_v34 = vsub.f32 1.0, %v5018_v44  ;;  %v8051_v33 = vmul.f32 %v5018_v44, %v4515_v15  ;;  %v8053_v23 = vpop.eup %5019 }
 0x44d   : > { %v8059_v21 = vpop.eup %5021 }
 0x44e   : > { %v4592_v57 = vrot.slane %v4501_v34, 3  ;;  %v8057_v8 = vmul.f32 %v8053_v23, %v8051_v33  ;;  %v8067_v49 = vpop.eup %5023 }
 0x450   : > { %9243 = vst [vmem:[#allocation96_spill] sm:$0xff] %v8057_v8  ;;  %v8061_v24 = vmul.f32 %v4592_v57, %v4541_v62  ;;  %v8065_v6 = vmul.f32 %v8059_v21, %v8057_v8  ;;  %v4927_v62 = vmul.f32 -1.442695, %v8038_v31 }
 0x452   : > { %9244 = vst [vmem:[#allocation56_spill] sm:$0xff] %v8065_v6  ;;  %v4519_v43 = vmul.f32 %v8067_v49, %v8065_v6 }
 0x454   : > { %v4553_v29 = vrot.slane %v4519_v43, 3 }
 0x45a   : > { %v4035_v20 = vpop.f32.mrf.mxu2  ;;  %v4048_v35 = vpop.f32.mrf.mxu3 }
 0x45b   : > { %v4036_v28 = vadd.f32 %v4035_v20, %v7936_v40  ;;  %v8073_v56 = vadd.f32 %v4048_v35, %v7936_v40 }
 0x45d   : > { %v4418_v4 = vmax.f32 %v4036_v28, 0.0  ;;  %v4419_v54 = vmax.f32 %v8073_v56, 0.0  ;;  %v4932_v52 = vmul.f32 -1.442695, %v8073_v56 }
 0x45f   : > { %v4435_v2 = vsub.f32 0.0, %v4418_v4  ;;  %v4436_v41 = vsub.f32 0.0, %v4419_v54 }
 0x461   : > { %v4457_v11 = vmul.f32 %v7953_v61, %v4435_v2  ;;  %v4458_v38 = vmul.f32 %v7953_v61, %v4436_v41 }
 0x462   : > { %v4037_v9 = vpop.f32.mrf.mxu2  ;;  %v4050_v12 = vpop.f32.mrf.mxu3 }
 0x463   : > { %v4483_v47 = vmul.f32 1.442695, %v4457_v11  ;;  %v4485_v15 = vmul.f32 1.442695, %v4458_v38 }
 0x465   : > { %5025 = vpow2.f32 %v4483_v47 }
 0x466   : > { %5027 = vpow2.f32 %v4485_v15 }
 0x467   : > { %5029 = vpow2.f32 %v4921_v18 }
 0x468   : > { %5031 = vpow2.f32 %v4922_v22 }
 0x469   : > { %5033 = vpow2.f32 %v4923_v63 }
 0x46a   : > { %5035 = vpow2.f32 %v4924_v16 }
 0x46b   : > { %v5026_v30 = vpop.eup %5025  ;;  %5037 = vpow2.f32 %v4929_v60 }
 0x46c   : > { %v5028_v45 = vpop.eup %5027  ;;  %v4505_v3 = vsub.f32 1.0, %v5026_v30  ;;  %v4520_v55 = vmul.f32 %v5026_v30, %v4519_v43  ;;  %5039 = vpow2.f32 %v4930_v39  ;;  %v4931_v43 = vmul.f32 -1.442695, %v4036_v28 }
 0x46d   : > { %v4506_v19 = vsub.f32 1.0, %v5028_v45  ;;  %v5030_v36 = vpop.eup %5029  ;;  %5041 = vpow2.f32 %v4925_v59 }
 0x46e   : > { %v4556_v5 = vrot.slane %v4520_v55, 3  ;;  %v4596_v27 = vrot.slane %v4505_v3, 3  ;;  %v8079_v26 = vmul.f32 %v5028_v45, %v4520_v55  ;;  %v5032_v17 = vpop.eup %5031  ;;  %v8096_v34 = vadd.f32 1.0, %v5030_v36 }
 0x46f   : > { %v4597_v25 = vrot.slane %v4506_v19, 3  ;;  %v5034_v44 = vpop.eup %5033  ;;  %v8099_v57 = vadd.f32 1.0, %v5032_v17  ;;  %5043 = vpow2.f32 %v4926_v58 }
 0x470   : > { %v8083_v50 = vmul.f32 %v4596_v27, %v4553_v29  ;;  %v8101_v48 = vadd.f32 1.0, %v5034_v44  ;;  %v5036_v7 = vpop.eup %5035  ;;  %5045 = vrcp.f32 %v8096_v34  ;;  %v4179_v19 = vand.u32 2147483648, %v8096_v34 }
 0x471   : > { %v8085_v10 = vmul.f32 %v4597_v25, %v4556_v5  ;;  %v5038_v32 = vpop.eup %5037  ;;  %5047 = vpow2.f32 %v4927_v62  ;;  %v8107_v31 = vadd.f32 1.0, %v5036_v7  ;;  %v4194_v29 = vand.u32 2147483648, %v8099_v57 }
 0x472   : > { %9245 = vst [vmem:[#allocation52_spill] sm:$0xff] %v8083_v50  ;;  %v8089_v1 = vadd.f32 %v8083_v50, %v8017_v14  ;;  %v5040_v37 = vpop.eup %5039  ;;  %5049 = vrcp.f32 %v8099_v57  ;;  %v8109_v35 = vadd.f32 1.0, %v5038_v32  ;;  %v4209_v16 = vand.u32 2147483648, %v8101_v48 }
 0x473   : > { %9246 = vst [vmem:[#allocation97_spill] sm:$0xff] %v8085_v10  ;;  %5051 = vrcp.f32 %v8101_v48  ;;  %v5042_v20 = vpop.eup %5041  ;;  %v8111_v54 = vadd.f32 1.0, %v5040_v37  ;;  %v4224_v59 = vand.u32 2147483648, %v8107_v31  ;;  %v8159_v58 = vor.u32 1.1754944e-38, %v4179_v19 }
 0x474   : > { %9247 = vst [vmem:[#allocation13_spill] sm:$0xff] %v8089_v1  ;;  %5053 = vpow2.f32 %v4928_v13  ;;  %v8117_v28 = vadd.f32 1.0, %v5042_v20  ;;  %v8161_v44 = vor.u32 1.1754944e-38, %v4194_v29  ;;  %v8178_v20 = vor.u32 1.1754944e-38, %v4209_v16 }
 0x475   : > { %v5044_v4 = vpop.eup %5043  ;;  %5055 = vpow2.f32 %v4931_v43  ;;  %v4314_v19 = vand.u32 2147483648, %v8111_v54  ;;  %v4504_v29 = vsub.f32 1.0, %v8067_v49  ;;  %vm4173_vm4 = vweird.f32 %v8096_v34 }
 0x476   : > { %v8113_v2 = vpop.eup %5045  ;;  %5057 = vrcp.f32 %v8107_v31  ;;  %v8122_v38 = vadd.f32 1.0, %v5044_v4  ;;  %vm4188_vm5 = vweird.f32 %v8099_v57  ;;  %vm4203_vm7 = vweird.f32 %v8101_v48 }
 0x477   : > { %v5048_v41 = vpop.eup %5047  ;;  %5059 = vrcp.f32 %v8109_v35  ;;  %v4169_v56 = vmul.f32 %v8113_v2, %v8096_v34  ;;  %v8222_v42 = vrot.slane %v4504_v29, 3  ;;  %vm4174_vm2 = vweird.f32 %v8113_v2 }
 0x478   : > { %v8119_v11 = vpop.eup %5049  ;;  %5061 = vrcp.f32 %v8111_v54  ;;  %v8127_v12 = vadd.f32 1.0, %v5048_v41  ;;  %vm4218_vm9 = vweird.f32 %v8107_v31  ;;  %vm8294_vm10 = vmor %vm4173_vm4, %vm4174_vm2  ;;  %vm4233_vm1 = vweird.f32 %v8117_v28 }
 0x479   : > { %v8124_v9 = vpop.eup %5051  ;;  %5063 = vpow2.f32 %v4932_v52  ;;  %v4184_v30 = vmul.f32 %v8119_v11, %v8099_v57  ;;  %v4170_v27 = vsub.f32 1.0, %v4169_v56  ;;  %v4299_v52 = vand.u32 2147483648, %v8109_v35  ;;  %9253 = vst [vmem:[#allocation94_spill] sm:$0xff] %v8222_v42 }
 0x47a   : > { %v5054_v47 = vpop.eup %5053  ;;  %5065 = vrcp.f32 %v8117_v28  ;;  %v4199_v3 = vmul.f32 %v8124_v9, %v8101_v48  ;;  %v4269_v1 = vand.u32 2147483648, %v8127_v12  ;;  %vm4189_vm3 = vweird.f32 %v8119_v11 }
 0x47b   : > { %v5056_v15 = vpop.eup %5055  ;;  %5067 = vrcp.f32 %v8122_v38  ;;  %v8139_v55 = vadd.f32 1.0, %v5054_v47  ;;  %v4185_v63 = vsub.f32 1.0, %v4184_v30  ;;  %v8166_v7 = vmul.f32 %v8113_v2, %v4170_v27  ;;  %vm8306_vm11 = vmor %vm4188_vm5, %vm4189_vm3 }
 0x47c   : > { %v8135_v45 = vpop.eup %5057  ;;  %5069 = vrcp.f32 %v8127_v12  ;;  %v8148_v22 = vadd.f32 1.0, %v5056_v15  ;;  %v4200_v36 = vsub.f32 1.0, %v4199_v3  ;;  %v8184_v47 = vor.u32 1.1754944e-38, %v4224_v59 }
 0x47d   : > { %v8141_v18 = vpop.eup %5059  ;;  %v4214_v60 = vmul.f32 %v8135_v45, %v8107_v31  ;;  %5071 = vrcp.f32 %v8139_v55  ;;  %v8176_v43 = vmul.f32 %v8119_v11, %v4185_v63  ;;  %v4503_v3 = vsub.f32 1.0, %v8059_v21 }
 0x47e   : > { %v8146_v5 = vpop.eup %5061  ;;  %v4289_v62 = vmul.f32 %v8141_v18, %v8109_v35  ;;  %5073 = vrcp.f32 %v8148_v22  ;;  %v8182_v41 = vmul.f32 %v8124_v9, %v4200_v36  ;;  %v4239_v63 = vand.u32 2147483648, %v8117_v28 }
 0x47f   : > { %v5064_v25 = vpop.eup %5063  ;;  %v4304_v13 = vmul.f32 %v8146_v5, %v8111_v54  ;;  %v4215_v4 = vsub.f32 1.0, %v4214_v60  ;;  %v8202_v36 = vor.u32 1.1754944e-38, %v4299_v52  ;;  %v4254_v21 = vand.u32 2147483648, %v8122_v38 }
 0x480   : > { %v8153_v39 = vpop.eup %5065  ;;  %v8171_v32 = vadd.f32 1.0, %v5064_v25  ;;  %v4290_v30 = vsub.f32 1.0, %v4289_v62  ;;  %v4502_v59 = vsub.f32 1.0, %v8053_v23  ;;  %v4284_v50 = vand.u32 2147483648, %v8139_v55 }
 0x481   : > { %v8157_v17 = vpop.eup %5067  ;;  %v4229_v56 = vmul.f32 %v8153_v39, %v8117_v28  ;;  %v4305_v25 = vsub.f32 1.0, %v4304_v13  ;;  %v8200_v60 = vmul.f32 %v8135_v45, %v4215_v4  ;;  %9248 = vst [vmem:[#allocation100_spill] sm:$0xff] %v8202_v36  ;;  %v8213_v53 = vrot.slane %v4503_v3, 3 }
 0x482   : > { %v8173_v37 = vpop.eup %5069  ;;  %v4244_v15 = vmul.f32 %v8157_v17, %v8122_v38  ;;  %5075 = vrcp.f32 %v8171_v32  ;;  %v8211_v14 = vmul.f32 %v8141_v18, %v4290_v30  ;;  %v8215_v4 = vor.u32 1.1754944e-38, %v4314_v19 }
 0x483   : > { %v8193_v27 = vpop.eup %5071  ;;  %v4259_v16 = vmul.f32 %v8173_v37, %v8127_v12  ;;  %v4230_v62 = vsub.f32 1.0, %v4229_v56  ;;  %9250 = vst [vmem:[#allocation22_spill] sm:$0xff] %v8213_v53  ;;  %v8220_v23 = vmul.f32 %v8146_v5, %v4305_v25  ;;  %v8224_v56 = vor.u32 1.1754944e-38, %v4239_v63 }
 0x484   : > { %v8206_v49 = vpop.eup %5073  ;;  %v4245_v13 = vsub.f32 1.0, %v4244_v15  ;;  %9249 = vst [vmem:[#allocation102_spill] sm:$0xff] %v8211_v14  ;;  %v4274_v52 = vmul.f32 %v8193_v27, %v8139_v55  ;;  %v8226_v36 = vor.u32 1.1754944e-38, %v4254_v21  ;;  %v4544_v30 = vrot.slane %v8051_v33, 3 }
 0x485   : > { %9251 = vst [vmem:[#allocation101_spill] sm:$0xff] %v8215_v4  ;;  %v4260_v15 = vsub.f32 1.0, %v4259_v16  ;;  %v4593_v14 = vrot.slane %v4502_v59, 3  ;;  %v4319_v3 = vmul.f32 %v8206_v49, %v8148_v22  ;;  %v8234_v53 = vmul.f32 %v8153_v39, %v4230_v62 }
 0x486   : > { %9252 = vst [vmem:[#allocation103_spill] sm:$0xff] %v8220_v23  ;;  %v8237_v25 = vmul.f32 %v8157_v17, %v4245_v13  ;;  %v8239_v29 = vor.u32 1.1754944e-38, %v4269_v1  ;;  %v8241_v63 = vor.u32 1.1754944e-38, %v4284_v50  ;;  %v4275_v16 = vsub.f32 1.0, %v4274_v52 }
 0x487   : > { %v4329_v21 = vand.u32 2147483648, %v8148_v22  ;;  %v4344_v59 = vand.u32 2147483648, %v8171_v32  ;;  %v8249_v62 = vmul.f32 %v8173_v37, %v4260_v15  ;;  %v4320_v52 = vsub.f32 1.0, %v4319_v3 }
 0x488   : > { %v8231_v19 = vpop.eup %5075  ;;  %9254 = vst [vmem:[#allocation98_spill] sm:$0xff] %v8239_v29  ;;  %v8257_v8 = vmul.f32 %v4593_v14, %v4544_v30  ;;  %v8261_v23 = vadd.f32 %v8085_v10, %v8019_v0  ;;  %vm4204_vm6 = vweird.f32 %v8124_v9  ;;  %vm4219_vm8 = vweird.f32 %v8135_v45 }
 0x489   : > { %9255 = vst [vmem:[#allocation91_spill] sm:$0xff] %v8241_v63  ;;  %v4334_v33 = vmul.f32 %v8231_v19, %v8171_v32  ;;  %v8268_v3 = vor.u32 1.1754944e-38, %v4329_v21  ;;  %v8270_v63 = vor.u32 1.1754944e-38, %v4344_v59  ;;  %v8278_v21 = vmul.f32 %v8206_v49, %v4320_v52  ;;  %vm8328_vm12 = vmor %vm4203_vm7, %vm4204_vm6 }
 0x48a   : > { %vm4234_vm14 = vweird.f32 %v8153_v39  ;;  %vm8354_vm0 = vmor %vm4218_vm9, %vm4219_vm8  ;;  %vm4249_vm3 = vweird.f32 %v8157_v17  ;;  %vm4248_vm4 = vweird.f32 %v8122_v38  ;;  %vm4264_vm5 = vweird.f32 %v8173_v37 }
 0x48b   : > { %9256 = vst [vmem:[#allocation95_spill] sm:$0xff] %v8268_v3  ;;  %vm4279_vm6 = vweird.f32 %v8193_v27  ;;  %vm4263_vm7 = vweird.f32 %v8127_v12  ;;  %vm4294_vm8 = vweird.f32 %v8141_v18  ;;  %vm4278_vm9 = vweird.f32 %v8139_v55 }
 0x48c   : > { %9257 = vst [vmem:[#allocation99_spill] sm:$0xff] %v8270_v63 }
 0x48d   : > { %9258 = vst [vmem:[#allocation86_spill] sm:$0xff] %v8278_v21 }
 0x494   : > { %v4074_v4 = vpop.f32.mrf.mxu1 }
 0x495   : > { %v4075_v13 = vadd.f32 %v4074_v4, %v7936_v40  ;;  %v8266_v4 = vmul.f32 %v8193_v27, %v4275_v16 }
 0x497   : > { %v4061_v42 = vpop.f32.mrf.mxu0  ;;  %v4934_v6 = vmul.f32 -1.442695, %v4075_v13 }
 0x498   : > { %v4062_v50 = vadd.f32 %v4061_v42, %v7936_v40  ;;  %v4421_v42 = vmax.f32 %v4075_v13, 0.0 }
 0x499   : > { %v4087_v0 = vpop.f32.mrf.mxu2 }
 0x49a   : > { %v4933_v15 = vmul.f32 -1.442695, %v4062_v50  ;;  %v4420_v1 = vmax.f32 %v4062_v50, 0.0  ;;  %v4438_v10 = vsub.f32 0.0, %v4421_v42  ;;  %v4335_v50 = vsub.f32 1.0, %v4334_v33 }
 0x49b   : > { %v4100_v29 = vpop.f32.mrf.mxu3  ;;  %v4088_v13 = vadd.f32 %v4087_v0, %v7936_v40 }
 0x49c   : > { %5077 = vpow2.f32 %v4933_v15  ;;  %v4437_v30 = vsub.f32 0.0, %v4420_v1  ;;  %v4101_v16 = vadd.f32 %v4100_v29, %v7936_v40  ;;  %v4460_v1 = vmul.f32 %v7953_v61, %v4438_v10  ;;  %v4076_v33 = vpop.f32.mrf.mxu1 }
 0x49d   : > { %5079 = vpow2.f32 %v4934_v6  ;;  %v5160_v15 = vmov 1e+10   ;;  %v4935_v14 = vmul.f32 -1.442695, %v4088_v13  ;;  %v4422_v63 = vmax.f32 %v4088_v13, 0.0 }
 0x49e   : > { %v4459_v59 = vmul.f32 %v7953_v61, %v4437_v30  ;;  %v4444_v42 = vrot.slane %v5160_v15, 6  ;;  %v4423_v3 = vmax.f32 %v4101_v16, 0.0  ;;  %v4172_v6 = vadd.f32 %v8113_v2, %v8166_v7 }
 0x49f   : > { %v4063_v0 = vpop.f32.mrf.mxu0  ;;  %v4489_v29 = vmul.f32 1.442695, %v4460_v1  ;;  %v4936_v52 = vmul.f32 -1.442695, %v4101_v16  ;;  %v4187_v30 = vadd.f32 %v8119_v11, %v8176_v43  ;;  %v8288_v10 = vmul.f32 %v8231_v19, %v4335_v50 }
 0x4a0   : > { %v4487_v40 = vmul.f32 1.442695, %v4459_v59  ;;  %5081 = vpow2.f32 %v4935_v14  ;;  %v4439_v15 = vsub.f32 0.0, %v4422_v63  ;;  %v4440_v13 = vsub.f32 0.0, %v4423_v3 }
 0x4a1   : > { %v4177_v16 = vand.u32 2147483647, %v8096_v34  ;;  %v4192_v43 = vand.u32 2147483647, %v8099_v57  ;;  %v4202_v50 = vadd.f32 %v8124_v9, %v8182_v41  ;;  %v4176_v41 = vsel %vm8294_vm10, %v8113_v2, %v4172_v6  ;;  %v4089_v0 = vpop.f32.mrf.mxu2 }
 0x4a2   : > { %v5078_v21 = vpop.eup %5077  ;;  %5083 = vpow2.f32 %v4487_v40  ;;  %v4461_v59 = vmul.f32 %v7953_v61, %v4439_v15  ;;  %v4462_v34 = vmul.f32 %v4444_v42, %v4440_v13  ;;  %v4191_v57 = vsel %vm8306_vm11, %v8119_v11, %v4187_v30 }
 0x4a3   : > { %v5080_v14 = vpop.eup %5079  ;;  %v8310_v3 = vadd.f32 1.0, %v5078_v21  ;;  %5085 = vpow2.f32 %v4489_v29  ;;  %v4102_v33 = vpop.f32.mrf.mxu3  ;;  %v4207_v61 = vand.u32 2147483647, %v8101_v48  ;;  %vm4178_vm13 = vcmp.eq.f32.partialorder %v4177_v16, 8.507059e+37 }
 0x4a4   : > { %v8313_v1 = vadd.f32 1.0, %v5080_v14  ;;  %5087 = vpow2.f32 %v4936_v52  ;;  %v4491_v40 = vmul.f32 1.442695, %v4461_v59  ;;  %v4493_v2 = vmul.f32 1.442695, %v4462_v34 }
 0x4a5   : > { %5089 = vrcp.f32 %v8310_v3  ;;  %v4359_v21 = vand.u32 2147483648, %v8310_v3  ;;  %v8335_v11 = vadd.f32 %v8135_v45, %v8200_v60  ;;  %v8339_v29 = vsel %vm4178_vm13, %v8159_v58, %v4176_v41 }
 0x4a6   : > { %5091 = vrcp.f32 %v8313_v1  ;;  %v5082_v6 = vpop.eup %5081  ;;  %vm4193_vm15 = vcmp.eq.f32.partialorder %v4192_v43, 8.507059e+37  ;;  %v4206_v48 = vsel %vm8328_vm12, %v8124_v9, %v4202_v50  ;;  %v4374_v30 = vand.u32 2147483648, %v8313_v1 }
 0x4a7   : > { %5093 = vpow2.f32 %v4491_v40  ;;  %v8345_v15 = vadd.f32 1.0, %v5082_v6  ;;  %v8348_v60 = vsel %vm4193_vm15, %v8161_v44, %v4191_v57  ;;  %v8359_v9 = vor.u32 1.1754944e-38, %v4359_v21  ;;  %vm8430_vm15 = vmor %vm4233_vm1, %vm4234_vm14 }
 0x4a8   : > { %v5084_v52 = vpop.eup %5083  ;;  %5095 = vpow2.f32 %v4493_v2  ;;  %vm4208_vm2 = vcmp.eq.f32.partialorder %v4207_v61, 8.507059e+37  ;;  %v4221_v14 = vsel %vm8354_vm0, %v8135_v45, %v8335_v11  ;;  %v8381_v33 = vor.u32 1.1754944e-38, %v4374_v30 }
 0x4a9   : > { %v5086_v13 = vpop.eup %5085  ;;  %v4507_v7 = vsub.f32 1.0, %v5084_v52  ;;  %v4522_v16 = vmul.f32 %v5084_v52, %v8079_v26  ;;  %5097 = vrcp.f32 %v8345_v15  ;;  %v8365_v50 = vsel %vm4208_vm2, %v8178_v20, %v4206_v48 }
 0x4aa   : > { %v5088_v43 = vpop.eup %5087  ;;  %v4508_v44 = vsub.f32 1.0, %v5086_v13  ;;  %v4222_v45 = vand.u32 2147483647, %v8107_v31  ;;  %v9267_v61 = vrot.slane %v8079_v26, 3  ;;  %v4389_v6 = vand.u32 2147483648, %v8345_v15 }
 0x4ab   : > { %v8371_v63 = vpop.eup %5089  ;;  %v4562_v59 = vrot.slane %v4522_v16, 3  ;;  %v4598_v34 = vrot.slane %v4507_v7, 3  ;;  %v4523_v41 = vmul.f32 %v5086_v13, %v4522_v16  ;;  %v8373_v57 = vadd.f32 1.0, %v5088_v43 }
 0x4ac   : > { %v8375_v0 = vpop.eup %5091  ;;  %v4349_v20 = vmul.f32 %v8371_v63, %v8310_v3  ;;  %v4599_v21 = vrot.slane %v4508_v44, 3  ;;  %v4232_v7 = vadd.f32 %v8153_v39, %v8234_v53  ;;  %vm4309_vm10 = vweird.f32 %v8146_v5 }
 0x4ad   : > { %v5094_v40 = vpop.eup %5093  ;;  %v8387_v42 = vmul.f32 %v4598_v34, %v9267_v61  ;;  %v4364_v2 = vmul.f32 %v8375_v0, %v8313_v1  ;;  %v4565_v11 = vrot.slane %v4523_v41, 3  ;;  %5099 = vrcp.f32 %v8373_v57 }
 0x4ae   : > { %v5096_v48 = vpop.eup %5095  ;;  %v4350_v52 = vsub.f32 1.0, %v4349_v20  ;;  %v8393_v30 = vmul.f32 %v4599_v21, %v4562_v59  ;;  %v4509_v31 = vsub.f32 1.0, %v5094_v40  ;;  %v4404_v58 = vand.u32 2147483648, %v8373_v57 }
 0x4af   : > { %v8400_v26 = vadd.f32 %v8387_v42, %v8034_v46  ;;  %v4365_v13 = vsub.f32 1.0, %v4364_v2  ;;  %v8405_v16 = vpop.eup %5097  ;;  %v4510_v59 = vsub.f32 1.0, %v5096_v48  ;;  %v4237_v34 = vand.u32 2147483647, %v8117_v28 }
 0x4b0   : > { %v8410_v43 = vadd.f32 %v8393_v30, %v8044_v51  ;;  %v4600_v44 = vrot.slane %v4509_v31, 3  ;;  %vm4293_vm11 = vweird.f32 %v8109_v35  ;;  %v8416_v20 = vmul.f32 %v8371_v63, %v4350_v52 }
 0x4b1   : > { %9268 = vst [vmem:[#allocation87_spill] sm:$0xff] %v8400_v26  ;;  %v8419_v53 = vmul.f32 %v8375_v0, %v4365_v13  ;;  %v4379_v21 = vmul.f32 %v8405_v16, %v8345_v15  ;;  %v8423_v61 = vor.u32 1.1754944e-38, %v4389_v6  ;;  %vm4308_vm13 = vweird.f32 %v8111_v54 }
 0x4b2   : > { %9269 = vst [vmem:[#allocation60_spill] sm:$0xff] %v8410_v43  ;;  %v8435_v48 = vmul.f32 %v4600_v44, %v4565_v11  ;;  %v8437_v52 = vor.u32 1.1754944e-38, %v4404_v58  ;;  %v4524_v31 = vmul.f32 %v5094_v40, %v4523_v41  ;;  %vm4223_vm2 = vcmp.eq.f32.partialorder %v4222_v45, 8.507059e+37 }
 0x4b3   : > { %vm4323_vm12 = vweird.f32 %v8148_v22  ;;  %v4380_v6 = vsub.f32 1.0, %v4379_v21  ;;  %v4601_v13 = vrot.slane %v4510_v59, 3  ;;  %v8441_v43 = vsel %vm4223_vm2, %v8184_v47, %v4221_v14  ;;  %v8446_v26 = vpop.eup %5099 }
 0x4b4   : > { %v4236_v28 = vsel %vm8430_vm15, %v8153_v39, %v4232_v7  ;;  %v8452_v41 = vadd.f32 %v8435_v48, %v8061_v24  ;;  %v4568_v45 = vrot.slane %v4524_v31, 3  ;;  %vm4238_vm0 = vcmp.eq.f32.partialorder %v4237_v34, 8.507059e+37  ;;  %vm8460_vm15 = vmor %vm4248_vm4, %vm4249_vm3  ;;  %v9283_v39 = vld [vmem:[#allocation103_spill] sm:$0xff] }
 0x4b5   : > { %v4247_v47 = vadd.f32 %v8157_v17, %v8237_v25  ;;  %vm4369_vm2 = vweird.f32 %v8375_v0  ;;  %v4381_v14 = vmul.f32 %v8405_v16, %v4380_v6  ;;  %v4394_v40 = vmul.f32 %v8446_v26, %v8373_v57  ;;  %vm8486_vm3 = vmor %vm4263_vm7, %vm4264_vm5 }
 0x4b6   : > { %v8469_v11 = vsel %vm4238_vm0, %v8224_v56, %v4236_v28  ;;  %v4252_v25 = vand.u32 2147483647, %v8122_v38  ;;  %vm4353_vm1 = vweird.f32 %v8310_v3  ;;  %v8474_v58 = vmul.f32 %v4601_v13, %v4568_v45  ;;  %v9279_v13 = vld [vmem:[#allocation91_spill] sm:$0xff]  ;;  %v9280_v45 = vld [vmem:[#allocation102_spill] sm:$0xff] }
 0x4b7   : > { %v4251_v7 = vsel %vm8460_vm15, %v8157_v17, %v4247_v47  ;;  %v4262_v44 = vadd.f32 %v8173_v37, %v8249_v62  ;;  %v4267_v59 = vand.u32 2147483647, %v8127_v12  ;;  %vm4368_vm4 = vweird.f32 %v8313_v1  ;;  %vm4280_vm15 = vmor %vm4278_vm9, %vm4279_vm6 }
 0x4b8   : > { %v4395_v56 = vsub.f32 1.0, %v4394_v40  ;;  %vm4253_vm14 = vcmp.eq.f32.partialorder %v4252_v25, 8.507059e+37  ;;  %v4277_v17 = vadd.f32 %v8193_v27, %v8266_v4  ;;  %v4282_v62 = vand.u32 2147483647, %v8139_v55  ;;  %vm8516_vm9 = vmor %vm4293_vm11, %vm4294_vm8 }
 0x4b9   : > { %vm4383_vm5 = vweird.f32 %v8345_v15  ;;  %v4648_v12 = vperm.slane %v8474_v58, 0  ;;  %v4687_v34 = vadd.f32 %v8474_v58, %v8257_v8  ;;  %v8504_v21 = vsel %vm4253_vm14, %v8226_v36, %v4251_v7  ;;  %vm8535_vm8 = vmor %vm4308_vm13, %vm4309_vm10  ;;  %v9284_v7 = vld [vmem:[#allocation86_spill] sm:$0xff] }
 0x4ba   : > { %v4266_v4 = vsel %vm8486_vm3, %v8173_v37, %v4262_v44  ;;  %v4396_v2 = vmul.f32 %v8446_v26, %v4395_v56  ;;  %vm4398_vm7 = vweird.f32 %v8373_v57  ;;  %vm4268_vm0 = vcmp.eq.f32.partialorder %v4267_v59, 8.507059e+37  ;;  %v9278_v37 = vld [vmem:[#allocation98_spill] sm:$0xff] }
 0x4bb   : > { %v4281_v55 = vsel %vm4280_vm15, %v8193_v27, %v4277_v17  ;;  %vm4283_vm6 = vcmp.eq.f32.partialorder %v4282_v62, 8.507059e+37  ;;  %v8521_v36 = vadd.f32 %v4687_v34, %v8261_v23  ;;  %v8524_v6 = vsel %vm4268_vm0, %v9278_v37, %v4266_v4  ;;  %v9293_v34 = vld [vmem:[#allocation101_spill] sm:$0xff] }
 0x4bc   : > { %v8527_v28 = vsel %vm4283_vm6, %v9279_v13, %v4281_v55  ;;  %v4292_v27 = vadd.f32 %v8141_v18, %v9280_v45  ;;  %v4297_v23 = vand.u32 2147483647, %v8109_v35  ;;  %v4307_v40 = vadd.f32 %v8146_v5, %v9283_v39  ;;  %v9297_v55 = vld [vmem:[#allocation95_spill] sm:$0xff] }
 0x4bd   : > { %v4312_v25 = vand.u32 2147483647, %v8111_v54  ;;  %v4322_v44 = vadd.f32 %v8206_v49, %v9284_v7  ;;  %vm9285_vm11 = vweird.f32 %v8206_v49  ;;  %v4327_v38 = vand.u32 2147483647, %v8148_v22  ;;  %v9300_v13 = vld [vmem:[#allocation99_spill] sm:$0xff] }
 0x4be   : > { %vm8549_vm14 = vmor %vm4323_vm12, %vm9285_vm11  ;;  %v4296_v35 = vsel %vm8516_vm9, %v8141_v18, %v4292_v27  ;;  %v4337_v54 = vadd.f32 %v8231_v19, %v8288_v10  ;;  %v4342_v56 = vand.u32 2147483647, %v8171_v32  ;;  %vm9288_vm10 = vweird.f32 %v8231_v19  ;;  %v9292_v10 = vld [vmem:[#allocation100_spill] sm:$0xff]  ;;  %v9305_v7 = vld [vmem:[#allocation71_spill] sm:$0xff] }
 0x4bf   : > { %vm9289_vm13 = vweird.f32 %v8171_v32  ;;  %vm4298_vm12 = vcmp.eq.f32.partialorder %v4297_v23, 8.507059e+37  ;;  %v4311_v18 = vsel %vm8535_vm8, %v8146_v5, %v4307_v40  ;;  %vm4313_vm0 = vcmp.eq.f32.partialorder %v4312_v25, 8.507059e+37  ;;  %vm8595_vm11 = vmor %vm4368_vm4, %vm4369_vm2 }
 0x4c0   : > { %vm8564_vm3 = vmor %vm9289_vm13, %vm9288_vm10  ;;  %v4326_v22 = vsel %vm8549_vm14, %v8206_v49, %v4322_v44  ;;  %v4301_v62 = vsel %vm4298_vm12, %v9292_v10, %v4296_v35  ;;  %v4316_v4 = vsel %vm4313_vm0, %v9293_v34, %v4311_v18  ;;  %vm4328_vm15 = vcmp.eq.f32.partialorder %v4327_v38, 8.507059e+37  ;;  %v9306_v44 = vld [vmem:[#allocation96_spill] sm:$0xff]  ;;  %v9308_v35 = vld [vmem:[#allocation22_spill] sm:$0xff] }
 0x4c1   : > { %v4341_v32 = vsel %vm8564_vm3, %v8231_v19, %v4337_v54  ;;  %vm9294_vm6 = vweird.f32 %v8371_v63  ;;  %v4331_v31 = vsel %vm4328_vm15, %v9297_v55, %v4326_v22  ;;  %vm4343_vm8 = vcmp.eq.f32.partialorder %v4342_v56, 8.507059e+37  ;;  %v9309_v38 = vld [vmem:[#allocation56_spill] sm:$0xff]  ;;  %v9313_v18 = vld [vmem:[#allocation90_spill] sm:$0xff] }
 0x4c2   : > { %vm8583_vm9 = vmor %vm4353_vm1, %vm9294_vm6  ;;  %v4352_v49 = vadd.f32 %v8371_v63, %v8416_v20  ;;  %v4357_v37 = vand.u32 2147483647, %v8310_v3  ;;  %v4346_v45 = vsel %vm4343_vm8, %v9300_v13, %v4341_v32  ;;  %v4367_v27 = vadd.f32 %v8375_v0, %v8419_v53  ;;  %v9315_v13 = vld [vmem:[#allocation52_spill] sm:$0xff] }
 0x4c3   : > { %v4372_v47 = vand.u32 2147483647, %v8313_v1  ;;  %v4382_v23 = vadd.f32 %v8405_v16, %v4381_v14  ;;  %vm9301_vm1 = vweird.f32 %v8405_v16  ;;  %v4387_v20 = vand.u32 2147483647, %v8345_v15 }
 0x4c4   : > { %vm4385_vm14 = vmor %vm4383_vm5, %vm9301_vm1  ;;  %v4356_v3 = vsel %vm8583_vm9, %v8371_v63, %v4352_v49  ;;  %vm4358_vm2 = vcmp.eq.f32.partialorder %v4357_v37, 8.507059e+37  ;;  %v4397_v39 = vadd.f32 %v8446_v26, %v4396_v2  ;;  %vm9302_vm4 = vweird.f32 %v8446_v26 }
 0x4c5   : > { %vm8617_vm10 = vmor %vm4398_vm7, %vm9302_vm4  ;;  %v4361_v53 = vsel %vm4358_vm2, %v8359_v9, %v4356_v3  ;;  %v4371_v14 = vsel %vm8595_vm11, %v8375_v0, %v4367_v27  ;;  %vm4373_vm5 = vcmp.eq.f32.partialorder %v4372_v47, 8.507059e+37  ;;  %v4386_v63 = vsel %vm4385_vm14, %v8405_v16, %v4382_v23  ;;  %v9311_v16 = vld [vmem:[#allocation94_spill] sm:$0xff]  ;;  %v9316_v47 = vld [vmem:[#allocation97_spill] sm:$0xff] }
 0x4c6   : > { %v4376_v15 = vsel %vm4373_vm5, %v8381_v33, %v4371_v14  ;;  %vm4388_vm13 = vcmp.eq.f32.partialorder %v4387_v20, 8.507059e+37  ;;  %v4401_v2 = vsel %vm8617_vm10, %v8446_v26, %v4397_v39  ;;  %v4402_v40 = vand.u32 2147483647, %v8373_v57  ;;  %v9312_v33 = vld [vmem:[#allocation6_spill] sm:$0xff]  ;;  %v9314_v26 = vld [vmem:[#allocation11_spill] sm:$0xff] }
 0x4c7   : > { %v4391_v25 = vsel %vm4388_vm13, %v8423_v61, %v4386_v63  ;;  %v4495_v9 = vsub.f32 1.0, %v9305_v7  ;;  %v9307_v59 = vrot.slane %v9306_v44, 3  ;;  %v9310_v54 = vrot.slane %v9309_v38, 3 }
 0x4c8   : > { %vm4403_vm7 = vcmp.eq.f32.partialorder %v4402_v40, 8.507059e+37  ;;  %v4634_v17 = vperm.slane %v9312_v33, 0  ;;  %v4635_v22 = vperm.slane %v9313_v18, 0  ;;  %v4636_v10 = vperm.slane %v9314_v26, 0 }
 0x4c9   : > { %v4625_v0 = vmul.f32 %v9308_v35, %v9307_v59  ;;  %v4626_v56 = vmul.f32 %v9311_v16, %v9310_v54  ;;  %v4406_v57 = vsel %vm4403_vm7, %v8437_v52, %v4401_v2  ;;  %v4586_v61 = vrot.slane %v4495_v9, 3  ;;  %v9319_v35 = vld [vmem:[#allocation60_spill] sm:$0xff] }
 0x4ca   : > { %v4637_v34 = vperm.slane %v8034_v46, 0  ;;  %v4638_v32 = vperm.slane %v8044_v51, 0  ;;  %v4639_v5 = vperm.slane %v8061_v24, 0  ;;  %v4640_v55 = vperm.slane %v8257_v8, 0 }
 0x4cb   : > { %v4641_v49 = vperm.slane %v4625_v0, 0  ;;  %v4642_v37 = vperm.slane %v4626_v56, 0  ;;  %v4633_v19 = vperm.slane %v4586_v61, 0  ;;  %v4643_v27 = vperm.slane %v9315_v13, 0 }
 0x4cc   : > { %v4644_v23 = vperm.slane %v9316_v47, 0  ;;  %v4645_v3 = vperm.slane %v8387_v42, 0  ;;  %v4646_v52 = vperm.slane %v8393_v30, 0  ;;  %v4647_v20 = vperm.slane %v8435_v48, 0 }
 0x4cd   : > { %v4650_v46 = vmul.f32 %v4634_v17, %v8348_v60  ;;  %v4651_v51 = vmul.f32 %v4635_v22, %v8365_v50  ;;  %v4649_v24 = vmul.f32 %v4633_v19, %v8339_v29  ;;  %v4652_v8 = vmul.f32 %v4636_v10, %v8441_v43  ;;  %v5118_v17 = vld [vmem:[%s5410_s14] sm:$0xff] }
 0x4ce   : > { %v4653_v39 = vmul.f32 %v4637_v34, %v8469_v11  ;;  %v4654_v1 = vmul.f32 %v4638_v32, %v8504_v21  ;;  %v4655_v14 = vmul.f32 %v4639_v5, %v8524_v6  ;;  %v4656_v42 = vmul.f32 %v4640_v55, %v8527_v28 }
 0x4cf   : > { %v4657_v63 = vmul.f32 %v4641_v49, %v4301_v62  ;;  %v4658_v30 = vmul.f32 %v4642_v37, %v4316_v4  ;;  %v4659_v2 = vmul.f32 %v4643_v27, %v4331_v31  ;;  %v4660_v48 = vmul.f32 %v4644_v23, %v4346_v45 }
 0x4d0   : > { %v4661_v40 = vmul.f32 %v4645_v3, %v4361_v53  ;;  %v4662_v60 = vmul.f32 %v4646_v52, %v4376_v15  ;;  %v4663_v7 = vmul.f32 %v4647_v20, %v4391_v25  ;;  %v4664_v29 = vmul.f32 %v4648_v12, %v4406_v57  ;;  %v9317_v15 = vld [vmem:[#allocation13_spill] sm:$0xff]  ;;  %v9318_v12 = vld [vmem:[#allocation87_spill] sm:$0xff] }
 0x4d1   : > { %v4665_v50 = vadd.f32 %v4657_v63, %v4649_v24  ;;  %v4666_v43 = vadd.f32 %v4658_v30, %v4650_v46  ;;  %v4667_v9 = vadd.f32 %v4659_v2, %v4651_v51  ;;  %v4668_v11 = vadd.f32 %v4660_v48, %v4652_v8 }
 0x4d2   : > { %v4669_v21 = vadd.f32 %v4661_v40, %v4653_v39  ;;  %v4670_v44 = vadd.f32 %v4662_v60, %v4654_v1  ;;  %v4671_v6 = vadd.f32 %v4663_v7, %v4655_v14  ;;  %v4672_v59 = vadd.f32 %v4664_v29, %v4656_v42 }
 0x4d3   : > { %v4680_v4 = vadd.f32 %v4625_v0, %v4586_v61  ;;  %v4681_v31 = vadd.f32 %v4626_v56, %v9312_v33  ;;  %v4690_v58 = vadd.f32 %v8452_v41, %v9317_v15  ;;  %v4695_v18 = vrot.slane %v5118_v17, 2 }
 0x4d4   : > { %v4673_v28 = vadd.f32 %v4669_v21, %v4665_v50  ;;  %v4674_v62 = vadd.f32 %v4670_v44, %v4666_v43  ;;  %v4675_v45 = vadd.f32 %v4671_v6, %v4667_v9  ;;  %v4676_v53 = vadd.f32 %v4672_v59, %v4668_v11 }
 0x4d5   : > { %v4688_v25 = vadd.f32 %v9318_v12, %v4680_v4  ;;  %v4689_v38 = vadd.f32 %v9319_v35, %v4681_v31  ;;  %vm4699_vm3 = vcmask 1042432   ;;  %v4718_v37 = vsub.f32 1.0, %v5118_v17 }
 0x4d6   : > { %v4677_v54 = vadd.f32 %v4675_v45, %v4673_v28  ;;  %v4678_v16 = vadd.f32 %v4676_v53, %v4674_v62  ;;  %vm4731_vm12 = vcmask 1040384   ;;  %v5161_v60 = vmov 0.0  }
 0x4d7   : > { %v4692_v22 = vadd.f32 %v4690_v58, %v4688_v25  ;;  %v4693_v26 = vadd.f32 %v8521_v36, %v4689_v38  ;;  %4754 = vst [vmem:[%s380_s11] sm:$0x1] %v5161_v60  ;;  %v4742_v7 = vlaneseq }
 0x4d8   : > { %v4679_v10 = vadd.f32 %v4678_v16, %v4677_v54 }
 0x4d9   : > { %v4694_v0 = vadd.f32 %v4693_v26, %v4692_v22  ;;  %v4743_v29 = vand.u32 127, %v4742_v7 }
 0x4da   : > { %v4697_v57 = vsub.f32 %v4679_v10, %v4695_v18 }
 0x4db   : > { %v4710_v56 = vmax.f32 %v4694_v0, 1e-07  ;;  %vm4745_vm0 = vcmp.eq.s32.totalorder %v4743_v29, 1  ;;  %vm4744_vm15 = vcmp.eq.s32.totalorder %v4743_v29, 0 }
 0x4dc   : > { %v4698_v33 = vmul.f32 %v4697_v57, %v4697_v57 }
 0x4dd   : > { %v4711_v61 = vmin.f32 %v4710_v56, 0.9999999 }
 0x4de   : > { %v4700_v34 = vsel %vm4699_vm3, %v4698_v33, 0.0  ;;  %v4755_v43 = vld [vmem:[%s380_s11] sm:$0x1] }
 0x4df   : > { %4701 = vadd.xlane.f32.xlu0 %v4700_v34  ;;  %5101 = vlog2.f32 %v4711_v61  ;;  %v4719_v41 = vsub.f32 1.0, %v4711_v61 }
 0x4e1   : > { %5103 = vlog2.f32 %v4719_v41 }
 0x4e5   : > { %v5102_v32 = vpop.eup %5101 }
 0x4e6   : > { %v4713_v5 = vmul.f32 0.6931472, %v5102_v32 }
 0x4e7   : > { %v5104_v55 = vpop.eup %5103 }
 0x4e8   : > { %v4715_v49 = vrot.slane %v4713_v5, 3  ;;  %v4721_v19 = vmul.f32 0.6931472, %v5104_v55 }
 0x4ea   : > { %v4723_v13 = vrot.slane %v4721_v19, 3  ;;  %v4717_v36 = vmul.f32 %v5118_v17, %v4715_v49 }
 0x4ec   : > { %v4725_v27 = vmul.f32 %v4723_v13, %v4718_v37 }
 0x4ee   : > { %v4726_v47 = vadd.f32 %v4725_v27, %v4717_v36 }
 0x4f0   : > { %v4727_v23 = vsub.f32 0.0, %v4726_v47 }
 0x4f2   : > { %v4729_v3 = vrot.slane %v4727_v23, 5 }
 0x4f4   : > { %v4732_v52 = vsel %vm4731_vm12, %v4729_v3, 0.0 }
 0x4f5   : > { %4733 = vadd.xlane.f32.xlu1 %v4732_v52 }
 0x552   : > { %v4702_v20 = vpop.xlane.xlu0 %4701 }
 0x553   : > { %v4703_v46 = vrot.slane %v4702_v20, 4 }
 0x555   : > { %v4704_v51 = vadd.f32 %v4703_v46, %v4702_v20 }
 0x557   : > { %v4705_v24 = vrot.slane %v4704_v51, 2 }
 0x559   : > { %v4706_v8 = vadd.f32 %v4705_v24, %v4704_v51 }
 0x55b   : > { %v4707_v39 = vrot.slane %v4706_v8, 1 }
 0x55d   : > { %v4708_v1 = vadd.f32 %v4707_v39, %v4706_v8 }
 0x55f   : > { %4955 = vpush %v4708_v1 }
 0x568   : > { %v4734_v14 = vpop.xlane.xlu1 %4733 }
 0x569   : > { %v4735_v42 = vrot.slane %v4734_v14, 4 }
 0x56b   : > { %v4736_v63 = vadd.f32 %v4735_v42, %v4734_v14 }
 0x56d   : > { %v4737_v30 = vrot.slane %v4736_v63, 2 }
 0x56f   : > { %v4738_v2 = vadd.f32 %v4737_v30, %v4736_v63 }
 0x571   : > { %v4739_v48 = vrot.slane %v4738_v2, 1 }
 0x573   : > { %v4740_v40 = vadd.f32 %v4739_v48, %v4738_v2 }
 0x575   : > { %4957 = vpush %v4740_v40 }
 0x590   : > { %s4956_s12 = spop %4955 }
 0x591   : > { %v4748_v9 = vstv %s4956_s12 }
 0x5a6   : > { %s4958_s27 = spop %4957 }
 0x5a7   : > { %v4746_v50 = vstv %s4958_s27 }
 0x5a8   : > { %v4747_v11 = vsel %vm4745_vm0, %v4746_v50, 0.0 }
 0x5a9   : > { %v4749_v21 = vsel %vm4744_vm15, %v4748_v9, %v4747_v11 }
 0x5aa   : > { %v4756_v44 = vadd.f32 %v4755_v43, %v4749_v21 }
 0x5ac   : > { %4757 = vst [vmem:[%s380_s11] sm:$0x1] %v4756_v44 }
 0x5ad PF: > { %s18_s9 = sadd.s32 1, %s5157_s9   ;;  %s9320_s27 = smov %s5145_s28 }
 0x5ae   : > { %p15_p10 = scmp.ge.s32.totalorder %s18_s9, 4   ;;  %s9321_s28 = smov %s5242_s13 }
 0x5af   : > { %s9322_s29 = smov %s5153_s30  ;;  %s9323_s30 = smov %s9325_s10 }
 0x5b0   :  { %17 = sbr.rel (!%p15_p10) target bundleno = 3 (0x3), region = 132 }

</bundles_post_ra>
